<compile_context>
chip_gen: v6e
topology: v6e:2x2x1
jax: 0.10.0
libtpu: 0.0.40
codegen_flags: <defaults>
</compile_context>

<pallas_src>
import functools
import math

import jax
import jax.numpy as jnp
from jax.experimental import pallas as pl
from jax.experimental.pallas import tpu as pltpu

# -----------------------------------------------------------------------------
# Hyper-parameters (module defaults shrunk for the small demo)
# -----------------------------------------------------------------------------
BATCH = 2
IN_CHANNELS = 2
IMG_SIZE = 16                         # TODO(synk): module default 32 (shrunk)
PATCH_SIZE = 4
SQRT_PATCHES = IMG_SIZE // PATCH_SIZE          # 4
NUM_PATCHES = SQRT_PATCHES ** 2                # 16
EMBED_DIM = 128
NUM_HEADS = 16                        # module default (head_dim = 8)
NUM_LAYERS = 2                        # TODO(synk): module default 3 (shrunk)
DIM_FF = 256                          # TODO(synk): torch default 2048 (shrunk)

INNER_IMG = PATCH_SIZE                # inner encoder sees 4x4 crops
INNER_PATCH = 2
INNER_SQRT = INNER_IMG // INNER_PATCH          # 2
INNER_NUM_PATCHES = INNER_SQRT ** 2            # 4

LN_EPS = 1e-5

_TOWER_KEYS = ('wqkv', 'bqkv', 'wo', 'bo', 'ln1w', 'ln1b',
               'w1', 'b1', 'w2', 'b2', 'ln2w', 'ln2b')
_BIG_KEYS = ('wqkv', 'wo', 'w1', 'w2')          # HBM-resident, DMA'd per layer
_SMALL_KEYS = ('bqkv', 'bo', 'ln1w', 'ln1b', 'b1', 'b2', 'ln2w', 'ln2b')


# -----------------------------------------------------------------------------
# Shared math helpers (usable both inside the kernel and in the JAX reference)
# -----------------------------------------------------------------------------
def _bf16_dot(x, w):
    """MXU matmul with bf16 operands and f32 accumulation."""
    return jnp.dot(x.astype(jnp.bfloat16), w.astype(jnp.bfloat16),
                   preferred_element_type=jnp.float32)


def _ln(v, w, b):
    mu = jnp.mean(v, axis=-1, keepdims=True)
    var = jnp.mean(jnp.square(v - mu), axis=-1, keepdims=True)
    return (v - mu) * jax.lax.rsqrt(var + LN_EPS) * w + b


def _sigmoid(x):
    # exact logistic via tanh (single EUP op, numerically stable for any x)
    return 0.5 * (jnp.tanh(0.5 * x) + 1.0)


# -----------------------------------------------------------------------------
# In-kernel post-norm TransformerEncoderLayer
#   x2:   (seq * nb, D) f32, rows seq-major; attention is over `seq` positions.
#   hsum: (D, D) bf16 block matrix -> per-head score sum broadcast to all
#         features of that head (scale 1/sqrt(head_dim) folded in).
# -----------------------------------------------------------------------------
def _encoder_layer(x2, seq, hsum, wqkv, wo, w1, w2,
                   bqkv, bo, ln1w, ln1b, b1, b2, ln2w, ln2b):
    M, D = x2.shape
    nb = M // seq

    # fused QKV projection: one (M, D) @ (D, 3D) matmul; hold q/k/v in bf16
    qkv = (_bf16_dot(x2, wqkv) + bqkv).astype(jnp.bfloat16)       # (M, 3D)
    q = [qkv[i * nb:(i + 1) * nb, 0 * D:1 * D] for i in range(seq)]
    k = [qkv[i * nb:(i + 1) * nb, 1 * D:2 * D] for i in range(seq)]
    v = [qkv[i * nb:(i + 1) * nb, 2 * D:3 * D] for i in range(seq)]

    if seq == 2:
        # softmax over 2 keys == sigmoid of the score difference; only the
        # differences go through the (batched, bf16) block-diagonal matmul.
        kd = k[0] - k[1]                                          # bf16
        stack = jnp.concatenate([q[0] * kd, q[1] * kd], axis=0)   # (2*nb, D)
        diff = jnp.dot(stack, hsum, preferred_element_type=jnp.float32)
        p0 = _sigmoid(diff[0:nb, :])        # attn weight of key 0 for query 0
        p1 = _sigmoid(-diff[nb:2 * nb, :])  # attn weight of key 1 for query 1
        o0 = p0 * v[0] + (1.0 - p0) * v[1]
        o1 = (1.0 - p1) * v[0] + p1 * v[1]
        outs = [o0, o1]
    else:
        # general path: batch all seq^2 score matmuls into one MXU push
        prods = [q[i] * k[j] for i in range(seq) for j in range(seq)]
        sb_all = jnp.dot(jnp.concatenate(prods, axis=0), hsum,
                         preferred_element_type=jnp.float32)      # (s*s*nb, D)
        outs = []
        for i in range(seq):
            sb = [sb_all[(i * seq + j) * nb:(i * seq + j + 1) * nb, :]
                  for j in range(seq)]
            m = sb[0]
            for j in range(1, seq):
                m = jnp.maximum(m, sb[j])
            e = [jnp.exp(s - m) for s in sb]
            den = e[0]
            for j in range(1, seq):
                den = den + e[j]
            inv = pl.reciprocal(den, approx=True)
            o = (e[0] * inv) * v[0]
            for j in range(1, seq):
                o = o + (e[j] * inv) * v[j]
            outs.append(o)

    attn = jnp.concatenate(outs, axis=0)                          # (M, D) f32
    attn = _bf16_dot(attn, wo) + bo
    x2 = _ln(x2 + attn, ln1w, ln1b)

    h = jnp.maximum(_bf16_dot(x2, w1) + b1, 0.0).astype(jnp.bfloat16)  # ReLU
    h = jnp.dot(h, w2.astype(jnp.bfloat16), preferred_element_type=jnp.float32)
    h = h + b2
    return _ln(x2 + h, ln2w, ln2b)


# -----------------------------------------------------------------------------
# The single fused forward kernel
# -----------------------------------------------------------------------------
def _fused_kernel(B, N, Ni, L,
                  patches_ref, ipat_ref, posf_ref, iposf_ref, hsum_ref,
                  pw_ref, ipw_ref, ihw_ref, ihb_ref, hw_ref, hb_ref,
                  bqkv_ref, bo_ref, ln1w_ref, ln1b_ref,
                  b1_ref, b2_ref, ln2w_ref, ln2b_ref,
                  wqkv_hbm, wo_hbm, w1_hbm, w2_hbm,
                  out_ref, nn_ref,
                  wqkv_s, wo_s, w1_s, w2_s, sems):
    D = pw_ref.shape[-1]
    L2 = 2 * L                                    # inner layers then outer layers
    hbm = (wqkv_hbm, wo_hbm, w1_hbm, w2_hbm)
    scr = (wqkv_s, wo_s, w1_s, w2_s)

    def _wcopy(kind, s):
        return pltpu.make_async_copy(hbm[kind].at[s], scr[kind].at[s],
                                     sems.at[kind, s])

    # Kick off all per-layer weight DMAs up front (layer-major order) so they
    # stream HBM->VMEM behind the patch-embedding / earlier-layer compute.
    for s in range(L2):
        for kind in range(4):
            _wcopy(kind, s).start()

    hsum = hsum_ref[...]                          # (D, D) bf16, scale folded in

    # ---- outer + inner patch embeddings (conv biases folded into pos tables) -
    emb = _bf16_dot(patches_ref[...], pw_ref[...]) + posf_ref[...]    # (B*N, D)
    x_in = _bf16_dot(ipat_ref[...], ipw_ref[...]) + iposf_ref[...]    # (B*Ni*N, D)

    # TODO(synk): nn.Dropout (p=0.1) layers are identity here (inference mode).

    def run_layer(x, s):
        for kind in range(4):                     # wait only for this layer
            _wcopy(kind, s).wait()
        return _encoder_layer(
            x, B, hsum,
            wqkv_s[s], wo_s[s], w1_s[s], w2_s[s],
            bqkv_ref[s], bo_ref[s], ln1w_ref[s], ln1b_ref[s],
            b1_ref[s], b2_ref[s], ln2w_ref[s], ln2b_ref[s])

    # ---- inner transformer tower: seq = B (batch_first=False), batch = Ni*N --
    y = x_in
    for l in range(L):
        y = run_layer(y, l)

    # ---- inner head Linear(Ni, 1): lane-dense weighted sum over inner patches
    z3 = (y * ihw_ref[...]).reshape(B, Ni * N, D)
    code = z3[:, 0:N, :]
    for i in range(1, Ni):
        code = code + z3[:, i * N:(i + 1) * N, :]
    emb = emb + code.reshape(B * N, D) + ihb_ref[...]
    nn_ref[...] = emb.reshape(B, N, D)            # returned nn_input

    # ---- outer transformer tower: seq = B, batch = N --------------------------
    y = emb
    for l in range(L):
        y = run_layer(y, L + l)

    # ---- outer head Linear(N, 1): lane-dense weighted sum over the patch axis
    zo = (y * hw_ref[...]).reshape(B, N, D)
    out_ref[...] = jnp.sum(zo, axis=1) + hb_ref[...]              # (B, D)


# -----------------------------------------------------------------------------
# Wrapper: zero-FLOP layout prep (im2col + broadcasts), then one pallas_call
# -----------------------------------------------------------------------------
def image_encoder_forward(params, x):
    B, C = x.shape[0], x.shape[1]
    p, sq, N, D = PATCH_SIZE, SQRT_PATCHES, NUM_PATCHES, EMBED_DIM
    Ni, ip, isq = INNER_NUM_PATCHES, INNER_PATCH, INNER_SQRT
    hd = D // NUM_HEADS
    L = NUM_LAYERS

    x6 = x.reshape(B, C, sq, p, sq, p)            # (B, C, h_chunk, ph, w_chunk, pw)

    # outer conv-as-im2col, rows ordered (b, n) with patch n = h*sq + w
    patches = x6.transpose(0, 2, 4, 1, 3, 5).reshape(B * N, C * p * p)

    # split_images[i*sq + j] = x[:, :, j*p:(j+1)*p, i*p:(i+1)*p]  (module quirk)
    split = x6.transpose(4, 2, 0, 1, 3, 5).reshape(N, B, C, p, p)
    isplit = split.reshape(N, B, C, isq, ip, isq, ip)
    # inner conv-as-im2col, rows ordered (b, i, n) with inner patch i = ih*isq+iw
    ipat = isplit.transpose(1, 3, 5, 0, 2, 4, 6).reshape(B * Ni * N, C * ip * ip)

    # positional tables (conv biases folded in) broadcast to kernel row layouts
    posf = (jnp.broadcast_to(params['pos'][None], (B, N, D)).reshape(B * N, D)
            + params['patch_b'])
    iposf = (jnp.broadcast_to(params['in_pos'][None, :, None, :],
                              (B, Ni, N, D)).reshape(B * Ni * N, D)
             + params['in_patch_b'])
    ihw_col = jnp.broadcast_to(params['in_head_w'][None, :, None, None],
                               (B, Ni, N, 1)).reshape(B * Ni * N, 1)
    hw_col = jnp.broadcast_to(params['head_w'][None, :, None],
                              (B, N, 1)).reshape(B * N, 1)

    # per-head score sum+broadcast matrix (bf16, 1/sqrt(head_dim) folded in)
    fid = jnp.arange(D) // hd
    hsum = ((fid[:, None] == fid[None, :]).astype(jnp.float32)
            / math.sqrt(hd)).astype(jnp.bfloat16)

    # stack inner tower (layers 0..L-1) then outer tower (layers L..2L-1)
    stk = {kk: jnp.concatenate([params['in_tx'][kk], params['tx'][kk]], axis=0)
           for kk in _TOWER_KEYS}

    vmem_args = [patches, ipat, posf, iposf, hsum,
                 params['patch_w'], params['in_patch_w'],
                 ihw_col, params['in_head_b'], hw_col, params['head_b']] \
        + [stk[kk] for kk in _SMALL_KEYS]
    hbm_args = [stk[kk] for kk in _BIG_KEYS]      # stay in HBM, DMA'd in-kernel

    scratch = [pltpu.VMEM(a.shape, a.dtype) for a in hbm_args]
    scratch.append(pltpu.SemaphoreType.DMA((len(hbm_args), 2 * L)))

    vmem_spec = pl.BlockSpec(memory_space=pltpu.MemorySpace.VMEM)
    any_spec = pl.BlockSpec(memory_space=pl.ANY)

    out, nn_input = pl.pallas_call(
        functools.partial(_fused_kernel, B, N, Ni, L),
        out_shape=(jax.ShapeDtypeStruct((B, D), jnp.float32),
                   jax.ShapeDtypeStruct((B, N, D), jnp.float32)),
        in_specs=[vmem_spec] * len(vmem_args) + [any_spec] * len(hbm_args),
        out_specs=(vmem_spec, vmem_spec),
        scratch_shapes=scratch,
        compiler_params=pltpu.CompilerParams(
            vmem_limit_bytes=16 * 1024 * 1024),
    )(*vmem_args, *hbm_args)
    return out, nn_input


# -----------------------------------------------------------------------------
# Pure-JAX reference (independent layouts / standard per-head attention)
# -----------------------------------------------------------------------------
def _ref_tower(x_nsd, pr):
    nb, s, d = x_nsd.shape
    nh = NUM_HEADS
    hd = d // nh
    scale = 1.0 / math.sqrt(hd)
    hi = jax.lax.Precision.HIGHEST
    x2 = x_nsd.reshape(nb * s, d)
    for l in range(pr['wqkv'].shape[0]):
        qkv = _bf16_dot(x2, pr['wqkv'][l]) + pr['bqkv'][l]
        q, k, v = qkv[:, :d], qkv[:, d:2 * d], qkv[:, 2 * d:]
        qh = q.reshape(nb, s, nh, hd)
        kh = k.reshape(nb, s, nh, hd)
        vh = v.reshape(nb, s, nh, hd)
        sc = jnp.einsum('nihd,njhd->nhij', qh, kh, precision=hi) * scale
        a = jax.nn.softmax(sc, axis=-1)
        oh = jnp.einsum('nhij,njhd->nihd', a, vh, precision=hi).reshape(nb * s, d)
        attn = _bf16_dot(oh, pr['wo'][l]) + pr['bo'][l]
        x2 = _ln(x2 + attn, pr['ln1w'][l], pr['ln1b'][l])
        ff = jax.nn.relu(_bf16_dot(x2, pr['w1'][l]) + pr['b1'][l])
        ff = _bf16_dot(ff, pr['w2'][l]) + pr['b2'][l]
        x2 = _ln(x2 + ff, pr['ln2w'][l], pr['ln2b'][l])
    return x2.reshape(nb, s, d)


def _ref_forward(params, x):
    B, C = x.shape[0], x.shape[1]
    p, sq, N, D = PATCH_SIZE, SQRT_PATCHES, NUM_PATCHES, EMBED_DIM
    Ni, ip, isq = INNER_NUM_PATCHES, INNER_PATCH, INNER_SQRT

    x6 = x.reshape(B, C, sq, p, sq, p)
    patches = x6.transpose(0, 2, 4, 1, 3, 5).reshape(B, N, C * p * p)
    emb = _bf16_dot(patches, params['patch_w']) + params['patch_b'] \
        + params['pos'][None]

    split = x6.transpose(4, 2, 0, 1, 3, 5).reshape(N, B, C, p, p)
    isplit = split.reshape(N, B, C, isq, ip, isq, ip)
    ipat = isplit.transpose(0, 1, 3, 5, 2, 4, 6).reshape(N, B, Ni, C * ip * ip)
    iemb = _bf16_dot(ipat, params['in_patch_w']) + params['in_patch_b'] \
        + params['in_pos'][None, None]

    # inner transformer: torch seq axis == torch batch B (batch_first=False)
    itok = iemb.transpose(0, 2, 1, 3).reshape(N * Ni, B, D)
    iout = _ref_tower(itok, params['in_tx']).reshape(N, Ni, B, D)
    inner_code = jnp.einsum('nibd,i->nbd', iout, params['in_head_w']) \
        + params['in_head_b'][0, 0]

    emb = emb + inner_code.transpose(1, 0, 2)
    nn_input = emb

    tok = emb.transpose(1, 0, 2)                           # (N, B, D)
    otok = _ref_tower(tok, params['tx'])
    out = jnp.einsum('nbd,n->bd', otok, params['head_w']) \
        + params['head_b'][0, 0]
    return out, nn_input


# -----------------------------------------------------------------------------
# Deterministic parameter init (weights pre-transposed so kernels compute x @ W;
# matmul weight matrices stored in bf16, biases / LN / pos / heads in f32)
# -----------------------------------------------------------------------------
def _init_tower(key, L, d, dff):
    ks = jax.random.split(key, 12)
    w = lambda k, shape, s=0.02: s * jax.random.normal(k, shape, jnp.float32)
    return {
        'wqkv': w(ks[0], (L, d, 3 * d)).astype(jnp.bfloat16),
        'bqkv': w(ks[1], (L, 1, 3 * d), 0.01),
        'wo':   w(ks[2], (L, d, d)).astype(jnp.bfloat16),
        'bo':   w(ks[3], (L, 1, d), 0.01),
        'ln1w': 1.0 + w(ks[4], (L, 1, d), 0.01),
        'ln1b': w(ks[5], (L, 1, d), 0.01),
        'w1':   w(ks[6], (L, d, dff)).astype(jnp.bfloat16),
        'b1':   w(ks[7], (L, 1, dff), 0.01),
        'w2':   w(ks[8], (L, dff, d)).astype(jnp.bfloat16),
        'b2':   w(ks[9], (L, 1, d), 0.01),
        'ln2w': 1.0 + w(ks[10], (L, 1, d), 0.01),
        'ln2b': w(ks[11], (L, 1, d), 0.01),
    }


def init_params(key):
    k = jax.random.split(key, 12)
    kout = IN_CHANNELS * PATCH_SIZE * PATCH_SIZE
    kin = IN_CHANNELS * INNER_PATCH * INNER_PATCH
    n = lambda kk, shape, s: s * jax.random.normal(kk, shape, jnp.float32)
    return {
        'patch_w': n(k[0], (kout, EMBED_DIM), 0.05).astype(jnp.bfloat16),
        'patch_b': n(k[1], (1, EMBED_DIM), 0.01),
        'pos': n(k[2], (NUM_PATCHES, EMBED_DIM), 0.02),
        'tx': _init_tower(k[3], NUM_LAYERS, EMBED_DIM, DIM_FF),
        'head_w': n(k[4], (NUM_PATCHES,), 0.1),
        'head_b': n(k[5], (1, 1), 0.01),
        'in_patch_w': n(k[6], (kin, EMBED_DIM), 0.05).astype(jnp.bfloat16),
        'in_patch_b': n(k[7], (1, EMBED_DIM), 0.01),
        'in_pos': n(k[8], (INNER_NUM_PATCHES, EMBED_DIM), 0.02),
        'in_tx': _init_tower(k[9], NUM_LAYERS, EMBED_DIM, DIM_FF),
        'in_head_w': n(k[10], (INNER_NUM_PATCHES,), 0.1),
        'in_head_b': n(k[11], (1, 1), 0.01),
    }


# -----------------------------------------------------------------------------
if __name__ == "__main__":
    key = jax.random.PRNGKey(0)
    pkey, xkey = jax.random.split(key)
    params = init_params(pkey)
    x = jax.random.normal(xkey, (BATCH, IN_CHANNELS, IMG_SIZE, IMG_SIZE),
                          jnp.float32)

    fwd = jax.jit(image_encoder_forward)
    out, nn_input = jax.block_until_ready(fwd(params, x))

    ref_out, ref_nn = jax.block_until_ready(jax.jit(_ref_forward)(params, x))

    ok_shapes = (out.shape == (BATCH, EMBED_DIM)
                 and nn_input.shape == (BATCH, NUM_PATCHES, EMBED_DIM))
    err_out = float(jnp.max(jnp.abs(out - ref_out)))
    err_nn = float(jnp.max(jnp.abs(nn_input - ref_nn)))
    finite = bool(jnp.all(jnp.isfinite(out)) & jnp.all(jnp.isfinite(nn_input)))

    if ok_shapes and finite and err_out < 2e-2 and err_nn < 2e-2:
        print("KERNEL_OK")
    else:
        print(f"MISMATCH shapes_ok={ok_shapes} finite={finite} "
              f"err_out={err_out} err_nn={err_nn}")
</pallas_src>

<mosaic_0001>
module attributes {stable_mosaic.version = 11 : i64} {
  func.func @_fused_kernel(%arg0: memref<32x32xf32, #tpu.memory_space<vmem>>, %arg1: memref<128x8xf32, #tpu.memory_space<vmem>>, %arg2: memref<32x128xf32, #tpu.memory_space<vmem>>, %arg3: memref<128x128xf32, #tpu.memory_space<vmem>>, %arg4: memref<128x128xbf16, #tpu.memory_space<vmem>>, %arg5: memref<32x128xbf16, #tpu.memory_space<vmem>>, %arg6: memref<8x128xbf16, #tpu.memory_space<vmem>>, %arg7: memref<128x1xf32, #tpu.memory_space<vmem>>, %arg8: memref<1x1xf32, #tpu.memory_space<vmem>>, %arg9: memref<32x1xf32, #tpu.memory_space<vmem>>, %arg10: memref<1x1xf32, #tpu.memory_space<vmem>>, %arg11: memref<4x1x384xf32, #tpu.memory_space<vmem>>, %arg12: memref<4x1x128xf32, #tpu.memory_space<vmem>>, %arg13: memref<4x1x128xf32, #tpu.memory_space<vmem>>, %arg14: memref<4x1x128xf32, #tpu.memory_space<vmem>>, %arg15: memref<4x1x256xf32, #tpu.memory_space<vmem>>, %arg16: memref<4x1x128xf32, #tpu.memory_space<vmem>>, %arg17: memref<4x1x128xf32, #tpu.memory_space<vmem>>, %arg18: memref<4x1x128xf32, #tpu.memory_space<vmem>>, %arg19: memref<4x128x384xbf16, #tpu.memory_space<any>>, %arg20: memref<4x128x128xbf16, #tpu.memory_space<any>>, %arg21: memref<4x128x256xbf16, #tpu.memory_space<any>>, %arg22: memref<4x256x128xbf16, #tpu.memory_space<any>>, %arg23: memref<2x128xf32, #tpu.memory_space<vmem>>, %arg24: memref<2x16x128xf32, #tpu.memory_space<vmem>>, %arg25: memref<4x128x384xbf16, #tpu.memory_space<vmem>>, %arg26: memref<4x128x128xbf16, #tpu.memory_space<vmem>>, %arg27: memref<4x128x256xbf16, #tpu.memory_space<vmem>>, %arg28: memref<4x256x128xbf16, #tpu.memory_space<vmem>>, %arg29: memref<4x4x!tpu.dma_semaphore, #tpu.memory_space<semaphore_mem>>) attributes {dimension_semantics = [], scalar_prefetch = 0 : i64, scratch_operands = 5 : i64, tpu.core_type = #tpu.core_type<tc>} {
    %c0_i32 = arith.constant 0 : i32
    %c0_i32_0 = arith.constant 0 : i32
    %c0_i32_1 = arith.constant 0 : i32
    %c0_i32_2 = arith.constant 0 : i32
    %c0_i32_3 = arith.constant 0 : i32
    %c0_i32_4 = arith.constant 0 : i32
    %0 = tpu.memref_slice %arg19[%c0_i32, %c0_i32_3, %c0_i32_4] : memref<4x128x384xbf16, #tpu.memory_space<any>> -> memref<1x128x384xbf16, #tpu.memory_space<any>>
    %1 = tpu.memref_squeeze %0 : memref<1x128x384xbf16, #tpu.memory_space<any>> -> memref<128x384xbf16, #tpu.memory_space<any>>
    %c0_i32_5 = arith.constant 0 : i32
    %c0_i32_6 = arith.constant 0 : i32
    %2 = tpu.memref_slice %arg25[%c0_i32_0, %c0_i32_5, %c0_i32_6] : memref<4x128x384xbf16, #tpu.memory_space<vmem>> -> memref<1x128x384xbf16, #tpu.memory_space<vmem>>
    %3 = tpu.memref_squeeze %2 : memref<1x128x384xbf16, #tpu.memory_space<vmem>> -> memref<128x384xbf16, #tpu.memory_space<vmem>>
    %4 = tpu.memref_slice %arg29[%c0_i32_1, %c0_i32_2] : memref<4x4x!tpu.dma_semaphore, #tpu.memory_space<semaphore_mem>> -> memref<1x1x!tpu.dma_semaphore, #tpu.memory_space<semaphore_mem>>
    %5 = tpu.memref_squeeze %4 : memref<1x1x!tpu.dma_semaphore, #tpu.memory_space<semaphore_mem>> -> memref<!tpu.dma_semaphore, #tpu.memory_space<semaphore_mem>>
    tpu.enqueue_dma source(%1 : memref<128x384xbf16, #tpu.memory_space<any>>) target(%3 : memref<128x384xbf16, #tpu.memory_space<vmem>>) target_semaphore(%5 : memref<!tpu.dma_semaphore, #tpu.memory_space<semaphore_mem>>)
    %c0_i32_7 = arith.constant 0 : i32
    %c0_i32_8 = arith.constant 0 : i32
    %c1_i32 = arith.constant 1 : i32
    %c0_i32_9 = arith.constant 0 : i32
    %c0_i32_10 = arith.constant 0 : i32
    %c0_i32_11 = arith.constant 0 : i32
    %6 = tpu.memref_slice %arg20[%c0_i32_7, %c0_i32_10, %c0_i32_11] : memref<4x128x128xbf16, #tpu.memory_space<any>> -> memref<1x128x128xbf16, #tpu.memory_space<any>>
    %7 = tpu.memref_squeeze %6 : memref<1x128x128xbf16, #tpu.memory_space<any>> -> memref<128x128xbf16, #tpu.memory_space<any>>
    %c0_i32_12 = arith.constant 0 : i32
    %c0_i32_13 = arith.constant 0 : i32
    %8 = tpu.memref_slice %arg26[%c0_i32_8, %c0_i32_12, %c0_i32_13] : memref<4x128x128xbf16, #tpu.memory_space<vmem>> -> memref<1x128x128xbf16, #tpu.memory_space<vmem>>
    %9 = tpu.memref_squeeze %8 : memref<1x128x128xbf16, #tpu.memory_space<vmem>> -> memref<128x128xbf16, #tpu.memory_space<vmem>>
    %10 = tpu.memref_slice %arg29[%c1_i32, %c0_i32_9] : memref<4x4x!tpu.dma_semaphore, #tpu.memory_space<semaphore_mem>> -> memref<1x1x!tpu.dma_semaphore, #tpu.memory_space<semaphore_mem>>
    %11 = tpu.memref_squeeze %10 : memref<1x1x!tpu.dma_semaphore, #tpu.memory_space<semaphore_mem>> -> memref<!tpu.dma_semaphore, #tpu.memory_space<semaphore_mem>>
    tpu.enqueue_dma source(%7 : memref<128x128xbf16, #tpu.memory_space<any>>) target(%9 : memref<128x128xbf16, #tpu.memory_space<vmem>>) target_semaphore(%11 : memref<!tpu.dma_semaphore, #tpu.memory_space<semaphore_mem>>)
    %c0_i32_14 = arith.constant 0 : i32
    %c0_i32_15 = arith.constant 0 : i32
    %c2_i32 = arith.constant 2 : i32
    %c0_i32_16 = arith.constant 0 : i32
    %c0_i32_17 = arith.constant 0 : i32
    %c0_i32_18 = arith.constant 0 : i32
    %12 = tpu.memref_slice %arg21[%c0_i32_14, %c0_i32_17, %c0_i32_18] : memref<4x128x256xbf16, #tpu.memory_space<any>> -> memref<1x128x256xbf16, #tpu.memory_space<any>>
    %13 = tpu.memref_squeeze %12 : memref<1x128x256xbf16, #tpu.memory_space<any>> -> memref<128x256xbf16, #tpu.memory_space<any>>
    %c0_i32_19 = arith.constant 0 : i32
    %c0_i32_20 = arith.constant 0 : i32
    %14 = tpu.memref_slice %arg27[%c0_i32_15, %c0_i32_19, %c0_i32_20] : memref<4x128x256xbf16, #tpu.memory_space<vmem>> -> memref<1x128x256xbf16, #tpu.memory_space<vmem>>
    %15 = tpu.memref_squeeze %14 : memref<1x128x256xbf16, #tpu.memory_space<vmem>> -> memref<128x256xbf16, #tpu.memory_space<vmem>>
    %16 = tpu.memref_slice %arg29[%c2_i32, %c0_i32_16] : memref<4x4x!tpu.dma_semaphore, #tpu.memory_space<semaphore_mem>> -> memref<1x1x!tpu.dma_semaphore, #tpu.memory_space<semaphore_mem>>
    %17 = tpu.memref_squeeze %16 : memref<1x1x!tpu.dma_semaphore, #tpu.memory_space<semaphore_mem>> -> memref<!tpu.dma_semaphore, #tpu.memory_space<semaphore_mem>>
    tpu.enqueue_dma source(%13 : memref<128x256xbf16, #tpu.memory_space<any>>) target(%15 : memref<128x256xbf16, #tpu.memory_space<vmem>>) target_semaphore(%17 : memref<!tpu.dma_semaphore, #tpu.memory_space<semaphore_mem>>)
    %c0_i32_21 = arith.constant 0 : i32
    %c0_i32_22 = arith.constant 0 : i32
    %c3_i32 = arith.constant 3 : i32
    %c0_i32_23 = arith.constant 0 : i32
    %c0_i32_24 = arith.constant 0 : i32
    %c0_i32_25 = arith.constant 0 : i32
    %18 = tpu.memref_slice %arg22[%c0_i32_21, %c0_i32_24, %c0_i32_25] : memref<4x256x128xbf16, #tpu.memory_space<any>> -> memref<1x256x128xbf16, #tpu.memory_space<any>>
    %19 = tpu.memref_squeeze %18 : memref<1x256x128xbf16, #tpu.memory_space<any>> -> memref<256x128xbf16, #tpu.memory_space<any>>
    %c0_i32_26 = arith.constant 0 : i32
    %c0_i32_27 = arith.constant 0 : i32
    %20 = tpu.memref_slice %arg28[%c0_i32_22, %c0_i32_26, %c0_i32_27] : memref<4x256x128xbf16, #tpu.memory_space<vmem>> -> memref<1x256x128xbf16, #tpu.memory_space<vmem>>
    %21 = tpu.memref_squeeze %20 : memref<1x256x128xbf16, #tpu.memory_space<vmem>> -> memref<256x128xbf16, #tpu.memory_space<vmem>>
    %22 = tpu.memref_slice %arg29[%c3_i32, %c0_i32_23] : memref<4x4x!tpu.dma_semaphore, #tpu.memory_space<semaphore_mem>> -> memref<1x1x!tpu.dma_semaphore, #tpu.memory_space<semaphore_mem>>
    %23 = tpu.memref_squeeze %22 : memref<1x1x!tpu.dma_semaphore, #tpu.memory_space<semaphore_mem>> -> memref<!tpu.dma_semaphore, #tpu.memory_space<semaphore_mem>>
    tpu.enqueue_dma source(%19 : memref<256x128xbf16, #tpu.memory_space<any>>) target(%21 : memref<256x128xbf16, #tpu.memory_space<vmem>>) target_semaphore(%23 : memref<!tpu.dma_semaphore, #tpu.memory_space<semaphore_mem>>)
    %c1_i32_28 = arith.constant 1 : i32
    %c1_i32_29 = arith.constant 1 : i32
    %c0_i32_30 = arith.constant 0 : i32
    %c1_i32_31 = arith.constant 1 : i32
    %c0_i32_32 = arith.constant 0 : i32
    %c0_i32_33 = arith.constant 0 : i32
    %24 = tpu.memref_slice %arg19[%c1_i32_28, %c0_i32_32, %c0_i32_33] : memref<4x128x384xbf16, #tpu.memory_space<any>> -> memref<1x128x384xbf16, #tpu.memory_space<any>>
    %25 = tpu.memref_squeeze %24 : memref<1x128x384xbf16, #tpu.memory_space<any>> -> memref<128x384xbf16, #tpu.memory_space<any>>
    %c0_i32_34 = arith.constant 0 : i32
    %c0_i32_35 = arith.constant 0 : i32
    %26 = tpu.memref_slice %arg25[%c1_i32_29, %c0_i32_34, %c0_i32_35] : memref<4x128x384xbf16, #tpu.memory_space<vmem>> -> memref<1x128x384xbf16, #tpu.memory_space<vmem>>
    %27 = tpu.memref_squeeze %26 : memref<1x128x384xbf16, #tpu.memory_space<vmem>> -> memref<128x384xbf16, #tpu.memory_space<vmem>>
    %28 = tpu.memref_slice %arg29[%c0_i32_30, %c1_i32_31] : memref<4x4x!tpu.dma_semaphore, #tpu.memory_space<semaphore_mem>> -> memref<1x1x!tpu.dma_semaphore, #tpu.memory_space<semaphore_mem>>
    %29 = tpu.memref_squeeze %28 : memref<1x1x!tpu.dma_semaphore, #tpu.memory_space<semaphore_mem>> -> memref<!tpu.dma_semaphore, #tpu.memory_space<semaphore_mem>>
    tpu.enqueue_dma source(%25 : memref<128x384xbf16, #tpu.memory_space<any>>) target(%27 : memref<128x384xbf16, #tpu.memory_space<vmem>>) target_semaphore(%29 : memref<!tpu.dma_semaphore, #tpu.memory_space<semaphore_mem>>)
    %c1_i32_36 = arith.constant 1 : i32
    %c1_i32_37 = arith.constant 1 : i32
    %c1_i32_38 = arith.constant 1 : i32
    %c1_i32_39 = arith.constant 1 : i32
    %c0_i32_40 = arith.constant 0 : i32
    %c0_i32_41 = arith.constant 0 : i32
    %30 = tpu.memref_slice %arg20[%c1_i32_36, %c0_i32_40, %c0_i32_41] : memref<4x128x128xbf16, #tpu.memory_space<any>> -> memref<1x128x128xbf16, #tpu.memory_space<any>>
    %31 = tpu.memref_squeeze %30 : memref<1x128x128xbf16, #tpu.memory_space<any>> -> memref<128x128xbf16, #tpu.memory_space<any>>
    %c0_i32_42 = arith.constant 0 : i32
    %c0_i32_43 = arith.constant 0 : i32
    %32 = tpu.memref_slice %arg26[%c1_i32_37, %c0_i32_42, %c0_i32_43] : memref<4x128x128xbf16, #tpu.memory_space<vmem>> -> memref<1x128x128xbf16, #tpu.memory_space<vmem>>
    %33 = tpu.memref_squeeze %32 : memref<1x128x128xbf16, #tpu.memory_space<vmem>> -> memref<128x128xbf16, #tpu.memory_space<vmem>>
    %34 = tpu.memref_slice %arg29[%c1_i32_38, %c1_i32_39] : memref<4x4x!tpu.dma_semaphore, #tpu.memory_space<semaphore_mem>> -> memref<1x1x!tpu.dma_semaphore, #tpu.memory_space<semaphore_mem>>
    %35 = tpu.memref_squeeze %34 : memref<1x1x!tpu.dma_semaphore, #tpu.memory_space<semaphore_mem>> -> memref<!tpu.dma_semaphore, #tpu.memory_space<semaphore_mem>>
    tpu.enqueue_dma source(%31 : memref<128x128xbf16, #tpu.memory_space<any>>) target(%33 : memref<128x128xbf16, #tpu.memory_space<vmem>>) target_semaphore(%35 : memref<!tpu.dma_semaphore, #tpu.memory_space<semaphore_mem>>)
    %c1_i32_44 = arith.constant 1 : i32
    %c1_i32_45 = arith.constant 1 : i32
    %c2_i32_46 = arith.constant 2 : i32
    %c1_i32_47 = arith.constant 1 : i32
    %c0_i32_48 = arith.constant 0 : i32
    %c0_i32_49 = arith.constant 0 : i32
    %36 = tpu.memref_slice %arg21[%c1_i32_44, %c0_i32_48, %c0_i32_49] : memref<4x128x256xbf16, #tpu.memory_space<any>> -> memref<1x128x256xbf16, #tpu.memory_space<any>>
    %37 = tpu.memref_squeeze %36 : memref<1x128x256xbf16, #tpu.memory_space<any>> -> memref<128x256xbf16, #tpu.memory_space<any>>
    %c0_i32_50 = arith.constant 0 : i32
    %c0_i32_51 = arith.constant 0 : i32
    %38 = tpu.memref_slice %arg27[%c1_i32_45, %c0_i32_50, %c0_i32_51] : memref<4x128x256xbf16, #tpu.memory_space<vmem>> -> memref<1x128x256xbf16, #tpu.memory_space<vmem>>
    %39 = tpu.memref_squeeze %38 : memref<1x128x256xbf16, #tpu.memory_space<vmem>> -> memref<128x256xbf16, #tpu.memory_space<vmem>>
    %40 = tpu.memref_slice %arg29[%c2_i32_46, %c1_i32_47] : memref<4x4x!tpu.dma_semaphore, #tpu.memory_space<semaphore_mem>> -> memref<1x1x!tpu.dma_semaphore, #tpu.memory_space<semaphore_mem>>
    %41 = tpu.memref_squeeze %40 : memref<1x1x!tpu.dma_semaphore, #tpu.memory_space<semaphore_mem>> -> memref<!tpu.dma_semaphore, #tpu.memory_space<semaphore_mem>>
    tpu.enqueue_dma source(%37 : memref<128x256xbf16, #tpu.memory_space<any>>) target(%39 : memref<128x256xbf16, #tpu.memory_space<vmem>>) target_semaphore(%41 : memref<!tpu.dma_semaphore, #tpu.memory_space<semaphore_mem>>)
    %c1_i32_52 = arith.constant 1 : i32
    %c1_i32_53 = arith.constant 1 : i32
    %c3_i32_54 = arith.constant 3 : i32
    %c1_i32_55 = arith.constant 1 : i32
    %c0_i32_56 = arith.constant 0 : i32
    %c0_i32_57 = arith.constant 0 : i32
    %42 = tpu.memref_slice %arg22[%c1_i32_52, %c0_i32_56, %c0_i32_57] : memref<4x256x128xbf16, #tpu.memory_space<any>> -> memref<1x256x128xbf16, #tpu.memory_space<any>>
    %43 = tpu.memref_squeeze %42 : memref<1x256x128xbf16, #tpu.memory_space<any>> -> memref<256x128xbf16, #tpu.memory_space<any>>
    %c0_i32_58 = arith.constant 0 : i32
    %c0_i32_59 = arith.constant 0 : i32
    %44 = tpu.memref_slice %arg28[%c1_i32_53, %c0_i32_58, %c0_i32_59] : memref<4x256x128xbf16, #tpu.memory_space<vmem>> -> memref<1x256x128xbf16, #tpu.memory_space<vmem>>
    %45 = tpu.memref_squeeze %44 : memref<1x256x128xbf16, #tpu.memory_space<vmem>> -> memref<256x128xbf16, #tpu.memory_space<vmem>>
    %46 = tpu.memref_slice %arg29[%c3_i32_54, %c1_i32_55] : memref<4x4x!tpu.dma_semaphore, #tpu.memory_space<semaphore_mem>> -> memref<1x1x!tpu.dma_semaphore, #tpu.memory_space<semaphore_mem>>
    %47 = tpu.memref_squeeze %46 : memref<1x1x!tpu.dma_semaphore, #tpu.memory_space<semaphore_mem>> -> memref<!tpu.dma_semaphore, #tpu.memory_space<semaphore_mem>>
    tpu.enqueue_dma source(%43 : memref<256x128xbf16, #tpu.memory_space<any>>) target(%45 : memref<256x128xbf16, #tpu.memory_space<vmem>>) target_semaphore(%47 : memref<!tpu.dma_semaphore, #tpu.memory_space<semaphore_mem>>)
    %c2_i32_60 = arith.constant 2 : i32
    %c2_i32_61 = arith.constant 2 : i32
    %c0_i32_62 = arith.constant 0 : i32
    %c2_i32_63 = arith.constant 2 : i32
    %c0_i32_64 = arith.constant 0 : i32
    %c0_i32_65 = arith.constant 0 : i32
    %48 = tpu.memref_slice %arg19[%c2_i32_60, %c0_i32_64, %c0_i32_65] : memref<4x128x384xbf16, #tpu.memory_space<any>> -> memref<1x128x384xbf16, #tpu.memory_space<any>>
    %49 = tpu.memref_squeeze %48 : memref<1x128x384xbf16, #tpu.memory_space<any>> -> memref<128x384xbf16, #tpu.memory_space<any>>
    %c0_i32_66 = arith.constant 0 : i32
    %c0_i32_67 = arith.constant 0 : i32
    %50 = tpu.memref_slice %arg25[%c2_i32_61, %c0_i32_66, %c0_i32_67] : memref<4x128x384xbf16, #tpu.memory_space<vmem>> -> memref<1x128x384xbf16, #tpu.memory_space<vmem>>
    %51 = tpu.memref_squeeze %50 : memref<1x128x384xbf16, #tpu.memory_space<vmem>> -> memref<128x384xbf16, #tpu.memory_space<vmem>>
    %52 = tpu.memref_slice %arg29[%c0_i32_62, %c2_i32_63] : memref<4x4x!tpu.dma_semaphore, #tpu.memory_space<semaphore_mem>> -> memref<1x1x!tpu.dma_semaphore, #tpu.memory_space<semaphore_mem>>
    %53 = tpu.memref_squeeze %52 : memref<1x1x!tpu.dma_semaphore, #tpu.memory_space<semaphore_mem>> -> memref<!tpu.dma_semaphore, #tpu.memory_space<semaphore_mem>>
    tpu.enqueue_dma source(%49 : memref<128x384xbf16, #tpu.memory_space<any>>) target(%51 : memref<128x384xbf16, #tpu.memory_space<vmem>>) target_semaphore(%53 : memref<!tpu.dma_semaphore, #tpu.memory_space<semaphore_mem>>)
    %c2_i32_68 = arith.constant 2 : i32
    %c2_i32_69 = arith.constant 2 : i32
    %c1_i32_70 = arith.constant 1 : i32
    %c2_i32_71 = arith.constant 2 : i32
    %c0_i32_72 = arith.constant 0 : i32
    %c0_i32_73 = arith.constant 0 : i32
    %54 = tpu.memref_slice %arg20[%c2_i32_68, %c0_i32_72, %c0_i32_73] : memref<4x128x128xbf16, #tpu.memory_space<any>> -> memref<1x128x128xbf16, #tpu.memory_space<any>>
    %55 = tpu.memref_squeeze %54 : memref<1x128x128xbf16, #tpu.memory_space<any>> -> memref<128x128xbf16, #tpu.memory_space<any>>
    %c0_i32_74 = arith.constant 0 : i32
    %c0_i32_75 = arith.constant 0 : i32
    %56 = tpu.memref_slice %arg26[%c2_i32_69, %c0_i32_74, %c0_i32_75] : memref<4x128x128xbf16, #tpu.memory_space<vmem>> -> memref<1x128x128xbf16, #tpu.memory_space<vmem>>
    %57 = tpu.memref_squeeze %56 : memref<1x128x128xbf16, #tpu.memory_space<vmem>> -> memref<128x128xbf16, #tpu.memory_space<vmem>>
    %58 = tpu.memref_slice %arg29[%c1_i32_70, %c2_i32_71] : memref<4x4x!tpu.dma_semaphore, #tpu.memory_space<semaphore_mem>> -> memref<1x1x!tpu.dma_semaphore, #tpu.memory_space<semaphore_mem>>
    %59 = tpu.memref_squeeze %58 : memref<1x1x!tpu.dma_semaphore, #tpu.memory_space<semaphore_mem>> -> memref<!tpu.dma_semaphore, #tpu.memory_space<semaphore_mem>>
    tpu.enqueue_dma source(%55 : memref<128x128xbf16, #tpu.memory_space<any>>) target(%57 : memref<128x128xbf16, #tpu.memory_space<vmem>>) target_semaphore(%59 : memref<!tpu.dma_semaphore, #tpu.memory_space<semaphore_mem>>)
    %c2_i32_76 = arith.constant 2 : i32
    %c2_i32_77 = arith.constant 2 : i32
    %c2_i32_78 = arith.constant 2 : i32
    %c2_i32_79 = arith.constant 2 : i32
    %c0_i32_80 = arith.constant 0 : i32
    %c0_i32_81 = arith.constant 0 : i32
    %60 = tpu.memref_slice %arg21[%c2_i32_76, %c0_i32_80, %c0_i32_81] : memref<4x128x256xbf16, #tpu.memory_space<any>> -> memref<1x128x256xbf16, #tpu.memory_space<any>>
    %61 = tpu.memref_squeeze %60 : memref<1x128x256xbf16, #tpu.memory_space<any>> -> memref<128x256xbf16, #tpu.memory_space<any>>
    %c0_i32_82 = arith.constant 0 : i32
    %c0_i32_83 = arith.constant 0 : i32
    %62 = tpu.memref_slice %arg27[%c2_i32_77, %c0_i32_82, %c0_i32_83] : memref<4x128x256xbf16, #tpu.memory_space<vmem>> -> memref<1x128x256xbf16, #tpu.memory_space<vmem>>
    %63 = tpu.memref_squeeze %62 : memref<1x128x256xbf16, #tpu.memory_space<vmem>> -> memref<128x256xbf16, #tpu.memory_space<vmem>>
    %64 = tpu.memref_slice %arg29[%c2_i32_78, %c2_i32_79] : memref<4x4x!tpu.dma_semaphore, #tpu.memory_space<semaphore_mem>> -> memref<1x1x!tpu.dma_semaphore, #tpu.memory_space<semaphore_mem>>
    %65 = tpu.memref_squeeze %64 : memref<1x1x!tpu.dma_semaphore, #tpu.memory_space<semaphore_mem>> -> memref<!tpu.dma_semaphore, #tpu.memory_space<semaphore_mem>>
    tpu.enqueue_dma source(%61 : memref<128x256xbf16, #tpu.memory_space<any>>) target(%63 : memref<128x256xbf16, #tpu.memory_space<vmem>>) target_semaphore(%65 : memref<!tpu.dma_semaphore, #tpu.memory_space<semaphore_mem>>)
    %c2_i32_84 = arith.constant 2 : i32
    %c2_i32_85 = arith.constant 2 : i32
    %c3_i32_86 = arith.constant 3 : i32
    %c2_i32_87 = arith.constant 2 : i32
    %c0_i32_88 = arith.constant 0 : i32
    %c0_i32_89 = arith.constant 0 : i32
    %66 = tpu.memref_slice %arg22[%c2_i32_84, %c0_i32_88, %c0_i32_89] : memref<4x256x128xbf16, #tpu.memory_space<any>> -> memref<1x256x128xbf16, #tpu.memory_space<any>>
    %67 = tpu.memref_squeeze %66 : memref<1x256x128xbf16, #tpu.memory_space<any>> -> memref<256x128xbf16, #tpu.memory_space<any>>
    %c0_i32_90 = arith.constant 0 : i32
    %c0_i32_91 = arith.constant 0 : i32
    %68 = tpu.memref_slice %arg28[%c2_i32_85, %c0_i32_90, %c0_i32_91] : memref<4x256x128xbf16, #tpu.memory_space<vmem>> -> memref<1x256x128xbf16, #tpu.memory_space<vmem>>
    %69 = tpu.memref_squeeze %68 : memref<1x256x128xbf16, #tpu.memory_space<vmem>> -> memref<256x128xbf16, #tpu.memory_space<vmem>>
    %70 = tpu.memref_slice %arg29[%c3_i32_86, %c2_i32_87] : memref<4x4x!tpu.dma_semaphore, #tpu.memory_space<semaphore_mem>> -> memref<1x1x!tpu.dma_semaphore, #tpu.memory_space<semaphore_mem>>
    %71 = tpu.memref_squeeze %70 : memref<1x1x!tpu.dma_semaphore, #tpu.memory_space<semaphore_mem>> -> memref<!tpu.dma_semaphore, #tpu.memory_space<semaphore_mem>>
    tpu.enqueue_dma source(%67 : memref<256x128xbf16, #tpu.memory_space<any>>) target(%69 : memref<256x128xbf16, #tpu.memory_space<vmem>>) target_semaphore(%71 : memref<!tpu.dma_semaphore, #tpu.memory_space<semaphore_mem>>)
    %c3_i32_92 = arith.constant 3 : i32
    %c3_i32_93 = arith.constant 3 : i32
    %c0_i32_94 = arith.constant 0 : i32
    %c3_i32_95 = arith.constant 3 : i32
    %c0_i32_96 = arith.constant 0 : i32
    %c0_i32_97 = arith.constant 0 : i32
    %72 = tpu.memref_slice %arg19[%c3_i32_92, %c0_i32_96, %c0_i32_97] : memref<4x128x384xbf16, #tpu.memory_space<any>> -> memref<1x128x384xbf16, #tpu.memory_space<any>>
    %73 = tpu.memref_squeeze %72 : memref<1x128x384xbf16, #tpu.memory_space<any>> -> memref<128x384xbf16, #tpu.memory_space<any>>
    %c0_i32_98 = arith.constant 0 : i32
    %c0_i32_99 = arith.constant 0 : i32
    %74 = tpu.memref_slice %arg25[%c3_i32_93, %c0_i32_98, %c0_i32_99] : memref<4x128x384xbf16, #tpu.memory_space<vmem>> -> memref<1x128x384xbf16, #tpu.memory_space<vmem>>
    %75 = tpu.memref_squeeze %74 : memref<1x128x384xbf16, #tpu.memory_space<vmem>> -> memref<128x384xbf16, #tpu.memory_space<vmem>>
    %76 = tpu.memref_slice %arg29[%c0_i32_94, %c3_i32_95] : memref<4x4x!tpu.dma_semaphore, #tpu.memory_space<semaphore_mem>> -> memref<1x1x!tpu.dma_semaphore, #tpu.memory_space<semaphore_mem>>
    %77 = tpu.memref_squeeze %76 : memref<1x1x!tpu.dma_semaphore, #tpu.memory_space<semaphore_mem>> -> memref<!tpu.dma_semaphore, #tpu.memory_space<semaphore_mem>>
    tpu.enqueue_dma source(%73 : memref<128x384xbf16, #tpu.memory_space<any>>) target(%75 : memref<128x384xbf16, #tpu.memory_space<vmem>>) target_semaphore(%77 : memref<!tpu.dma_semaphore, #tpu.memory_space<semaphore_mem>>)
    %c3_i32_100 = arith.constant 3 : i32
    %c3_i32_101 = arith.constant 3 : i32
    %c1_i32_102 = arith.constant 1 : i32
    %c3_i32_103 = arith.constant 3 : i32
    %c0_i32_104 = arith.constant 0 : i32
    %c0_i32_105 = arith.constant 0 : i32
    %78 = tpu.memref_slice %arg20[%c3_i32_100, %c0_i32_104, %c0_i32_105] : memref<4x128x128xbf16, #tpu.memory_space<any>> -> memref<1x128x128xbf16, #tpu.memory_space<any>>
    %79 = tpu.memref_squeeze %78 : memref<1x128x128xbf16, #tpu.memory_space<any>> -> memref<128x128xbf16, #tpu.memory_space<any>>
    %c0_i32_106 = arith.constant 0 : i32
    %c0_i32_107 = arith.constant 0 : i32
    %80 = tpu.memref_slice %arg26[%c3_i32_101, %c0_i32_106, %c0_i32_107] : memref<4x128x128xbf16, #tpu.memory_space<vmem>> -> memref<1x128x128xbf16, #tpu.memory_space<vmem>>
    %81 = tpu.memref_squeeze %80 : memref<1x128x128xbf16, #tpu.memory_space<vmem>> -> memref<128x128xbf16, #tpu.memory_space<vmem>>
    %82 = tpu.memref_slice %arg29[%c1_i32_102, %c3_i32_103] : memref<4x4x!tpu.dma_semaphore, #tpu.memory_space<semaphore_mem>> -> memref<1x1x!tpu.dma_semaphore, #tpu.memory_space<semaphore_mem>>
    %83 = tpu.memref_squeeze %82 : memref<1x1x!tpu.dma_semaphore, #tpu.memory_space<semaphore_mem>> -> memref<!tpu.dma_semaphore, #tpu.memory_space<semaphore_mem>>
    tpu.enqueue_dma source(%79 : memref<128x128xbf16, #tpu.memory_space<any>>) target(%81 : memref<128x128xbf16, #tpu.memory_space<vmem>>) target_semaphore(%83 : memref<!tpu.dma_semaphore, #tpu.memory_space<semaphore_mem>>)
    %c3_i32_108 = arith.constant 3 : i32
    %c3_i32_109 = arith.constant 3 : i32
    %c2_i32_110 = arith.constant 2 : i32
    %c3_i32_111 = arith.constant 3 : i32
    %c0_i32_112 = arith.constant 0 : i32
    %c0_i32_113 = arith.constant 0 : i32
    %84 = tpu.memref_slice %arg21[%c3_i32_108, %c0_i32_112, %c0_i32_113] : memref<4x128x256xbf16, #tpu.memory_space<any>> -> memref<1x128x256xbf16, #tpu.memory_space<any>>
    %85 = tpu.memref_squeeze %84 : memref<1x128x256xbf16, #tpu.memory_space<any>> -> memref<128x256xbf16, #tpu.memory_space<any>>
    %c0_i32_114 = arith.constant 0 : i32
    %c0_i32_115 = arith.constant 0 : i32
    %86 = tpu.memref_slice %arg27[%c3_i32_109, %c0_i32_114, %c0_i32_115] : memref<4x128x256xbf16, #tpu.memory_space<vmem>> -> memref<1x128x256xbf16, #tpu.memory_space<vmem>>
    %87 = tpu.memref_squeeze %86 : memref<1x128x256xbf16, #tpu.memory_space<vmem>> -> memref<128x256xbf16, #tpu.memory_space<vmem>>
    %88 = tpu.memref_slice %arg29[%c2_i32_110, %c3_i32_111] : memref<4x4x!tpu.dma_semaphore, #tpu.memory_space<semaphore_mem>> -> memref<1x1x!tpu.dma_semaphore, #tpu.memory_space<semaphore_mem>>
    %89 = tpu.memref_squeeze %88 : memref<1x1x!tpu.dma_semaphore, #tpu.memory_space<semaphore_mem>> -> memref<!tpu.dma_semaphore, #tpu.memory_space<semaphore_mem>>
    tpu.enqueue_dma source(%85 : memref<128x256xbf16, #tpu.memory_space<any>>) target(%87 : memref<128x256xbf16, #tpu.memory_space<vmem>>) target_semaphore(%89 : memref<!tpu.dma_semaphore, #tpu.memory_space<semaphore_mem>>)
    %c3_i32_116 = arith.constant 3 : i32
    %c3_i32_117 = arith.constant 3 : i32
    %c3_i32_118 = arith.constant 3 : i32
    %c3_i32_119 = arith.constant 3 : i32
    %c0_i32_120 = arith.constant 0 : i32
    %c0_i32_121 = arith.constant 0 : i32
    %90 = tpu.memref_slice %arg22[%c3_i32_116, %c0_i32_120, %c0_i32_121] : memref<4x256x128xbf16, #tpu.memory_space<any>> -> memref<1x256x128xbf16, #tpu.memory_space<any>>
    %91 = tpu.memref_squeeze %90 : memref<1x256x128xbf16, #tpu.memory_space<any>> -> memref<256x128xbf16, #tpu.memory_space<any>>
    %c0_i32_122 = arith.constant 0 : i32
    %c0_i32_123 = arith.constant 0 : i32
    %92 = tpu.memref_slice %arg28[%c3_i32_117, %c0_i32_122, %c0_i32_123] : memref<4x256x128xbf16, #tpu.memory_space<vmem>> -> memref<1x256x128xbf16, #tpu.memory_space<vmem>>
    %93 = tpu.memref_squeeze %92 : memref<1x256x128xbf16, #tpu.memory_space<vmem>> -> memref<256x128xbf16, #tpu.memory_space<vmem>>
    %94 = tpu.memref_slice %arg29[%c3_i32_118, %c3_i32_119] : memref<4x4x!tpu.dma_semaphore, #tpu.memory_space<semaphore_mem>> -> memref<1x1x!tpu.dma_semaphore, #tpu.memory_space<semaphore_mem>>
    %95 = tpu.memref_squeeze %94 : memref<1x1x!tpu.dma_semaphore, #tpu.memory_space<semaphore_mem>> -> memref<!tpu.dma_semaphore, #tpu.memory_space<semaphore_mem>>
    tpu.enqueue_dma source(%91 : memref<256x128xbf16, #tpu.memory_space<any>>) target(%93 : memref<256x128xbf16, #tpu.memory_space<vmem>>) target_semaphore(%95 : memref<!tpu.dma_semaphore, #tpu.memory_space<semaphore_mem>>)
    %c0 = arith.constant 0 : index
    %c0_124 = arith.constant 0 : index
    %96 = vector.load %arg4[%c0, %c0_124] : memref<128x128xbf16, #tpu.memory_space<vmem>>, vector<128x128xbf16>
    %c0_125 = arith.constant 0 : index
    %c0_126 = arith.constant 0 : index
    %97 = vector.load %arg0[%c0_125, %c0_126] : memref<32x32xf32, #tpu.memory_space<vmem>>, vector<32x32xf32>
    %c0_127 = arith.constant 0 : index
    %c0_128 = arith.constant 0 : index
    %98 = vector.load %arg5[%c0_127, %c0_128] : memref<32x128xbf16, #tpu.memory_space<vmem>>, vector<32x128xbf16>
    %99 = arith.truncf %97 : vector<32x32xf32> to vector<32x32xbf16>
    %cst = arith.constant dense<0.000000e+00> : vector<32x128xf32>
    %100 = tpu.matmul %99, %98, %cst {dimension_numbers = #tpu.dot_dimension_numbers<[1], [0], [0], [1], [0, 0, 1, 1], [], []>} : vector<32x32xbf16>, vector<32x128xbf16>, vector<32x128xf32> -> vector<32x128xf32>
    %c0_129 = arith.constant 0 : index
    %c0_130 = arith.constant 0 : index
    %101 = vector.load %arg2[%c0_129, %c0_130] : memref<32x128xf32, #tpu.memory_space<vmem>>, vector<32x128xf32>
    %102 = arith.addf %100, %101 : vector<32x128xf32>
    %c0_131 = arith.constant 0 : index
    %c0_132 = arith.constant 0 : index
    %103 = vector.load %arg1[%c0_131, %c0_132] : memref<128x8xf32, #tpu.memory_space<vmem>>, vector<128x8xf32>
    %c0_133 = arith.constant 0 : index
    %c0_134 = arith.constant 0 : index
    %104 = vector.load %arg6[%c0_133, %c0_134] : memref<8x128xbf16, #tpu.memory_space<vmem>>, vector<8x128xbf16>
    %105 = arith.truncf %103 : vector<128x8xf32> to vector<128x8xbf16>
    %cst_135 = arith.constant dense<0.000000e+00> : vector<128x128xf32>
    %106 = tpu.matmul %105, %104, %cst_135 {dimension_numbers = #tpu.dot_dimension_numbers<[1], [0], [0], [1], [0, 0, 1, 1], [], []>} : vector<128x8xbf16>, vector<8x128xbf16>, vector<128x128xf32> -> vector<128x128xf32>
    %c0_136 = arith.constant 0 : index
    %c0_137 = arith.constant 0 : index
    %107 = vector.load %arg3[%c0_136, %c0_137] : memref<128x128xf32, #tpu.memory_space<vmem>>, vector<128x128xf32>
    %108 = arith.addf %106, %107 : vector<128x128xf32>
    %c0_i32_138 = arith.constant 0 : i32
    %c0_i32_139 = arith.constant 0 : i32
    %c0_i32_140 = arith.constant 0 : i32
    %c0_i32_141 = arith.constant 0 : i32
    %c0_i32_142 = arith.constant 0 : i32
    %c0_i32_143 = arith.constant 0 : i32
    %109 = tpu.memref_slice %arg19[%c0_i32_138, %c0_i32_142, %c0_i32_143] : memref<4x128x384xbf16, #tpu.memory_space<any>> -> memref<1x128x384xbf16, #tpu.memory_space<any>>
    %110 = tpu.memref_squeeze %109 : memref<1x128x384xbf16, #tpu.memory_space<any>> -> memref<128x384xbf16, #tpu.memory_space<any>>
    %c0_i32_144 = arith.constant 0 : i32
    %c0_i32_145 = arith.constant 0 : i32
    %111 = tpu.memref_slice %arg25[%c0_i32_139, %c0_i32_144, %c0_i32_145] : memref<4x128x384xbf16, #tpu.memory_space<vmem>> -> memref<1x128x384xbf16, #tpu.memory_space<vmem>>
    %112 = tpu.memref_squeeze %111 : memref<1x128x384xbf16, #tpu.memory_space<vmem>> -> memref<128x384xbf16, #tpu.memory_space<vmem>>
    %113 = tpu.memref_slice %arg29[%c0_i32_140, %c0_i32_141] : memref<4x4x!tpu.dma_semaphore, #tpu.memory_space<semaphore_mem>> -> memref<1x1x!tpu.dma_semaphore, #tpu.memory_space<semaphore_mem>>
    %114 = tpu.memref_squeeze %113 : memref<1x1x!tpu.dma_semaphore, #tpu.memory_space<semaphore_mem>> -> memref<!tpu.dma_semaphore, #tpu.memory_space<semaphore_mem>>
    tpu.wait_dma2 semaphore(%114 : memref<!tpu.dma_semaphore, #tpu.memory_space<semaphore_mem>>) src(%110 : memref<128x384xbf16, #tpu.memory_space<any>>) dst(%112 : memref<128x384xbf16, #tpu.memory_space<vmem>>)
    %c0_i32_146 = arith.constant 0 : i32
    %c0_i32_147 = arith.constant 0 : i32
    %c1_i32_148 = arith.constant 1 : i32
    %c0_i32_149 = arith.constant 0 : i32
    %c0_i32_150 = arith.constant 0 : i32
    %c0_i32_151 = arith.constant 0 : i32
    %115 = tpu.memref_slice %arg20[%c0_i32_146, %c0_i32_150, %c0_i32_151] : memref<4x128x128xbf16, #tpu.memory_space<any>> -> memref<1x128x128xbf16, #tpu.memory_space<any>>
    %116 = tpu.memref_squeeze %115 : memref<1x128x128xbf16, #tpu.memory_space<any>> -> memref<128x128xbf16, #tpu.memory_space<any>>
    %c0_i32_152 = arith.constant 0 : i32
    %c0_i32_153 = arith.constant 0 : i32
    %117 = tpu.memref_slice %arg26[%c0_i32_147, %c0_i32_152, %c0_i32_153] : memref<4x128x128xbf16, #tpu.memory_space<vmem>> -> memref<1x128x128xbf16, #tpu.memory_space<vmem>>
    %118 = tpu.memref_squeeze %117 : memref<1x128x128xbf16, #tpu.memory_space<vmem>> -> memref<128x128xbf16, #tpu.memory_space<vmem>>
    %119 = tpu.memref_slice %arg29[%c1_i32_148, %c0_i32_149] : memref<4x4x!tpu.dma_semaphore, #tpu.memory_space<semaphore_mem>> -> memref<1x1x!tpu.dma_semaphore, #tpu.memory_space<semaphore_mem>>
    %120 = tpu.memref_squeeze %119 : memref<1x1x!tpu.dma_semaphore, #tpu.memory_space<semaphore_mem>> -> memref<!tpu.dma_semaphore, #tpu.memory_space<semaphore_mem>>
    tpu.wait_dma2 semaphore(%120 : memref<!tpu.dma_semaphore, #tpu.memory_space<semaphore_mem>>) src(%116 : memref<128x128xbf16, #tpu.memory_space<any>>) dst(%118 : memref<128x128xbf16, #tpu.memory_space<vmem>>)
    %c0_i32_154 = arith.constant 0 : i32
    %c0_i32_155 = arith.constant 0 : i32
    %c2_i32_156 = arith.constant 2 : i32
    %c0_i32_157 = arith.constant 0 : i32
    %c0_i32_158 = arith.constant 0 : i32
    %c0_i32_159 = arith.constant 0 : i32
    %121 = tpu.memref_slice %arg21[%c0_i32_154, %c0_i32_158, %c0_i32_159] : memref<4x128x256xbf16, #tpu.memory_space<any>> -> memref<1x128x256xbf16, #tpu.memory_space<any>>
    %122 = tpu.memref_squeeze %121 : memref<1x128x256xbf16, #tpu.memory_space<any>> -> memref<128x256xbf16, #tpu.memory_space<any>>
    %c0_i32_160 = arith.constant 0 : i32
    %c0_i32_161 = arith.constant 0 : i32
    %123 = tpu.memref_slice %arg27[%c0_i32_155, %c0_i32_160, %c0_i32_161] : memref<4x128x256xbf16, #tpu.memory_space<vmem>> -> memref<1x128x256xbf16, #tpu.memory_space<vmem>>
    %124 = tpu.memref_squeeze %123 : memref<1x128x256xbf16, #tpu.memory_space<vmem>> -> memref<128x256xbf16, #tpu.memory_space<vmem>>
    %125 = tpu.memref_slice %arg29[%c2_i32_156, %c0_i32_157] : memref<4x4x!tpu.dma_semaphore, #tpu.memory_space<semaphore_mem>> -> memref<1x1x!tpu.dma_semaphore, #tpu.memory_space<semaphore_mem>>
    %126 = tpu.memref_squeeze %125 : memref<1x1x!tpu.dma_semaphore, #tpu.memory_space<semaphore_mem>> -> memref<!tpu.dma_semaphore, #tpu.memory_space<semaphore_mem>>
    tpu.wait_dma2 semaphore(%126 : memref<!tpu.dma_semaphore, #tpu.memory_space<semaphore_mem>>) src(%122 : memref<128x256xbf16, #tpu.memory_space<any>>) dst(%124 : memref<128x256xbf16, #tpu.memory_space<vmem>>)
    %c0_i32_162 = arith.constant 0 : i32
    %c0_i32_163 = arith.constant 0 : i32
    %c3_i32_164 = arith.constant 3 : i32
    %c0_i32_165 = arith.constant 0 : i32
    %c0_i32_166 = arith.constant 0 : i32
    %c0_i32_167 = arith.constant 0 : i32
    %127 = tpu.memref_slice %arg22[%c0_i32_162, %c0_i32_166, %c0_i32_167] : memref<4x256x128xbf16, #tpu.memory_space<any>> -> memref<1x256x128xbf16, #tpu.memory_space<any>>
    %128 = tpu.memref_squeeze %127 : memref<1x256x128xbf16, #tpu.memory_space<any>> -> memref<256x128xbf16, #tpu.memory_space<any>>
    %c0_i32_168 = arith.constant 0 : i32
    %c0_i32_169 = arith.constant 0 : i32
    %129 = tpu.memref_slice %arg28[%c0_i32_163, %c0_i32_168, %c0_i32_169] : memref<4x256x128xbf16, #tpu.memory_space<vmem>> -> memref<1x256x128xbf16, #tpu.memory_space<vmem>>
    %130 = tpu.memref_squeeze %129 : memref<1x256x128xbf16, #tpu.memory_space<vmem>> -> memref<256x128xbf16, #tpu.memory_space<vmem>>
    %131 = tpu.memref_slice %arg29[%c3_i32_164, %c0_i32_165] : memref<4x4x!tpu.dma_semaphore, #tpu.memory_space<semaphore_mem>> -> memref<1x1x!tpu.dma_semaphore, #tpu.memory_space<semaphore_mem>>
    %132 = tpu.memref_squeeze %131 : memref<1x1x!tpu.dma_semaphore, #tpu.memory_space<semaphore_mem>> -> memref<!tpu.dma_semaphore, #tpu.memory_space<semaphore_mem>>
    tpu.wait_dma2 semaphore(%132 : memref<!tpu.dma_semaphore, #tpu.memory_space<semaphore_mem>>) src(%128 : memref<256x128xbf16, #tpu.memory_space<any>>) dst(%130 : memref<256x128xbf16, #tpu.memory_space<vmem>>)
    %c0_170 = arith.constant 0 : index
    %c0_171 = arith.constant 0 : index
    %c0_172 = arith.constant 0 : index
    %133 = vector.load %arg25[%c0_170, %c0_171, %c0_172] : memref<4x128x384xbf16, #tpu.memory_space<vmem>>, vector<1x128x384xbf16>
    %134 = vector.shape_cast %133 : vector<1x128x384xbf16> to vector<128x384xbf16>
    %c0_173 = arith.constant 0 : index
    %c0_174 = arith.constant 0 : index
    %c0_175 = arith.constant 0 : index
    %135 = vector.load %arg26[%c0_173, %c0_174, %c0_175] : memref<4x128x128xbf16, #tpu.memory_space<vmem>>, vector<1x128x128xbf16>
    %136 = vector.shape_cast %135 : vector<1x128x128xbf16> to vector<128x128xbf16>
    %c0_176 = arith.constant 0 : index
    %c0_177 = arith.constant 0 : index
    %c0_178 = arith.constant 0 : index
    %137 = vector.load %arg27[%c0_176, %c0_177, %c0_178] : memref<4x128x256xbf16, #tpu.memory_space<vmem>>, vector<1x128x256xbf16>
    %138 = vector.shape_cast %137 : vector<1x128x256xbf16> to vector<128x256xbf16>
    %c0_179 = arith.constant 0 : index
    %c0_180 = arith.constant 0 : index
    %c0_181 = arith.constant 0 : index
    %139 = vector.load %arg28[%c0_179, %c0_180, %c0_181] : memref<4x256x128xbf16, #tpu.memory_space<vmem>>, vector<1x256x128xbf16>
    %140 = vector.shape_cast %139 : vector<1x256x128xbf16> to vector<256x128xbf16>
    %c0_182 = arith.constant 0 : index
    %c0_183 = arith.constant 0 : index
    %c0_184 = arith.constant 0 : index
    %141 = vector.load %arg11[%c0_182, %c0_183, %c0_184] : memref<4x1x384xf32, #tpu.memory_space<vmem>>, vector<1x1x384xf32>
    %142 = vector.shape_cast %141 : vector<1x1x384xf32> to vector<1x384xf32>
    %c0_185 = arith.constant 0 : index
    %c0_186 = arith.constant 0 : index
    %c0_187 = arith.constant 0 : index
    %143 = vector.load %arg12[%c0_185, %c0_186, %c0_187] : memref<4x1x128xf32, #tpu.memory_space<vmem>>, vector<1x1x128xf32>
    %144 = vector.shape_cast %143 : vector<1x1x128xf32> to vector<1x128xf32>
    %c0_188 = arith.constant 0 : index
    %c0_189 = arith.constant 0 : index
    %c0_190 = arith.constant 0 : index
    %145 = vector.load %arg13[%c0_188, %c0_189, %c0_190] : memref<4x1x128xf32, #tpu.memory_space<vmem>>, vector<1x1x128xf32>
    %146 = vector.shape_cast %145 : vector<1x1x128xf32> to vector<1x128xf32>
    %c0_191 = arith.constant 0 : index
    %c0_192 = arith.constant 0 : index
    %c0_193 = arith.constant 0 : index
    %147 = vector.load %arg14[%c0_191, %c0_192, %c0_193] : memref<4x1x128xf32, #tpu.memory_space<vmem>>, vector<1x1x128xf32>
    %148 = vector.shape_cast %147 : vector<1x1x128xf32> to vector<1x128xf32>
    %c0_194 = arith.constant 0 : index
    %c0_195 = arith.constant 0 : index
    %c0_196 = arith.constant 0 : index
    %149 = vector.load %arg15[%c0_194, %c0_195, %c0_196] : memref<4x1x256xf32, #tpu.memory_space<vmem>>, vector<1x1x256xf32>
    %150 = vector.shape_cast %149 : vector<1x1x256xf32> to vector<1x256xf32>
    %c0_197 = arith.constant 0 : index
    %c0_198 = arith.constant 0 : index
    %c0_199 = arith.constant 0 : index
    %151 = vector.load %arg16[%c0_197, %c0_198, %c0_199] : memref<4x1x128xf32, #tpu.memory_space<vmem>>, vector<1x1x128xf32>
    %152 = vector.shape_cast %151 : vector<1x1x128xf32> to vector<1x128xf32>
    %c0_200 = arith.constant 0 : index
    %c0_201 = arith.constant 0 : index
    %c0_202 = arith.constant 0 : index
    %153 = vector.load %arg17[%c0_200, %c0_201, %c0_202] : memref<4x1x128xf32, #tpu.memory_space<vmem>>, vector<1x1x128xf32>
    %154 = vector.shape_cast %153 : vector<1x1x128xf32> to vector<1x128xf32>
    %c0_203 = arith.constant 0 : index
    %c0_204 = arith.constant 0 : index
    %c0_205 = arith.constant 0 : index
    %155 = vector.load %arg18[%c0_203, %c0_204, %c0_205] : memref<4x1x128xf32, #tpu.memory_space<vmem>>, vector<1x1x128xf32>
    %156 = vector.shape_cast %155 : vector<1x1x128xf32> to vector<1x128xf32>
    %157 = arith.truncf %108 : vector<128x128xf32> to vector<128x128xbf16>
    %cst_206 = arith.constant dense<0.000000e+00> : vector<128x384xf32>
    %158 = tpu.matmul %157, %134, %cst_206 {dimension_numbers = #tpu.dot_dimension_numbers<[1], [0], [0], [1], [0, 0, 1, 1], [], []>} : vector<128x128xbf16>, vector<128x384xbf16>, vector<128x384xf32> -> vector<128x384xf32>
    %159 = vector.broadcast %142 : vector<1x384xf32> to vector<128x384xf32>
    %160 = arith.addf %158, %159 : vector<128x384xf32>
    %161 = arith.truncf %160 : vector<128x384xf32> to vector<128x384xbf16>
    %162 = vector.extract_strided_slice %161 {offsets = [0, 0], sizes = [64, 128], strides = [1, 1]} : vector<128x384xbf16> to vector<64x128xbf16>
    %163 = vector.extract_strided_slice %161 {offsets = [64, 0], sizes = [64, 128], strides = [1, 1]} : vector<128x384xbf16> to vector<64x128xbf16>
    %164 = vector.extract_strided_slice %161 {offsets = [0, 128], sizes = [64, 128], strides = [1, 1]} : vector<128x384xbf16> to vector<64x128xbf16>
    %165 = vector.extract_strided_slice %161 {offsets = [64, 128], sizes = [64, 128], strides = [1, 1]} : vector<128x384xbf16> to vector<64x128xbf16>
    %166 = vector.extract_strided_slice %161 {offsets = [0, 256], sizes = [64, 128], strides = [1, 1]} : vector<128x384xbf16> to vector<64x128xbf16>
    %167 = vector.extract_strided_slice %161 {offsets = [64, 256], sizes = [64, 128], strides = [1, 1]} : vector<128x384xbf16> to vector<64x128xbf16>
    %168 = arith.subf %164, %165 : vector<64x128xbf16>
    %169 = arith.mulf %162, %168 : vector<64x128xbf16>
    %170 = arith.mulf %163, %168 : vector<64x128xbf16>
    %171 = tpu.concatenate %169, %170 in 0 : vector<64x128xbf16>, vector<64x128xbf16> -> vector<128x128xbf16>
    %cst_207 = arith.constant dense<0.000000e+00> : vector<128x128xf32>
    %172 = tpu.matmul %171, %96, %cst_207 {dimension_numbers = #tpu.dot_dimension_numbers<[1], [0], [0], [1], [0, 0, 1, 1], [], []>} : vector<128x128xbf16>, vector<128x128xbf16>, vector<128x128xf32> -> vector<128x128xf32>
    %173 = vector.extract_strided_slice %172 {offsets = [0, 0], sizes = [64, 128], strides = [1, 1]} : vector<128x128xf32> to vector<64x128xf32>
    %cst_208 = arith.constant 5.000000e-01 : f32
    %174 = vector.broadcast %cst_208 : f32 to vector<64x128xf32>
    %175 = arith.mulf %174, %173 : vector<64x128xf32>
    %176 = math.tanh %175 : vector<64x128xf32>
    %cst_209 = arith.constant 1.000000e+00 : f32
    %177 = vector.broadcast %cst_209 : f32 to vector<64x128xf32>
    %178 = arith.addf %176, %177 : vector<64x128xf32>
    %cst_210 = arith.constant 5.000000e-01 : f32
    %179 = vector.broadcast %cst_210 : f32 to vector<64x128xf32>
    %180 = arith.mulf %179, %178 : vector<64x128xf32>
    %181 = vector.extract_strided_slice %172 {offsets = [64, 0], sizes = [64, 128], strides = [1, 1]} : vector<128x128xf32> to vector<64x128xf32>
    %cst_211 = arith.constant 0.000000e+00 : f32
    %182 = vector.broadcast %cst_211 : f32 to vector<64x128xf32>
    %183 = arith.subf %182, %181 : vector<64x128xf32>
    %cst_212 = arith.constant 5.000000e-01 : f32
    %184 = vector.broadcast %cst_212 : f32 to vector<64x128xf32>
    %185 = arith.mulf %184, %183 : vector<64x128xf32>
    %186 = math.tanh %185 : vector<64x128xf32>
    %cst_213 = arith.constant 1.000000e+00 : f32
    %187 = vector.broadcast %cst_213 : f32 to vector<64x128xf32>
    %188 = arith.addf %186, %187 : vector<64x128xf32>
    %cst_214 = arith.constant 5.000000e-01 : f32
    %189 = vector.broadcast %cst_214 : f32 to vector<64x128xf32>
    %190 = arith.mulf %189, %188 : vector<64x128xf32>
    %191 = arith.extf %166 : vector<64x128xbf16> to vector<64x128xf32>
    %192 = arith.mulf %180, %191 : vector<64x128xf32>
    %cst_215 = arith.constant 1.000000e+00 : f32
    %193 = vector.broadcast %cst_215 : f32 to vector<64x128xf32>
    %194 = arith.subf %193, %180 : vector<64x128xf32>
    %195 = arith.extf %167 : vector<64x128xbf16> to vector<64x128xf32>
    %196 = arith.mulf %194, %195 : vector<64x128xf32>
    %197 = arith.addf %192, %196 : vector<64x128xf32>
    %cst_216 = arith.constant 1.000000e+00 : f32
    %198 = vector.broadcast %cst_216 : f32 to vector<64x128xf32>
    %199 = arith.subf %198, %190 : vector<64x128xf32>
    %200 = arith.extf %166 : vector<64x128xbf16> to vector<64x128xf32>
    %201 = arith.mulf %199, %200 : vector<64x128xf32>
    %202 = arith.extf %167 : vector<64x128xbf16> to vector<64x128xf32>
    %203 = arith.mulf %190, %202 : vector<64x128xf32>
    %204 = arith.addf %201, %203 : vector<64x128xf32>
    %205 = tpu.concatenate %197, %204 in 0 : vector<64x128xf32>, vector<64x128xf32> -> vector<128x128xf32>
    %206 = arith.truncf %205 : vector<128x128xf32> to vector<128x128xbf16>
    %cst_217 = arith.constant dense<0.000000e+00> : vector<128x128xf32>
    %207 = tpu.matmul %206, %136, %cst_217 {dimension_numbers = #tpu.dot_dimension_numbers<[1], [0], [0], [1], [0, 0, 1, 1], [], []>} : vector<128x128xbf16>, vector<128x128xbf16>, vector<128x128xf32> -> vector<128x128xf32>
    %208 = vector.broadcast %144 : vector<1x128xf32> to vector<128x128xf32>
    %209 = arith.addf %207, %208 : vector<128x128xf32>
    %210 = arith.addf %108, %209 : vector<128x128xf32>
    %cst_218 = arith.constant dense<0.000000e+00> : vector<128xf32>
    %211 = vector.multi_reduction <add>, %210, %cst_218 [1] : vector<128x128xf32> to vector<128xf32>
    %212 = vector.shape_cast %211 : vector<128xf32> to vector<128x1xf32>
    %cst_219 = arith.constant 1.280000e+02 : f32
    %213 = vector.broadcast %cst_219 : f32 to vector<128x1xf32>
    %214 = arith.divf %212, %213 : vector<128x1xf32>
    %215 = vector.broadcast %214 : vector<128x1xf32> to vector<128x128xf32>
    %216 = arith.subf %210, %215 : vector<128x128xf32>
    %217 = arith.mulf %216, %216 : vector<128x128xf32>
    %cst_220 = arith.constant dense<0.000000e+00> : vector<128xf32>
    %218 = vector.multi_reduction <add>, %217, %cst_220 [1] : vector<128x128xf32> to vector<128xf32>
    %219 = vector.shape_cast %218 : vector<128xf32> to vector<128x1xf32>
    %cst_221 = arith.constant 1.280000e+02 : f32
    %220 = vector.broadcast %cst_221 : f32 to vector<128x1xf32>
    %221 = arith.divf %219, %220 : vector<128x1xf32>
    %222 = vector.broadcast %214 : vector<128x1xf32> to vector<128x128xf32>
    %223 = arith.subf %210, %222 : vector<128x128xf32>
    %cst_222 = arith.constant 9.99999974E-6 : f32
    %224 = vector.broadcast %cst_222 : f32 to vector<128x1xf32>
    %225 = arith.addf %221, %224 : vector<128x1xf32>
    %226 = math.rsqrt %225 : vector<128x1xf32>
    %227 = vector.broadcast %226 : vector<128x1xf32> to vector<128x128xf32>
    %228 = arith.mulf %223, %227 : vector<128x128xf32>
    %229 = vector.broadcast %146 : vector<1x128xf32> to vector<128x128xf32>
    %230 = arith.mulf %228, %229 : vector<128x128xf32>
    %231 = vector.broadcast %148 : vector<1x128xf32> to vector<128x128xf32>
    %232 = arith.addf %230, %231 : vector<128x128xf32>
    %233 = arith.truncf %232 : vector<128x128xf32> to vector<128x128xbf16>
    %cst_223 = arith.constant dense<0.000000e+00> : vector<128x256xf32>
    %234 = tpu.matmul %233, %138, %cst_223 {dimension_numbers = #tpu.dot_dimension_numbers<[1], [0], [0], [1], [0, 0, 1, 1], [], []>} : vector<128x128xbf16>, vector<128x256xbf16>, vector<128x256xf32> -> vector<128x256xf32>
    %235 = vector.broadcast %150 : vector<1x256xf32> to vector<128x256xf32>
    %236 = arith.addf %234, %235 : vector<128x256xf32>
    %cst_224 = arith.constant 0.000000e+00 : f32
    %237 = vector.broadcast %cst_224 : f32 to vector<128x256xf32>
    %238 = arith.maximumf %236, %237 : vector<128x256xf32>
    %239 = arith.truncf %238 : vector<128x256xf32> to vector<128x256xbf16>
    %cst_225 = arith.constant dense<0.000000e+00> : vector<128x128xf32>
    %240 = tpu.matmul %239, %140, %cst_225 {dimension_numbers = #tpu.dot_dimension_numbers<[1], [0], [0], [1], [0, 0, 1, 1], [], []>} : vector<128x256xbf16>, vector<256x128xbf16>, vector<128x128xf32> -> vector<128x128xf32>
    %241 = vector.broadcast %152 : vector<1x128xf32> to vector<128x128xf32>
    %242 = arith.addf %240, %241 : vector<128x128xf32>
    %243 = arith.addf %232, %242 : vector<128x128xf32>
    %cst_226 = arith.constant dense<0.000000e+00> : vector<128xf32>
    %244 = vector.multi_reduction <add>, %243, %cst_226 [1] : vector<128x128xf32> to vector<128xf32>
    %245 = vector.shape_cast %244 : vector<128xf32> to vector<128x1xf32>
    %cst_227 = arith.constant 1.280000e+02 : f32
    %246 = vector.broadcast %cst_227 : f32 to vector<128x1xf32>
    %247 = arith.divf %245, %246 : vector<128x1xf32>
    %248 = vector.broadcast %247 : vector<128x1xf32> to vector<128x128xf32>
    %249 = arith.subf %243, %248 : vector<128x128xf32>
    %250 = arith.mulf %249, %249 : vector<128x128xf32>
    %cst_228 = arith.constant dense<0.000000e+00> : vector<128xf32>
    %251 = vector.multi_reduction <add>, %250, %cst_228 [1] : vector<128x128xf32> to vector<128xf32>
    %252 = vector.shape_cast %251 : vector<128xf32> to vector<128x1xf32>
    %cst_229 = arith.constant 1.280000e+02 : f32
    %253 = vector.broadcast %cst_229 : f32 to vector<128x1xf32>
    %254 = arith.divf %252, %253 : vector<128x1xf32>
    %255 = vector.broadcast %247 : vector<128x1xf32> to vector<128x128xf32>
    %256 = arith.subf %243, %255 : vector<128x128xf32>
    %cst_230 = arith.constant 9.99999974E-6 : f32
    %257 = vector.broadcast %cst_230 : f32 to vector<128x1xf32>
    %258 = arith.addf %254, %257 : vector<128x1xf32>
    %259 = math.rsqrt %258 : vector<128x1xf32>
    %260 = vector.broadcast %259 : vector<128x1xf32> to vector<128x128xf32>
    %261 = arith.mulf %256, %260 : vector<128x128xf32>
    %262 = vector.broadcast %154 : vector<1x128xf32> to vector<128x128xf32>
    %263 = arith.mulf %261, %262 : vector<128x128xf32>
    %264 = vector.broadcast %156 : vector<1x128xf32> to vector<128x128xf32>
    %265 = arith.addf %263, %264 : vector<128x128xf32>
    %c1_i32_231 = arith.constant 1 : i32
    %c1_i32_232 = arith.constant 1 : i32
    %c0_i32_233 = arith.constant 0 : i32
    %c1_i32_234 = arith.constant 1 : i32
    %c0_i32_235 = arith.constant 0 : i32
    %c0_i32_236 = arith.constant 0 : i32
    %266 = tpu.memref_slice %arg19[%c1_i32_231, %c0_i32_235, %c0_i32_236] : memref<4x128x384xbf16, #tpu.memory_space<any>> -> memref<1x128x384xbf16, #tpu.memory_space<any>>
    %267 = tpu.memref_squeeze %266 : memref<1x128x384xbf16, #tpu.memory_space<any>> -> memref<128x384xbf16, #tpu.memory_space<any>>
    %c0_i32_237 = arith.constant 0 : i32
    %c0_i32_238 = arith.constant 0 : i32
    %268 = tpu.memref_slice %arg25[%c1_i32_232, %c0_i32_237, %c0_i32_238] : memref<4x128x384xbf16, #tpu.memory_space<vmem>> -> memref<1x128x384xbf16, #tpu.memory_space<vmem>>
    %269 = tpu.memref_squeeze %268 : memref<1x128x384xbf16, #tpu.memory_space<vmem>> -> memref<128x384xbf16, #tpu.memory_space<vmem>>
    %270 = tpu.memref_slice %arg29[%c0_i32_233, %c1_i32_234] : memref<4x4x!tpu.dma_semaphore, #tpu.memory_space<semaphore_mem>> -> memref<1x1x!tpu.dma_semaphore, #tpu.memory_space<semaphore_mem>>
    %271 = tpu.memref_squeeze %270 : memref<1x1x!tpu.dma_semaphore, #tpu.memory_space<semaphore_mem>> -> memref<!tpu.dma_semaphore, #tpu.memory_space<semaphore_mem>>
    tpu.wait_dma2 semaphore(%271 : memref<!tpu.dma_semaphore, #tpu.memory_space<semaphore_mem>>) src(%267 : memref<128x384xbf16, #tpu.memory_space<any>>) dst(%269 : memref<128x384xbf16, #tpu.memory_space<vmem>>)
    %c1_i32_239 = arith.constant 1 : i32
    %c1_i32_240 = arith.constant 1 : i32
    %c1_i32_241 = arith.constant 1 : i32
    %c1_i32_242 = arith.constant 1 : i32
    %c0_i32_243 = arith.constant 0 : i32
    %c0_i32_244 = arith.constant 0 : i32
    %272 = tpu.memref_slice %arg20[%c1_i32_239, %c0_i32_243, %c0_i32_244] : memref<4x128x128xbf16, #tpu.memory_space<any>> -> memref<1x128x128xbf16, #tpu.memory_space<any>>
    %273 = tpu.memref_squeeze %272 : memref<1x128x128xbf16, #tpu.memory_space<any>> -> memref<128x128xbf16, #tpu.memory_space<any>>
    %c0_i32_245 = arith.constant 0 : i32
    %c0_i32_246 = arith.constant 0 : i32
    %274 = tpu.memref_slice %arg26[%c1_i32_240, %c0_i32_245, %c0_i32_246] : memref<4x128x128xbf16, #tpu.memory_space<vmem>> -> memref<1x128x128xbf16, #tpu.memory_space<vmem>>
    %275 = tpu.memref_squeeze %274 : memref<1x128x128xbf16, #tpu.memory_space<vmem>> -> memref<128x128xbf16, #tpu.memory_space<vmem>>
    %276 = tpu.memref_slice %arg29[%c1_i32_241, %c1_i32_242] : memref<4x4x!tpu.dma_semaphore, #tpu.memory_space<semaphore_mem>> -> memref<1x1x!tpu.dma_semaphore, #tpu.memory_space<semaphore_mem>>
    %277 = tpu.memref_squeeze %276 : memref<1x1x!tpu.dma_semaphore, #tpu.memory_space<semaphore_mem>> -> memref<!tpu.dma_semaphore, #tpu.memory_space<semaphore_mem>>
    tpu.wait_dma2 semaphore(%277 : memref<!tpu.dma_semaphore, #tpu.memory_space<semaphore_mem>>) src(%273 : memref<128x128xbf16, #tpu.memory_space<any>>) dst(%275 : memref<128x128xbf16, #tpu.memory_space<vmem>>)
    %c1_i32_247 = arith.constant 1 : i32
    %c1_i32_248 = arith.constant 1 : i32
    %c2_i32_249 = arith.constant 2 : i32
    %c1_i32_250 = arith.constant 1 : i32
    %c0_i32_251 = arith.constant 0 : i32
    %c0_i32_252 = arith.constant 0 : i32
    %278 = tpu.memref_slice %arg21[%c1_i32_247, %c0_i32_251, %c0_i32_252] : memref<4x128x256xbf16, #tpu.memory_space<any>> -> memref<1x128x256xbf16, #tpu.memory_space<any>>
    %279 = tpu.memref_squeeze %278 : memref<1x128x256xbf16, #tpu.memory_space<any>> -> memref<128x256xbf16, #tpu.memory_space<any>>
    %c0_i32_253 = arith.constant 0 : i32
    %c0_i32_254 = arith.constant 0 : i32
    %280 = tpu.memref_slice %arg27[%c1_i32_248, %c0_i32_253, %c0_i32_254] : memref<4x128x256xbf16, #tpu.memory_space<vmem>> -> memref<1x128x256xbf16, #tpu.memory_space<vmem>>
    %281 = tpu.memref_squeeze %280 : memref<1x128x256xbf16, #tpu.memory_space<vmem>> -> memref<128x256xbf16, #tpu.memory_space<vmem>>
    %282 = tpu.memref_slice %arg29[%c2_i32_249, %c1_i32_250] : memref<4x4x!tpu.dma_semaphore, #tpu.memory_space<semaphore_mem>> -> memref<1x1x!tpu.dma_semaphore, #tpu.memory_space<semaphore_mem>>
    %283 = tpu.memref_squeeze %282 : memref<1x1x!tpu.dma_semaphore, #tpu.memory_space<semaphore_mem>> -> memref<!tpu.dma_semaphore, #tpu.memory_space<semaphore_mem>>
    tpu.wait_dma2 semaphore(%283 : memref<!tpu.dma_semaphore, #tpu.memory_space<semaphore_mem>>) src(%279 : memref<128x256xbf16, #tpu.memory_space<any>>) dst(%281 : memref<128x256xbf16, #tpu.memory_space<vmem>>)
    %c1_i32_255 = arith.constant 1 : i32
    %c1_i32_256 = arith.constant 1 : i32
    %c3_i32_257 = arith.constant 3 : i32
    %c1_i32_258 = arith.constant 1 : i32
    %c0_i32_259 = arith.constant 0 : i32
    %c0_i32_260 = arith.constant 0 : i32
    %284 = tpu.memref_slice %arg22[%c1_i32_255, %c0_i32_259, %c0_i32_260] : memref<4x256x128xbf16, #tpu.memory_space<any>> -> memref<1x256x128xbf16, #tpu.memory_space<any>>
    %285 = tpu.memref_squeeze %284 : memref<1x256x128xbf16, #tpu.memory_space<any>> -> memref<256x128xbf16, #tpu.memory_space<any>>
    %c0_i32_261 = arith.constant 0 : i32
    %c0_i32_262 = arith.constant 0 : i32
    %286 = tpu.memref_slice %arg28[%c1_i32_256, %c0_i32_261, %c0_i32_262] : memref<4x256x128xbf16, #tpu.memory_space<vmem>> -> memref<1x256x128xbf16, #tpu.memory_space<vmem>>
    %287 = tpu.memref_squeeze %286 : memref<1x256x128xbf16, #tpu.memory_space<vmem>> -> memref<256x128xbf16, #tpu.memory_space<vmem>>
    %288 = tpu.memref_slice %arg29[%c3_i32_257, %c1_i32_258] : memref<4x4x!tpu.dma_semaphore, #tpu.memory_space<semaphore_mem>> -> memref<1x1x!tpu.dma_semaphore, #tpu.memory_space<semaphore_mem>>
    %289 = tpu.memref_squeeze %288 : memref<1x1x!tpu.dma_semaphore, #tpu.memory_space<semaphore_mem>> -> memref<!tpu.dma_semaphore, #tpu.memory_space<semaphore_mem>>
    tpu.wait_dma2 semaphore(%289 : memref<!tpu.dma_semaphore, #tpu.memory_space<semaphore_mem>>) src(%285 : memref<256x128xbf16, #tpu.memory_space<any>>) dst(%287 : memref<256x128xbf16, #tpu.memory_space<vmem>>)
    %c1 = arith.constant 1 : index
    %c0_263 = arith.constant 0 : index
    %c0_264 = arith.constant 0 : index
    %290 = vector.load %arg25[%c1, %c0_263, %c0_264] : memref<4x128x384xbf16, #tpu.memory_space<vmem>>, vector<1x128x384xbf16>
    %291 = vector.shape_cast %290 : vector<1x128x384xbf16> to vector<128x384xbf16>
    %c1_265 = arith.constant 1 : index
    %c0_266 = arith.constant 0 : index
    %c0_267 = arith.constant 0 : index
    %292 = vector.load %arg26[%c1_265, %c0_266, %c0_267] : memref<4x128x128xbf16, #tpu.memory_space<vmem>>, vector<1x128x128xbf16>
    %293 = vector.shape_cast %292 : vector<1x128x128xbf16> to vector<128x128xbf16>
    %c1_268 = arith.constant 1 : index
    %c0_269 = arith.constant 0 : index
    %c0_270 = arith.constant 0 : index
    %294 = vector.load %arg27[%c1_268, %c0_269, %c0_270] : memref<4x128x256xbf16, #tpu.memory_space<vmem>>, vector<1x128x256xbf16>
    %295 = vector.shape_cast %294 : vector<1x128x256xbf16> to vector<128x256xbf16>
    %c1_271 = arith.constant 1 : index
    %c0_272 = arith.constant 0 : index
    %c0_273 = arith.constant 0 : index
    %296 = vector.load %arg28[%c1_271, %c0_272, %c0_273] : memref<4x256x128xbf16, #tpu.memory_space<vmem>>, vector<1x256x128xbf16>
    %297 = vector.shape_cast %296 : vector<1x256x128xbf16> to vector<256x128xbf16>
    %c1_274 = arith.constant 1 : index
    %c0_275 = arith.constant 0 : index
    %c0_276 = arith.constant 0 : index
    %298 = vector.load %arg11[%c1_274, %c0_275, %c0_276] : memref<4x1x384xf32, #tpu.memory_space<vmem>>, vector<1x1x384xf32>
    %299 = vector.shape_cast %298 : vector<1x1x384xf32> to vector<1x384xf32>
    %c1_277 = arith.constant 1 : index
    %c0_278 = arith.constant 0 : index
    %c0_279 = arith.constant 0 : index
    %300 = vector.load %arg12[%c1_277, %c0_278, %c0_279] : memref<4x1x128xf32, #tpu.memory_space<vmem>>, vector<1x1x128xf32>
    %301 = vector.shape_cast %300 : vector<1x1x128xf32> to vector<1x128xf32>
    %c1_280 = arith.constant 1 : index
    %c0_281 = arith.constant 0 : index
    %c0_282 = arith.constant 0 : index
    %302 = vector.load %arg13[%c1_280, %c0_281, %c0_282] : memref<4x1x128xf32, #tpu.memory_space<vmem>>, vector<1x1x128xf32>
    %303 = vector.shape_cast %302 : vector<1x1x128xf32> to vector<1x128xf32>
    %c1_283 = arith.constant 1 : index
    %c0_284 = arith.constant 0 : index
    %c0_285 = arith.constant 0 : index
    %304 = vector.load %arg14[%c1_283, %c0_284, %c0_285] : memref<4x1x128xf32, #tpu.memory_space<vmem>>, vector<1x1x128xf32>
    %305 = vector.shape_cast %304 : vector<1x1x128xf32> to vector<1x128xf32>
    %c1_286 = arith.constant 1 : index
    %c0_287 = arith.constant 0 : index
    %c0_288 = arith.constant 0 : index
    %306 = vector.load %arg15[%c1_286, %c0_287, %c0_288] : memref<4x1x256xf32, #tpu.memory_space<vmem>>, vector<1x1x256xf32>
    %307 = vector.shape_cast %306 : vector<1x1x256xf32> to vector<1x256xf32>
    %c1_289 = arith.constant 1 : index
    %c0_290 = arith.constant 0 : index
    %c0_291 = arith.constant 0 : index
    %308 = vector.load %arg16[%c1_289, %c0_290, %c0_291] : memref<4x1x128xf32, #tpu.memory_space<vmem>>, vector<1x1x128xf32>
    %309 = vector.shape_cast %308 : vector<1x1x128xf32> to vector<1x128xf32>
    %c1_292 = arith.constant 1 : index
    %c0_293 = arith.constant 0 : index
    %c0_294 = arith.constant 0 : index
    %310 = vector.load %arg17[%c1_292, %c0_293, %c0_294] : memref<4x1x128xf32, #tpu.memory_space<vmem>>, vector<1x1x128xf32>
    %311 = vector.shape_cast %310 : vector<1x1x128xf32> to vector<1x128xf32>
    %c1_295 = arith.constant 1 : index
    %c0_296 = arith.constant 0 : index
    %c0_297 = arith.constant 0 : index
    %312 = vector.load %arg18[%c1_295, %c0_296, %c0_297] : memref<4x1x128xf32, #tpu.memory_space<vmem>>, vector<1x1x128xf32>
    %313 = vector.shape_cast %312 : vector<1x1x128xf32> to vector<1x128xf32>
    %314 = arith.truncf %265 : vector<128x128xf32> to vector<128x128xbf16>
    %cst_298 = arith.constant dense<0.000000e+00> : vector<128x384xf32>
    %315 = tpu.matmul %314, %291, %cst_298 {dimension_numbers = #tpu.dot_dimension_numbers<[1], [0], [0], [1], [0, 0, 1, 1], [], []>} : vector<128x128xbf16>, vector<128x384xbf16>, vector<128x384xf32> -> vector<128x384xf32>
    %316 = vector.broadcast %299 : vector<1x384xf32> to vector<128x384xf32>
    %317 = arith.addf %315, %316 : vector<128x384xf32>
    %318 = arith.truncf %317 : vector<128x384xf32> to vector<128x384xbf16>
    %319 = vector.extract_strided_slice %318 {offsets = [0, 0], sizes = [64, 128], strides = [1, 1]} : vector<128x384xbf16> to vector<64x128xbf16>
    %320 = vector.extract_strided_slice %318 {offsets = [64, 0], sizes = [64, 128], strides = [1, 1]} : vector<128x384xbf16> to vector<64x128xbf16>
    %321 = vector.extract_strided_slice %318 {offsets = [0, 128], sizes = [64, 128], strides = [1, 1]} : vector<128x384xbf16> to vector<64x128xbf16>
    %322 = vector.extract_strided_slice %318 {offsets = [64, 128], sizes = [64, 128], strides = [1, 1]} : vector<128x384xbf16> to vector<64x128xbf16>
    %323 = vector.extract_strided_slice %318 {offsets = [0, 256], sizes = [64, 128], strides = [1, 1]} : vector<128x384xbf16> to vector<64x128xbf16>
    %324 = vector.extract_strided_slice %318 {offsets = [64, 256], sizes = [64, 128], strides = [1, 1]} : vector<128x384xbf16> to vector<64x128xbf16>
    %325 = arith.subf %321, %322 : vector<64x128xbf16>
    %326 = arith.mulf %319, %325 : vector<64x128xbf16>
    %327 = arith.mulf %320, %325 : vector<64x128xbf16>
    %328 = tpu.concatenate %326, %327 in 0 : vector<64x128xbf16>, vector<64x128xbf16> -> vector<128x128xbf16>
    %cst_299 = arith.constant dense<0.000000e+00> : vector<128x128xf32>
    %329 = tpu.matmul %328, %96, %cst_299 {dimension_numbers = #tpu.dot_dimension_numbers<[1], [0], [0], [1], [0, 0, 1, 1], [], []>} : vector<128x128xbf16>, vector<128x128xbf16>, vector<128x128xf32> -> vector<128x128xf32>
    %330 = vector.extract_strided_slice %329 {offsets = [0, 0], sizes = [64, 128], strides = [1, 1]} : vector<128x128xf32> to vector<64x128xf32>
    %cst_300 = arith.constant 5.000000e-01 : f32
    %331 = vector.broadcast %cst_300 : f32 to vector<64x128xf32>
    %332 = arith.mulf %331, %330 : vector<64x128xf32>
    %333 = math.tanh %332 : vector<64x128xf32>
    %cst_301 = arith.constant 1.000000e+00 : f32
    %334 = vector.broadcast %cst_301 : f32 to vector<64x128xf32>
    %335 = arith.addf %333, %334 : vector<64x128xf32>
    %cst_302 = arith.constant 5.000000e-01 : f32
    %336 = vector.broadcast %cst_302 : f32 to vector<64x128xf32>
    %337 = arith.mulf %336, %335 : vector<64x128xf32>
    %338 = vector.extract_strided_slice %329 {offsets = [64, 0], sizes = [64, 128], strides = [1, 1]} : vector<128x128xf32> to vector<64x128xf32>
    %cst_303 = arith.constant 0.000000e+00 : f32
    %339 = vector.broadcast %cst_303 : f32 to vector<64x128xf32>
    %340 = arith.subf %339, %338 : vector<64x128xf32>
    %cst_304 = arith.constant 5.000000e-01 : f32
    %341 = vector.broadcast %cst_304 : f32 to vector<64x128xf32>
    %342 = arith.mulf %341, %340 : vector<64x128xf32>
    %343 = math.tanh %342 : vector<64x128xf32>
    %cst_305 = arith.constant 1.000000e+00 : f32
    %344 = vector.broadcast %cst_305 : f32 to vector<64x128xf32>
    %345 = arith.addf %343, %344 : vector<64x128xf32>
    %cst_306 = arith.constant 5.000000e-01 : f32
    %346 = vector.broadcast %cst_306 : f32 to vector<64x128xf32>
    %347 = arith.mulf %346, %345 : vector<64x128xf32>
    %348 = arith.extf %323 : vector<64x128xbf16> to vector<64x128xf32>
    %349 = arith.mulf %337, %348 : vector<64x128xf32>
    %cst_307 = arith.constant 1.000000e+00 : f32
    %350 = vector.broadcast %cst_307 : f32 to vector<64x128xf32>
    %351 = arith.subf %350, %337 : vector<64x128xf32>
    %352 = arith.extf %324 : vector<64x128xbf16> to vector<64x128xf32>
    %353 = arith.mulf %351, %352 : vector<64x128xf32>
    %354 = arith.addf %349, %353 : vector<64x128xf32>
    %cst_308 = arith.constant 1.000000e+00 : f32
    %355 = vector.broadcast %cst_308 : f32 to vector<64x128xf32>
    %356 = arith.subf %355, %347 : vector<64x128xf32>
    %357 = arith.extf %323 : vector<64x128xbf16> to vector<64x128xf32>
    %358 = arith.mulf %356, %357 : vector<64x128xf32>
    %359 = arith.extf %324 : vector<64x128xbf16> to vector<64x128xf32>
    %360 = arith.mulf %347, %359 : vector<64x128xf32>
    %361 = arith.addf %358, %360 : vector<64x128xf32>
    %362 = tpu.concatenate %354, %361 in 0 : vector<64x128xf32>, vector<64x128xf32> -> vector<128x128xf32>
    %363 = arith.truncf %362 : vector<128x128xf32> to vector<128x128xbf16>
    %cst_309 = arith.constant dense<0.000000e+00> : vector<128x128xf32>
    %364 = tpu.matmul %363, %293, %cst_309 {dimension_numbers = #tpu.dot_dimension_numbers<[1], [0], [0], [1], [0, 0, 1, 1], [], []>} : vector<128x128xbf16>, vector<128x128xbf16>, vector<128x128xf32> -> vector<128x128xf32>
    %365 = vector.broadcast %301 : vector<1x128xf32> to vector<128x128xf32>
    %366 = arith.addf %364, %365 : vector<128x128xf32>
    %367 = arith.addf %265, %366 : vector<128x128xf32>
    %cst_310 = arith.constant dense<0.000000e+00> : vector<128xf32>
    %368 = vector.multi_reduction <add>, %367, %cst_310 [1] : vector<128x128xf32> to vector<128xf32>
    %369 = vector.shape_cast %368 : vector<128xf32> to vector<128x1xf32>
    %cst_311 = arith.constant 1.280000e+02 : f32
    %370 = vector.broadcast %cst_311 : f32 to vector<128x1xf32>
    %371 = arith.divf %369, %370 : vector<128x1xf32>
    %372 = vector.broadcast %371 : vector<128x1xf32> to vector<128x128xf32>
    %373 = arith.subf %367, %372 : vector<128x128xf32>
    %374 = arith.mulf %373, %373 : vector<128x128xf32>
    %cst_312 = arith.constant dense<0.000000e+00> : vector<128xf32>
    %375 = vector.multi_reduction <add>, %374, %cst_312 [1] : vector<128x128xf32> to vector<128xf32>
    %376 = vector.shape_cast %375 : vector<128xf32> to vector<128x1xf32>
    %cst_313 = arith.constant 1.280000e+02 : f32
    %377 = vector.broadcast %cst_313 : f32 to vector<128x1xf32>
    %378 = arith.divf %376, %377 : vector<128x1xf32>
    %379 = vector.broadcast %371 : vector<128x1xf32> to vector<128x128xf32>
    %380 = arith.subf %367, %379 : vector<128x128xf32>
    %cst_314 = arith.constant 9.99999974E-6 : f32
    %381 = vector.broadcast %cst_314 : f32 to vector<128x1xf32>
    %382 = arith.addf %378, %381 : vector<128x1xf32>
    %383 = math.rsqrt %382 : vector<128x1xf32>
    %384 = vector.broadcast %383 : vector<128x1xf32> to vector<128x128xf32>
    %385 = arith.mulf %380, %384 : vector<128x128xf32>
    %386 = vector.broadcast %303 : vector<1x128xf32> to vector<128x128xf32>
    %387 = arith.mulf %385, %386 : vector<128x128xf32>
    %388 = vector.broadcast %305 : vector<1x128xf32> to vector<128x128xf32>
    %389 = arith.addf %387, %388 : vector<128x128xf32>
    %390 = arith.truncf %389 : vector<128x128xf32> to vector<128x128xbf16>
    %cst_315 = arith.constant dense<0.000000e+00> : vector<128x256xf32>
    %391 = tpu.matmul %390, %295, %cst_315 {dimension_numbers = #tpu.dot_dimension_numbers<[1], [0], [0], [1], [0, 0, 1, 1], [], []>} : vector<128x128xbf16>, vector<128x256xbf16>, vector<128x256xf32> -> vector<128x256xf32>
    %392 = vector.broadcast %307 : vector<1x256xf32> to vector<128x256xf32>
    %393 = arith.addf %391, %392 : vector<128x256xf32>
    %cst_316 = arith.constant 0.000000e+00 : f32
    %394 = vector.broadcast %cst_316 : f32 to vector<128x256xf32>
    %395 = arith.maximumf %393, %394 : vector<128x256xf32>
    %396 = arith.truncf %395 : vector<128x256xf32> to vector<128x256xbf16>
    %cst_317 = arith.constant dense<0.000000e+00> : vector<128x128xf32>
    %397 = tpu.matmul %396, %297, %cst_317 {dimension_numbers = #tpu.dot_dimension_numbers<[1], [0], [0], [1], [0, 0, 1, 1], [], []>} : vector<128x256xbf16>, vector<256x128xbf16>, vector<128x128xf32> -> vector<128x128xf32>
    %398 = vector.broadcast %309 : vector<1x128xf32> to vector<128x128xf32>
    %399 = arith.addf %397, %398 : vector<128x128xf32>
    %400 = arith.addf %389, %399 : vector<128x128xf32>
    %cst_318 = arith.constant dense<0.000000e+00> : vector<128xf32>
    %401 = vector.multi_reduction <add>, %400, %cst_318 [1] : vector<128x128xf32> to vector<128xf32>
    %402 = vector.shape_cast %401 : vector<128xf32> to vector<128x1xf32>
    %cst_319 = arith.constant 1.280000e+02 : f32
    %403 = vector.broadcast %cst_319 : f32 to vector<128x1xf32>
    %404 = arith.divf %402, %403 : vector<128x1xf32>
    %405 = vector.broadcast %404 : vector<128x1xf32> to vector<128x128xf32>
    %406 = arith.subf %400, %405 : vector<128x128xf32>
    %407 = arith.mulf %406, %406 : vector<128x128xf32>
    %cst_320 = arith.constant dense<0.000000e+00> : vector<128xf32>
    %408 = vector.multi_reduction <add>, %407, %cst_320 [1] : vector<128x128xf32> to vector<128xf32>
    %409 = vector.shape_cast %408 : vector<128xf32> to vector<128x1xf32>
    %cst_321 = arith.constant 1.280000e+02 : f32
    %410 = vector.broadcast %cst_321 : f32 to vector<128x1xf32>
    %411 = arith.divf %409, %410 : vector<128x1xf32>
    %412 = vector.broadcast %404 : vector<128x1xf32> to vector<128x128xf32>
    %413 = arith.subf %400, %412 : vector<128x128xf32>
    %cst_322 = arith.constant 9.99999974E-6 : f32
    %414 = vector.broadcast %cst_322 : f32 to vector<128x1xf32>
    %415 = arith.addf %411, %414 : vector<128x1xf32>
    %416 = math.rsqrt %415 : vector<128x1xf32>
    %417 = vector.broadcast %416 : vector<128x1xf32> to vector<128x128xf32>
    %418 = arith.mulf %413, %417 : vector<128x128xf32>
    %419 = vector.broadcast %311 : vector<1x128xf32> to vector<128x128xf32>
    %420 = arith.mulf %418, %419 : vector<128x128xf32>
    %421 = vector.broadcast %313 : vector<1x128xf32> to vector<128x128xf32>
    %422 = arith.addf %420, %421 : vector<128x128xf32>
    %c0_323 = arith.constant 0 : index
    %c0_324 = arith.constant 0 : index
    %423 = vector.load %arg7[%c0_323, %c0_324] : memref<128x1xf32, #tpu.memory_space<vmem>>, vector<128x1xf32>
    %424 = vector.broadcast %423 : vector<128x1xf32> to vector<128x128xf32>
    %425 = arith.mulf %422, %424 : vector<128x128xf32>
    %426 = vector.shape_cast %425 : vector<128x128xf32> to vector<2x64x128xf32>
    %427 = vector.extract_strided_slice %426 {offsets = [0, 0, 0], sizes = [2, 16, 128], strides = [1, 1, 1]} : vector<2x64x128xf32> to vector<2x16x128xf32>
    %428 = vector.extract_strided_slice %426 {offsets = [0, 16, 0], sizes = [2, 16, 128], strides = [1, 1, 1]} : vector<2x64x128xf32> to vector<2x16x128xf32>
    %429 = arith.addf %427, %428 : vector<2x16x128xf32>
    %430 = vector.extract_strided_slice %426 {offsets = [0, 32, 0], sizes = [2, 16, 128], strides = [1, 1, 1]} : vector<2x64x128xf32> to vector<2x16x128xf32>
    %431 = arith.addf %429, %430 : vector<2x16x128xf32>
    %432 = vector.extract_strided_slice %426 {offsets = [0, 48, 0], sizes = [2, 16, 128], strides = [1, 1, 1]} : vector<2x64x128xf32> to vector<2x16x128xf32>
    %433 = arith.addf %431, %432 : vector<2x16x128xf32>
    %434 = vector.shape_cast %433 : vector<2x16x128xf32> to vector<32x128xf32>
    %435 = arith.addf %102, %434 : vector<32x128xf32>
    %c0_325 = arith.constant 0 : index
    %c0_326 = arith.constant 0 : index
    %436 = vector.load %arg8[%c0_325, %c0_326] : memref<1x1xf32, #tpu.memory_space<vmem>>, vector<1x1xf32>
    %437 = vector.broadcast %436 : vector<1x1xf32> to vector<32x128xf32>
    %438 = arith.addf %435, %437 : vector<32x128xf32>
    %439 = vector.shape_cast %438 : vector<32x128xf32> to vector<2x16x128xf32>
    %c0_327 = arith.constant 0 : index
    %c0_328 = arith.constant 0 : index
    %c0_329 = arith.constant 0 : index
    %440 = vector.load %arg24[%c0_327, %c0_328, %c0_329] : memref<2x16x128xf32, #tpu.memory_space<vmem>>, vector<2x16x128xf32>
    tpu.vector_store %arg24[%c0_327, %c0_328, %c0_329], %439 {strides = array<i32>} : memref<2x16x128xf32, #tpu.memory_space<vmem>>, vector<2x16x128xf32>,
    %c2_i32_330 = arith.constant 2 : i32
    %c2_i32_331 = arith.constant 2 : i32
    %c0_i32_332 = arith.constant 0 : i32
    %c2_i32_333 = arith.constant 2 : i32
    %c0_i32_334 = arith.constant 0 : i32
    %c0_i32_335 = arith.constant 0 : i32
    %441 = tpu.memref_slice %arg19[%c2_i32_330, %c0_i32_334, %c0_i32_335] : memref<4x128x384xbf16, #tpu.memory_space<any>> -> memref<1x128x384xbf16, #tpu.memory_space<any>>
    %442 = tpu.memref_squeeze %441 : memref<1x128x384xbf16, #tpu.memory_space<any>> -> memref<128x384xbf16, #tpu.memory_space<any>>
    %c0_i32_336 = arith.constant 0 : i32
    %c0_i32_337 = arith.constant 0 : i32
    %443 = tpu.memref_slice %arg25[%c2_i32_331, %c0_i32_336, %c0_i32_337] : memref<4x128x384xbf16, #tpu.memory_space<vmem>> -> memref<1x128x384xbf16, #tpu.memory_space<vmem>>
    %444 = tpu.memref_squeeze %443 : memref<1x128x384xbf16, #tpu.memory_space<vmem>> -> memref<128x384xbf16, #tpu.memory_space<vmem>>
    %445 = tpu.memref_slice %arg29[%c0_i32_332, %c2_i32_333] : memref<4x4x!tpu.dma_semaphore, #tpu.memory_space<semaphore_mem>> -> memref<1x1x!tpu.dma_semaphore, #tpu.memory_space<semaphore_mem>>
    %446 = tpu.memref_squeeze %445 : memref<1x1x!tpu.dma_semaphore, #tpu.memory_space<semaphore_mem>> -> memref<!tpu.dma_semaphore, #tpu.memory_space<semaphore_mem>>
    tpu.wait_dma2 semaphore(%446 : memref<!tpu.dma_semaphore, #tpu.memory_space<semaphore_mem>>) src(%442 : memref<128x384xbf16, #tpu.memory_space<any>>) dst(%444 : memref<128x384xbf16, #tpu.memory_space<vmem>>)
    %c2_i32_338 = arith.constant 2 : i32
    %c2_i32_339 = arith.constant 2 : i32
    %c1_i32_340 = arith.constant 1 : i32
    %c2_i32_341 = arith.constant 2 : i32
    %c0_i32_342 = arith.constant 0 : i32
    %c0_i32_343 = arith.constant 0 : i32
    %447 = tpu.memref_slice %arg20[%c2_i32_338, %c0_i32_342, %c0_i32_343] : memref<4x128x128xbf16, #tpu.memory_space<any>> -> memref<1x128x128xbf16, #tpu.memory_space<any>>
    %448 = tpu.memref_squeeze %447 : memref<1x128x128xbf16, #tpu.memory_space<any>> -> memref<128x128xbf16, #tpu.memory_space<any>>
    %c0_i32_344 = arith.constant 0 : i32
    %c0_i32_345 = arith.constant 0 : i32
    %449 = tpu.memref_slice %arg26[%c2_i32_339, %c0_i32_344, %c0_i32_345] : memref<4x128x128xbf16, #tpu.memory_space<vmem>> -> memref<1x128x128xbf16, #tpu.memory_space<vmem>>
    %450 = tpu.memref_squeeze %449 : memref<1x128x128xbf16, #tpu.memory_space<vmem>> -> memref<128x128xbf16, #tpu.memory_space<vmem>>
    %451 = tpu.memref_slice %arg29[%c1_i32_340, %c2_i32_341] : memref<4x4x!tpu.dma_semaphore, #tpu.memory_space<semaphore_mem>> -> memref<1x1x!tpu.dma_semaphore, #tpu.memory_space<semaphore_mem>>
    %452 = tpu.memref_squeeze %451 : memref<1x1x!tpu.dma_semaphore, #tpu.memory_space<semaphore_mem>> -> memref<!tpu.dma_semaphore, #tpu.memory_space<semaphore_mem>>
    tpu.wait_dma2 semaphore(%452 : memref<!tpu.dma_semaphore, #tpu.memory_space<semaphore_mem>>) src(%448 : memref<128x128xbf16, #tpu.memory_space<any>>) dst(%450 : memref<128x128xbf16, #tpu.memory_space<vmem>>)
    %c2_i32_346 = arith.constant 2 : i32
    %c2_i32_347 = arith.constant 2 : i32
    %c2_i32_348 = arith.constant 2 : i32
    %c2_i32_349 = arith.constant 2 : i32
    %c0_i32_350 = arith.constant 0 : i32
    %c0_i32_351 = arith.constant 0 : i32
    %453 = tpu.memref_slice %arg21[%c2_i32_346, %c0_i32_350, %c0_i32_351] : memref<4x128x256xbf16, #tpu.memory_space<any>> -> memref<1x128x256xbf16, #tpu.memory_space<any>>
    %454 = tpu.memref_squeeze %453 : memref<1x128x256xbf16, #tpu.memory_space<any>> -> memref<128x256xbf16, #tpu.memory_space<any>>
    %c0_i32_352 = arith.constant 0 : i32
    %c0_i32_353 = arith.constant 0 : i32
    %455 = tpu.memref_slice %arg27[%c2_i32_347, %c0_i32_352, %c0_i32_353] : memref<4x128x256xbf16, #tpu.memory_space<vmem>> -> memref<1x128x256xbf16, #tpu.memory_space<vmem>>
    %456 = tpu.memref_squeeze %455 : memref<1x128x256xbf16, #tpu.memory_space<vmem>> -> memref<128x256xbf16, #tpu.memory_space<vmem>>
    %457 = tpu.memref_slice %arg29[%c2_i32_348, %c2_i32_349] : memref<4x4x!tpu.dma_semaphore, #tpu.memory_space<semaphore_mem>> -> memref<1x1x!tpu.dma_semaphore, #tpu.memory_space<semaphore_mem>>
    %458 = tpu.memref_squeeze %457 : memref<1x1x!tpu.dma_semaphore, #tpu.memory_space<semaphore_mem>> -> memref<!tpu.dma_semaphore, #tpu.memory_space<semaphore_mem>>
    tpu.wait_dma2 semaphore(%458 : memref<!tpu.dma_semaphore, #tpu.memory_space<semaphore_mem>>) src(%454 : memref<128x256xbf16, #tpu.memory_space<any>>) dst(%456 : memref<128x256xbf16, #tpu.memory_space<vmem>>)
    %c2_i32_354 = arith.constant 2 : i32
    %c2_i32_355 = arith.constant 2 : i32
    %c3_i32_356 = arith.constant 3 : i32
    %c2_i32_357 = arith.constant 2 : i32
    %c0_i32_358 = arith.constant 0 : i32
    %c0_i32_359 = arith.constant 0 : i32
    %459 = tpu.memref_slice %arg22[%c2_i32_354, %c0_i32_358, %c0_i32_359] : memref<4x256x128xbf16, #tpu.memory_space<any>> -> memref<1x256x128xbf16, #tpu.memory_space<any>>
    %460 = tpu.memref_squeeze %459 : memref<1x256x128xbf16, #tpu.memory_space<any>> -> memref<256x128xbf16, #tpu.memory_space<any>>
    %c0_i32_360 = arith.constant 0 : i32
    %c0_i32_361 = arith.constant 0 : i32
    %461 = tpu.memref_slice %arg28[%c2_i32_355, %c0_i32_360, %c0_i32_361] : memref<4x256x128xbf16, #tpu.memory_space<vmem>> -> memref<1x256x128xbf16, #tpu.memory_space<vmem>>
    %462 = tpu.memref_squeeze %461 : memref<1x256x128xbf16, #tpu.memory_space<vmem>> -> memref<256x128xbf16, #tpu.memory_space<vmem>>
    %463 = tpu.memref_slice %arg29[%c3_i32_356, %c2_i32_357] : memref<4x4x!tpu.dma_semaphore, #tpu.memory_space<semaphore_mem>> -> memref<1x1x!tpu.dma_semaphore, #tpu.memory_space<semaphore_mem>>
    %464 = tpu.memref_squeeze %463 : memref<1x1x!tpu.dma_semaphore, #tpu.memory_space<semaphore_mem>> -> memref<!tpu.dma_semaphore, #tpu.memory_space<semaphore_mem>>
    tpu.wait_dma2 semaphore(%464 : memref<!tpu.dma_semaphore, #tpu.memory_space<semaphore_mem>>) src(%460 : memref<256x128xbf16, #tpu.memory_space<any>>) dst(%462 : memref<256x128xbf16, #tpu.memory_space<vmem>>)
    %c2 = arith.constant 2 : index
    %c0_362 = arith.constant 0 : index
    %c0_363 = arith.constant 0 : index
    %465 = vector.load %arg25[%c2, %c0_362, %c0_363] : memref<4x128x384xbf16, #tpu.memory_space<vmem>>, vector<1x128x384xbf16>
    %466 = vector.shape_cast %465 : vector<1x128x384xbf16> to vector<128x384xbf16>
    %c2_364 = arith.constant 2 : index
    %c0_365 = arith.constant 0 : index
    %c0_366 = arith.constant 0 : index
    %467 = vector.load %arg26[%c2_364, %c0_365, %c0_366] : memref<4x128x128xbf16, #tpu.memory_space<vmem>>, vector<1x128x128xbf16>
    %468 = vector.shape_cast %467 : vector<1x128x128xbf16> to vector<128x128xbf16>
    %c2_367 = arith.constant 2 : index
    %c0_368 = arith.constant 0 : index
    %c0_369 = arith.constant 0 : index
    %469 = vector.load %arg27[%c2_367, %c0_368, %c0_369] : memref<4x128x256xbf16, #tpu.memory_space<vmem>>, vector<1x128x256xbf16>
    %470 = vector.shape_cast %469 : vector<1x128x256xbf16> to vector<128x256xbf16>
    %c2_370 = arith.constant 2 : index
    %c0_371 = arith.constant 0 : index
    %c0_372 = arith.constant 0 : index
    %471 = vector.load %arg28[%c2_370, %c0_371, %c0_372] : memref<4x256x128xbf16, #tpu.memory_space<vmem>>, vector<1x256x128xbf16>
    %472 = vector.shape_cast %471 : vector<1x256x128xbf16> to vector<256x128xbf16>
    %c2_373 = arith.constant 2 : index
    %c0_374 = arith.constant 0 : index
    %c0_375 = arith.constant 0 : index
    %473 = vector.load %arg11[%c2_373, %c0_374, %c0_375] : memref<4x1x384xf32, #tpu.memory_space<vmem>>, vector<1x1x384xf32>
    %474 = vector.shape_cast %473 : vector<1x1x384xf32> to vector<1x384xf32>
    %c2_376 = arith.constant 2 : index
    %c0_377 = arith.constant 0 : index
    %c0_378 = arith.constant 0 : index
    %475 = vector.load %arg12[%c2_376, %c0_377, %c0_378] : memref<4x1x128xf32, #tpu.memory_space<vmem>>, vector<1x1x128xf32>
    %476 = vector.shape_cast %475 : vector<1x1x128xf32> to vector<1x128xf32>
    %c2_379 = arith.constant 2 : index
    %c0_380 = arith.constant 0 : index
    %c0_381 = arith.constant 0 : index
    %477 = vector.load %arg13[%c2_379, %c0_380, %c0_381] : memref<4x1x128xf32, #tpu.memory_space<vmem>>, vector<1x1x128xf32>
    %478 = vector.shape_cast %477 : vector<1x1x128xf32> to vector<1x128xf32>
    %c2_382 = arith.constant 2 : index
    %c0_383 = arith.constant 0 : index
    %c0_384 = arith.constant 0 : index
    %479 = vector.load %arg14[%c2_382, %c0_383, %c0_384] : memref<4x1x128xf32, #tpu.memory_space<vmem>>, vector<1x1x128xf32>
    %480 = vector.shape_cast %479 : vector<1x1x128xf32> to vector<1x128xf32>
    %c2_385 = arith.constant 2 : index
    %c0_386 = arith.constant 0 : index
    %c0_387 = arith.constant 0 : index
    %481 = vector.load %arg15[%c2_385, %c0_386, %c0_387] : memref<4x1x256xf32, #tpu.memory_space<vmem>>, vector<1x1x256xf32>
    %482 = vector.shape_cast %481 : vector<1x1x256xf32> to vector<1x256xf32>
    %c2_388 = arith.constant 2 : index
    %c0_389 = arith.constant 0 : index
    %c0_390 = arith.constant 0 : index
    %483 = vector.load %arg16[%c2_388, %c0_389, %c0_390] : memref<4x1x128xf32, #tpu.memory_space<vmem>>, vector<1x1x128xf32>
    %484 = vector.shape_cast %483 : vector<1x1x128xf32> to vector<1x128xf32>
    %c2_391 = arith.constant 2 : index
    %c0_392 = arith.constant 0 : index
    %c0_393 = arith.constant 0 : index
    %485 = vector.load %arg17[%c2_391, %c0_392, %c0_393] : memref<4x1x128xf32, #tpu.memory_space<vmem>>, vector<1x1x128xf32>
    %486 = vector.shape_cast %485 : vector<1x1x128xf32> to vector<1x128xf32>
    %c2_394 = arith.constant 2 : index
    %c0_395 = arith.constant 0 : index
    %c0_396 = arith.constant 0 : index
    %487 = vector.load %arg18[%c2_394, %c0_395, %c0_396] : memref<4x1x128xf32, #tpu.memory_space<vmem>>, vector<1x1x128xf32>
    %488 = vector.shape_cast %487 : vector<1x1x128xf32> to vector<1x128xf32>
    %489 = arith.truncf %438 : vector<32x128xf32> to vector<32x128xbf16>
    %cst_397 = arith.constant dense<0.000000e+00> : vector<32x384xf32>
    %490 = tpu.matmul %489, %466, %cst_397 {dimension_numbers = #tpu.dot_dimension_numbers<[1], [0], [0], [1], [0, 0, 1, 1], [], []>} : vector<32x128xbf16>, vector<128x384xbf16>, vector<32x384xf32> -> vector<32x384xf32>
    %491 = vector.broadcast %474 : vector<1x384xf32> to vector<32x384xf32>
    %492 = arith.addf %490, %491 : vector<32x384xf32>
    %493 = arith.truncf %492 : vector<32x384xf32> to vector<32x384xbf16>
    %494 = vector.extract_strided_slice %493 {offsets = [0, 0], sizes = [16, 128], strides = [1, 1]} : vector<32x384xbf16> to vector<16x128xbf16>
    %495 = vector.extract_strided_slice %493 {offsets = [16, 0], sizes = [16, 128], strides = [1, 1]} : vector<32x384xbf16> to vector<16x128xbf16>
    %496 = vector.extract_strided_slice %493 {offsets = [0, 128], sizes = [16, 128], strides = [1, 1]} : vector<32x384xbf16> to vector<16x128xbf16>
    %497 = vector.extract_strided_slice %493 {offsets = [16, 128], sizes = [16, 128], strides = [1, 1]} : vector<32x384xbf16> to vector<16x128xbf16>
    %498 = vector.extract_strided_slice %493 {offsets = [0, 256], sizes = [16, 128], strides = [1, 1]} : vector<32x384xbf16> to vector<16x128xbf16>
    %499 = vector.extract_strided_slice %493 {offsets = [16, 256], sizes = [16, 128], strides = [1, 1]} : vector<32x384xbf16> to vector<16x128xbf16>
    %500 = arith.subf %496, %497 : vector<16x128xbf16>
    %501 = arith.mulf %494, %500 : vector<16x128xbf16>
    %502 = arith.mulf %495, %500 : vector<16x128xbf16>
    %503 = tpu.concatenate %501, %502 in 0 : vector<16x128xbf16>, vector<16x128xbf16> -> vector<32x128xbf16>
    %cst_398 = arith.constant dense<0.000000e+00> : vector<32x128xf32>
    %504 = tpu.matmul %503, %96, %cst_398 {dimension_numbers = #tpu.dot_dimension_numbers<[1], [0], [0], [1], [0, 0, 1, 1], [], []>} : vector<32x128xbf16>, vector<128x128xbf16>, vector<32x128xf32> -> vector<32x128xf32>
    %505 = vector.extract_strided_slice %504 {offsets = [0, 0], sizes = [16, 128], strides = [1, 1]} : vector<32x128xf32> to vector<16x128xf32>
    %cst_399 = arith.constant 5.000000e-01 : f32
    %506 = vector.broadcast %cst_399 : f32 to vector<16x128xf32>
    %507 = arith.mulf %506, %505 : vector<16x128xf32>
    %508 = math.tanh %507 : vector<16x128xf32>
    %cst_400 = arith.constant 1.000000e+00 : f32
    %509 = vector.broadcast %cst_400 : f32 to vector<16x128xf32>
    %510 = arith.addf %508, %509 : vector<16x128xf32>
    %cst_401 = arith.constant 5.000000e-01 : f32
    %511 = vector.broadcast %cst_401 : f32 to vector<16x128xf32>
    %512 = arith.mulf %511, %510 : vector<16x128xf32>
    %513 = vector.extract_strided_slice %504 {offsets = [16, 0], sizes = [16, 128], strides = [1, 1]} : vector<32x128xf32> to vector<16x128xf32>
    %cst_402 = arith.constant 0.000000e+00 : f32
    %514 = vector.broadcast %cst_402 : f32 to vector<16x128xf32>
    %515 = arith.subf %514, %513 : vector<16x128xf32>
    %cst_403 = arith.constant 5.000000e-01 : f32
    %516 = vector.broadcast %cst_403 : f32 to vector<16x128xf32>
    %517 = arith.mulf %516, %515 : vector<16x128xf32>
    %518 = math.tanh %517 : vector<16x128xf32>
    %cst_404 = arith.constant 1.000000e+00 : f32
    %519 = vector.broadcast %cst_404 : f32 to vector<16x128xf32>
    %520 = arith.addf %518, %519 : vector<16x128xf32>
    %cst_405 = arith.constant 5.000000e-01 : f32
    %521 = vector.broadcast %cst_405 : f32 to vector<16x128xf32>
    %522 = arith.mulf %521, %520 : vector<16x128xf32>
    %523 = arith.extf %498 : vector<16x128xbf16> to vector<16x128xf32>
    %524 = arith.mulf %512, %523 : vector<16x128xf32>
    %cst_406 = arith.constant 1.000000e+00 : f32
    %525 = vector.broadcast %cst_406 : f32 to vector<16x128xf32>
    %526 = arith.subf %525, %512 : vector<16x128xf32>
    %527 = arith.extf %499 : vector<16x128xbf16> to vector<16x128xf32>
    %528 = arith.mulf %526, %527 : vector<16x128xf32>
    %529 = arith.addf %524, %528 : vector<16x128xf32>
    %cst_407 = arith.constant 1.000000e+00 : f32
    %530 = vector.broadcast %cst_407 : f32 to vector<16x128xf32>
    %531 = arith.subf %530, %522 : vector<16x128xf32>
    %532 = arith.extf %498 : vector<16x128xbf16> to vector<16x128xf32>
    %533 = arith.mulf %531, %532 : vector<16x128xf32>
    %534 = arith.extf %499 : vector<16x128xbf16> to vector<16x128xf32>
    %535 = arith.mulf %522, %534 : vector<16x128xf32>
    %536 = arith.addf %533, %535 : vector<16x128xf32>
    %537 = tpu.concatenate %529, %536 in 0 : vector<16x128xf32>, vector<16x128xf32> -> vector<32x128xf32>
    %538 = arith.truncf %537 : vector<32x128xf32> to vector<32x128xbf16>
    %cst_408 = arith.constant dense<0.000000e+00> : vector<32x128xf32>
    %539 = tpu.matmul %538, %468, %cst_408 {dimension_numbers = #tpu.dot_dimension_numbers<[1], [0], [0], [1], [0, 0, 1, 1], [], []>} : vector<32x128xbf16>, vector<128x128xbf16>, vector<32x128xf32> -> vector<32x128xf32>
    %540 = vector.broadcast %476 : vector<1x128xf32> to vector<32x128xf32>
    %541 = arith.addf %539, %540 : vector<32x128xf32>
    %542 = arith.addf %438, %541 : vector<32x128xf32>
    %cst_409 = arith.constant dense<0.000000e+00> : vector<32xf32>
    %543 = vector.multi_reduction <add>, %542, %cst_409 [1] : vector<32x128xf32> to vector<32xf32>
    %544 = vector.shape_cast %543 : vector<32xf32> to vector<32x1xf32>
    %cst_410 = arith.constant 1.280000e+02 : f32
    %545 = vector.broadcast %cst_410 : f32 to vector<32x1xf32>
    %546 = arith.divf %544, %545 : vector<32x1xf32>
    %547 = vector.broadcast %546 : vector<32x1xf32> to vector<32x128xf32>
    %548 = arith.subf %542, %547 : vector<32x128xf32>
    %549 = arith.mulf %548, %548 : vector<32x128xf32>
    %cst_411 = arith.constant dense<0.000000e+00> : vector<32xf32>
    %550 = vector.multi_reduction <add>, %549, %cst_411 [1] : vector<32x128xf32> to vector<32xf32>
    %551 = vector.shape_cast %550 : vector<32xf32> to vector<32x1xf32>
    %cst_412 = arith.constant 1.280000e+02 : f32
    %552 = vector.broadcast %cst_412 : f32 to vector<32x1xf32>
    %553 = arith.divf %551, %552 : vector<32x1xf32>
    %554 = vector.broadcast %546 : vector<32x1xf32> to vector<32x128xf32>
    %555 = arith.subf %542, %554 : vector<32x128xf32>
    %cst_413 = arith.constant 9.99999974E-6 : f32
    %556 = vector.broadcast %cst_413 : f32 to vector<32x1xf32>
    %557 = arith.addf %553, %556 : vector<32x1xf32>
    %558 = math.rsqrt %557 : vector<32x1xf32>
    %559 = vector.broadcast %558 : vector<32x1xf32> to vector<32x128xf32>
    %560 = arith.mulf %555, %559 : vector<32x128xf32>
    %561 = vector.broadcast %478 : vector<1x128xf32> to vector<32x128xf32>
    %562 = arith.mulf %560, %561 : vector<32x128xf32>
    %563 = vector.broadcast %480 : vector<1x128xf32> to vector<32x128xf32>
    %564 = arith.addf %562, %563 : vector<32x128xf32>
    %565 = arith.truncf %564 : vector<32x128xf32> to vector<32x128xbf16>
    %cst_414 = arith.constant dense<0.000000e+00> : vector<32x256xf32>
    %566 = tpu.matmul %565, %470, %cst_414 {dimension_numbers = #tpu.dot_dimension_numbers<[1], [0], [0], [1], [0, 0, 1, 1], [], []>} : vector<32x128xbf16>, vector<128x256xbf16>, vector<32x256xf32> -> vector<32x256xf32>
    %567 = vector.broadcast %482 : vector<1x256xf32> to vector<32x256xf32>
    %568 = arith.addf %566, %567 : vector<32x256xf32>
    %cst_415 = arith.constant 0.000000e+00 : f32
    %569 = vector.broadcast %cst_415 : f32 to vector<32x256xf32>
    %570 = arith.maximumf %568, %569 : vector<32x256xf32>
    %571 = arith.truncf %570 : vector<32x256xf32> to vector<32x256xbf16>
    %cst_416 = arith.constant dense<0.000000e+00> : vector<32x128xf32>
    %572 = tpu.matmul %571, %472, %cst_416 {dimension_numbers = #tpu.dot_dimension_numbers<[1], [0], [0], [1], [0, 0, 1, 1], [], []>} : vector<32x256xbf16>, vector<256x128xbf16>, vector<32x128xf32> -> vector<32x128xf32>
    %573 = vector.broadcast %484 : vector<1x128xf32> to vector<32x128xf32>
    %574 = arith.addf %572, %573 : vector<32x128xf32>
    %575 = arith.addf %564, %574 : vector<32x128xf32>
    %cst_417 = arith.constant dense<0.000000e+00> : vector<32xf32>
    %576 = vector.multi_reduction <add>, %575, %cst_417 [1] : vector<32x128xf32> to vector<32xf32>
    %577 = vector.shape_cast %576 : vector<32xf32> to vector<32x1xf32>
    %cst_418 = arith.constant 1.280000e+02 : f32
    %578 = vector.broadcast %cst_418 : f32 to vector<32x1xf32>
    %579 = arith.divf %577, %578 : vector<32x1xf32>
    %580 = vector.broadcast %579 : vector<32x1xf32> to vector<32x128xf32>
    %581 = arith.subf %575, %580 : vector<32x128xf32>
    %582 = arith.mulf %581, %581 : vector<32x128xf32>
    %cst_419 = arith.constant dense<0.000000e+00> : vector<32xf32>
    %583 = vector.multi_reduction <add>, %582, %cst_419 [1] : vector<32x128xf32> to vector<32xf32>
    %584 = vector.shape_cast %583 : vector<32xf32> to vector<32x1xf32>
    %cst_420 = arith.constant 1.280000e+02 : f32
    %585 = vector.broadcast %cst_420 : f32 to vector<32x1xf32>
    %586 = arith.divf %584, %585 : vector<32x1xf32>
    %587 = vector.broadcast %579 : vector<32x1xf32> to vector<32x128xf32>
    %588 = arith.subf %575, %587 : vector<32x128xf32>
    %cst_421 = arith.constant 9.99999974E-6 : f32
    %589 = vector.broadcast %cst_421 : f32 to vector<32x1xf32>
    %590 = arith.addf %586, %589 : vector<32x1xf32>
    %591 = math.rsqrt %590 : vector<32x1xf32>
    %592 = vector.broadcast %591 : vector<32x1xf32> to vector<32x128xf32>
    %593 = arith.mulf %588, %592 : vector<32x128xf32>
    %594 = vector.broadcast %486 : vector<1x128xf32> to vector<32x128xf32>
    %595 = arith.mulf %593, %594 : vector<32x128xf32>
    %596 = vector.broadcast %488 : vector<1x128xf32> to vector<32x128xf32>
    %597 = arith.addf %595, %596 : vector<32x128xf32>
    %c3_i32_422 = arith.constant 3 : i32
    %c3_i32_423 = arith.constant 3 : i32
    %c0_i32_424 = arith.constant 0 : i32
    %c3_i32_425 = arith.constant 3 : i32
    %c0_i32_426 = arith.constant 0 : i32
    %c0_i32_427 = arith.constant 0 : i32
    %598 = tpu.memref_slice %arg19[%c3_i32_422, %c0_i32_426, %c0_i32_427] : memref<4x128x384xbf16, #tpu.memory_space<any>> -> memref<1x128x384xbf16, #tpu.memory_space<any>>
    %599 = tpu.memref_squeeze %598 : memref<1x128x384xbf16, #tpu.memory_space<any>> -> memref<128x384xbf16, #tpu.memory_space<any>>
    %c0_i32_428 = arith.constant 0 : i32
    %c0_i32_429 = arith.constant 0 : i32
    %600 = tpu.memref_slice %arg25[%c3_i32_423, %c0_i32_428, %c0_i32_429] : memref<4x128x384xbf16, #tpu.memory_space<vmem>> -> memref<1x128x384xbf16, #tpu.memory_space<vmem>>
    %601 = tpu.memref_squeeze %600 : memref<1x128x384xbf16, #tpu.memory_space<vmem>> -> memref<128x384xbf16, #tpu.memory_space<vmem>>
    %602 = tpu.memref_slice %arg29[%c0_i32_424, %c3_i32_425] : memref<4x4x!tpu.dma_semaphore, #tpu.memory_space<semaphore_mem>> -> memref<1x1x!tpu.dma_semaphore, #tpu.memory_space<semaphore_mem>>
    %603 = tpu.memref_squeeze %602 : memref<1x1x!tpu.dma_semaphore, #tpu.memory_space<semaphore_mem>> -> memref<!tpu.dma_semaphore, #tpu.memory_space<semaphore_mem>>
    tpu.wait_dma2 semaphore(%603 : memref<!tpu.dma_semaphore, #tpu.memory_space<semaphore_mem>>) src(%599 : memref<128x384xbf16, #tpu.memory_space<any>>) dst(%601 : memref<128x384xbf16, #tpu.memory_space<vmem>>)
    %c3_i32_430 = arith.constant 3 : i32
    %c3_i32_431 = arith.constant 3 : i32
    %c1_i32_432 = arith.constant 1 : i32
    %c3_i32_433 = arith.constant 3 : i32
    %c0_i32_434 = arith.constant 0 : i32
    %c0_i32_435 = arith.constant 0 : i32
    %604 = tpu.memref_slice %arg20[%c3_i32_430, %c0_i32_434, %c0_i32_435] : memref<4x128x128xbf16, #tpu.memory_space<any>> -> memref<1x128x128xbf16, #tpu.memory_space<any>>
    %605 = tpu.memref_squeeze %604 : memref<1x128x128xbf16, #tpu.memory_space<any>> -> memref<128x128xbf16, #tpu.memory_space<any>>
    %c0_i32_436 = arith.constant 0 : i32
    %c0_i32_437 = arith.constant 0 : i32
    %606 = tpu.memref_slice %arg26[%c3_i32_431, %c0_i32_436, %c0_i32_437] : memref<4x128x128xbf16, #tpu.memory_space<vmem>> -> memref<1x128x128xbf16, #tpu.memory_space<vmem>>
    %607 = tpu.memref_squeeze %606 : memref<1x128x128xbf16, #tpu.memory_space<vmem>> -> memref<128x128xbf16, #tpu.memory_space<vmem>>
    %608 = tpu.memref_slice %arg29[%c1_i32_432, %c3_i32_433] : memref<4x4x!tpu.dma_semaphore, #tpu.memory_space<semaphore_mem>> -> memref<1x1x!tpu.dma_semaphore, #tpu.memory_space<semaphore_mem>>
    %609 = tpu.memref_squeeze %608 : memref<1x1x!tpu.dma_semaphore, #tpu.memory_space<semaphore_mem>> -> memref<!tpu.dma_semaphore, #tpu.memory_space<semaphore_mem>>
    tpu.wait_dma2 semaphore(%609 : memref<!tpu.dma_semaphore, #tpu.memory_space<semaphore_mem>>) src(%605 : memref<128x128xbf16, #tpu.memory_space<any>>) dst(%607 : memref<128x128xbf16, #tpu.memory_space<vmem>>)
    %c3_i32_438 = arith.constant 3 : i32
    %c3_i32_439 = arith.constant 3 : i32
    %c2_i32_440 = arith.constant 2 : i32
    %c3_i32_441 = arith.constant 3 : i32
    %c0_i32_442 = arith.constant 0 : i32
    %c0_i32_443 = arith.constant 0 : i32
    %610 = tpu.memref_slice %arg21[%c3_i32_438, %c0_i32_442, %c0_i32_443] : memref<4x128x256xbf16, #tpu.memory_space<any>> -> memref<1x128x256xbf16, #tpu.memory_space<any>>
    %611 = tpu.memref_squeeze %610 : memref<1x128x256xbf16, #tpu.memory_space<any>> -> memref<128x256xbf16, #tpu.memory_space<any>>
    %c0_i32_444 = arith.constant 0 : i32
    %c0_i32_445 = arith.constant 0 : i32
    %612 = tpu.memref_slice %arg27[%c3_i32_439, %c0_i32_444, %c0_i32_445] : memref<4x128x256xbf16, #tpu.memory_space<vmem>> -> memref<1x128x256xbf16, #tpu.memory_space<vmem>>
    %613 = tpu.memref_squeeze %612 : memref<1x128x256xbf16, #tpu.memory_space<vmem>> -> memref<128x256xbf16, #tpu.memory_space<vmem>>
    %614 = tpu.memref_slice %arg29[%c2_i32_440, %c3_i32_441] : memref<4x4x!tpu.dma_semaphore, #tpu.memory_space<semaphore_mem>> -> memref<1x1x!tpu.dma_semaphore, #tpu.memory_space<semaphore_mem>>
    %615 = tpu.memref_squeeze %614 : memref<1x1x!tpu.dma_semaphore, #tpu.memory_space<semaphore_mem>> -> memref<!tpu.dma_semaphore, #tpu.memory_space<semaphore_mem>>
    tpu.wait_dma2 semaphore(%615 : memref<!tpu.dma_semaphore, #tpu.memory_space<semaphore_mem>>) src(%611 : memref<128x256xbf16, #tpu.memory_space<any>>) dst(%613 : memref<128x256xbf16, #tpu.memory_space<vmem>>)
    %c3_i32_446 = arith.constant 3 : i32
    %c3_i32_447 = arith.constant 3 : i32
    %c3_i32_448 = arith.constant 3 : i32
    %c3_i32_449 = arith.constant 3 : i32
    %c0_i32_450 = arith.constant 0 : i32
    %c0_i32_451 = arith.constant 0 : i32
    %616 = tpu.memref_slice %arg22[%c3_i32_446, %c0_i32_450, %c0_i32_451] : memref<4x256x128xbf16, #tpu.memory_space<any>> -> memref<1x256x128xbf16, #tpu.memory_space<any>>
    %617 = tpu.memref_squeeze %616 : memref<1x256x128xbf16, #tpu.memory_space<any>> -> memref<256x128xbf16, #tpu.memory_space<any>>
    %c0_i32_452 = arith.constant 0 : i32
    %c0_i32_453 = arith.constant 0 : i32
    %618 = tpu.memref_slice %arg28[%c3_i32_447, %c0_i32_452, %c0_i32_453] : memref<4x256x128xbf16, #tpu.memory_space<vmem>> -> memref<1x256x128xbf16, #tpu.memory_space<vmem>>
    %619 = tpu.memref_squeeze %618 : memref<1x256x128xbf16, #tpu.memory_space<vmem>> -> memref<256x128xbf16, #tpu.memory_space<vmem>>
    %620 = tpu.memref_slice %arg29[%c3_i32_448, %c3_i32_449] : memref<4x4x!tpu.dma_semaphore, #tpu.memory_space<semaphore_mem>> -> memref<1x1x!tpu.dma_semaphore, #tpu.memory_space<semaphore_mem>>
    %621 = tpu.memref_squeeze %620 : memref<1x1x!tpu.dma_semaphore, #tpu.memory_space<semaphore_mem>> -> memref<!tpu.dma_semaphore, #tpu.memory_space<semaphore_mem>>
    tpu.wait_dma2 semaphore(%621 : memref<!tpu.dma_semaphore, #tpu.memory_space<semaphore_mem>>) src(%617 : memref<256x128xbf16, #tpu.memory_space<any>>) dst(%619 : memref<256x128xbf16, #tpu.memory_space<vmem>>)
    %c3 = arith.constant 3 : index
    %c0_454 = arith.constant 0 : index
    %c0_455 = arith.constant 0 : index
    %622 = vector.load %arg25[%c3, %c0_454, %c0_455] : memref<4x128x384xbf16, #tpu.memory_space<vmem>>, vector<1x128x384xbf16>
    %623 = vector.shape_cast %622 : vector<1x128x384xbf16> to vector<128x384xbf16>
    %c3_456 = arith.constant 3 : index
    %c0_457 = arith.constant 0 : index
    %c0_458 = arith.constant 0 : index
    %624 = vector.load %arg26[%c3_456, %c0_457, %c0_458] : memref<4x128x128xbf16, #tpu.memory_space<vmem>>, vector<1x128x128xbf16>
    %625 = vector.shape_cast %624 : vector<1x128x128xbf16> to vector<128x128xbf16>
    %c3_459 = arith.constant 3 : index
    %c0_460 = arith.constant 0 : index
    %c0_461 = arith.constant 0 : index
    %626 = vector.load %arg27[%c3_459, %c0_460, %c0_461] : memref<4x128x256xbf16, #tpu.memory_space<vmem>>, vector<1x128x256xbf16>
    %627 = vector.shape_cast %626 : vector<1x128x256xbf16> to vector<128x256xbf16>
    %c3_462 = arith.constant 3 : index
    %c0_463 = arith.constant 0 : index
    %c0_464 = arith.constant 0 : index
    %628 = vector.load %arg28[%c3_462, %c0_463, %c0_464] : memref<4x256x128xbf16, #tpu.memory_space<vmem>>, vector<1x256x128xbf16>
    %629 = vector.shape_cast %628 : vector<1x256x128xbf16> to vector<256x128xbf16>
    %c3_465 = arith.constant 3 : index
    %c0_466 = arith.constant 0 : index
    %c0_467 = arith.constant 0 : index
    %630 = vector.load %arg11[%c3_465, %c0_466, %c0_467] : memref<4x1x384xf32, #tpu.memory_space<vmem>>, vector<1x1x384xf32>
    %631 = vector.shape_cast %630 : vector<1x1x384xf32> to vector<1x384xf32>
    %c3_468 = arith.constant 3 : index
    %c0_469 = arith.constant 0 : index
    %c0_470 = arith.constant 0 : index
    %632 = vector.load %arg12[%c3_468, %c0_469, %c0_470] : memref<4x1x128xf32, #tpu.memory_space<vmem>>, vector<1x1x128xf32>
    %633 = vector.shape_cast %632 : vector<1x1x128xf32> to vector<1x128xf32>
    %c3_471 = arith.constant 3 : index
    %c0_472 = arith.constant 0 : index
    %c0_473 = arith.constant 0 : index
    %634 = vector.load %arg13[%c3_471, %c0_472, %c0_473] : memref<4x1x128xf32, #tpu.memory_space<vmem>>, vector<1x1x128xf32>
    %635 = vector.shape_cast %634 : vector<1x1x128xf32> to vector<1x128xf32>
    %c3_474 = arith.constant 3 : index
    %c0_475 = arith.constant 0 : index
    %c0_476 = arith.constant 0 : index
    %636 = vector.load %arg14[%c3_474, %c0_475, %c0_476] : memref<4x1x128xf32, #tpu.memory_space<vmem>>, vector<1x1x128xf32>
    %637 = vector.shape_cast %636 : vector<1x1x128xf32> to vector<1x128xf32>
    %c3_477 = arith.constant 3 : index
    %c0_478 = arith.constant 0 : index
    %c0_479 = arith.constant 0 : index
    %638 = vector.load %arg15[%c3_477, %c0_478, %c0_479] : memref<4x1x256xf32, #tpu.memory_space<vmem>>, vector<1x1x256xf32>
    %639 = vector.shape_cast %638 : vector<1x1x256xf32> to vector<1x256xf32>
    %c3_480 = arith.constant 3 : index
    %c0_481 = arith.constant 0 : index
    %c0_482 = arith.constant 0 : index
    %640 = vector.load %arg16[%c3_480, %c0_481, %c0_482] : memref<4x1x128xf32, #tpu.memory_space<vmem>>, vector<1x1x128xf32>
    %641 = vector.shape_cast %640 : vector<1x1x128xf32> to vector<1x128xf32>
    %c3_483 = arith.constant 3 : index
    %c0_484 = arith.constant 0 : index
    %c0_485 = arith.constant 0 : index
    %642 = vector.load %arg17[%c3_483, %c0_484, %c0_485] : memref<4x1x128xf32, #tpu.memory_space<vmem>>, vector<1x1x128xf32>
    %643 = vector.shape_cast %642 : vector<1x1x128xf32> to vector<1x128xf32>
    %c3_486 = arith.constant 3 : index
    %c0_487 = arith.constant 0 : index
    %c0_488 = arith.constant 0 : index
    %644 = vector.load %arg18[%c3_486, %c0_487, %c0_488] : memref<4x1x128xf32, #tpu.memory_space<vmem>>, vector<1x1x128xf32>
    %645 = vector.shape_cast %644 : vector<1x1x128xf32> to vector<1x128xf32>
    %646 = arith.truncf %597 : vector<32x128xf32> to vector<32x128xbf16>
    %cst_489 = arith.constant dense<0.000000e+00> : vector<32x384xf32>
    %647 = tpu.matmul %646, %623, %cst_489 {dimension_numbers = #tpu.dot_dimension_numbers<[1], [0], [0], [1], [0, 0, 1, 1], [], []>} : vector<32x128xbf16>, vector<128x384xbf16>, vector<32x384xf32> -> vector<32x384xf32>
    %648 = vector.broadcast %631 : vector<1x384xf32> to vector<32x384xf32>
    %649 = arith.addf %647, %648 : vector<32x384xf32>
    %650 = arith.truncf %649 : vector<32x384xf32> to vector<32x384xbf16>
    %651 = vector.extract_strided_slice %650 {offsets = [0, 0], sizes = [16, 128], strides = [1, 1]} : vector<32x384xbf16> to vector<16x128xbf16>
    %652 = vector.extract_strided_slice %650 {offsets = [16, 0], sizes = [16, 128], strides = [1, 1]} : vector<32x384xbf16> to vector<16x128xbf16>
    %653 = vector.extract_strided_slice %650 {offsets = [0, 128], sizes = [16, 128], strides = [1, 1]} : vector<32x384xbf16> to vector<16x128xbf16>
    %654 = vector.extract_strided_slice %650 {offsets = [16, 128], sizes = [16, 128], strides = [1, 1]} : vector<32x384xbf16> to vector<16x128xbf16>
    %655 = vector.extract_strided_slice %650 {offsets = [0, 256], sizes = [16, 128], strides = [1, 1]} : vector<32x384xbf16> to vector<16x128xbf16>
    %656 = vector.extract_strided_slice %650 {offsets = [16, 256], sizes = [16, 128], strides = [1, 1]} : vector<32x384xbf16> to vector<16x128xbf16>
    %657 = arith.subf %653, %654 : vector<16x128xbf16>
    %658 = arith.mulf %651, %657 : vector<16x128xbf16>
    %659 = arith.mulf %652, %657 : vector<16x128xbf16>
    %660 = tpu.concatenate %658, %659 in 0 : vector<16x128xbf16>, vector<16x128xbf16> -> vector<32x128xbf16>
    %cst_490 = arith.constant dense<0.000000e+00> : vector<32x128xf32>
    %661 = tpu.matmul %660, %96, %cst_490 {dimension_numbers = #tpu.dot_dimension_numbers<[1], [0], [0], [1], [0, 0, 1, 1], [], []>} : vector<32x128xbf16>, vector<128x128xbf16>, vector<32x128xf32> -> vector<32x128xf32>
    %662 = vector.extract_strided_slice %661 {offsets = [0, 0], sizes = [16, 128], strides = [1, 1]} : vector<32x128xf32> to vector<16x128xf32>
    %cst_491 = arith.constant 5.000000e-01 : f32
    %663 = vector.broadcast %cst_491 : f32 to vector<16x128xf32>
    %664 = arith.mulf %663, %662 : vector<16x128xf32>
    %665 = math.tanh %664 : vector<16x128xf32>
    %cst_492 = arith.constant 1.000000e+00 : f32
    %666 = vector.broadcast %cst_492 : f32 to vector<16x128xf32>
    %667 = arith.addf %665, %666 : vector<16x128xf32>
    %cst_493 = arith.constant 5.000000e-01 : f32
    %668 = vector.broadcast %cst_493 : f32 to vector<16x128xf32>
    %669 = arith.mulf %668, %667 : vector<16x128xf32>
    %670 = vector.extract_strided_slice %661 {offsets = [16, 0], sizes = [16, 128], strides = [1, 1]} : vector<32x128xf32> to vector<16x128xf32>
    %cst_494 = arith.constant 0.000000e+00 : f32
    %671 = vector.broadcast %cst_494 : f32 to vector<16x128xf32>
    %672 = arith.subf %671, %670 : vector<16x128xf32>
    %cst_495 = arith.constant 5.000000e-01 : f32
    %673 = vector.broadcast %cst_495 : f32 to vector<16x128xf32>
    %674 = arith.mulf %673, %672 : vector<16x128xf32>
    %675 = math.tanh %674 : vector<16x128xf32>
    %cst_496 = arith.constant 1.000000e+00 : f32
    %676 = vector.broadcast %cst_496 : f32 to vector<16x128xf32>
    %677 = arith.addf %675, %676 : vector<16x128xf32>
    %cst_497 = arith.constant 5.000000e-01 : f32
    %678 = vector.broadcast %cst_497 : f32 to vector<16x128xf32>
    %679 = arith.mulf %678, %677 : vector<16x128xf32>
    %680 = arith.extf %655 : vector<16x128xbf16> to vector<16x128xf32>
    %681 = arith.mulf %669, %680 : vector<16x128xf32>
    %cst_498 = arith.constant 1.000000e+00 : f32
    %682 = vector.broadcast %cst_498 : f32 to vector<16x128xf32>
    %683 = arith.subf %682, %669 : vector<16x128xf32>
    %684 = arith.extf %656 : vector<16x128xbf16> to vector<16x128xf32>
    %685 = arith.mulf %683, %684 : vector<16x128xf32>
    %686 = arith.addf %681, %685 : vector<16x128xf32>
    %cst_499 = arith.constant 1.000000e+00 : f32
    %687 = vector.broadcast %cst_499 : f32 to vector<16x128xf32>
    %688 = arith.subf %687, %679 : vector<16x128xf32>
    %689 = arith.extf %655 : vector<16x128xbf16> to vector<16x128xf32>
    %690 = arith.mulf %688, %689 : vector<16x128xf32>
    %691 = arith.extf %656 : vector<16x128xbf16> to vector<16x128xf32>
    %692 = arith.mulf %679, %691 : vector<16x128xf32>
    %693 = arith.addf %690, %692 : vector<16x128xf32>
    %694 = tpu.concatenate %686, %693 in 0 : vector<16x128xf32>, vector<16x128xf32> -> vector<32x128xf32>
    %695 = arith.truncf %694 : vector<32x128xf32> to vector<32x128xbf16>
    %cst_500 = arith.constant dense<0.000000e+00> : vector<32x128xf32>
    %696 = tpu.matmul %695, %625, %cst_500 {dimension_numbers = #tpu.dot_dimension_numbers<[1], [0], [0], [1], [0, 0, 1, 1], [], []>} : vector<32x128xbf16>, vector<128x128xbf16>, vector<32x128xf32> -> vector<32x128xf32>
    %697 = vector.broadcast %633 : vector<1x128xf32> to vector<32x128xf32>
    %698 = arith.addf %696, %697 : vector<32x128xf32>
    %699 = arith.addf %597, %698 : vector<32x128xf32>
    %cst_501 = arith.constant dense<0.000000e+00> : vector<32xf32>
    %700 = vector.multi_reduction <add>, %699, %cst_501 [1] : vector<32x128xf32> to vector<32xf32>
    %701 = vector.shape_cast %700 : vector<32xf32> to vector<32x1xf32>
    %cst_502 = arith.constant 1.280000e+02 : f32
    %702 = vector.broadcast %cst_502 : f32 to vector<32x1xf32>
    %703 = arith.divf %701, %702 : vector<32x1xf32>
    %704 = vector.broadcast %703 : vector<32x1xf32> to vector<32x128xf32>
    %705 = arith.subf %699, %704 : vector<32x128xf32>
    %706 = arith.mulf %705, %705 : vector<32x128xf32>
    %cst_503 = arith.constant dense<0.000000e+00> : vector<32xf32>
    %707 = vector.multi_reduction <add>, %706, %cst_503 [1] : vector<32x128xf32> to vector<32xf32>
    %708 = vector.shape_cast %707 : vector<32xf32> to vector<32x1xf32>
    %cst_504 = arith.constant 1.280000e+02 : f32
    %709 = vector.broadcast %cst_504 : f32 to vector<32x1xf32>
    %710 = arith.divf %708, %709 : vector<32x1xf32>
    %711 = vector.broadcast %703 : vector<32x1xf32> to vector<32x128xf32>
    %712 = arith.subf %699, %711 : vector<32x128xf32>
    %cst_505 = arith.constant 9.99999974E-6 : f32
    %713 = vector.broadcast %cst_505 : f32 to vector<32x1xf32>
    %714 = arith.addf %710, %713 : vector<32x1xf32>
    %715 = math.rsqrt %714 : vector<32x1xf32>
    %716 = vector.broadcast %715 : vector<32x1xf32> to vector<32x128xf32>
    %717 = arith.mulf %712, %716 : vector<32x128xf32>
    %718 = vector.broadcast %635 : vector<1x128xf32> to vector<32x128xf32>
    %719 = arith.mulf %717, %718 : vector<32x128xf32>
    %720 = vector.broadcast %637 : vector<1x128xf32> to vector<32x128xf32>
    %721 = arith.addf %719, %720 : vector<32x128xf32>
    %722 = arith.truncf %721 : vector<32x128xf32> to vector<32x128xbf16>
    %cst_506 = arith.constant dense<0.000000e+00> : vector<32x256xf32>
    %723 = tpu.matmul %722, %627, %cst_506 {dimension_numbers = #tpu.dot_dimension_numbers<[1], [0], [0], [1], [0, 0, 1, 1], [], []>} : vector<32x128xbf16>, vector<128x256xbf16>, vector<32x256xf32> -> vector<32x256xf32>
    %724 = vector.broadcast %639 : vector<1x256xf32> to vector<32x256xf32>
    %725 = arith.addf %723, %724 : vector<32x256xf32>
    %cst_507 = arith.constant 0.000000e+00 : f32
    %726 = vector.broadcast %cst_507 : f32 to vector<32x256xf32>
    %727 = arith.maximumf %725, %726 : vector<32x256xf32>
    %728 = arith.truncf %727 : vector<32x256xf32> to vector<32x256xbf16>
    %cst_508 = arith.constant dense<0.000000e+00> : vector<32x128xf32>
    %729 = tpu.matmul %728, %629, %cst_508 {dimension_numbers = #tpu.dot_dimension_numbers<[1], [0], [0], [1], [0, 0, 1, 1], [], []>} : vector<32x256xbf16>, vector<256x128xbf16>, vector<32x128xf32> -> vector<32x128xf32>
    %730 = vector.broadcast %641 : vector<1x128xf32> to vector<32x128xf32>
    %731 = arith.addf %729, %730 : vector<32x128xf32>
    %732 = arith.addf %721, %731 : vector<32x128xf32>
    %cst_509 = arith.constant dense<0.000000e+00> : vector<32xf32>
    %733 = vector.multi_reduction <add>, %732, %cst_509 [1] : vector<32x128xf32> to vector<32xf32>
    %734 = vector.shape_cast %733 : vector<32xf32> to vector<32x1xf32>
    %cst_510 = arith.constant 1.280000e+02 : f32
    %735 = vector.broadcast %cst_510 : f32 to vector<32x1xf32>
    %736 = arith.divf %734, %735 : vector<32x1xf32>
    %737 = vector.broadcast %736 : vector<32x1xf32> to vector<32x128xf32>
    %738 = arith.subf %732, %737 : vector<32x128xf32>
    %739 = arith.mulf %738, %738 : vector<32x128xf32>
    %cst_511 = arith.constant dense<0.000000e+00> : vector<32xf32>
    %740 = vector.multi_reduction <add>, %739, %cst_511 [1] : vector<32x128xf32> to vector<32xf32>
    %741 = vector.shape_cast %740 : vector<32xf32> to vector<32x1xf32>
    %cst_512 = arith.constant 1.280000e+02 : f32
    %742 = vector.broadcast %cst_512 : f32 to vector<32x1xf32>
    %743 = arith.divf %741, %742 : vector<32x1xf32>
    %744 = vector.broadcast %736 : vector<32x1xf32> to vector<32x128xf32>
    %745 = arith.subf %732, %744 : vector<32x128xf32>
    %cst_513 = arith.constant 9.99999974E-6 : f32
    %746 = vector.broadcast %cst_513 : f32 to vector<32x1xf32>
    %747 = arith.addf %743, %746 : vector<32x1xf32>
    %748 = math.rsqrt %747 : vector<32x1xf32>
    %749 = vector.broadcast %748 : vector<32x1xf32> to vector<32x128xf32>
    %750 = arith.mulf %745, %749 : vector<32x128xf32>
    %751 = vector.broadcast %643 : vector<1x128xf32> to vector<32x128xf32>
    %752 = arith.mulf %750, %751 : vector<32x128xf32>
    %753 = vector.broadcast %645 : vector<1x128xf32> to vector<32x128xf32>
    %754 = arith.addf %752, %753 : vector<32x128xf32>
    %c0_514 = arith.constant 0 : index
    %c0_515 = arith.constant 0 : index
    %755 = vector.load %arg9[%c0_514, %c0_515] : memref<32x1xf32, #tpu.memory_space<vmem>>, vector<32x1xf32>
    %756 = vector.broadcast %755 : vector<32x1xf32> to vector<32x128xf32>
    %757 = arith.mulf %754, %756 : vector<32x128xf32>
    %758 = vector.shape_cast %757 : vector<32x128xf32> to vector<2x16x128xf32>
    %cst_516 = arith.constant dense<0.000000e+00> : vector<2x128xf32>
    %759 = vector.multi_reduction <add>, %758, %cst_516 [1] : vector<2x16x128xf32> to vector<2x128xf32>
    %c0_517 = arith.constant 0 : index
    %c0_518 = arith.constant 0 : index
    %760 = vector.load %arg10[%c0_517, %c0_518] : memref<1x1xf32, #tpu.memory_space<vmem>>, vector<1x1xf32>
    %761 = vector.broadcast %760 : vector<1x1xf32> to vector<2x128xf32>
    %762 = arith.addf %759, %761 : vector<2x128xf32>
    %c0_519 = arith.constant 0 : index
    %c0_520 = arith.constant 0 : index
    %763 = vector.load %arg23[%c0_519, %c0_520] : memref<2x128xf32, #tpu.memory_space<vmem>>, vector<2x128xf32>
    tpu.vector_store %arg23[%c0_519, %c0_520], %762 {strides = array<i32>} : memref<2x128xf32, #tpu.memory_space<vmem>>, vector<2x128xf32>,
    return
  }
}

</mosaic_0001>

<bundles_post_ra>
// kernel: image_encoder_forward.1
= control target key start
LH: loop header
LB: loop body
LE: loop exit
PB: predicated region body
PF: predicated region fallthrough
CT: control target
= control target key end

     0   :  { %s12895_s0 = inlined_call_operand.vmem [shape: f32[32,32], index: 0, kind: input, shape index: {}]   ;;  %s12896_s1 = inlined_call_operand.vmem [shape: f32[128,8], index: 1, kind: input, shape index: {}]   ;;  %s12897_s2 = inlined_call_operand.vmem [shape: f32[32,128], index: 2, kind: input, shape index: {}]   ;;  %s12898_s3 = inlined_call_operand.vmem [shape: f32[128,128], index: 3, kind: input, shape index: {}]   ;;  %s12899_s4 = inlined_call_operand.vmem [shape: bf16[128,128], index: 4, kind: input, shape index: {}]   ;;  %s12900_s5 = inlined_call_operand.vmem [shape: bf16[32,128], index: 5, kind: input, shape index: {}]   ;;  %s12901_s6 = inlined_call_operand.vmem [shape: bf16[8,128], index: 6, kind: input, shape index: {}]   ;;  %s12902_s7 = inlined_call_operand.vmem [shape: f32[128,1], index: 7, kind: input, shape index: {}]   ;;  %s12903_s8 = inlined_call_operand.<no memory space> [shape: f32[1,1], index: 8, kind: input, shape index: {}]   ;;  %s12904_s9 = inlined_call_operand.vmem [shape: f32[32,1], index: 9, kind: input, shape index: {}]   ;;  %s12905_s11 = inlined_call_operand.vmem [shape: f32[4,1,384], index: 11, kind: input, shape index: {}]   ;;  %s12906_s12 = inlined_call_operand.vmem [shape: f32[4,1,128], index: 12, kind: input, shape index: {}]   ;;  %s12907_s13 = inlined_call_operand.vmem [shape: f32[4,1,128], index: 13, kind: input, shape index: {}]   ;;  %s12908_s14 = inlined_call_operand.vmem [shape: f32[4,1,128], index: 14, kind: input, shape index: {}]   ;;  %s12909_s15 = inlined_call_operand.vmem [shape: f32[4,1,256], index: 15, kind: input, shape index: {}]   ;;  %s12910_s16 = inlined_call_operand.vmem [shape: f32[4,1,128], index: 16, kind: input, shape index: {}]   ;;  %s12911_s17 = inlined_call_operand.vmem [shape: f32[4,1,128], index: 17, kind: input, shape index: {}]   ;;  %s12912_s18 = inlined_call_operand.vmem [shape: f32[4,1,128], index: 18, kind: input, shape index: {}]   ;;  %s12913_s19 = inlined_call_operand.vmem [shape: bf16[4,128,384], index: 19, kind: input, shape index: {}]   ;;  %s12914_s20 = inlined_call_operand.vmem [shape: bf16[4,128,128], index: 20, kind: input, shape index: {}]   ;;  %s12915_s21 = inlined_call_operand.vmem [shape: bf16[4,128,256], index: 21, kind: input, shape index: {}]   ;;  %s12916_s22 = inlined_call_operand.vmem [shape: bf16[4,256,128], index: 22, kind: input, shape index: {}]   ;;  %s12917_s23 = inlined_call_operand.hbm [shape: f32[2,128], index: 23, kind: output, shape index: {0}]   ;;  %s12918_s24 = inlined_call_operand.hbm [shape: f32[2,16,128], index: 24, kind: output, shape index: {1}]   ;;  %s12919_s10 = inlined_call_operand.<no memory space> [shape: f32[1,1], index: 10, kind: input, shape index: {}]  }
   0x1   :  { %13039 = sst [smem:[#allocation120_spill]] %s12895_s0  ;;  %v32_v1 = vstv %s12919_s10 }
   0x2   :  { %13040 = sst [smem:[#allocation121_spill]] %s12896_s1  ;;  %33 = vst [vmem:[#allocation8] sm:$0x1] %v32_v1 }
   0x3   :  { %13041 = sst [smem:[#allocation122_spill]] %s12897_s2 }
   0x4   :  { %13042 = sst [smem:[#allocation123_spill]] %s12898_s3 }
   0x5   :  { %13043 = sst [smem:[#allocation124_spill]] %s12899_s4 }
   0x6   :  { %13044 = sst [smem:[#allocation125_spill]] %s12900_s5 }
   0x7   :  { %13045 = sst [smem:[#allocation126_spill]] %s12901_s6 }
   0x8   :  { %13046 = sst [smem:[#allocation127_spill]] %s12902_s7 }
   0x9   :  { %13047 = sst [smem:[#allocation128_spill]] %s12903_s8 }
   0xa   :  { %s13048_s27 = sld [smem:[#allocation128_spill]] }
  0x10   :  { %v30_v0 = vstv %s13048_s27 }
  0x11   :  { %31 = vst [vmem:[#allocation7] sm:$0x1] %v30_v0 }
  0x12   :  { %34 = vsyncpa [#allocation10], 0 }
  0x13   :  { %35 = vsyncpa [#allocation12], 0  ;;  %v108_v2 = vld [vmem:[%s12913_s19] sm:$0xff]  ;;  %v110_v3 = vld [vmem:[%s12913_s19 + $0x8] sm:$0xff] }
  0x14   :  { %109 = vst [vmem:[#allocation2] sm:$0xff] %v108_v2  ;;  %111 = vst [vmem:[#allocation2 + $0x8] sm:$0xff] %v110_v3  ;;  %v112_v4 = vld [vmem:[%s12913_s19 + $0x10] sm:$0xff]  ;;  %v114_v5 = vld [vmem:[%s12913_s19 + $0x18] sm:$0xff] }
  0x15   :  { %v116_v6 = vld [vmem:[%s12913_s19 + $0x20] sm:$0xff]  ;;  %113 = vst [vmem:[#allocation2 + $0x10] sm:$0xff] %v112_v4  ;;  %115 = vst [vmem:[#allocation2 + $0x18] sm:$0xff] %v114_v5  ;;  %v118_v7 = vld [vmem:[%s12913_s19 + $0x28] sm:$0xff] }
  0x16   :  { %117 = vst [vmem:[#allocation2 + $0x20] sm:$0xff] %v116_v6  ;;  %v120_v8 = vld [vmem:[%s12913_s19 + $0x30] sm:$0xff]  ;;  %v122_v9 = vld [vmem:[%s12913_s19 + $0x38] sm:$0xff]  ;;  %119 = vst [vmem:[#allocation2 + $0x28] sm:$0xff] %v118_v7 }
  0x17   :  { %121 = vst [vmem:[#allocation2 + $0x30] sm:$0xff] %v120_v8  ;;  %123 = vst [vmem:[#allocation2 + $0x38] sm:$0xff] %v122_v9  ;;  %v124_v10 = vld [vmem:[%s12913_s19 + $0x40] sm:$0xff]  ;;  %v126_v11 = vld [vmem:[%s12913_s19 + $0x48] sm:$0xff] }
  0x18   :  { %v128_v12 = vld [vmem:[%s12913_s19 + $0x50] sm:$0xff]  ;;  %125 = vst [vmem:[#allocation2 + $0x40] sm:$0xff] %v124_v10  ;;  %127 = vst [vmem:[#allocation2 + $0x48] sm:$0xff] %v126_v11  ;;  %v130_v13 = vld [vmem:[%s12913_s19 + $0x58] sm:$0xff] }
  0x19   :  { %129 = vst [vmem:[#allocation2 + $0x50] sm:$0xff] %v128_v12  ;;  %v132_v14 = vld [vmem:[%s12913_s19 + $0x60] sm:$0xff]  ;;  %v134_v15 = vld [vmem:[%s12913_s19 + $0x68] sm:$0xff]  ;;  %131 = vst [vmem:[#allocation2 + $0x58] sm:$0xff] %v130_v13 }
  0x1a   :  { %133 = vst [vmem:[#allocation2 + $0x60] sm:$0xff] %v132_v14  ;;  %135 = vst [vmem:[#allocation2 + $0x68] sm:$0xff] %v134_v15  ;;  %v136_v16 = vld [vmem:[%s12913_s19 + $0x70] sm:$0xff]  ;;  %v138_v17 = vld [vmem:[%s12913_s19 + $0x78] sm:$0xff] }
  0x1b   :  { %v140_v18 = vld [vmem:[%s12913_s19 + $0x80] sm:$0xff]  ;;  %137 = vst [vmem:[#allocation2 + $0x70] sm:$0xff] %v136_v16  ;;  %139 = vst [vmem:[#allocation2 + $0x78] sm:$0xff] %v138_v17  ;;  %v142_v19 = vld [vmem:[%s12913_s19 + $0x88] sm:$0xff] }
  0x1c   :  { %141 = vst [vmem:[#allocation2 + $0x80] sm:$0xff] %v140_v18  ;;  %v144_v20 = vld [vmem:[%s12913_s19 + $0x90] sm:$0xff]  ;;  %v146_v21 = vld [vmem:[%s12913_s19 + $0x98] sm:$0xff]  ;;  %143 = vst [vmem:[#allocation2 + $0x88] sm:$0xff] %v142_v19 }
  0x1d   :  { %145 = vst [vmem:[#allocation2 + $0x90] sm:$0xff] %v144_v20  ;;  %147 = vst [vmem:[#allocation2 + $0x98] sm:$0xff] %v146_v21  ;;  %v148_v22 = vld [vmem:[%s12913_s19 + $0xa0] sm:$0xff]  ;;  %v150_v23 = vld [vmem:[%s12913_s19 + $0xa8] sm:$0xff] }
  0x1e   :  { %v152_v24 = vld [vmem:[%s12913_s19 + $0xb0] sm:$0xff]  ;;  %149 = vst [vmem:[#allocation2 + $0xa0] sm:$0xff] %v148_v22  ;;  %151 = vst [vmem:[#allocation2 + $0xa8] sm:$0xff] %v150_v23  ;;  %v154_v25 = vld [vmem:[%s12913_s19 + $0xb8] sm:$0xff] }
  0x1f   :  { %153 = vst [vmem:[#allocation2 + $0xb0] sm:$0xff] %v152_v24  ;;  %155 = vst [vmem:[#allocation2 + $0xb8] sm:$0xff] %v154_v25 }
  0x20   :  { %163 = vsyncadd [#allocation6], 3072  ;;  %v198_v26 = vld [vmem:[%s12914_s20] sm:$0xff]  ;;  %v200_v27 = vld [vmem:[%s12914_s20 + $0x8] sm:$0xff] }
  0x21   :  { %199 = vst [vmem:[#allocation3] sm:$0xff] %v198_v26  ;;  %201 = vst [vmem:[#allocation3 + $0x8] sm:$0xff] %v200_v27  ;;  %v202_v28 = vld [vmem:[%s12914_s20 + $0x10] sm:$0xff]  ;;  %v204_v29 = vld [vmem:[%s12914_s20 + $0x18] sm:$0xff] }
  0x22   :  { %v206_v30 = vld [vmem:[%s12914_s20 + $0x20] sm:$0xff]  ;;  %203 = vst [vmem:[#allocation3 + $0x10] sm:$0xff] %v202_v28  ;;  %205 = vst [vmem:[#allocation3 + $0x18] sm:$0xff] %v204_v29  ;;  %v208_v31 = vld [vmem:[%s12914_s20 + $0x28] sm:$0xff] }
  0x23   :  { %207 = vst [vmem:[#allocation3 + $0x20] sm:$0xff] %v206_v30  ;;  %v210_v32 = vld [vmem:[%s12914_s20 + $0x30] sm:$0xff]  ;;  %v212_v33 = vld [vmem:[%s12914_s20 + $0x38] sm:$0xff]  ;;  %209 = vst [vmem:[#allocation3 + $0x28] sm:$0xff] %v208_v31 }
  0x24   :  { %211 = vst [vmem:[#allocation3 + $0x30] sm:$0xff] %v210_v32  ;;  %213 = vst [vmem:[#allocation3 + $0x38] sm:$0xff] %v212_v33 }
  0x25   :  { %221 = vsyncadd [#allocation6 + $0x4], 1024  ;;  %v9835_v34 = vld [vmem:[%s12915_s21] sm:$0xff]  ;;  %v9840_v35 = vld [vmem:[%s12915_s21 + $0x8] sm:$0xff] }
  0x26   :  { %13049 = vst [vmem:[#allocation47_spill] sm:$0xff] %v9835_v34  ;;  %13050 = vst [vmem:[#allocation48_spill] sm:$0xff] %v9840_v35  ;;  %v9845_v36 = vld [vmem:[%s12915_s21 + $0x10] sm:$0xff]  ;;  %v9850_v37 = vld [vmem:[%s12915_s21 + $0x18] sm:$0xff] }
  0x27   :  { %13051 = vst [vmem:[#allocation49_spill] sm:$0xff] %v9845_v36  ;;  %13052 = vst [vmem:[#allocation50_spill] sm:$0xff] %v9850_v37  ;;  %v9855_v38 = vld [vmem:[%s12915_s21 + $0x20] sm:$0xff]  ;;  %v9860_v39 = vld [vmem:[%s12915_s21 + $0x28] sm:$0xff] }
  0x28   :  { %13053 = vst [vmem:[#allocation51_spill] sm:$0xff] %v9855_v38  ;;  %13054 = vst [vmem:[#allocation52_spill] sm:$0xff] %v9860_v39  ;;  %v9865_v40 = vld [vmem:[%s12915_s21 + $0x30] sm:$0xff]  ;;  %v9870_v41 = vld [vmem:[%s12915_s21 + $0x38] sm:$0xff] }
  0x29   :  { %13055 = vst [vmem:[#allocation53_spill] sm:$0xff] %v9865_v40  ;;  %13056 = vst [vmem:[#allocation54_spill] sm:$0xff] %v9870_v41  ;;  %v9875_v42 = vld [vmem:[%s12915_s21 + $0x40] sm:$0xff]  ;;  %v9880_v43 = vld [vmem:[%s12915_s21 + $0x48] sm:$0xff] }
  0x2a   :  { %13057 = vst [vmem:[#allocation55_spill] sm:$0xff] %v9875_v42  ;;  %13058 = vst [vmem:[#allocation56_spill] sm:$0xff] %v9880_v43  ;;  %v9885_v44 = vld [vmem:[%s12915_s21 + $0x50] sm:$0xff]  ;;  %v9890_v45 = vld [vmem:[%s12915_s21 + $0x58] sm:$0xff] }
  0x2b   :  { %13059 = vst [vmem:[#allocation57_spill] sm:$0xff] %v9885_v44  ;;  %v9895_v46 = vld [vmem:[%s12915_s21 + $0x60] sm:$0xff]  ;;  %v9900_v47 = vld [vmem:[%s12915_s21 + $0x68] sm:$0xff]  ;;  %v9905_v48 = vld [vmem:[%s12915_s21 + $0x70] sm:$0xff] }
  0x2c   :  { %v9910_v49 = vld [vmem:[%s12915_s21 + $0x78] sm:$0xff] }
  0x2d   :  { %295 = vsyncadd [#allocation6 + $0x8], 2048  ;;  %v330_v50 = vld [vmem:[%s12916_s22] sm:$0xff]  ;;  %v332_v51 = vld [vmem:[%s12916_s22 + $0x8] sm:$0xff] }
  0x2e   :  { %331 = vst [vmem:[#allocation5] sm:$0xff] %v330_v50  ;;  %333 = vst [vmem:[#allocation5 + $0x8] sm:$0xff] %v332_v51  ;;  %v334_v52 = vld [vmem:[%s12916_s22 + $0x10] sm:$0xff]  ;;  %v336_v53 = vld [vmem:[%s12916_s22 + $0x18] sm:$0xff] }
  0x2f   :  { %v338_v54 = vld [vmem:[%s12916_s22 + $0x20] sm:$0xff]  ;;  %335 = vst [vmem:[#allocation5 + $0x10] sm:$0xff] %v334_v52  ;;  %337 = vst [vmem:[#allocation5 + $0x18] sm:$0xff] %v336_v53  ;;  %v340_v55 = vld [vmem:[%s12916_s22 + $0x28] sm:$0xff] }
  0x30   :  { %339 = vst [vmem:[#allocation5 + $0x20] sm:$0xff] %v338_v54  ;;  %v342_v56 = vld [vmem:[%s12916_s22 + $0x30] sm:$0xff]  ;;  %v344_v57 = vld [vmem:[%s12916_s22 + $0x38] sm:$0xff]  ;;  %341 = vst [vmem:[#allocation5 + $0x28] sm:$0xff] %v340_v55 }
  0x31   :  { %343 = vst [vmem:[#allocation5 + $0x30] sm:$0xff] %v342_v56  ;;  %345 = vst [vmem:[#allocation5 + $0x38] sm:$0xff] %v344_v57  ;;  %v346_v58 = vld [vmem:[%s12916_s22 + $0x40] sm:$0xff]  ;;  %v348_v59 = vld [vmem:[%s12916_s22 + $0x48] sm:$0xff] }
  0x32   :  { %v350_v60 = vld [vmem:[%s12916_s22 + $0x50] sm:$0xff]  ;;  %347 = vst [vmem:[#allocation5 + $0x40] sm:$0xff] %v346_v58  ;;  %349 = vst [vmem:[#allocation5 + $0x48] sm:$0xff] %v348_v59  ;;  %v352_v61 = vld [vmem:[%s12916_s22 + $0x58] sm:$0xff] }
  0x33   :  { %351 = vst [vmem:[#allocation5 + $0x50] sm:$0xff] %v350_v60  ;;  %v354_v62 = vld [vmem:[%s12916_s22 + $0x60] sm:$0xff]  ;;  %v356_v63 = vld [vmem:[%s12916_s22 + $0x68] sm:$0xff]  ;;  %353 = vst [vmem:[#allocation5 + $0x58] sm:$0xff] %v352_v61 }
  0x34   :  { %355 = vst [vmem:[#allocation5 + $0x60] sm:$0xff] %v354_v62  ;;  %357 = vst [vmem:[#allocation5 + $0x68] sm:$0xff] %v356_v63  ;;  %v358_v0 = vld [vmem:[%s12916_s22 + $0x70] sm:$0xff]  ;;  %v360_v1 = vld [vmem:[%s12916_s22 + $0x78] sm:$0xff] }
  0x35   :  { %359 = vst [vmem:[#allocation5 + $0x70] sm:$0xff] %v358_v0  ;;  %361 = vst [vmem:[#allocation5 + $0x78] sm:$0xff] %v360_v1 }
  0x36   :  { %369 = vsyncadd [#allocation6 + $0xc], 2048  ;;  %v7811_v2 = vld [vmem:[%s12913_s19 + $0xc0] sm:$0xff]  ;;  %v7812_v3 = vld [vmem:[%s12913_s19 + $0xc8] sm:$0xff] }
  0x37   :  { %407 = vst [vmem:[#allocation2 + $0xc0] sm:$0xff] %v7811_v2  ;;  %409 = vst [vmem:[#allocation2 + $0xc8] sm:$0xff] %v7812_v3  ;;  %v7813_v4 = vld [vmem:[%s12913_s19 + $0xd0] sm:$0xff]  ;;  %v7814_v5 = vld [vmem:[%s12913_s19 + $0xd8] sm:$0xff] }
  0x38   :  { %v7815_v6 = vld [vmem:[%s12913_s19 + $0xe0] sm:$0xff]  ;;  %411 = vst [vmem:[#allocation2 + $0xd0] sm:$0xff] %v7813_v4  ;;  %413 = vst [vmem:[#allocation2 + $0xd8] sm:$0xff] %v7814_v5  ;;  %v7816_v7 = vld [vmem:[%s12913_s19 + $0xe8] sm:$0xff] }
  0x39   :  { %415 = vst [vmem:[#allocation2 + $0xe0] sm:$0xff] %v7815_v6  ;;  %v7817_v8 = vld [vmem:[%s12913_s19 + $0xf0] sm:$0xff]  ;;  %v7818_v9 = vld [vmem:[%s12913_s19 + $0xf8] sm:$0xff]  ;;  %417 = vst [vmem:[#allocation2 + $0xe8] sm:$0xff] %v7816_v7 }
  0x3a   :  { %419 = vst [vmem:[#allocation2 + $0xf0] sm:$0xff] %v7817_v8  ;;  %421 = vst [vmem:[#allocation2 + $0xf8] sm:$0xff] %v7818_v9  ;;  %v7819_v10 = vld [vmem:[%s12913_s19 + $0x100] sm:$0xff]  ;;  %v7820_v11 = vld [vmem:[%s12913_s19 + $0x108] sm:$0xff] }
  0x3b   :  { %v7821_v12 = vld [vmem:[%s12913_s19 + $0x110] sm:$0xff]  ;;  %423 = vst [vmem:[#allocation2 + $0x100] sm:$0xff] %v7819_v10  ;;  %425 = vst [vmem:[#allocation2 + $0x108] sm:$0xff] %v7820_v11  ;;  %v7822_v13 = vld [vmem:[%s12913_s19 + $0x118] sm:$0xff] }
  0x3c   :  { %427 = vst [vmem:[#allocation2 + $0x110] sm:$0xff] %v7821_v12  ;;  %v7823_v14 = vld [vmem:[%s12913_s19 + $0x120] sm:$0xff]  ;;  %v7824_v15 = vld [vmem:[%s12913_s19 + $0x128] sm:$0xff]  ;;  %429 = vst [vmem:[#allocation2 + $0x118] sm:$0xff] %v7822_v13 }
  0x3d   :  { %431 = vst [vmem:[#allocation2 + $0x120] sm:$0xff] %v7823_v14  ;;  %433 = vst [vmem:[#allocation2 + $0x128] sm:$0xff] %v7824_v15  ;;  %v7825_v16 = vld [vmem:[%s12913_s19 + $0x130] sm:$0xff]  ;;  %v7826_v17 = vld [vmem:[%s12913_s19 + $0x138] sm:$0xff] }
  0x3e   :  { %v7827_v18 = vld [vmem:[%s12913_s19 + $0x140] sm:$0xff]  ;;  %435 = vst [vmem:[#allocation2 + $0x130] sm:$0xff] %v7825_v16  ;;  %437 = vst [vmem:[#allocation2 + $0x138] sm:$0xff] %v7826_v17  ;;  %v7828_v19 = vld [vmem:[%s12913_s19 + $0x148] sm:$0xff] }
  0x3f   :  { %439 = vst [vmem:[#allocation2 + $0x140] sm:$0xff] %v7827_v18  ;;  %v7829_v20 = vld [vmem:[%s12913_s19 + $0x150] sm:$0xff]  ;;  %v7830_v21 = vld [vmem:[%s12913_s19 + $0x158] sm:$0xff]  ;;  %441 = vst [vmem:[#allocation2 + $0x148] sm:$0xff] %v7828_v19 }
  0x40   :  { %443 = vst [vmem:[#allocation2 + $0x150] sm:$0xff] %v7829_v20  ;;  %445 = vst [vmem:[#allocation2 + $0x158] sm:$0xff] %v7830_v21  ;;  %v7831_v22 = vld [vmem:[%s12913_s19 + $0x160] sm:$0xff]  ;;  %v7832_v23 = vld [vmem:[%s12913_s19 + $0x168] sm:$0xff] }
  0x41   :  { %v7833_v24 = vld [vmem:[%s12913_s19 + $0x170] sm:$0xff]  ;;  %447 = vst [vmem:[#allocation2 + $0x160] sm:$0xff] %v7831_v22  ;;  %449 = vst [vmem:[#allocation2 + $0x168] sm:$0xff] %v7832_v23  ;;  %v7834_v25 = vld [vmem:[%s12913_s19 + $0x178] sm:$0xff] }
  0x42   :  { %451 = vst [vmem:[#allocation2 + $0x170] sm:$0xff] %v7833_v24  ;;  %453 = vst [vmem:[#allocation2 + $0x178] sm:$0xff] %v7834_v25 }
  0x43   :  { %461 = vsyncadd [#allocation6 + $0x1], 3072  ;;  %v7836_v26 = vld [vmem:[%s12914_s20 + $0x40] sm:$0xff]  ;;  %v7837_v27 = vld [vmem:[%s12914_s20 + $0x48] sm:$0xff] }
  0x44   :  { %499 = vst [vmem:[#allocation3 + $0x40] sm:$0xff] %v7836_v26  ;;  %501 = vst [vmem:[#allocation3 + $0x48] sm:$0xff] %v7837_v27  ;;  %v7838_v28 = vld [vmem:[%s12914_s20 + $0x50] sm:$0xff]  ;;  %v7839_v29 = vld [vmem:[%s12914_s20 + $0x58] sm:$0xff] }
  0x45   :  { %v7840_v30 = vld [vmem:[%s12914_s20 + $0x60] sm:$0xff]  ;;  %503 = vst [vmem:[#allocation3 + $0x50] sm:$0xff] %v7838_v28  ;;  %505 = vst [vmem:[#allocation3 + $0x58] sm:$0xff] %v7839_v29  ;;  %v7841_v31 = vld [vmem:[%s12914_s20 + $0x68] sm:$0xff] }
  0x46   :  { %507 = vst [vmem:[#allocation3 + $0x60] sm:$0xff] %v7840_v30  ;;  %v7842_v32 = vld [vmem:[%s12914_s20 + $0x70] sm:$0xff]  ;;  %v7843_v33 = vld [vmem:[%s12914_s20 + $0x78] sm:$0xff]  ;;  %509 = vst [vmem:[#allocation3 + $0x68] sm:$0xff] %v7841_v31 }
  0x47   :  { %511 = vst [vmem:[#allocation3 + $0x70] sm:$0xff] %v7842_v32  ;;  %513 = vst [vmem:[#allocation3 + $0x78] sm:$0xff] %v7843_v33 }
  0x48   :  { %521 = vsyncadd [#allocation6 + $0x5], 1024  ;;  %v10059_v50 = vld [vmem:[%s12915_s21 + $0x80] sm:$0xff]  ;;  %v10064_v51 = vld [vmem:[%s12915_s21 + $0x88] sm:$0xff] }
  0x49   :  { %13060 = vst [vmem:[#allocation58_spill] sm:$0xff] %v10059_v50  ;;  %13061 = vst [vmem:[#allocation59_spill] sm:$0xff] %v10064_v51  ;;  %v10069_v52 = vld [vmem:[%s12915_s21 + $0x90] sm:$0xff]  ;;  %v10074_v53 = vld [vmem:[%s12915_s21 + $0x98] sm:$0xff] }
  0x4a   :  { %13062 = vst [vmem:[#allocation60_spill] sm:$0xff] %v10069_v52  ;;  %13063 = vst [vmem:[#allocation61_spill] sm:$0xff] %v10074_v53  ;;  %v10079_v54 = vld [vmem:[%s12915_s21 + $0xa0] sm:$0xff]  ;;  %v10084_v55 = vld [vmem:[%s12915_s21 + $0xa8] sm:$0xff] }
  0x4b   :  { %13064 = vst [vmem:[#allocation62_spill] sm:$0xff] %v10079_v54  ;;  %13065 = vst [vmem:[#allocation63_spill] sm:$0xff] %v10084_v55  ;;  %v10089_v56 = vld [vmem:[%s12915_s21 + $0xb0] sm:$0xff]  ;;  %v10094_v57 = vld [vmem:[%s12915_s21 + $0xb8] sm:$0xff] }
  0x4c   :  { %13066 = vst [vmem:[#allocation64_spill] sm:$0xff] %v10089_v56  ;;  %13067 = vst [vmem:[#allocation65_spill] sm:$0xff] %v10094_v57  ;;  %v10099_v58 = vld [vmem:[%s12915_s21 + $0xc0] sm:$0xff]  ;;  %v10104_v59 = vld [vmem:[%s12915_s21 + $0xc8] sm:$0xff] }
  0x4d   :  { %13068 = vst [vmem:[#allocation66_spill] sm:$0xff] %v10099_v58  ;;  %13069 = vst [vmem:[#allocation67_spill] sm:$0xff] %v10104_v59  ;;  %v10109_v60 = vld [vmem:[%s12915_s21 + $0xd0] sm:$0xff]  ;;  %v10114_v61 = vld [vmem:[%s12915_s21 + $0xd8] sm:$0xff] }
  0x4e   :  { %13070 = vst [vmem:[#allocation68_spill] sm:$0xff] %v10109_v60  ;;  %13071 = vst [vmem:[#allocation69_spill] sm:$0xff] %v10114_v61  ;;  %v10119_v62 = vld [vmem:[%s12915_s21 + $0xe0] sm:$0xff]  ;;  %v10124_v63 = vld [vmem:[%s12915_s21 + $0xe8] sm:$0xff] }
  0x4f   :  { %13072 = vst [vmem:[#allocation70_spill] sm:$0xff] %v10119_v62  ;;  %13073 = vst [vmem:[#allocation71_spill] sm:$0xff] %v10124_v63  ;;  %v10129_v0 = vld [vmem:[%s12915_s21 + $0xf0] sm:$0xff]  ;;  %v10134_v1 = vld [vmem:[%s12915_s21 + $0xf8] sm:$0xff] }
  0x50   :  { %13074 = vst [vmem:[#allocation72_spill] sm:$0xff] %v10129_v0  ;;  %13075 = vst [vmem:[#allocation73_spill] sm:$0xff] %v10134_v1 }
  0x51   :  { %597 = vsyncadd [#allocation6 + $0x9], 2048  ;;  %v7862_v2 = vld [vmem:[%s12916_s22 + $0x80] sm:$0xff]  ;;  %v7863_v3 = vld [vmem:[%s12916_s22 + $0x88] sm:$0xff] }
  0x52   :  { %635 = vst [vmem:[#allocation5 + $0x80] sm:$0xff] %v7862_v2  ;;  %637 = vst [vmem:[#allocation5 + $0x88] sm:$0xff] %v7863_v3  ;;  %v7864_v4 = vld [vmem:[%s12916_s22 + $0x90] sm:$0xff]  ;;  %v7865_v5 = vld [vmem:[%s12916_s22 + $0x98] sm:$0xff] }
  0x53   :  { %v7866_v6 = vld [vmem:[%s12916_s22 + $0xa0] sm:$0xff]  ;;  %639 = vst [vmem:[#allocation5 + $0x90] sm:$0xff] %v7864_v4  ;;  %641 = vst [vmem:[#allocation5 + $0x98] sm:$0xff] %v7865_v5  ;;  %v7867_v7 = vld [vmem:[%s12916_s22 + $0xa8] sm:$0xff] }
  0x54   :  { %643 = vst [vmem:[#allocation5 + $0xa0] sm:$0xff] %v7866_v6  ;;  %v7868_v8 = vld [vmem:[%s12916_s22 + $0xb0] sm:$0xff]  ;;  %v7869_v9 = vld [vmem:[%s12916_s22 + $0xb8] sm:$0xff]  ;;  %645 = vst [vmem:[#allocation5 + $0xa8] sm:$0xff] %v7867_v7 }
  0x55   :  { %647 = vst [vmem:[#allocation5 + $0xb0] sm:$0xff] %v7868_v8  ;;  %649 = vst [vmem:[#allocation5 + $0xb8] sm:$0xff] %v7869_v9  ;;  %v7870_v10 = vld [vmem:[%s12916_s22 + $0xc0] sm:$0xff]  ;;  %v7871_v11 = vld [vmem:[%s12916_s22 + $0xc8] sm:$0xff] }
  0x56   :  { %v7872_v12 = vld [vmem:[%s12916_s22 + $0xd0] sm:$0xff]  ;;  %651 = vst [vmem:[#allocation5 + $0xc0] sm:$0xff] %v7870_v10  ;;  %653 = vst [vmem:[#allocation5 + $0xc8] sm:$0xff] %v7871_v11  ;;  %v7873_v13 = vld [vmem:[%s12916_s22 + $0xd8] sm:$0xff] }
  0x57   :  { %655 = vst [vmem:[#allocation5 + $0xd0] sm:$0xff] %v7872_v12  ;;  %v7874_v14 = vld [vmem:[%s12916_s22 + $0xe0] sm:$0xff]  ;;  %v7875_v15 = vld [vmem:[%s12916_s22 + $0xe8] sm:$0xff]  ;;  %657 = vst [vmem:[#allocation5 + $0xd8] sm:$0xff] %v7873_v13 }
  0x58   :  { %659 = vst [vmem:[#allocation5 + $0xe0] sm:$0xff] %v7874_v14  ;;  %661 = vst [vmem:[#allocation5 + $0xe8] sm:$0xff] %v7875_v15  ;;  %v7876_v16 = vld [vmem:[%s12916_s22 + $0xf0] sm:$0xff]  ;;  %v7877_v17 = vld [vmem:[%s12916_s22 + $0xf8] sm:$0xff] }
  0x59   :  { %663 = vst [vmem:[#allocation5 + $0xf0] sm:$0xff] %v7876_v16  ;;  %665 = vst [vmem:[#allocation5 + $0xf8] sm:$0xff] %v7877_v17 }
  0x5a   :  { %673 = vsyncadd [#allocation6 + $0xd], 2048  ;;  %v7879_v18 = vld [vmem:[%s12913_s19 + $0x180] sm:$0xff]  ;;  %v7880_v19 = vld [vmem:[%s12913_s19 + $0x188] sm:$0xff] }
  0x5b   :  { %711 = vst [vmem:[#allocation2 + $0x180] sm:$0xff] %v7879_v18  ;;  %713 = vst [vmem:[#allocation2 + $0x188] sm:$0xff] %v7880_v19  ;;  %v7881_v20 = vld [vmem:[%s12913_s19 + $0x190] sm:$0xff]  ;;  %v7882_v21 = vld [vmem:[%s12913_s19 + $0x198] sm:$0xff] }
  0x5c   :  { %v7883_v22 = vld [vmem:[%s12913_s19 + $0x1a0] sm:$0xff]  ;;  %715 = vst [vmem:[#allocation2 + $0x190] sm:$0xff] %v7881_v20  ;;  %717 = vst [vmem:[#allocation2 + $0x198] sm:$0xff] %v7882_v21  ;;  %v7884_v23 = vld [vmem:[%s12913_s19 + $0x1a8] sm:$0xff] }
  0x5d   :  { %719 = vst [vmem:[#allocation2 + $0x1a0] sm:$0xff] %v7883_v22  ;;  %v7885_v24 = vld [vmem:[%s12913_s19 + $0x1b0] sm:$0xff]  ;;  %v7886_v25 = vld [vmem:[%s12913_s19 + $0x1b8] sm:$0xff]  ;;  %721 = vst [vmem:[#allocation2 + $0x1a8] sm:$0xff] %v7884_v23 }
  0x5e   :  { %723 = vst [vmem:[#allocation2 + $0x1b0] sm:$0xff] %v7885_v24  ;;  %725 = vst [vmem:[#allocation2 + $0x1b8] sm:$0xff] %v7886_v25  ;;  %v7887_v26 = vld [vmem:[%s12913_s19 + $0x1c0] sm:$0xff]  ;;  %v7888_v27 = vld [vmem:[%s12913_s19 + $0x1c8] sm:$0xff] }
  0x5f   :  { %v7889_v28 = vld [vmem:[%s12913_s19 + $0x1d0] sm:$0xff]  ;;  %727 = vst [vmem:[#allocation2 + $0x1c0] sm:$0xff] %v7887_v26  ;;  %729 = vst [vmem:[#allocation2 + $0x1c8] sm:$0xff] %v7888_v27  ;;  %v7890_v29 = vld [vmem:[%s12913_s19 + $0x1d8] sm:$0xff] }
  0x60   :  { %731 = vst [vmem:[#allocation2 + $0x1d0] sm:$0xff] %v7889_v28  ;;  %v7891_v30 = vld [vmem:[%s12913_s19 + $0x1e0] sm:$0xff]  ;;  %v7892_v31 = vld [vmem:[%s12913_s19 + $0x1e8] sm:$0xff]  ;;  %733 = vst [vmem:[#allocation2 + $0x1d8] sm:$0xff] %v7890_v29 }
  0x61   :  { %735 = vst [vmem:[#allocation2 + $0x1e0] sm:$0xff] %v7891_v30  ;;  %737 = vst [vmem:[#allocation2 + $0x1e8] sm:$0xff] %v7892_v31  ;;  %v7893_v32 = vld [vmem:[%s12913_s19 + $0x1f0] sm:$0xff]  ;;  %v7894_v33 = vld [vmem:[%s12913_s19 + $0x1f8] sm:$0xff] }
  0x62   :  { %v7895_v2 = vld [vmem:[%s12913_s19 + $0x200] sm:$0xff]  ;;  %739 = vst [vmem:[#allocation2 + $0x1f0] sm:$0xff] %v7893_v32  ;;  %741 = vst [vmem:[#allocation2 + $0x1f8] sm:$0xff] %v7894_v33  ;;  %v7896_v3 = vld [vmem:[%s12913_s19 + $0x208] sm:$0xff] }
  0x63   :  { %743 = vst [vmem:[#allocation2 + $0x200] sm:$0xff] %v7895_v2  ;;  %v7897_v4 = vld [vmem:[%s12913_s19 + $0x210] sm:$0xff]  ;;  %v7898_v5 = vld [vmem:[%s12913_s19 + $0x218] sm:$0xff]  ;;  %745 = vst [vmem:[#allocation2 + $0x208] sm:$0xff] %v7896_v3 }
  0x64   :  { %747 = vst [vmem:[#allocation2 + $0x210] sm:$0xff] %v7897_v4  ;;  %749 = vst [vmem:[#allocation2 + $0x218] sm:$0xff] %v7898_v5  ;;  %v7899_v6 = vld [vmem:[%s12913_s19 + $0x220] sm:$0xff]  ;;  %v7900_v7 = vld [vmem:[%s12913_s19 + $0x228] sm:$0xff] }
  0x65   :  { %v7901_v8 = vld [vmem:[%s12913_s19 + $0x230] sm:$0xff]  ;;  %751 = vst [vmem:[#allocation2 + $0x220] sm:$0xff] %v7899_v6  ;;  %753 = vst [vmem:[#allocation2 + $0x228] sm:$0xff] %v7900_v7  ;;  %v7902_v9 = vld [vmem:[%s12913_s19 + $0x238] sm:$0xff] }
  0x66   :  { %755 = vst [vmem:[#allocation2 + $0x230] sm:$0xff] %v7901_v8  ;;  %757 = vst [vmem:[#allocation2 + $0x238] sm:$0xff] %v7902_v9 }
  0x67   :  { %765 = vsyncadd [#allocation6 + $0x2], 3072  ;;  %v7904_v10 = vld [vmem:[%s12914_s20 + $0x80] sm:$0xff]  ;;  %v7905_v11 = vld [vmem:[%s12914_s20 + $0x88] sm:$0xff] }
  0x68   :  { %803 = vst [vmem:[#allocation3 + $0x80] sm:$0xff] %v7904_v10  ;;  %805 = vst [vmem:[#allocation3 + $0x88] sm:$0xff] %v7905_v11  ;;  %v7906_v12 = vld [vmem:[%s12914_s20 + $0x90] sm:$0xff]  ;;  %v7907_v13 = vld [vmem:[%s12914_s20 + $0x98] sm:$0xff] }
  0x69   :  { %v7908_v14 = vld [vmem:[%s12914_s20 + $0xa0] sm:$0xff]  ;;  %807 = vst [vmem:[#allocation3 + $0x90] sm:$0xff] %v7906_v12  ;;  %809 = vst [vmem:[#allocation3 + $0x98] sm:$0xff] %v7907_v13  ;;  %v7909_v15 = vld [vmem:[%s12914_s20 + $0xa8] sm:$0xff] }
  0x6a   :  { %811 = vst [vmem:[#allocation3 + $0xa0] sm:$0xff] %v7908_v14  ;;  %v7910_v16 = vld [vmem:[%s12914_s20 + $0xb0] sm:$0xff]  ;;  %v7911_v17 = vld [vmem:[%s12914_s20 + $0xb8] sm:$0xff]  ;;  %813 = vst [vmem:[#allocation3 + $0xa8] sm:$0xff] %v7909_v15 }
  0x6b   :  { %815 = vst [vmem:[#allocation3 + $0xb0] sm:$0xff] %v7910_v16  ;;  %817 = vst [vmem:[#allocation3 + $0xb8] sm:$0xff] %v7911_v17 }
  0x6c   :  { %825 = vsyncadd [#allocation6 + $0x6], 1024  ;;  %v10283_v18 = vld [vmem:[%s12915_s21 + $0x100] sm:$0xff]  ;;  %v10288_v19 = vld [vmem:[%s12915_s21 + $0x108] sm:$0xff] }
  0x6d   :  { %13076 = vst [vmem:[#allocation74_spill] sm:$0xff] %v10283_v18  ;;  %13077 = vst [vmem:[#allocation75_spill] sm:$0xff] %v10288_v19  ;;  %v10293_v20 = vld [vmem:[%s12915_s21 + $0x110] sm:$0xff]  ;;  %v10298_v21 = vld [vmem:[%s12915_s21 + $0x118] sm:$0xff] }
  0x6e   :  { %13078 = vst [vmem:[#allocation76_spill] sm:$0xff] %v10293_v20  ;;  %13079 = vst [vmem:[#allocation77_spill] sm:$0xff] %v10298_v21  ;;  %v10303_v22 = vld [vmem:[%s12915_s21 + $0x120] sm:$0xff]  ;;  %v10308_v23 = vld [vmem:[%s12915_s21 + $0x128] sm:$0xff] }
  0x6f   :  { %13080 = vst [vmem:[#allocation78_spill] sm:$0xff] %v10303_v22  ;;  %13081 = vst [vmem:[#allocation79_spill] sm:$0xff] %v10308_v23  ;;  %v10313_v24 = vld [vmem:[%s12915_s21 + $0x130] sm:$0xff]  ;;  %v10318_v25 = vld [vmem:[%s12915_s21 + $0x138] sm:$0xff] }
  0x70   :  { %13082 = vst [vmem:[#allocation80_spill] sm:$0xff] %v10313_v24  ;;  %13083 = vst [vmem:[#allocation81_spill] sm:$0xff] %v10318_v25  ;;  %v10323_v26 = vld [vmem:[%s12915_s21 + $0x140] sm:$0xff]  ;;  %v10328_v27 = vld [vmem:[%s12915_s21 + $0x148] sm:$0xff] }
  0x71   :  { %13084 = vst [vmem:[#allocation82_spill] sm:$0xff] %v10323_v26  ;;  %13085 = vst [vmem:[#allocation83_spill] sm:$0xff] %v10328_v27  ;;  %v10333_v28 = vld [vmem:[%s12915_s21 + $0x150] sm:$0xff]  ;;  %v10338_v29 = vld [vmem:[%s12915_s21 + $0x158] sm:$0xff] }
  0x72   :  { %13086 = vst [vmem:[#allocation84_spill] sm:$0xff] %v10333_v28  ;;  %13087 = vst [vmem:[#allocation85_spill] sm:$0xff] %v10338_v29  ;;  %v10343_v30 = vld [vmem:[%s12915_s21 + $0x160] sm:$0xff]  ;;  %v10348_v31 = vld [vmem:[%s12915_s21 + $0x168] sm:$0xff] }
  0x73   :  { %13088 = vst [vmem:[#allocation86_spill] sm:$0xff] %v10343_v30  ;;  %13089 = vst [vmem:[#allocation87_spill] sm:$0xff] %v10348_v31  ;;  %v10353_v32 = vld [vmem:[%s12915_s21 + $0x170] sm:$0xff]  ;;  %v10358_v33 = vld [vmem:[%s12915_s21 + $0x178] sm:$0xff] }
  0x74   :  { %13090 = vst [vmem:[#allocation88_spill] sm:$0xff] %v10353_v32  ;;  %13091 = vst [vmem:[#allocation89_spill] sm:$0xff] %v10358_v33 }
  0x75   :  { %901 = vsyncadd [#allocation6 + $0xa], 2048  ;;  %v7930_v2 = vld [vmem:[%s12916_s22 + $0x100] sm:$0xff]  ;;  %v7931_v3 = vld [vmem:[%s12916_s22 + $0x108] sm:$0xff] }
  0x76   :  { %939 = vst [vmem:[#allocation5 + $0x100] sm:$0xff] %v7930_v2  ;;  %941 = vst [vmem:[#allocation5 + $0x108] sm:$0xff] %v7931_v3  ;;  %v7932_v4 = vld [vmem:[%s12916_s22 + $0x110] sm:$0xff]  ;;  %v7933_v5 = vld [vmem:[%s12916_s22 + $0x118] sm:$0xff] }
  0x77   :  { %v7934_v6 = vld [vmem:[%s12916_s22 + $0x120] sm:$0xff]  ;;  %943 = vst [vmem:[#allocation5 + $0x110] sm:$0xff] %v7932_v4  ;;  %945 = vst [vmem:[#allocation5 + $0x118] sm:$0xff] %v7933_v5  ;;  %v7935_v7 = vld [vmem:[%s12916_s22 + $0x128] sm:$0xff] }
  0x78   :  { %947 = vst [vmem:[#allocation5 + $0x120] sm:$0xff] %v7934_v6  ;;  %v7936_v8 = vld [vmem:[%s12916_s22 + $0x130] sm:$0xff]  ;;  %v7937_v9 = vld [vmem:[%s12916_s22 + $0x138] sm:$0xff]  ;;  %949 = vst [vmem:[#allocation5 + $0x128] sm:$0xff] %v7935_v7 }
  0x79   :  { %951 = vst [vmem:[#allocation5 + $0x130] sm:$0xff] %v7936_v8  ;;  %953 = vst [vmem:[#allocation5 + $0x138] sm:$0xff] %v7937_v9  ;;  %v7938_v10 = vld [vmem:[%s12916_s22 + $0x140] sm:$0xff]  ;;  %v7939_v11 = vld [vmem:[%s12916_s22 + $0x148] sm:$0xff] }
  0x7a   :  { %v7940_v12 = vld [vmem:[%s12916_s22 + $0x150] sm:$0xff]  ;;  %955 = vst [vmem:[#allocation5 + $0x140] sm:$0xff] %v7938_v10  ;;  %957 = vst [vmem:[#allocation5 + $0x148] sm:$0xff] %v7939_v11  ;;  %v7941_v13 = vld [vmem:[%s12916_s22 + $0x158] sm:$0xff] }
  0x7b   :  { %959 = vst [vmem:[#allocation5 + $0x150] sm:$0xff] %v7940_v12  ;;  %v7942_v14 = vld [vmem:[%s12916_s22 + $0x160] sm:$0xff]  ;;  %v7943_v15 = vld [vmem:[%s12916_s22 + $0x168] sm:$0xff]  ;;  %961 = vst [vmem:[#allocation5 + $0x158] sm:$0xff] %v7941_v13 }
  0x7c   :  { %963 = vst [vmem:[#allocation5 + $0x160] sm:$0xff] %v7942_v14  ;;  %965 = vst [vmem:[#allocation5 + $0x168] sm:$0xff] %v7943_v15  ;;  %v7944_v16 = vld [vmem:[%s12916_s22 + $0x170] sm:$0xff]  ;;  %v7945_v17 = vld [vmem:[%s12916_s22 + $0x178] sm:$0xff] }
  0x7d   :  { %967 = vst [vmem:[#allocation5 + $0x170] sm:$0xff] %v7944_v16  ;;  %969 = vst [vmem:[#allocation5 + $0x178] sm:$0xff] %v7945_v17 }
  0x7e   :  { %977 = vsyncadd [#allocation6 + $0xe], 2048  ;;  %v7947_v2 = vld [vmem:[%s12913_s19 + $0x240] sm:$0xff]  ;;  %v7948_v3 = vld [vmem:[%s12913_s19 + $0x248] sm:$0xff] }
  0x7f   :  { %1015 = vst [vmem:[#allocation2 + $0x240] sm:$0xff] %v7947_v2  ;;  %1017 = vst [vmem:[#allocation2 + $0x248] sm:$0xff] %v7948_v3  ;;  %v7949_v4 = vld [vmem:[%s12913_s19 + $0x250] sm:$0xff]  ;;  %v7950_v5 = vld [vmem:[%s12913_s19 + $0x258] sm:$0xff] }
  0x80   :  { %v7951_v6 = vld [vmem:[%s12913_s19 + $0x260] sm:$0xff]  ;;  %1019 = vst [vmem:[#allocation2 + $0x250] sm:$0xff] %v7949_v4  ;;  %1021 = vst [vmem:[#allocation2 + $0x258] sm:$0xff] %v7950_v5  ;;  %v7952_v7 = vld [vmem:[%s12913_s19 + $0x268] sm:$0xff] }
  0x81   :  { %1023 = vst [vmem:[#allocation2 + $0x260] sm:$0xff] %v7951_v6  ;;  %v7953_v8 = vld [vmem:[%s12913_s19 + $0x270] sm:$0xff]  ;;  %v7954_v9 = vld [vmem:[%s12913_s19 + $0x278] sm:$0xff]  ;;  %1025 = vst [vmem:[#allocation2 + $0x268] sm:$0xff] %v7952_v7 }
  0x82   :  { %1027 = vst [vmem:[#allocation2 + $0x270] sm:$0xff] %v7953_v8  ;;  %1029 = vst [vmem:[#allocation2 + $0x278] sm:$0xff] %v7954_v9  ;;  %v7955_v10 = vld [vmem:[%s12913_s19 + $0x280] sm:$0xff]  ;;  %v7956_v11 = vld [vmem:[%s12913_s19 + $0x288] sm:$0xff] }
  0x83   :  { %v7957_v12 = vld [vmem:[%s12913_s19 + $0x290] sm:$0xff]  ;;  %1031 = vst [vmem:[#allocation2 + $0x280] sm:$0xff] %v7955_v10  ;;  %1033 = vst [vmem:[#allocation2 + $0x288] sm:$0xff] %v7956_v11  ;;  %v7958_v13 = vld [vmem:[%s12913_s19 + $0x298] sm:$0xff] }
  0x84   :  { %1035 = vst [vmem:[#allocation2 + $0x290] sm:$0xff] %v7957_v12  ;;  %v7959_v14 = vld [vmem:[%s12913_s19 + $0x2a0] sm:$0xff]  ;;  %v7960_v15 = vld [vmem:[%s12913_s19 + $0x2a8] sm:$0xff]  ;;  %1037 = vst [vmem:[#allocation2 + $0x298] sm:$0xff] %v7958_v13 }
  0x85   :  { %1039 = vst [vmem:[#allocation2 + $0x2a0] sm:$0xff] %v7959_v14  ;;  %1041 = vst [vmem:[#allocation2 + $0x2a8] sm:$0xff] %v7960_v15  ;;  %v7961_v16 = vld [vmem:[%s12913_s19 + $0x2b0] sm:$0xff]  ;;  %v7962_v17 = vld [vmem:[%s12913_s19 + $0x2b8] sm:$0xff] }
  0x86   :  { %v7963_v2 = vld [vmem:[%s12913_s19 + $0x2c0] sm:$0xff]  ;;  %1043 = vst [vmem:[#allocation2 + $0x2b0] sm:$0xff] %v7961_v16  ;;  %1045 = vst [vmem:[#allocation2 + $0x2b8] sm:$0xff] %v7962_v17  ;;  %v7964_v3 = vld [vmem:[%s12913_s19 + $0x2c8] sm:$0xff] }
  0x87   :  { %1047 = vst [vmem:[#allocation2 + $0x2c0] sm:$0xff] %v7963_v2  ;;  %v7965_v4 = vld [vmem:[%s12913_s19 + $0x2d0] sm:$0xff]  ;;  %v7966_v5 = vld [vmem:[%s12913_s19 + $0x2d8] sm:$0xff]  ;;  %1049 = vst [vmem:[#allocation2 + $0x2c8] sm:$0xff] %v7964_v3 }
  0x88   :  { %1051 = vst [vmem:[#allocation2 + $0x2d0] sm:$0xff] %v7965_v4  ;;  %1053 = vst [vmem:[#allocation2 + $0x2d8] sm:$0xff] %v7966_v5  ;;  %v7967_v6 = vld [vmem:[%s12913_s19 + $0x2e0] sm:$0xff]  ;;  %v7968_v7 = vld [vmem:[%s12913_s19 + $0x2e8] sm:$0xff] }
  0x89   :  { %v7969_v8 = vld [vmem:[%s12913_s19 + $0x2f0] sm:$0xff]  ;;  %1055 = vst [vmem:[#allocation2 + $0x2e0] sm:$0xff] %v7967_v6  ;;  %1057 = vst [vmem:[#allocation2 + $0x2e8] sm:$0xff] %v7968_v7  ;;  %v7970_v9 = vld [vmem:[%s12913_s19 + $0x2f8] sm:$0xff] }
  0x8a   :  { %1059 = vst [vmem:[#allocation2 + $0x2f0] sm:$0xff] %v7969_v8  ;;  %1061 = vst [vmem:[#allocation2 + $0x2f8] sm:$0xff] %v7970_v9 }
  0x8b   :  { %1069 = vsyncadd [#allocation6 + $0x3], 3072  ;;  %v7972_v10 = vld [vmem:[%s12914_s20 + $0xc0] sm:$0xff]  ;;  %v7973_v11 = vld [vmem:[%s12914_s20 + $0xc8] sm:$0xff] }
  0x8c   :  { %1107 = vst [vmem:[#allocation3 + $0xc0] sm:$0xff] %v7972_v10  ;;  %1109 = vst [vmem:[#allocation3 + $0xc8] sm:$0xff] %v7973_v11  ;;  %v7974_v12 = vld [vmem:[%s12914_s20 + $0xd0] sm:$0xff]  ;;  %v7975_v13 = vld [vmem:[%s12914_s20 + $0xd8] sm:$0xff] }
  0x8d   :  { %v7976_v14 = vld [vmem:[%s12914_s20 + $0xe0] sm:$0xff]  ;;  %1111 = vst [vmem:[#allocation3 + $0xd0] sm:$0xff] %v7974_v12  ;;  %1113 = vst [vmem:[#allocation3 + $0xd8] sm:$0xff] %v7975_v13  ;;  %v7977_v15 = vld [vmem:[%s12914_s20 + $0xe8] sm:$0xff] }
  0x8e   :  { %1115 = vst [vmem:[#allocation3 + $0xe0] sm:$0xff] %v7976_v14  ;;  %v7978_v16 = vld [vmem:[%s12914_s20 + $0xf0] sm:$0xff]  ;;  %v7979_v17 = vld [vmem:[%s12914_s20 + $0xf8] sm:$0xff]  ;;  %1117 = vst [vmem:[#allocation3 + $0xe8] sm:$0xff] %v7977_v15 }
  0x8f   :  { %1119 = vst [vmem:[#allocation3 + $0xf0] sm:$0xff] %v7978_v16  ;;  %1121 = vst [vmem:[#allocation3 + $0xf8] sm:$0xff] %v7979_v17 }
  0x90   :  { %1129 = vsyncadd [#allocation6 + $0x7], 1024  ;;  %v10507_v2 = vld [vmem:[%s12915_s21 + $0x180] sm:$0xff]  ;;  %v10512_v3 = vld [vmem:[%s12915_s21 + $0x188] sm:$0xff] }
  0x91   :  { %13092 = vst [vmem:[#allocation90_spill] sm:$0xff] %v10507_v2  ;;  %13093 = vst [vmem:[#allocation91_spill] sm:$0xff] %v10512_v3  ;;  %v10517_v4 = vld [vmem:[%s12915_s21 + $0x190] sm:$0xff]  ;;  %v10522_v5 = vld [vmem:[%s12915_s21 + $0x198] sm:$0xff] }
  0x92   :  { %13094 = vst [vmem:[#allocation92_spill] sm:$0xff] %v10517_v4  ;;  %13095 = vst [vmem:[#allocation93_spill] sm:$0xff] %v10522_v5  ;;  %v10527_v6 = vld [vmem:[%s12915_s21 + $0x1a0] sm:$0xff]  ;;  %v10532_v7 = vld [vmem:[%s12915_s21 + $0x1a8] sm:$0xff] }
  0x93   :  { %13096 = vst [vmem:[#allocation94_spill] sm:$0xff] %v10527_v6  ;;  %13097 = vst [vmem:[#allocation95_spill] sm:$0xff] %v10532_v7  ;;  %v10537_v8 = vld [vmem:[%s12915_s21 + $0x1b0] sm:$0xff]  ;;  %v10542_v9 = vld [vmem:[%s12915_s21 + $0x1b8] sm:$0xff] }
  0x94   :  { %13098 = vst [vmem:[#allocation96_spill] sm:$0xff] %v10537_v8  ;;  %13099 = vst [vmem:[#allocation97_spill] sm:$0xff] %v10542_v9  ;;  %v10547_v10 = vld [vmem:[%s12915_s21 + $0x1c0] sm:$0xff]  ;;  %v10552_v11 = vld [vmem:[%s12915_s21 + $0x1c8] sm:$0xff] }
  0x95   :  { %13100 = vst [vmem:[#allocation98_spill] sm:$0xff] %v10547_v10  ;;  %13101 = vst [vmem:[#allocation99_spill] sm:$0xff] %v10552_v11  ;;  %v10557_v12 = vld [vmem:[%s12915_s21 + $0x1d0] sm:$0xff]  ;;  %v10562_v13 = vld [vmem:[%s12915_s21 + $0x1d8] sm:$0xff] }
  0x96   :  { %13102 = vst [vmem:[#allocation100_spill] sm:$0xff] %v10557_v12  ;;  %13103 = vst [vmem:[#allocation101_spill] sm:$0xff] %v10562_v13  ;;  %v10567_v14 = vld [vmem:[%s12915_s21 + $0x1e0] sm:$0xff]  ;;  %v10572_v15 = vld [vmem:[%s12915_s21 + $0x1e8] sm:$0xff] }
  0x97   :  { %13104 = vst [vmem:[#allocation102_spill] sm:$0xff] %v10567_v14  ;;  %13105 = vst [vmem:[#allocation103_spill] sm:$0xff] %v10572_v15  ;;  %v10577_v16 = vld [vmem:[%s12915_s21 + $0x1f0] sm:$0xff]  ;;  %v10582_v17 = vld [vmem:[%s12915_s21 + $0x1f8] sm:$0xff] }
  0x98   :  { %13106 = vst [vmem:[#allocation104_spill] sm:$0xff] %v10577_v16  ;;  %13107 = vst [vmem:[#allocation105_spill] sm:$0xff] %v10582_v17 }
  0x99   :  { %1205 = vsyncadd [#allocation6 + $0xb], 2048  ;;  %v7998_v2 = vld [vmem:[%s12916_s22 + $0x180] sm:$0xff]  ;;  %v7999_v3 = vld [vmem:[%s12916_s22 + $0x188] sm:$0xff]  ;;  %s13108_s19 = sld [smem:[#allocation126_spill]]  ;;  %vm1446_vm0 = vcmask 1043456  }
  0x9a   :  { %1243 = vst [vmem:[#allocation5 + $0x180] sm:$0xff] %v7998_v2  ;;  %1245 = vst [vmem:[#allocation5 + $0x188] sm:$0xff] %v7999_v3  ;;  %v8000_v4 = vld [vmem:[%s12916_s22 + $0x190] sm:$0xff]  ;;  %v8001_v5 = vld [vmem:[%s12916_s22 + $0x198] sm:$0xff]  ;;  %s13109_s1 = sld [smem:[#allocation121_spill]]  ;;  %vm1421_vm1 = vcmask 64512  }
  0x9b   :  { %v8002_v6 = vld [vmem:[%s12916_s22 + $0x1a0] sm:$0xff]  ;;  %1247 = vst [vmem:[#allocation5 + $0x190] sm:$0xff] %v8000_v4  ;;  %1249 = vst [vmem:[#allocation5 + $0x198] sm:$0xff] %v8001_v5  ;;  %v8003_v2 = vld [vmem:[%s12916_s22 + $0x1a8] sm:$0xff] }
  0x9c   :  { %1251 = vst [vmem:[#allocation5 + $0x1a0] sm:$0xff] %v8002_v6  ;;  %v8004_v3 = vld [vmem:[%s12916_s22 + $0x1b0] sm:$0xff]  ;;  %v8005_v7 = vld [vmem:[%s12916_s22 + $0x1b8] sm:$0xff]  ;;  %1253 = vst [vmem:[#allocation5 + $0x1a8] sm:$0xff] %v8003_v2 }
  0x9d   :  { %1255 = vst [vmem:[#allocation5 + $0x1b0] sm:$0xff] %v8004_v3  ;;  %1257 = vst [vmem:[#allocation5 + $0x1b8] sm:$0xff] %v8005_v7  ;;  %v8006_v4 = vld [vmem:[%s12916_s22 + $0x1c0] sm:$0xff]  ;;  %v8007_v5 = vld [vmem:[%s12916_s22 + $0x1c8] sm:$0xff] }
  0x9e   :  { %v8008_v6 = vld [vmem:[%s12916_s22 + $0x1d0] sm:$0xff]  ;;  %1259 = vst [vmem:[#allocation5 + $0x1c0] sm:$0xff] %v8006_v4  ;;  %1261 = vst [vmem:[#allocation5 + $0x1c8] sm:$0xff] %v8007_v5  ;;  %v8009_v2 = vld [vmem:[%s12916_s22 + $0x1d8] sm:$0xff] }
  0x9f   :  { %1263 = vst [vmem:[#allocation5 + $0x1d0] sm:$0xff] %v8008_v6  ;;  %v8010_v7 = vld [vmem:[%s12916_s22 + $0x1e0] sm:$0xff]  ;;  %v8011_v3 = vld [vmem:[%s12916_s22 + $0x1e8] sm:$0xff]  ;;  %1265 = vst [vmem:[#allocation5 + $0x1d8] sm:$0xff] %v8009_v2 }
  0xa0   :  { %1267 = vst [vmem:[#allocation5 + $0x1e0] sm:$0xff] %v8010_v7  ;;  %1269 = vst [vmem:[#allocation5 + $0x1e8] sm:$0xff] %v8011_v3  ;;  %v8012_v4 = vld [vmem:[%s12916_s22 + $0x1f0] sm:$0xff]  ;;  %v8013_v5 = vld [vmem:[%s12916_s22 + $0x1f8] sm:$0xff] }
  0xa1   :  { %1271 = vst [vmem:[#allocation5 + $0x1f0] sm:$0xff] %v8012_v4  ;;  %1273 = vst [vmem:[#allocation5 + $0x1f8] sm:$0xff] %v8013_v5  ;;  %v1396_v6 = vld [vmem:[%s13108_s19] sm:$0xf]  ;;  %v1381_v7 = vld [vmem:[%s13109_s1 + $0x8] sm:$0xff] }
  0xa2   :  { %v1380_v2 = vld [vmem:[%s13109_s1] sm:$0xff]  ;;  %9048 = vmatprep.subr.msk.bf16.mxu1 %vm1446_vm0, %v1396_v6  ;;  %v1448_v3 = vsel %vm1446_vm0, %v1396_v6, 0  ;;  %v1382_v4 = vld [vmem:[%s13109_s1 + $0x10] sm:$0xff]  ;;  %v1383_v5 = vld [vmem:[%s13109_s1 + $0x18] sm:$0xff] }
  0xa3   :  { %v1397_v8 = vpack.c.bf16 %v1381_v7, %v1380_v2  ;;  %v1384_v9 = vld [vmem:[%s13109_s1 + $0x20] sm:$0xff]  ;;  %8719 = vmatpush3.bf16.msra.mxu1 %v1448_v3  ;;  %v1398_v10 = vpack.c.bf16 %v1383_v5, %v1382_v4  ;;  %v1385_v11 = vld [vmem:[%s13109_s1 + $0x28] sm:$0xff] }
  0xa4   :  { %v1399_v6 = vpack.c.bf16 %v1385_v11, %v1384_v9 }
  0xa5   :  { %8720 = vmatprep.mubr.msk.bf16.mxu1 %vm1421_vm1, %v1397_v8 }
  0xa6   :  { %1281 = vsyncadd [#allocation6 + $0xf], 2048  ;;  %s13110_s20 = sld [smem:[#allocation124_spill]]  ;;  %v1386_v3 = vld [vmem:[%s13109_s1 + $0x30] sm:$0xff]  ;;  %v1387_v8 = vld [vmem:[%s13109_s1 + $0x38] sm:$0xff]  ;;  %8721 = vmatmul.mubr.msk.bf16.vlgmr.msra.gmra.mxu1 %vm1421_vm1, %v1398_v10  ;;  %vm1324_vm2 = vcmask 261120  }
  0xa7   :  { %8724 = vmatprep.mubr.msk.bf16.mxu1 %vm1421_vm1, %v1399_v6  ;;  %v1400_v20 = vpack.c.bf16 %v1387_v8, %v1386_v3  ;;  %s13111_s3 = sld [smem:[#allocation125_spill]]  ;;  %v1388_v23 = vld [vmem:[%s13109_s1 + $0x40] sm:$0xff]  ;;  %v1389_v24 = vld [vmem:[%s13109_s1 + $0x48] sm:$0xff] }
  0xa8   :  { %v1401_v25 = vpack.c.bf16 %v1389_v24, %v1388_v23  ;;  %s13112_s22 = sld [smem:[#allocation120_spill]]  ;;  %v1390_v23 = vld [vmem:[%s13109_s1 + $0x50] sm:$0xff]  ;;  %v1391_v24 = vld [vmem:[%s13109_s1 + $0x58] sm:$0xff] }
  0xa9   :  { %s13113_s28 = sld [smem:[#allocation123_spill]] }
  0xaa   :  { %s13114_s26 = sld [smem:[#allocation122_spill]] }
  0xac   :  { %v10657_v2 = vld [vmem:[%s13110_s20] sm:$0xf]  ;;  %v10662_v7 = vld [vmem:[%s13110_s20 + $0x4] sm:$0xf]  ;;  %v10673_v9 = vld [vmem:[%s13110_s20 + $0x8] sm:$0xf] }
  0xad   :  { %v10678_v11 = vld [vmem:[%s13110_s20 + $0xc] sm:$0xf]  ;;  %v10683_v4 = vld [vmem:[%s13110_s20 + $0x10] sm:$0xf]  ;;  %v10689_v5 = vld [vmem:[%s13110_s20 + $0x14] sm:$0xf] }
  0xae   :  { %v10694_v12 = vld [vmem:[%s13110_s20 + $0x18] sm:$0xf]  ;;  %v10699_v13 = vld [vmem:[%s13110_s20 + $0x1c] sm:$0xf]  ;;  %v10705_v10 = vld [vmem:[%s13110_s20 + $0x20] sm:$0xf]  ;;  %8725 = vmatmul.mubr.msk.bf16.gmra.mxu1 %vm1421_vm1, %v1400_v20 }
  0xaf   :  { %v10710_v14 = vld [vmem:[%s13110_s20 + $0x24] sm:$0xf]  ;;  %v10715_v15 = vld [vmem:[%s13110_s20 + $0x28] sm:$0xf]  ;;  %v10720_v16 = vld [vmem:[%s13110_s20 + $0x2c] sm:$0xf]  ;;  %8728 = vmatprep.mubr.msk.bf16.mxu1 %vm1421_vm1, %v1401_v25  ;;  %v1402_v25 = vpack.c.bf16 %v1391_v24, %v1390_v23 }
  0xb0   :  { %v10725_v6 = vld [vmem:[%s13110_s20 + $0x30] sm:$0xf]  ;;  %v10730_v17 = vld [vmem:[%s13110_s20 + $0x34] sm:$0xf]  ;;  %v10735_v18 = vld [vmem:[%s13110_s20 + $0x38] sm:$0xf] }
  0xb1   :  { %v10740_v19 = vld [vmem:[%s13110_s20 + $0x3c] sm:$0xf]  ;;  %v9054_v21 = vld [vmem:[%s13111_s3 + $0x8] sm:$0xff]   ;;  %v9055_v22 = vld [vmem:[%s13111_s3] sm:$0xff]  }
  0xb2   :  { %8710 = vmatprep.subr.bf16.mxu0 %v9054_v21  ;;  %v1298_v3 = vld [vmem:[%s13112_s22] sm:$0xff]  ;;  %v1299_v8 = vld [vmem:[%s13112_s22 + $0x8] sm:$0xff]  ;;  %v1300_v26 = vld [vmem:[%s13112_s22 + $0x10] sm:$0xff] }
  0xb3   :  { %8711 = vmatpush3.bf16.msra.mxu0 %v9054_v21  ;;  %v1306_v27 = vpack.c.bf16 %v1299_v8, %v1298_v3  ;;  %v1301_v21 = vld [vmem:[%s13112_s22 + $0x18] sm:$0xff]  ;;  %v1392_v20 = vld [vmem:[%s13109_s1 + $0x60] sm:$0xff]  ;;  %v1393_v3 = vld [vmem:[%s13109_s1 + $0x68] sm:$0xff] }
  0xb4   :  { %8712 = vmatprep.subr.bf16.mxu0 %v9055_v22  ;;  %v1307_v28 = vpack.c.bf16 %v1301_v21, %v1300_v26  ;;  %v1403_v8 = vpack.c.bf16 %v1393_v3, %v1392_v20  ;;  %v1394_v26 = vld [vmem:[%s13109_s1 + $0x70] sm:$0xff]  ;;  %v1405_v23 = vld [vmem:[%s13113_s28] sm:$0xff]  ;;  %v1408_v3 = vld [vmem:[%s13113_s28 + $0x18] sm:$0xff] }
  0xb5   :  { %8714 = vmatprep.mubr.msk.bf16.mxu0 %vm1324_vm2, %v1306_v27  ;;  %v1395_v27 = vld [vmem:[%s13109_s1 + $0x78] sm:$0xff]  ;;  %v1419_v57 = vld [vmem:[%s13113_s28 + $0x70] sm:$0xff] }
  0xb6   :  { %8729 = vmatmul.mubr.msk.bf16.gmra.mxu1 %vm1421_vm1, %v1402_v25  ;;  %v1404_v21 = vpack.c.bf16 %v1395_v27, %v1394_v26  ;;  %v1406_v26 = vld [vmem:[%s13113_s28 + $0x8] sm:$0xff]  ;;  %v1311_v52 = vld [vmem:[%s13114_s26 + $0x18] sm:$0xff] }
  0xb7   :  { %8713 = vmatpush3.bf16.msra.mxu0 %v9055_v22  ;;  %8732 = vmatprep.mubr.msk.bf16.mxu1 %vm1421_vm1, %v1403_v8  ;;  %v1407_v22 = vld [vmem:[%s13113_s28 + $0x10] sm:$0xff] }
  0xba   :  { %8715 = vmatmul.mubr.msk.bf16.vlgmr.msra.gmra.mxu0 %vm1324_vm2, %v1307_v28 }
  0xbe   :  { %8733 = vmatmul.mubr.msk.bf16.gmra.mxu1 %vm1421_vm1, %v1404_v21 }
 0x166   :  { %v8722_v28 = vpop.f32.mrf.mxu1 }
 0x167   :  { %v10797_v24 = vadd.f32 %v8722_v28, %v1407_v22  ;;  %v1411_v22 = vld [vmem:[%s13113_s28 + $0x30] sm:$0xff] }
 0x168   :  { %v1484_v20 = vpop.f32.mrf.mxu1 }
 0x169   :  { %v10802_v25 = vadd.f32 %v1484_v20, %v1405_v23  ;;  %v1409_v23 = vld [vmem:[%s13113_s28 + $0x20] sm:$0xff] }
 0x16a   :  { %v8723_v8 = vpop.f32.mrf.mxu1 }
 0x16b   :  { %v10807_v27 = vadd.f32 %v8723_v8, %v1408_v3  ;;  %v1412_v3 = vld [vmem:[%s13113_s28 + $0x38] sm:$0xff] }
 0x16c   :  { %v1487_v21 = vpop.f32.mrf.mxu1 }
 0x16d   :  { %v10812_v28 = vadd.f32 %v1487_v21, %v1406_v26  ;;  %v1410_v26 = vld [vmem:[%s13113_s28 + $0x28] sm:$0xff]  ;;  %v1310_v21 = vld [vmem:[%s13114_s26 + $0x10] sm:$0xff] }
 0x16e   :  { %v8726_v29 = vpop.f32.mrf.mxu1 }
 0x16f   :  { %v10817_v20 = vadd.f32 %v8726_v29, %v1411_v22  ;;  %v1415_v22 = vld [vmem:[%s13113_s28 + $0x50] sm:$0xff] }
 0x170   :  { %v1500_v30 = vpop.f32.mrf.mxu1 }
 0x171   :  { %v10822_v8 = vadd.f32 %v1500_v30, %v1409_v23  ;;  %v1308_v30 = vld [vmem:[%s13114_s26] sm:$0xff] }
 0x172   :  { %v8727_v31 = vpop.f32.mrf.mxu1 }
 0x173   :  { %v10830_v32 = vadd.f32 %v8727_v31, %v1412_v3  ;;  %v1413_v31 = vld [vmem:[%s13113_s28 + $0x40] sm:$0xff] }
 0x174   :  { %v1503_v29 = vpop.f32.mrf.mxu1 }
 0x175   :  { %v10838_v23 = vadd.f32 %v1503_v29, %v1410_v26 }
 0x176   :  { %v8730_v51 = vpop.f32.mrf.mxu1 }
 0x177   :  { %v10848_v53 = vadd.f32 %v8730_v51, %v1415_v22  ;;  %v1414_v51 = vld [vmem:[%s13113_s28 + $0x48] sm:$0xff] }
 0x178   :  { %v1516_v55 = vpop.f32.mrf.mxu1 }
 0x179   :  { %v10858_v29 = vadd.f32 %v1516_v55, %v1413_v31 }
 0x17a   :  { %v8716_v33 = vpop.f32.mrf.mxu0  ;;  %v8731_v56 = vpop.f32.mrf.mxu1 }
 0x17b   :  { %v10840_v50 = vadd.f32 %v8716_v33, %v1310_v21  ;;  %v1416_v33 = vld [vmem:[%s13113_s28 + $0x58] sm:$0xff]  ;;  %v1309_v21 = vld [vmem:[%s13114_s26 + $0x8] sm:$0xff] }
 0x17c   :  { %v1365_v3 = vpop.f32.mrf.mxu0 }
 0x17d   :  { %13115 = vst [vmem:[#allocation106_spill] sm:$0xff] %v10840_v50  ;;  %v10850_v54 = vadd.f32 %v1365_v3, %v1308_v30  ;;  %v10865_v30 = vadd.f32 %v8731_v56, %v1416_v33  ;;  %v1420_v56 = vld [vmem:[%s13113_s28 + $0x78] sm:$0xff] }
 0x17e   :  { %v8717_v26 = vpop.f32.mrf.mxu0 }
 0x17f   :  { %13116 = vst [vmem:[#allocation107_spill] sm:$0xff] %v10850_v54  ;;  %v10860_v50 = vadd.f32 %v8717_v26, %v1311_v52  ;;  %v1519_v54 = vpop.f32.mrf.mxu1  ;;  %v1417_v52 = vld [vmem:[%s13113_s28 + $0x60] sm:$0xff] }
 0x180   :  { %v1368_v22 = vpop.f32.mrf.mxu0  ;;  %v10872_v58 = vadd.f32 %v1519_v54, %v1414_v51  ;;  %v1418_v54 = vld [vmem:[%s13113_s28 + $0x68] sm:$0xff] }
 0x181   :  { %13117 = vst [vmem:[#allocation108_spill] sm:$0xff] %v10860_v50  ;;  %v10867_v3 = vadd.f32 %v1368_v22, %v1309_v21  ;;  %v8734_v55 = vpop.f32.mrf.mxu1 }
 0x182   :  { %v10877_v31 = vadd.f32 %v8734_v55, %v1419_v57 }
 0x183   :  { %13118 = vst [vmem:[#allocation109_spill] sm:$0xff] %v10867_v3  ;;  %v1532_v26 = vpop.f32.mrf.mxu1 }
 0x184   :  { %v10882_v33 = vadd.f32 %v1532_v26, %v1417_v52 }
 0x185   :  { %v8735_v21 = vpop.f32.mrf.mxu1 }
 0x186   :  { %v10887_v51 = vadd.f32 %v8735_v21, %v1420_v56 }
 0x187   :  { %v1535_v22 = vpop.f32.mrf.mxu1 }
 0x188   :  { %v10889_v50 = vadd.f32 %v1535_v22, %v1418_v54 }
 0x189   :  { %9564 = dma.done.wait [#allocation6], 3072 }
 0x18a   :  { %9565 = vsyncadd [#allocation6], 4294964224 }
 0x18b   :  { %9566 = dma.done.wait [#allocation6 + $0x4], 1024 }
 0x18c   :  { %9567 = vsyncadd [#allocation6 + $0x4], 4294966272 }
 0x18d   :  { %9568 = dma.done.wait [#allocation6 + $0x8], 2048 }
 0x18e   :  { %9569 = vsyncadd [#allocation6 + $0x8], 4294965248 }
 0x18f   :  { %9570 = dma.done.wait [#allocation6 + $0xc], 2048 }
 0x190   :  { %9571 = vsyncadd [#allocation6 + $0xc], 4294965248  ;;  %v1665_v57 = vpack.c.bf16 %v10812_v28, %v10802_v25  ;;  %v12972_v55 = vmov 0   ;;  %v9056_v52 = vld [vmem:[#allocation2 + $0xac] ss:$12 sps:$4 sm:$0xff]  }
 0x191   :  { %1849 = vmatprep.mubr.bf16.mxu1 %v12972_v55  ;;  %v9058_v26 = vld [vmem:[#allocation2 + $0xa8] ss:$12 sps:$4 sm:$0xff]   ;;  %1817 = vmatprep.subr.bf16.mxu1 %v9056_v52  ;;  %v9061_v21 = vld [vmem:[#allocation2 + $0x90] ss:$12 sps:$4 sm:$0xff]   ;;  %v9064_v22 = vld [vmem:[#allocation2 + $0x78] ss:$12 sps:$4 sm:$0xff]  }
 0x192   :  { %8752 = vmatprep.mubr.bf16.mxu0 %v1665_v57  ;;  %v9059_v56 = vld [vmem:[#allocation2 + $0x94] ss:$12 sps:$4 sm:$0xff]   ;;  %1818 = vmatpush1.bf16.msra.mxu1 %v9058_v26  ;;  %v9062_v54 = vld [vmem:[#allocation2 + $0x7c] ss:$12 sps:$4 sm:$0xff]   ;;  %v9065_v3 = vld [vmem:[#allocation2 + $0x64] ss:$12 sps:$4 sm:$0xff]  }
 0x193   :  { %1819 = vmatprep.subr.bf16.mxu1 %v9059_v56  ;;  %v9067_v59 = vld [vmem:[#allocation2 + $0x60] ss:$12 sps:$4 sm:$0xff]   ;;  %v9080_v61 = vld [vmem:[#allocation2 + $0xb0] ss:$12 sps:$4 sm:$0xff]   ;;  %v9081_v62 = vld [vmem:[#allocation2 + $0x98] ss:$12 sps:$4 sm:$0xff]  }
 0x194   :  { %v9068_v60 = vld [vmem:[#allocation2 + $0x4c] ss:$12 sps:$4 sm:$0xff]   ;;  %v9070_v55 = vld [vmem:[#allocation2 + $0x48] ss:$12 sps:$4 sm:$0xff]   ;;  %8736 = vmatprep.subr.bf16.mxu0 %v9080_v61  ;;  %v9073_v26 = vld [vmem:[#allocation2 + $0x30] ss:$12 sps:$4 sm:$0xff]  }
 0x195   :  { %v9071_v63 = vld [vmem:[#allocation2 + $0x34] ss:$12 sps:$4 sm:$0xff]   ;;  %8737 = vmatpush3.bf16.msra.mxu0 %v9080_v61  ;;  %v1667_v61 = vpack.c.bf16 %v10838_v23, %v10822_v8 }
 0x196   :  { %1820 = vmatpush1.bf16.msra.mxu1 %v9061_v21  ;;  %v9082_v52 = vld [vmem:[#allocation2 + $0x80] ss:$12 sps:$4 sm:$0xff]   ;;  %8738 = vmatprep.subr.bf16.mxu0 %v9081_v62  ;;  %v9083_v56 = vld [vmem:[#allocation2 + $0x68] ss:$12 sps:$4 sm:$0xff]  }
 0x197   :  { %1821 = vmatprep.subr.bf16.mxu1 %v9062_v54  ;;  %v9074_v21 = vld [vmem:[#allocation2 + $0x1c] ss:$12 sps:$4 sm:$0xff]   ;;  %v9076_v54 = vld [vmem:[#allocation2 + $0x18] ss:$12 sps:$4 sm:$0xff]   ;;  %v10978_v0 = vld [vmem:[%s12905_s11] sm:$0x7] }
 0x199   :  { %8739 = vmatpush3.bf16.msra.mxu0 %v9081_v62  ;;  %v1668_v62 = vpack.c.bf16 %v10830_v32, %v10817_v20 }
 0x19a   :  { %1822 = vmatpush1.bf16.msra.mxu1 %v9064_v22  ;;  %8740 = vmatprep.subr.bf16.mxu0 %v9082_v52  ;;  %v9077_v22 = vld [vmem:[#allocation2 + $0x4] ss:$12 sps:$4 sm:$0xff]  }
 0x19b   :  { %1823 = vmatprep.subr.bf16.mxu1 %v9065_v3  ;;  %v9079_v3 = vld [vmem:[#allocation2] ss:$12 sps:$4 sm:$0xff]  }
 0x19d   :  { %8741 = vmatpush3.bf16.msra.mxu0 %v9082_v52  ;;  %v1672_v52 = vpack.c.bf16 %v10887_v51, %v10877_v31 }
 0x19e   :  { %1824 = vmatpush1.bf16.msra.mxu1 %v9067_v59  ;;  %8742 = vmatprep.subr.bf16.mxu0 %v9083_v56  ;;  %v13119_v59 = vmov 0  }
 0x19f   :  { %1825 = vmatprep.subr.bf16.mxu1 %v9068_v60  ;;  %v1666_v60 = vpack.c.bf16 %v10807_v27, %v10797_v24 }
 0x1a1   :  { %8743 = vmatpush3.bf16.msra.mxu0 %v9083_v56  ;;  %v9085_v56 = vld [vmem:[#allocation2 + $0x38] ss:$12 sps:$4 sm:$0xff]  }
 0x1a2   :  { %1826 = vmatpush1.bf16.msra.mxu1 %v9070_v55  ;;  %v1671_v55 = vpack.c.bf16 %v10889_v50, %v10882_v33 }
 0x1a3   :  { %1827 = vmatprep.subr.bf16.mxu1 %v9071_v63  ;;  %v1669_v63 = vpack.c.bf16 %v10872_v58, %v10858_v29 }
 0x1a6   :  { %1828 = vmatpush1.bf16.msra.mxu1 %v9073_v26  ;;  %v9084_v26 = vld [vmem:[#allocation2 + $0x50] ss:$12 sps:$4 sm:$0xff]  }
 0x1a7   :  { %1829 = vmatprep.subr.bf16.mxu1 %v9074_v21  ;;  %8744 = vmatprep.subr.bf16.mxu0 %v9084_v26  ;;  %v9086_v21 = vld [vmem:[#allocation2 + $0x20] ss:$12 sps:$4 sm:$0xff]  }
 0x1a8   :  { %8745 = vmatpush3.bf16.msra.mxu0 %v9084_v26  ;;  %v1674_v26 = vlaneseq }
 0x1a9   :  { %8746 = vmatprep.subr.bf16.mxu0 %v9085_v56 }
 0x1aa   :  { %1830 = vmatpush1.bf16.msra.mxu1 %v9076_v54  ;;  %v9087_v54 = vld [vmem:[#allocation2 + $0x8] ss:$12 sps:$4 sm:$0xff]  }
 0x1ab   :  { %1831 = vmatprep.subr.bf16.mxu1 %v9077_v22  ;;  %v10917_v22 = vcombine.low %v10735_v18, %v10740_v19  ;;  %v10935_v18 = vcombine.low %v10705_v10, %v10710_v14  ;;  %v10941_v19 = vcombine.low %v10694_v12, %v10699_v13  ;;  %v10953_v14 = vcombine.low %v10673_v9, %v10678_v11  ;;  %v9088_v13 = vld [vmem:[#allocation3 + $0x38] sm:$0xff]   ;;  %v9091_v9 = vld [vmem:[#allocation3 + $0x20] sm:$0xff]  }
 0x1ac   :  { %8747 = vmatpush3.bf16.msra.mxu0 %v9085_v56  ;;  %v10959_v12 = vcombine.low %v10657_v2, %v10662_v7 }
 0x1ad   :  { %8748 = vmatprep.subr.bf16.mxu0 %v9086_v21  ;;  %13120 = vst [vmem:[#allocation110_spill] sm:$0xff] %v10917_v22  ;;  %13123 = vst [vmem:[#allocation113_spill] sm:$0xff] %v10935_v18 }
 0x1ae   :  { %1832 = vmatpush1.bf16.msra.mxu1 %v9079_v3  ;;  %v10923_v3 = vcombine.low %v10725_v6, %v10730_v17  ;;  %13124 = vst [vmem:[#allocation114_spill] sm:$0xff] %v10941_v19  ;;  %13126 = vst [vmem:[#allocation116_spill] sm:$0xff] %v10953_v14  ;;  %v9090_v17 = vld [vmem:[#allocation3 + $0x28] sm:$0xff]  }
 0x1af   :  { %13127 = vst [vmem:[#allocation117_spill] sm:$0xff] %v10959_v12  ;;  %8800 = vmatprep.subr.bf16.mxu1 %v9088_v13 }
 0x1b0   :  { %8749 = vmatpush3.bf16.msra.mxu0 %v9086_v21  ;;  %13121 = vst [vmem:[#allocation111_spill] sm:$0xff] %v10923_v3 }
 0x1b1   :  { %1850 = vmatmul.mubr.bf16.vlgmr.msra.gmra.mxu1 %v1665_v57  ;;  %v1670_v57 = vpack.c.bf16 %v10865_v30, %v10848_v53  ;;  %8750 = vmatprep.subr.bf16.mxu0 %v9087_v54 }
 0x1b2   :  { %1859 = vmatprep.mubr.bf16.mxu1 %v13119_v59  ;;  %8801 = vmatpush3.bf16.msra.mxu1 %v9088_v13 }
 0x1b4   :  { %8751 = vmatpush3.bf16.msra.mxu0 %v9087_v54  ;;  %v10965_v54 = vshrl.u32 %v1674_v26, 7 }
 0x1b5   :  { %8768 = vmatprep.subr.bf16.mxu0 %v10917_v22 }
 0x1b7   :  { %8753 = vmatmul.mubr.bf16.vlgmr.msra.gmra.mxu0 %v1666_v60 }
 0x1b8   :  { %8756 = vmatprep.mubr.bf16.mxu0 %v1667_v61  ;;  %8769 = vmatpush3.bf16.msra.mxu0 %v10917_v22 }
 0x1b9   :  { %1860 = vmatmul.mubr.bf16.gmra.mxu1 %v1666_v60  ;;  %8770 = vmatprep.subr.bf16.mxu0 %v10923_v3  ;;  %v10929_v60 = vcombine.low %v10715_v15, %v10720_v16  ;;  %v10947_v15 = vcombine.low %v10683_v4, %v10689_v5  ;;  %v9089_v16 = vld [vmem:[#allocation3 + $0x30] sm:$0xff]  }
 0x1ba   :  { %1869 = vmatprep.mubr.bf16.mxu1 %v13119_v59  ;;  %8802 = vmatprep.subr.bf16.mxu1 %v9089_v16 }
 0x1bb   :  { %13122 = vst [vmem:[#allocation112_spill] sm:$0xff] %v10929_v60  ;;  %13125 = vst [vmem:[#allocation115_spill] sm:$0xff] %v10947_v15  ;;  %8803 = vmatpush3.bf16.msra.mxu1 %v9089_v16  ;;  %v10968_v16 = vsub.s32 1, %v10965_v54 }
 0x1bc   :  { %8771 = vmatpush3.bf16.msra.mxu0 %v10923_v3  ;;  %8804 = vmatprep.subr.bf16.mxu1 %v9090_v17 }
 0x1bd   :  { %8772 = vmatprep.subr.bf16.mxu0 %v10929_v60  ;;  %13128 = vst [vmem:[#allocation118_spill] sm:$0xff] %v10968_v16 }
 0x1bf   :  { %8757 = vmatmul.mubr.bf16.gmra.mxu0 %v1668_v62  ;;  %8805 = vmatpush3.bf16.msra.mxu1 %v9090_v17 }
 0x1c0   :  { %8760 = vmatprep.mubr.bf16.mxu0 %v1669_v63  ;;  %8773 = vmatpush3.bf16.msra.mxu0 %v10929_v60 }
 0x1c1   :  { %1870 = vmatmul.mubr.bf16.gmra.mxu1 %v1667_v61  ;;  %8774 = vmatprep.subr.bf16.mxu0 %v10935_v18 }
 0x1c2   :  { %1879 = vmatprep.mubr.bf16.mxu1 %v13119_v59  ;;  %8806 = vmatprep.subr.bf16.mxu1 %v9091_v9 }
 0x1c3   :  { %8807 = vmatpush3.bf16.msra.mxu1 %v9091_v9  ;;  %v10973_v9 = vsub.s32 0, %v10965_v54 }
 0x1c4   :  { %8775 = vmatpush3.bf16.msra.mxu0 %v10935_v18 }
 0x1c5   :  { %8776 = vmatprep.subr.bf16.mxu0 %v10941_v19  ;;  %13129 = vst [vmem:[#allocation119_spill] sm:$0xff] %v10973_v9 }
 0x1c7   :  { %8761 = vmatmul.mubr.bf16.gmra.mxu0 %v1670_v57 }
 0x1c8   :  { %8764 = vmatprep.mubr.bf16.mxu0 %v1671_v55  ;;  %8777 = vmatpush3.bf16.msra.mxu0 %v10941_v19 }
 0x1c9   :  { %1880 = vmatmul.mubr.bf16.gmra.mxu1 %v1668_v62  ;;  %8778 = vmatprep.subr.bf16.mxu0 %v10947_v15 }
 0x1ca   :  { %1889 = vmatprep.mubr.bf16.mxu1 %v13119_v59 }
 0x1cc   :  { %8779 = vmatpush3.bf16.msra.mxu0 %v10947_v15 }
 0x1cd   :  { %8780 = vmatprep.subr.bf16.mxu0 %v10953_v14 }
 0x1cf   :  { %8765 = vmatmul.mubr.bf16.gmra.mxu0 %v1672_v52 }
 0x1d0   :  { %8781 = vmatpush3.bf16.msra.mxu0 %v10953_v14  ;;  %v10984_v14 = vrot.slane %v10978_v0, %v10973_v9 }
 0x1d1   :  { %1890 = vmatmul.mubr.bf16.gmra.mxu1 %v1669_v63  ;;  %8782 = vmatprep.subr.bf16.mxu0 %v10959_v12 }
 0x1d2   :  { %1899 = vmatprep.mubr.bf16.mxu1 %v13119_v59 }
 0x1d4   :  { %8783 = vmatpush3.bf16.msra.mxu0 %v10959_v12  ;;  %v1681_v12 = vrot.slane %v10978_v0, %v10968_v16 }
 0x1d9   :  { %1900 = vmatmul.mubr.bf16.gmra.mxu1 %v1670_v57 }
 0x1da   :  { %1909 = vmatprep.mubr.bf16.mxu1 %v13119_v59 }
 0x1e1   :  { %1910 = vmatmul.mubr.bf16.gmra.mxu1 %v1671_v55 }
 0x1e2   :  { %1919 = vmatprep.mubr.bf16.mxu1 %v13119_v59 }
 0x1e9   :  { %1920 = vmatmul.mubr.bf16.gmra.mxu1 %v1672_v52 }
 0x271   :  { %v1851_v11 = vpop.f32.mrf.mxu1 }
 0x272   :  { %v1852_v35 = vadd.f32 %v1851_v11, %v10984_v14 }
 0x273   :  { %v1853_v4 = vpop.f32.mrf.mxu1 }
 0x274   :  { %v1854_v18 = vadd.f32 %v1853_v4, %v1681_v12 }
 0x275   :  { %v1855_v2 = vpop.f32.mrf.mxu1 }
 0x276   :  { %v1856_v60 = vadd.f32 %v1855_v2, %v10984_v14 }
 0x277   :  { %v1857_v7 = vpop.f32.mrf.mxu1 }
 0x278   :  { %v1858_v15 = vadd.f32 %v1857_v7, %v1681_v12  ;;  %v2027_v39 = vpack.c.bf16 %v1856_v60, %v1852_v35 }
 0x279   :  { %v1861_v5 = vpop.f32.mrf.mxu1 }
 0x27a   :  { %v2028_v36 = vpack.c.bf16 %v1858_v15, %v1854_v18 }
 0x27b   :  { %v1863_v10 = vpop.f32.mrf.mxu1 }
 0x27c   :  { %v1864_v43 = vadd.f32 %v1863_v10, %v1681_v12 }
 0x27d   :  { %v1865_v6 = vpop.f32.mrf.mxu1 }
 0x27e   :  { %v1866_v7 = vadd.f32 %v1865_v6, %v10984_v14 }
 0x27f   :  { %v1867_v61 = vpop.f32.mrf.mxu1 }
 0x280   :  { %v1868_v41 = vadd.f32 %v1867_v61, %v1681_v12 }
 0x281   :  { %v1871_v62 = vpop.f32.mrf.mxu1 }
 0x282   :  { %v2031_v2 = vpack.c.bf16 %v1868_v41, %v1864_v43 }
 0x283   :  { %v1873_v63 = vpop.f32.mrf.mxu1 }
 0x285   :  { %v1875_v57 = vpop.f32.mrf.mxu1 }
 0x286   :  { %v1876_v15 = vadd.f32 %v1875_v57, %v10984_v14 }
 0x287   :  { %v1877_v55 = vpop.f32.mrf.mxu1 }
 0x289   :  { %v10963_v52 = vpop.f32.mrf.mxu1 }
 0x28b   :  { %v1883_v56 = vpop.f32.mrf.mxu1 }
 0x28d   :  { %v1885_v21 = vpop.f32.mrf.mxu1 }
 0x28f   :  { %v1887_v13 = vpop.f32.mrf.mxu1 }
 0x291   :  { %v10970_v17 = vpop.f32.mrf.mxu1 }
 0x293   :  { %v1893_v1 = vpop.f32.mrf.mxu1 }
 0x294   :  { %v1894_v3 = vadd.f32 %v1893_v1, %v1681_v12 }
 0x295   :  { %v1895_v26 = vpop.f32.mrf.mxu1 }
 0x297   :  { %v1897_v19 = vpop.f32.mrf.mxu1 }
 0x298   :  { %v1898_v22 = vadd.f32 %v1897_v19, %v1681_v12  ;;  %v1862_v19 = vadd.f32 %v1861_v5, %v10984_v14 }
 0x299   :  { %v1901_v34 = vpop.f32.mrf.mxu1 }
 0x29a   :  { %v2040_v37 = vpack.c.bf16 %v1898_v22, %v1894_v3  ;;  %v2030_v22 = vpack.c.bf16 %v1866_v7, %v1862_v19  ;;  %v1888_v7 = vadd.f32 %v1887_v13, %v1681_v12  ;;  %v1884_v19 = vadd.f32 %v1883_v56, %v1681_v12 }
 0x29b   :  { %v1903_v38 = vpop.f32.mrf.mxu1 }
 0x29c   :  { %v2051_v16 = vsub.bf16 %v2028_v36, %v2040_v37  ;;  %v1904_v4 = vadd.f32 %v1903_v38, %v1681_v12  ;;  %v1878_v36 = vadd.f32 %v1877_v55, %v1681_v12 }
 0x29d   :  { %v1905_v40 = vpop.f32.mrf.mxu1 }
 0x29e   :  { %v2055_v42 = vmul.bf16 %v2051_v16, %v2027_v39  ;;  %v1874_v39 = vadd.f32 %v1873_v63, %v1681_v12  ;;  %v1886_v63 = vadd.f32 %v1885_v21, %v10984_v14  ;;  %v1906_v21 = vadd.f32 %v1905_v40, %v10984_v14 }
 0x29f   :  { %v1907_v9 = vpop.f32.mrf.mxu1 }
 0x2a0   :  { %v1908_v44 = vadd.f32 %v1907_v9, %v1681_v12  ;;  %8784 = vmatprep.mubr.bf16.mxu0 %v2055_v42  ;;  %v1872_v42 = vadd.f32 %v1871_v62, %v10984_v14  ;;  %v2034_v61 = vpack.c.bf16 %v1878_v36, %v1874_v39  ;;  %v1882_v62 = vadd.f32 %v10963_v52, %v10984_v14 }
 0x2a1   :  { %v1911_v1 = vpop.f32.mrf.mxu1  ;;  %v1892_v36 = vadd.f32 %v10970_v17, %v10984_v14 }
 0x2a2   :  { %v2043_v11 = vpack.c.bf16 %v1908_v44, %v1904_v4  ;;  %v2033_v43 = vpack.c.bf16 %v1876_v15, %v1872_v42  ;;  %v1912_v52 = vadd.f32 %v1911_v1, %v10984_v14  ;;  %v9094_v1 = vld [vmem:[#allocation3 + $0x8] sm:$0xff]  }
 0x2a3   :  { %v1913_v18 = vpop.f32.mrf.mxu1 }
 0x2a4   :  { %v2052_v3 = vsub.bf16 %v2031_v2, %v2043_v11  ;;  %v1914_v10 = vadd.f32 %v1913_v18, %v1681_v12  ;;  %v1896_v11 = vadd.f32 %v1895_v26, %v10984_v14  ;;  %v2037_v18 = vpack.c.bf16 %v1888_v7, %v1884_v19 }
 0x2a5   :  { %v1915_v35 = vpop.f32.mrf.mxu1  ;;  %v1902_v26 = vadd.f32 %v1901_v34, %v10984_v14  ;;  %v9093_v34 = vld [vmem:[#allocation3 + $0x10] sm:$0xff]  }
 0x2a6   :  { %v2056_v37 = vmul.bf16 %v2052_v3, %v2030_v22 }
 0x2a7   :  { %v1917_v60 = vpop.f32.mrf.mxu1  ;;  %v2042_v15 = vpack.c.bf16 %v1906_v21, %v1902_v26 }
 0x2a8   :  { %v1918_v6 = vadd.f32 %v1917_v60, %v1681_v12  ;;  %8785 = vmatmul.mubr.bf16.vlgmr.msra.gmra.mxu0 %v2056_v37  ;;  %v2036_v37 = vpack.c.bf16 %v1886_v63, %v1882_v62  ;;  %v2039_v60 = vpack.c.bf16 %v1896_v11, %v1892_v36 }
 0x2a9   :  { %v1921_v38 = vpop.f32.mrf.mxu1 }
 0x2aa   :  { %v2046_v5 = vpack.c.bf16 %v1918_v6, %v1914_v10  ;;  %v2059_v56 = vmul.bf16 %v2051_v16, %v2039_v60  ;;  %v2060_v6 = vmul.bf16 %v2052_v3, %v2042_v15  ;;  %v1922_v16 = vadd.f32 %v1921_v38, %v10984_v14  ;;  %v9095_v3 = vld [vmem:[#allocation3] sm:$0xff]  }
 0x2ab   :  { %v1923_v41 = vpop.f32.mrf.mxu1 }
 0x2ac   :  { %v2053_v44 = vsub.bf16 %v2034_v61, %v2046_v5  ;;  %v1924_v2 = vadd.f32 %v1923_v41, %v1681_v12  ;;  %v8754_v5 = vpop.f32.mrf.mxu0 }
 0x2ad   :  { %v1925_v9 = vpop.f32.mrf.mxu1 }
 0x2ae   :  { %v2057_v4 = vmul.bf16 %v2053_v44, %v2033_v43  ;;  %v1926_v17 = vadd.f32 %v1925_v9, %v10984_v14  ;;  %v1964_v41 = vpop.f32.mrf.mxu0 }
 0x2af   :  { %v1927_v55 = vpop.f32.mrf.mxu1 }
 0x2b0   :  { %v1928_v57 = vadd.f32 %v1927_v55, %v1681_v12  ;;  %8788 = vmatprep.mubr.bf16.mxu0 %v2057_v4  ;;  %v1916_v12 = vadd.f32 %v1915_v35, %v10984_v14  ;;  %v2048_v61 = vpack.c.bf16 %v1926_v17, %v1922_v16  ;;  %v9092_v35 = vld [vmem:[#allocation3 + $0x18] sm:$0xff]   ;;  %v8755_v14 = vpop.f32.mrf.mxu0 }
 0x2b1   :  { %8808 = vmatprep.subr.bf16.mxu1 %v9092_v35 }
 0x2b2   :  { %v2049_v22 = vpack.c.bf16 %v1928_v57, %v1924_v2  ;;  %v2045_v10 = vpack.c.bf16 %v1916_v12, %v1912_v52  ;;  %8809 = vmatpush3.bf16.msra.mxu1 %v9092_v35  ;;  %v1967_v38 = vpop.f32.mrf.mxu0 }
 0x2b3   :  { %8810 = vmatprep.subr.bf16.mxu1 %v9093_v34 }
 0x2b4   :  { %v2054_v13 = vsub.bf16 %v2037_v18, %v2049_v22  ;;  %v2061_v42 = vmul.bf16 %v2053_v44, %v2045_v10  ;;  %v8758_v43 = vpop.f32.mrf.mxu0 }
 0x2b6   :  { %v2058_v39 = vmul.bf16 %v2054_v13, %v2036_v37  ;;  %v2062_v40 = vmul.bf16 %v2054_v13, %v2048_v61  ;;  %8811 = vmatpush3.bf16.msra.mxu1 %v9093_v34  ;;  %v1980_v44 = vpop.f32.mrf.mxu0  ;;  %v11016_v13 = vsub.s32 2, %v10965_v54 }
 0x2b7   :  { %8812 = vmatprep.subr.bf16.mxu1 %v9094_v1 }
 0x2b8   :  { %8789 = vmatmul.mubr.bf16.gmra.mxu0 %v2058_v39  ;;  %v8759_v9 = vpop.f32.mrf.mxu0  ;;  %v11020_v12 = vrot.slane %v10978_v0, %v11016_v13 }
 0x2b9   :  { %8792 = vmatprep.mubr.bf16.mxu0 %v2059_v56 }
 0x2ba   :  { %8813 = vmatpush3.bf16.msra.mxu1 %v9094_v1  ;;  %v11005_v7 = vpop.f32.mrf.mxu0  ;;  %v1973_v26 = vadd.f32 %v8754_v5, %v11020_v12  ;;  %v1976_v52 = vadd.f32 %v8755_v14, %v11020_v12  ;;  %v1965_v15 = vadd.f32 %v1964_v41, %v11020_v12  ;;  %v1968_v54 = vadd.f32 %v1967_v38, %v11020_v12 }
 0x2bb   :  { %8814 = vmatprep.subr.bf16.mxu1 %v9095_v3 }
 0x2bc   :  { %v8762_v4 = vpop.f32.mrf.mxu0  ;;  %v11030_v35 = vpack.c.bf16 %v1968_v54, %v1965_v15  ;;  %v11045_v15 = vadd.f32 %v1980_v44, %v11020_v12 }
 0x2bd   :  { %v2005_v17 = vadd.f32 %v8762_v4, %v11020_v12 }
 0x2be   :  { %8815 = vmatpush3.bf16.msra.mxu1 %v9095_v3  ;;  %v1996_v55 = vpop.f32.mrf.mxu0 }
 0x2bf   :  { %v1997_v34 = vadd.f32 %v1996_v55, %v11020_v12 }
 0x2c0   :  { %8793 = vmatmul.mubr.bf16.gmra.mxu0 %v2060_v6  ;;  %v8763_v19 = vpop.f32.mrf.mxu0  ;;  %v11026_v6 = vpack.c.bf16 %v1976_v52, %v1973_v26  ;;  %v13011_v52 = vunpack.c.h.bf16 %v11030_v35 }
 0x2c1   :  { %8796 = vmatprep.mubr.bf16.mxu0 %v2061_v42  ;;  %v2008_v16 = vadd.f32 %v8763_v19, %v11020_v12  ;;  %v1989_v19 = vadd.f32 %v8758_v43, %v11020_v12 }
 0x2c2   :  { %v1999_v63 = vpop.f32.mrf.mxu0  ;;  %v13009_v4 = vunpack.c.h.bf16 %v11026_v6 }
 0x2c3   :  { %v2000_v1 = vadd.f32 %v1999_v63, %v11020_v12 }
 0x2c4   :  { %v11007_v2 = vpop.f32.mrf.mxu0 }
 0x2c6   :  { %v11009_v57 = vpop.f32.mrf.mxu0 }
 0x2c8   :  { %8797 = vmatmul.mubr.bf16.gmra.mxu0 %v2062_v40  ;;  %v11011_v11 = vpop.f32.mrf.mxu0 }
 0x2c9   :  { %2887 = vmatprep.mubr.bf16.mxu0 %v13119_v59 }
 0x2ca   :  { %v11013_v62 = vpop.f32.mrf.mxu0 }
 0x368   :  { %v8786_v18 = vpop.f32.mrf.mxu0 }
 0x369   :  { %v2210_v22 = vmul.f32 0.5, %v8786_v18  ;;  %v13010_v18 = vunpack.c.l.bf16 %v11026_v6 }
 0x36a   :  { %v2145_v36 = vpop.f32.mrf.mxu0 }
 0x36b   :  { %9112 = vtanh.f32 %v2210_v22  ;;  %v2208_v37 = vmul.f32 0.5, %v2145_v36  ;;  %v1992_v36 = vadd.f32 %v8759_v9, %v11020_v12 }
 0x36c   :  { %v8787_v60 = vpop.f32.mrf.mxu0 }
 0x36d   :  { %9114 = vtanh.f32 %v2208_v37  ;;  %v2211_v39 = vmul.f32 0.5, %v8787_v60  ;;  %v11038_v37 = vpack.c.bf16 %v2008_v16, %v2005_v17  ;;  %v11047_v16 = vpack.c.bf16 %v1992_v36, %v1989_v19 }
 0x36e   :  { %v2148_v56 = vpop.f32.mrf.mxu0 }
 0x36f   :  { %9116 = vtanh.f32 %v2211_v39  ;;  %v2209_v21 = vmul.f32 0.5, %v2148_v56  ;;  %v2280_v39 = vunpack.c.l.bf16 %v11030_v35  ;;  %v11041_v56 = vpack.c.bf16 %v2000_v1, %v1997_v34 }
 0x370   :  { %v13008_v34 = vunpack.c.l.bf16 %v11038_v37 }
 0x371   :  { %9118 = vtanh.f32 %v2209_v21  ;;  %v2304_v1 = vunpack.c.l.bf16 %v11041_v56 }
 0x378   :  { %v9113_v10 = vpop.eup %9112  ;;  %v8790_v42 = vpop.f32.mrf.mxu0 }
 0x379   :  { %v2226_v61 = vadd.f32 1.0, %v9113_v10  ;;  %v2214_v0 = vmul.f32 0.5, %v8790_v42 }
 0x37a   :  { %v9115_v40 = vpop.eup %9114  ;;  %v2161_v3 = vpop.f32.mrf.mxu0 }
 0x37b   :  { %v2234_v5 = vmul.f32 0.5, %v2226_v61  ;;  %v2224_v41 = vadd.f32 1.0, %v9115_v40  ;;  %9120 = vtanh.f32 %v2214_v0  ;;  %v2212_v14 = vmul.f32 0.5, %v2161_v3 }
 0x37c   :  { %v9117_v38 = vpop.eup %9116  ;;  %v8791_v22 = vpop.f32.mrf.mxu0  ;;  %v13019_v61 = vunpack.c.h.bf16 %v11038_v37 }
 0x37d   :  { %v2232_v55 = vmul.f32 0.5, %v2224_v41  ;;  %v2227_v60 = vadd.f32 1.0, %v9117_v38  ;;  %9122 = vtanh.f32 %v2212_v14  ;;  %v2215_v21 = vmul.f32 0.5, %v8791_v22 }
 0x37e   :  { %v9119_v63 = vpop.eup %9118  ;;  %v2164_v26 = vpop.f32.mrf.mxu0  ;;  %v2298_v43 = vsub.f32 1.0, %v2234_v5  ;;  %v1984_v41 = vadd.f32 %v11005_v7, %v11020_v12  ;;  %v13017_v22 = vunpack.c.h.bf16 %v11041_v56 }
 0x37f   :  { %v2235_v54 = vmul.f32 0.5, %v2227_v60  ;;  %v2296_v9 = vsub.f32 1.0, %v2232_v55  ;;  %v2225_v10 = vadd.f32 1.0, %v9119_v63  ;;  %9124 = vtanh.f32 %v2215_v21 }
 0x380   :  { %v2213_v42 = vmul.f32 0.5, %v2164_v26  ;;  %v8794_v17 = vpop.f32.mrf.mxu0  ;;  %v2314_v36 = vmul.f32 %v13008_v34, %v2298_v43 }
 0x381   :  { %v2299_v0 = vsub.f32 1.0, %v2235_v54  ;;  %v2242_v40 = vsub.f32 0.0, %v8794_v17  ;;  %v2233_v3 = vmul.f32 0.5, %v2225_v10  ;;  %v2312_v21 = vmul.f32 %v2304_v1, %v2296_v9 }
 0x382   :  { %9126 = vtanh.f32 %v2213_v42  ;;  %v2177_v44 = vpop.f32.mrf.mxu0  ;;  %v2291_v26 = vmul.f32 %v13009_v4, %v2235_v54  ;;  %v2290_v42 = vmul.f32 %v13010_v18, %v2234_v5  ;;  %v2288_v17 = vmul.f32 %v2280_v39, %v2232_v55 }
 0x383   :  { %v2315_v14 = vmul.f32 %v13019_v61, %v2299_v0  ;;  %v2250_v38 = vmul.f32 0.5, %v2242_v40  ;;  %v2240_v19 = vsub.f32 0.0, %v2177_v44  ;;  %v2297_v60 = vsub.f32 1.0, %v2233_v3 }
 0x384   :  { %v8795_v63 = vpop.f32.mrf.mxu0  ;;  %v2289_v43 = vmul.f32 %v13011_v52, %v2233_v3  ;;  %v2320_v34 = vadd.f32 %v2312_v21, %v2288_v17  ;;  %v2013_v52 = vadd.f32 %v11009_v57, %v11020_v12 }
 0x385   :  { %9128 = vtanh.f32 %v2250_v38  ;;  %v2248_v7 = vmul.f32 0.5, %v2240_v19  ;;  %v2243_v10 = vsub.f32 0.0, %v8795_v63  ;;  %v2313_v40 = vmul.f32 %v13017_v22, %v2297_v60 }
 0x386   :  { %v2180_v0 = vpop.f32.mrf.mxu0  ;;  %v2323_v9 = vadd.f32 %v2315_v14, %v2291_v26  ;;  %v2021_v19 = vadd.f32 %v11007_v2, %v11020_v12  ;;  %v2322_v63 = vadd.f32 %v2314_v36, %v2290_v42  ;;  %v2024_v14 = vadd.f32 %v11011_v11, %v11020_v12 }
 0x387   :  { %9130 = vtanh.f32 %v2248_v7  ;;  %v2251_v44 = vmul.f32 0.5, %v2243_v10  ;;  %v2241_v54 = vsub.f32 0.0, %v2180_v0  ;;  %v2321_v4 = vadd.f32 %v2313_v40, %v2289_v43 }
 0x388   :  { %v9121_v38 = vpop.eup %9120  ;;  %v8798_v5 = vpop.f32.mrf.mxu0  ;;  %v2016_v60 = vadd.f32 %v11013_v62, %v11020_v12  ;;  %v2361_v36 = vpack.c.bf16 %v2323_v9, %v2322_v63  ;;  %v11080_v0 = vpack.c.bf16 %v1984_v41, %v11045_v15  ;;  %v2286_v9 = vunpack.c.l.bf16 %v11047_v16 }
 0x389   :  { %v2230_v55 = vadd.f32 1.0, %v9121_v38  ;;  %9132 = vtanh.f32 %v2251_v44  ;;  %v2249_v18 = vmul.f32 0.5, %v2241_v54  ;;  %v2246_v3 = vsub.f32 0.0, %v8798_v5 }
 0x38a   :  { %v2193_v26 = vpop.f32.mrf.mxu0  ;;  %v2360_v7 = vpack.c.bf16 %v2321_v4, %v2320_v34  ;;  %v9123_v2 = vpop.eup %9122  ;;  %v11082_v40 = vpack.c.bf16 %v2016_v60, %v2013_v52  ;;  %v11085_v44 = vpack.c.bf16 %v2024_v14, %v2021_v19  ;;  %v13016_v15 = vunpack.c.h.bf16 %v11047_v16 }
 0x38b   :  { %9134 = vtanh.f32 %v2249_v18  ;;  %v2254_v21 = vmul.f32 0.5, %v2246_v3  ;;  %v2244_v10 = vsub.f32 0.0, %v2193_v26  ;;  %v2228_v42 = vadd.f32 1.0, %v9123_v2 }
 0x38c   :  { %8816 = vmatprep.mubr.bf16.mxu1 %v2360_v7  ;;  %v8799_v17 = vpop.f32.mrf.mxu0  ;;  %v9125_v43 = vpop.eup %9124  ;;  %v2238_v57 = vmul.f32 0.5, %v2230_v55  ;;  %v13015_v5 = vunpack.c.l.bf16 %v11080_v0  ;;  %v13018_v26 = vunpack.c.h.bf16 %v11080_v0  ;;  %v13013_v7 = vunpack.c.l.bf16 %v11082_v40 }
 0x38d   :  { %9136 = vtanh.f32 %v2254_v21  ;;  %v2252_v11 = vmul.f32 0.5, %v2244_v10  ;;  %8817 = vmatmul.mubr.bf16.vlgmr.msra.gmra.mxu1 %v2361_v36  ;;  %v2236_v62 = vmul.f32 0.5, %v2228_v42  ;;  %v2231_v12 = vadd.f32 1.0, %v9125_v43 }
 0x38e   :  { %v2247_v4 = vsub.f32 0.0, %v8799_v17  ;;  %v2196_v34 = vpop.f32.mrf.mxu0  ;;  %v2302_v52 = vsub.f32 1.0, %v2238_v57  ;;  %v13012_v14 = vunpack.c.l.bf16 %v11085_v44  ;;  %v13014_v36 = vunpack.c.h.bf16 %v11085_v44 }
 0x38f   :  { %v9127_v18 = vpop.eup %9126  ;;  %9138 = vtanh.f32 %v2252_v11  ;;  %v2245_v54 = vsub.f32 0.0, %v2196_v34  ;;  %v2300_v41 = vsub.f32 1.0, %v2236_v62  ;;  %v2239_v38 = vmul.f32 0.5, %v2231_v12 }
 0x390   :  { %v2229_v63 = vadd.f32 1.0, %v9127_v18  ;;  %v2255_v55 = vmul.f32 0.5, %v2247_v4  ;;  %v13020_v42 = vunpack.c.h.bf16 %v11082_v40  ;;  %v2292_v11 = vmul.f32 %v13015_v5, %v2236_v62 }
 0x391   :  { %v2253_v3 = vmul.f32 0.5, %v2245_v54  ;;  %v2303_v2 = vsub.f32 1.0, %v2239_v38  ;;  %v2316_v43 = vmul.f32 %v13013_v7, %v2300_v41  ;;  %v2318_v4 = vmul.f32 %v13012_v14, %v2302_v52 }
 0x392   :  { %v9129_v60 = vpop.eup %9128  ;;  %v2237_v19 = vmul.f32 0.5, %v2229_v63  ;;  %9140 = vtanh.f32 %v2255_v55  ;;  %v2295_v54 = vmul.f32 %v13016_v15, %v2239_v38  ;;  %v2294_v62 = vmul.f32 %v2286_v9, %v2238_v57 }
 0x393   :  { %v2266_v21 = vadd.f32 1.0, %v9129_v60  ;;  %9142 = vtanh.f32 %v2253_v3  ;;  %v2319_v34 = vmul.f32 %v13014_v36, %v2303_v2 }
 0x394   :  { %v9131_v10 = vpop.eup %9130  ;;  %v2301_v17 = vsub.f32 1.0, %v2237_v19  ;;  %v2293_v63 = vmul.f32 %v13018_v26, %v2237_v19  ;;  %v2326_v38 = vadd.f32 %v2318_v4, %v2294_v62  ;;  %v13130_v4 = vunpack.c.h.bf16 %v11038_v37 }
 0x395   :  { %v2264_v12 = vadd.f32 1.0, %v9131_v10  ;;  %v2274_v55 = vmul.f32 0.5, %v2266_v21  ;;  %v2324_v10 = vadd.f32 %v2316_v43, %v2292_v11  ;;  %v2327_v2 = vadd.f32 %v2319_v34, %v2295_v54 }
 0x396   :  { %v9133_v18 = vpop.eup %9132  ;;  %v2317_v41 = vmul.f32 %v13020_v42, %v2301_v17  ;;  %v13133_v54 = vunpack.c.h.bf16 %v11041_v56  ;;  %v13134_v62 = vunpack.c.h.bf16 %v11030_v35 }
 0x397   :  { %v2272_v3 = vmul.f32 0.5, %v2264_v12  ;;  %v2267_v60 = vadd.f32 1.0, %v9133_v18  ;;  %v2330_v22 = vsub.f32 1.0, %v2274_v55  ;;  %v2363_v17 = vpack.c.bf16 %v2327_v2, %v2326_v38 }
 0x398   :  { %v9135_v52 = vpop.eup %9134  ;;  %v2325_v14 = vadd.f32 %v2317_v41, %v2293_v63 }
 0x399   :  { %v2328_v7 = vsub.f32 1.0, %v2272_v3  ;;  %v2275_v36 = vmul.f32 0.5, %v2267_v60  ;;  %v2265_v5 = vadd.f32 1.0, %v9135_v52  ;;  %v2344_v11 = vmul.f32 %v2304_v1, %v2272_v3 }
 0x39a   :  { %v9137_v15 = vpop.eup %9136  ;;  %v2362_v19 = vpack.c.bf16 %v2325_v14, %v2324_v10  ;;  %v13131_v14 = vunpack.c.l.bf16 %v11026_v6  ;;  %v13135_v1 = vunpack.c.l.bf16 %v11038_v37  ;;  %v13136_v37 = vunpack.c.l.bf16 %v11080_v0 }
 0x39b   :  { %v2331_v21 = vsub.f32 1.0, %v2275_v36  ;;  %v2273_v26 = vmul.f32 0.5, %v2265_v5  ;;  %v2270_v61 = vadd.f32 1.0, %v9137_v15  ;;  %v2336_v43 = vmul.f32 %v2328_v7, %v2280_v39 }
 0x39c   :  { %v9139_v42 = vpop.eup %9138  ;;  %8820 = vmatprep.mubr.bf16.mxu1 %v2362_v19  ;;  %v2347_v34 = vmul.f32 %v13130_v4, %v2275_v36  ;;  %v2338_v18 = vmul.f32 %v2330_v22, %v13131_v14  ;;  %v13132_v15 = vunpack.c.h.bf16 %v11026_v6  ;;  %v2346_v3 = vmul.f32 %v13135_v1, %v2274_v55 }
 0x39d   :  { %v2329_v57 = vsub.f32 1.0, %v2273_v26  ;;  %v2268_v12 = vadd.f32 1.0, %v9139_v42  ;;  %8821 = vmatmul.mubr.bf16.gmra.mxu1 %v2363_v17  ;;  %v2345_v63 = vmul.f32 %v13133_v54, %v2273_v26  ;;  %v2278_v42 = vmul.f32 0.5, %v2270_v61 }
 0x39e   :  { %v2339_v5 = vmul.f32 %v2331_v21, %v13132_v15  ;;  %v2352_v10 = vadd.f32 %v2344_v11, %v2336_v43  ;;  %v2354_v38 = vadd.f32 %v2346_v3, %v2338_v18  ;;  %v13138_v11 = vunpack.c.h.bf16 %v11047_v16  ;;  %v8059_v16 = vld [vmem:[%s12906_s12] ss:$0 sm:$0xff] }
 0x39f   :  { %v2276_v41 = vmul.f32 0.5, %v2268_v12  ;;  %v2337_v39 = vmul.f32 %v2329_v57, %v13134_v62  ;;  %v9141_v7 = vpop.eup %9140  ;;  %v2334_v19 = vsub.f32 1.0, %v2278_v42  ;;  %v13137_v57 = vunpack.c.h.bf16 %v11085_v44 }
 0x3a0   :  { %v2355_v60 = vadd.f32 %v2347_v34, %v2339_v5  ;;  %v9143_v36 = vpop.eup %9142  ;;  %v2271_v52 = vadd.f32 1.0, %v9141_v7  ;;  %v13139_v34 = vunpack.c.l.bf16 %v11082_v40  ;;  %v13140_v18 = vunpack.c.h.bf16 %v11082_v40 }
 0x3a1   :  { %v2353_v22 = vadd.f32 %v2345_v63, %v2337_v39  ;;  %v2332_v2 = vsub.f32 1.0, %v2276_v41  ;;  %v2269_v6 = vadd.f32 1.0, %v9143_v36  ;;  %v2342_v43 = vmul.f32 %v2334_v19, %v2286_v9 }
 0x3a2   :  { %v2279_v56 = vmul.f32 0.5, %v2271_v52  ;;  %v2365_v21 = vpack.c.bf16 %v2355_v60, %v2354_v38  ;;  %v2348_v14 = vmul.f32 %v13139_v34, %v2276_v41  ;;  %v13141_v5 = vunpack.c.h.bf16 %v11080_v0 }
 0x3a3   :  { %v2364_v26 = vpack.c.bf16 %v2353_v22, %v2352_v10  ;;  %v2277_v61 = vmul.f32 0.5, %v2269_v6  ;;  %v2340_v55 = vmul.f32 %v2332_v2, %v13136_v37  ;;  %v13142_v63 = vunpack.c.l.bf16 %v11085_v44 }
 0x3a4   :  { %v2335_v17 = vsub.f32 1.0, %v2279_v56  ;;  %v2351_v12 = vmul.f32 %v13137_v57, %v2279_v56 }
 0x3a5   :  { %8824 = vmatprep.mubr.bf16.mxu1 %v2364_v26  ;;  %v2333_v35 = vsub.f32 1.0, %v2277_v61  ;;  %v2349_v15 = vmul.f32 %v13140_v18, %v2277_v61  ;;  %v2350_v62 = vmul.f32 %v13142_v63, %v2278_v42  ;;  %v2356_v7 = vadd.f32 %v2348_v14, %v2340_v55 }
 0x3a6   :  { %8825 = vmatmul.mubr.bf16.gmra.mxu1 %v2365_v21  ;;  %v2343_v4 = vmul.f32 %v2335_v17, %v13138_v11 }
 0x3a7   :  { %v2341_v54 = vmul.f32 %v2333_v35, %v13141_v5  ;;  %v2358_v3 = vadd.f32 %v2350_v62, %v2342_v43 }
 0x3a8   :  { %v2359_v39 = vadd.f32 %v2351_v12, %v2343_v4 }
 0x3a9   :  { %v2357_v1 = vadd.f32 %v2349_v15, %v2341_v54 }
 0x3aa   :  { %v2367_v60 = vpack.c.bf16 %v2359_v39, %v2358_v3 }
 0x3ab   :  { %v2366_v9 = vpack.c.bf16 %v2357_v1, %v2356_v7 }
 0x3ad   :  { %8828 = vmatprep.mubr.bf16.mxu1 %v2366_v9 }
 0x3ae   :  { %8829 = vmatmul.mubr.bf16.gmra.mxu1 %v2367_v60 }
 0x44d   :  { %v8818_v40 = vpop.f32.mrf.mxu1 }
 0x44e   :  { %v2465_v41 = vadd.f32 %v8818_v40, %v8059_v16 }
 0x44f   :  { %v2456_v36 = vpop.f32.mrf.mxu1 }
 0x450   :  { %v11146_v0 = vadd.f32 %v2465_v41, %v10797_v24  ;;  %v2457_v44 = vadd.f32 %v8059_v16, %v2456_v36 }
 0x451   :  { %v8819_v42 = vpop.f32.mrf.mxu1 }
 0x452   :  { %v11149_v52 = vadd.f32 %v2457_v44, %v10802_v25  ;;  %v2468_v10 = vadd.f32 %v8819_v42, %v8059_v16  ;;  %2539 = vadd.xlane.f32.xlu1 %v11146_v0 }
 0x453   :  { %v2459_v22 = vpop.f32.mrf.mxu1 }
 0x454   :  { %v11153_v2 = vadd.f32 %v2468_v10, %v10807_v27  ;;  %v2460_v6 = vadd.f32 %v8059_v16, %v2459_v22  ;;  %2535 = vadd.xlane.f32.xlu0 %v11149_v52 }
 0x456   :  { %v11157_v38 = vadd.f32 %v2460_v6, %v10812_v28  ;;  %2541 = vadd.xlane.f32.xlu1 %v11153_v2 }
 0x458   :  { %2537 = vadd.xlane.f32.xlu0 %v11157_v38 }
 0x45d   :  { %v8822_v24 = vpop.f32.mrf.mxu1 }
 0x45e   :  { %v2481_v26 = vadd.f32 %v8822_v24, %v8059_v16 }
 0x45f   :  { %v2472_v25 = vpop.f32.mrf.mxu1 }
 0x460   :  { %v2473_v19 = vadd.f32 %v8059_v16, %v2472_v25  ;;  %v11166_v17 = vadd.f32 %v2481_v26, %v10817_v20  ;;  %v8082_v25 = vcombine.low %v9895_v46, %v9900_v47 }
 0x461   :  { %v8823_v56 = vpop.f32.mrf.mxu1 }
 0x462   :  { %v11162_v61 = vadd.f32 %v2473_v19, %v10822_v8  ;;  %v2484_v28 = vadd.f32 %v8823_v56, %v8059_v16 }
 0x463   :  { %v2475_v27 = vpop.f32.mrf.mxu1 }
 0x464   :  { %v2476_v21 = vadd.f32 %v8059_v16, %v2475_v27  ;;  %2543 = vadd.xlane.f32.xlu0 %v11162_v61  ;;  %v11174_v8 = vadd.f32 %v2484_v28, %v10830_v32 }
 0x466   :  { %v11169_v35 = vadd.f32 %v2476_v21, %v10838_v23  ;;  %v8826_v37 = vpop.f32.mrf.mxu1  ;;  %v13143_v21 = vld [vmem:[#allocation57_spill] sm:$0xff] }
 0x467   :  { %v2497_v43 = vadd.f32 %v8826_v37, %v8059_v16  ;;  %v8081_v28 = vcombine.high %v13143_v21, %v9890_v45 }
 0x468   :  { %2545 = vadd.xlane.f32.xlu1 %v11169_v35  ;;  %2547 = vadd.xlane.f32.xlu0 %v11166_v17  ;;  %v2488_v55 = vpop.f32.mrf.mxu1 }
 0x469   :  { %v2489_v57 = vadd.f32 %v8059_v16, %v2488_v55  ;;  %v11182_v4 = vadd.f32 %v2497_v43, %v10848_v53  ;;  %v13144_v43 = vld [vmem:[#allocation56_spill] sm:$0xff] }
 0x46a   :  { %v8827_v12 = vpop.f32.mrf.mxu1 }
 0x46b   :  { %v11177_v11 = vadd.f32 %v2489_v57, %v10858_v29  ;;  %v2500_v34 = vadd.f32 %v8827_v12, %v8059_v16 }
 0x46c   :  { %2549 = vadd.xlane.f32.xlu1 %v11174_v8  ;;  %v2491_v20 = vpop.f32.mrf.mxu1 }
 0x46d   :  { %v2492_v23 = vadd.f32 %v8059_v16, %v2491_v20  ;;  %2551 = vadd.xlane.f32.xlu0 %v11177_v11  ;;  %v11190_v15 = vadd.f32 %v2500_v34, %v10865_v30  ;;  %v13145_v20 = vld [vmem:[#allocation55_spill] sm:$0xff] }
 0x46e   :  { %v8830_v32 = vpop.f32.mrf.mxu1  ;;  %v8078_v34 = vcombine.low %v13145_v20, %v13144_v43 }
 0x46f   :  { %v11185_v14 = vadd.f32 %v2492_v23, %v10872_v58  ;;  %v2513_v54 = vadd.f32 %v8830_v32, %v8059_v16  ;;  %v8079_v23 = vcombine.high %v13145_v20, %v13144_v43  ;;  %v9098_v43 = vld [vmem:[#allocation5 + $0x70] sm:$0xff]  }
 0x470   :  { %v2504_v18 = vpop.f32.mrf.mxu1  ;;  %v9099_v20 = vld [vmem:[#allocation5 + $0x30] sm:$0xff]  }
 0x471   :  { %2553 = vadd.xlane.f32.xlu1 %v11185_v14  ;;  %2555 = vadd.xlane.f32.xlu0 %v11182_v4  ;;  %v2505_v29 = vadd.f32 %v8059_v16, %v2504_v18  ;;  %v11198_v62 = vadd.f32 %v2513_v54, %v10877_v31  ;;  %v8084_v31 = vcombine.low %v9905_v48, %v9910_v49 }
 0x472   :  { %v8831_v5 = vpop.f32.mrf.mxu1 }
 0x473   :  { %v11193_v63 = vadd.f32 %v2505_v29, %v10882_v33  ;;  %v2516_v39 = vadd.f32 %v8831_v5, %v8059_v16  ;;  %v8085_v33 = vcombine.high %v9905_v48, %v9910_v49 }
 0x474   :  { %v2507_v53 = vpop.f32.mrf.mxu1 }
 0x475   :  { %2557 = vadd.xlane.f32.xlu1 %v11190_v15  ;;  %v2508_v58 = vadd.f32 %v8059_v16, %v2507_v53  ;;  %2559 = vadd.xlane.f32.xlu0 %v11193_v63  ;;  %v11206_v30 = vadd.f32 %v2516_v39, %v10887_v51  ;;  %v13146_v53 = vld [vmem:[#allocation54_spill] sm:$0xff] }
 0x476   :  { %2855 = vmatprep.subr.bf16.mxu0 %v8085_v33 }
 0x477   :  { %v11201_v7 = vadd.f32 %v2508_v58, %v10889_v50  ;;  %2856 = vmatpush1.bf16.msra.mxu0 %v8084_v31  ;;  %v13147_v58 = vld [vmem:[#allocation53_spill] sm:$0xff] }
 0x478   :  { %v8076_v31 = vcombine.low %v13147_v58, %v13146_v53 }
 0x479   :  { %2561 = vadd.xlane.f32.xlu1 %v11201_v7  ;;  %2563 = vadd.xlane.f32.xlu0 %v11198_v62 }
 0x47d   :  { %2565 = vadd.xlane.f32.xlu1 %v11206_v30 }
 0x4db   :  { %v2540_v1 = vpop.xlane.xlu1 %2539 }
 0x4dc   :  { %v2570_v3 = vmul.f32 0.0078125, %v2540_v1 }
 0x4dd   :  { %v2536_v50 = vpop.xlane.xlu0 %2535 }
 0x4de   :  { %v2568_v9 = vmul.f32 0.0078125, %v2536_v50  ;;  %v11217_v40 = vsub.f32 %v11146_v0, %v2570_v3 }
 0x4df   :  { %v2542_v60 = vpop.xlane.xlu1 %2541 }
 0x4e0   :  { %v11214_v16 = vsub.f32 %v11149_v52, %v2568_v9  ;;  %v2571_v41 = vmul.f32 0.0078125, %v2542_v60  ;;  %v2602_v52 = vmul.f32 %v11217_v40, %v11217_v40 }
 0x4e1   :  { %v2538_v51 = vpop.xlane.xlu0 %2537 }
 0x4e2   :  { %v2569_v36 = vmul.f32 0.0078125, %v2538_v51  ;;  %v2600_v44 = vmul.f32 %v11214_v16, %v11214_v16  ;;  %v11225_v49 = vsub.f32 %v11153_v2, %v2571_v41  ;;  %v8083_v2 = vcombine.high %v9895_v46, %v9900_v47  ;;  %v13148_v51 = vld [vmem:[#allocation52_spill] sm:$0xff]  ;;  %v13149_v41 = vld [vmem:[#allocation51_spill] sm:$0xff] }
 0x4e3   :  { %v8080_v46 = vcombine.low %v13143_v21, %v9890_v45 }
 0x4e4   :  { %v11222_v48 = vsub.f32 %v11157_v38, %v2569_v36  ;;  %2616 = vadd.xlane.f32.xlu0 %v2600_v44  ;;  %v2603_v0 = vmul.f32 %v11225_v49, %v11225_v49  ;;  %2857 = vmatprep.subr.bf16.mxu0 %v8083_v2  ;;  %v8074_v44 = vcombine.low %v13149_v41, %v13148_v51 }
 0x4e5   :  { %2858 = vmatpush1.bf16.msra.mxu0 %v8082_v25 }
 0x4e6   :  { %v2601_v42 = vmul.f32 %v11222_v48, %v11222_v48  ;;  %2859 = vmatprep.subr.bf16.mxu0 %v8081_v28 }
 0x4e8   :  { %2618 = vadd.xlane.f32.xlu1 %v2601_v42  ;;  %2620 = vadd.xlane.f32.xlu0 %v2602_v52 }
 0x4e9   :  { %2860 = vmatpush1.bf16.msra.mxu0 %v8080_v46  ;;  %v13152_v46 = vld [vmem:[#allocation48_spill] sm:$0xff] }
 0x4ea   :  { %2861 = vmatprep.subr.bf16.mxu0 %v8079_v23  ;;  %v9100_v23 = vld [vmem:[#allocation5 + $0x68] sm:$0xff]  }
 0x4ec   :  { %2622 = vadd.xlane.f32.xlu1 %v2603_v0 }
 0x4ed   :  { %v2544_v10 = vpop.xlane.xlu0 %2543  ;;  %2862 = vmatpush1.bf16.msra.mxu0 %v8078_v34  ;;  %v9101_v34 = vld [vmem:[#allocation5 + $0x28] sm:$0xff]  }
 0x4ee   :  { %v2572_v22 = vmul.f32 0.0078125, %v2544_v10 }
 0x4f0   :  { %v11234_v6 = vsub.f32 %v11162_v61, %v2572_v22 }
 0x4f1   :  { %v2546_v38 = vpop.xlane.xlu1 %2545  ;;  %v2548_v24 = vpop.xlane.xlu0 %2547 }
 0x4f2   :  { %v2573_v19 = vmul.f32 0.0078125, %v2546_v38  ;;  %v2574_v56 = vmul.f32 0.0078125, %v2548_v24  ;;  %v2604_v26 = vmul.f32 %v11234_v6, %v11234_v6  ;;  %v13150_v38 = vld [vmem:[#allocation50_spill] sm:$0xff]  ;;  %v13151_v24 = vld [vmem:[#allocation49_spill] sm:$0xff] }
 0x4f3   :  { %v8073_v25 = vcombine.high %v13151_v24, %v13150_v38 }
 0x4f4   :  { %v11243_v27 = vsub.f32 %v11169_v35, %v2573_v19  ;;  %v11246_v61 = vsub.f32 %v11166_v17, %v2574_v56  ;;  %2624 = vadd.xlane.f32.xlu0 %v2604_v26 }
 0x4f5   :  { %v2550_v37 = vpop.xlane.xlu1 %2549 }
 0x4f6   :  { %v2575_v47 = vmul.f32 0.0078125, %v2550_v37  ;;  %v2552_v55 = vpop.xlane.xlu0 %2551  ;;  %v2605_v57 = vmul.f32 %v11243_v27, %v11243_v27  ;;  %v2606_v35 = vmul.f32 %v11246_v61, %v11246_v61 }
 0x4f7   :  { %v2576_v12 = vmul.f32 0.0078125, %v2552_v55 }
 0x4f8   :  { %v11257_v17 = vsub.f32 %v11174_v8, %v2575_v47  ;;  %2626 = vadd.xlane.f32.xlu1 %v2605_v57  ;;  %2628 = vadd.xlane.f32.xlu0 %v2606_v35  ;;  %v13153_v47 = vld [vmem:[#allocation47_spill] sm:$0xff]  ;;  %v9096_v35 = vld [vmem:[#allocation5 + $0x78] sm:$0xff]  }
 0x4f9   :  { %v11262_v45 = vsub.f32 %v11177_v11, %v2576_v12  ;;  %v8077_v11 = vcombine.high %v13147_v58, %v13146_v53  ;;  %v8071_v55 = vcombine.high %v13153_v47, %v13152_v46  ;;  %v9097_v12 = vld [vmem:[#allocation5 + $0x38] sm:$0xff]   ;;  %8418 = vmatprep.subr.bf16.mxu1 %v9096_v35 }
 0x4fa   :  { %v2554_v32 = vpop.xlane.xlu1 %2553  ;;  %v2556_v18 = vpop.xlane.xlu0 %2555  ;;  %v2607_v29 = vmul.f32 %v11257_v17, %v11257_v17  ;;  %8419 = vmatpush3.bf16.msra.mxu1 %v9097_v12 }
 0x4fb   :  { %v2577_v5 = vmul.f32 0.0078125, %v2554_v32  ;;  %v2578_v8 = vmul.f32 0.0078125, %v2556_v18  ;;  %v2608_v54 = vmul.f32 %v11262_v45, %v11262_v45  ;;  %2863 = vmatprep.subr.bf16.mxu0 %v8077_v11  ;;  %8420 = vmatprep.subr.bf16.mxu1 %v9098_v43  ;;  %v9103_v32 = vld [vmem:[#allocation5 + $0x20] sm:$0xff]   ;;  %v9104_v18 = vld [vmem:[#allocation5 + $0x58] sm:$0xff]  }
 0x4fc   :  { %2630 = vadd.xlane.f32.xlu1 %v2607_v29  ;;  %2864 = vmatpush1.bf16.msra.mxu0 %v8076_v31  ;;  %v9105_v29 = vld [vmem:[#allocation5 + $0x18] sm:$0xff]  }
 0x4fd   :  { %v11273_v39 = vsub.f32 %v11185_v14, %v2577_v5  ;;  %v11276_v33 = vsub.f32 %v11182_v4, %v2578_v8  ;;  %2632 = vadd.xlane.f32.xlu0 %v2608_v54  ;;  %v8075_v4 = vcombine.high %v13149_v41, %v13148_v51 }
 0x4fe   :  { %v2558_v1 = vpop.xlane.xlu1 %2557  ;;  %v2560_v3 = vpop.xlane.xlu0 %2559  ;;  %8421 = vmatpush3.bf16.msra.mxu1 %v9099_v20 }
 0x4ff   :  { %v2579_v50 = vmul.f32 0.0078125, %v2558_v1  ;;  %v2609_v9 = vmul.f32 %v11273_v39, %v11273_v39  ;;  %v2610_v60 = vmul.f32 %v11276_v33, %v11276_v33  ;;  %v2580_v14 = vmul.f32 0.0078125, %v2560_v3  ;;  %2865 = vmatprep.subr.bf16.mxu0 %v8075_v4  ;;  %8422 = vmatprep.subr.bf16.mxu1 %v9100_v23 }
 0x500   :  { %2866 = vmatpush1.bf16.msra.mxu0 %v8074_v44 }
 0x501   :  { %v11287_v36 = vsub.f32 %v11190_v15, %v2579_v50  ;;  %2634 = vadd.xlane.f32.xlu1 %v2609_v9  ;;  %2636 = vadd.xlane.f32.xlu0 %v2610_v60  ;;  %v11292_v42 = vsub.f32 %v11193_v63, %v2580_v14  ;;  %v8072_v63 = vcombine.low %v13151_v24, %v13150_v38 }
 0x502   :  { %v2562_v52 = vpop.xlane.xlu1 %2561  ;;  %v2564_v0 = vpop.xlane.xlu0 %2563  ;;  %2867 = vmatprep.subr.bf16.mxu0 %v8073_v25  ;;  %8423 = vmatpush3.bf16.msra.mxu1 %v9101_v34 }
 0x503   :  { %v2611_v10 = vmul.f32 %v11287_v36, %v11287_v36  ;;  %v2581_v22 = vmul.f32 0.0078125, %v2562_v52  ;;  %v2582_v2 = vmul.f32 0.0078125, %v2564_v0  ;;  %v2612_v15 = vmul.f32 %v11292_v42, %v11292_v42  ;;  %v11325_v52 = vld [vmem:[%s12907_s13] ss:$0 sm:$0xff] }
 0x504   :  { %2868 = vmatpush1.bf16.msra.mxu0 %v8072_v63 }
 0x505   :  { %2638 = vadd.xlane.f32.xlu1 %v2611_v10  ;;  %v11303_v19 = vsub.f32 %v11201_v7, %v2581_v22  ;;  %v11306_v56 = vsub.f32 %v11198_v62, %v2582_v2  ;;  %2640 = vadd.xlane.f32.xlu0 %v2612_v15  ;;  %v8070_v7 = vcombine.low %v13153_v47, %v13152_v46 }
 0x506   :  { %v2566_v26 = vpop.xlane.xlu1 %2565  ;;  %2869 = vmatprep.subr.bf16.mxu0 %v8071_v55 }
 0x507   :  { %v2583_v21 = vmul.f32 0.0078125, %v2566_v26  ;;  %v2613_v28 = vmul.f32 %v11303_v19, %v11303_v19  ;;  %v2614_v37 = vmul.f32 %v11306_v56, %v11306_v56 }
 0x508   :  { %2870 = vmatpush1.bf16.msra.mxu0 %v8070_v7 }
 0x509   :  { %v11317_v62 = vsub.f32 %v11206_v30, %v2583_v21  ;;  %2642 = vadd.xlane.f32.xlu1 %v2613_v28  ;;  %2644 = vadd.xlane.f32.xlu0 %v2614_v37  ;;  %v9102_v30 = vld [vmem:[#allocation5 + $0x60] sm:$0xff]  }
 0x50a   :  { %8424 = vmatprep.subr.bf16.mxu1 %v9102_v30 }
 0x50b   :  { %v2615_v57 = vmul.f32 %v11317_v62, %v11317_v62  ;;  %8425 = vmatpush3.bf16.msra.mxu1 %v9103_v32 }
 0x50c   :  { %8426 = vmatprep.subr.bf16.mxu1 %v9104_v18 }
 0x50d   :  { %2646 = vadd.xlane.f32.xlu1 %v2615_v57 }
 0x50f   :  { %8427 = vmatpush3.bf16.msra.mxu1 %v9105_v29 }
 0x56d   :  { %v2617_v5 = vpop.xlane.xlu0 %2616 }
 0x56e   :  { %v2648_v8 = vmul.f32 0.0078125, %v2617_v5 }
 0x570   :  { %v2664_v54 = vadd.f32 1e-05, %v2648_v8 }
 0x571   :  { %v2619_v53 = vpop.xlane.xlu1 %2618  ;;  %v2621_v58 = vpop.xlane.xlu0 %2620 }
 0x572   :  { %9144 = vrsqrt.f32 %v2664_v54  ;;  %v2649_v11 = vmul.f32 0.0078125, %v2619_v53  ;;  %v2650_v31 = vmul.f32 0.0078125, %v2621_v58 }
 0x574   :  { %v2665_v1 = vadd.f32 1e-05, %v2649_v11  ;;  %v2666_v50 = vadd.f32 1e-05, %v2650_v31 }
 0x575   :  { %v2623_v3 = vpop.xlane.xlu1 %2622 }
 0x576   :  { %9146 = vrsqrt.f32 %v2665_v1  ;;  %v2651_v9 = vmul.f32 0.0078125, %v2623_v3 }
 0x577   :  { %9148 = vrsqrt.f32 %v2666_v50 }
 0x578   :  { %v2667_v60 = vadd.f32 1e-05, %v2651_v9 }
 0x57a   :  { %9150 = vrsqrt.f32 %v2667_v60 }
 0x57d   :  { %v2625_v14 = vpop.xlane.xlu0 %2624 }
 0x57e   :  { %v2652_v51 = vmul.f32 0.0078125, %v2625_v14 }
 0x57f   :  { %v9145_v41 = vpop.eup %9144 }
 0x580   :  { %v2696_v4 = vmul.f32 %v9145_v41, %v11214_v16  ;;  %v2668_v44 = vadd.f32 1e-05, %v2652_v51  ;;  %v11332_v16 = vld [vmem:[%s12908_s14] ss:$0 sm:$0xff] }
 0x581   :  { %v2627_v0 = vpop.xlane.xlu1 %2626  ;;  %v2629_v10 = vpop.xlane.xlu0 %2628 }
 0x582   :  { %9152 = vrsqrt.f32 %v2668_v44  ;;  %v2653_v22 = vmul.f32 0.0078125, %v2627_v0  ;;  %v2654_v2 = vmul.f32 0.0078125, %v2629_v10  ;;  %v2718_v38 = vmul.f32 %v11325_v52, %v2696_v4 }
 0x583   :  { %v9147_v15 = vpop.eup %9146 }
 0x584   :  { %v9149_v24 = vpop.eup %9148  ;;  %v2697_v25 = vmul.f32 %v9147_v15, %v11222_v48  ;;  %v2669_v63 = vadd.f32 1e-05, %v2653_v22  ;;  %v2670_v26 = vadd.f32 1e-05, %v2654_v2  ;;  %v11336_v55 = vadd.f32 %v11332_v16, %v2718_v38 }
 0x585   :  { %v2631_v21 = vpop.xlane.xlu1 %2630  ;;  %v2698_v48 = vmul.f32 %v9149_v24, %v11217_v40 }
 0x586   :  { %9154 = vrsqrt.f32 %v2669_v63  ;;  %v2655_v28 = vmul.f32 0.0078125, %v2631_v21  ;;  %v2633_v37 = vpop.xlane.xlu0 %2632  ;;  %v2719_v46 = vmul.f32 %v11325_v52, %v2697_v25 }
 0x587   :  { %v9151_v47 = vpop.eup %9150  ;;  %9156 = vrsqrt.f32 %v2670_v26  ;;  %v2656_v57 = vmul.f32 0.0078125, %v2633_v37  ;;  %v2720_v40 = vmul.f32 %v11325_v52, %v2698_v48 }
 0x588   :  { %v2671_v7 = vadd.f32 1e-05, %v2655_v28  ;;  %v11340_v35 = vadd.f32 %v11332_v16, %v2719_v46  ;;  %v2699_v12 = vmul.f32 %v9151_v47, %v11225_v49 }
 0x589   :  { %v2672_v30 = vadd.f32 1e-05, %v2656_v57  ;;  %v11352_v53 = vadd.f32 %v11332_v16, %v2720_v40 }
 0x58a   :  { %9158 = vrsqrt.f32 %v2671_v7  ;;  %v2635_v43 = vpop.xlane.xlu1 %2634  ;;  %v2756_v20 = vpack.c.bf16 %v11340_v35, %v11336_v55  ;;  %v2721_v23 = vmul.f32 %v11325_v52, %v2699_v12  ;;  %v2637_v32 = vpop.xlane.xlu0 %2636 }
 0x58b   :  { %v2657_v34 = vmul.f32 0.0078125, %v2635_v43  ;;  %v2658_v8 = vmul.f32 0.0078125, %v2637_v32 }
 0x58c   :  { %2888 = vmatmul.mubr.bf16.vlgmr.msra.gmra.mxu0 %v2756_v20  ;;  %v11349_v5 = vadd.f32 %v11332_v16, %v2721_v23 }
 0x58d   :  { %v2673_v18 = vadd.f32 1e-05, %v2657_v34  ;;  %2897 = vmatprep.mubr.bf16.mxu0 %v13119_v59  ;;  %v2674_v50 = vadd.f32 1e-05, %v2658_v8 }
 0x58e   :  { %v2639_v29 = vpop.xlane.xlu1 %2638  ;;  %v2757_v31 = vpack.c.bf16 %v11349_v5, %v11352_v53  ;;  %v2641_v60 = vpop.xlane.xlu0 %2640 }
 0x58f   :  { %v9153_v49 = vpop.eup %9152  ;;  %9160 = vrsqrt.f32 %v2673_v18  ;;  %v2659_v54 = vmul.f32 0.0078125, %v2639_v29  ;;  %v2660_v44 = vmul.f32 0.0078125, %v2641_v60 }
 0x590   :  { %9162 = vrsqrt.f32 %v2672_v30  ;;  %v2700_v58 = vmul.f32 %v9153_v49, %v11234_v6 }
 0x591   :  { %v2675_v11 = vadd.f32 1e-05, %v2659_v54  ;;  %v2676_v63 = vadd.f32 1e-05, %v2660_v44  ;;  %v9107_v44 = vld [vmem:[#allocation5 + $0x10] sm:$0xff]  }
 0x592   :  { %v2643_v3 = vpop.xlane.xlu1 %2642  ;;  %v2722_v51 = vmul.f32 %v11325_v52, %v2700_v58  ;;  %v2645_v28 = vpop.xlane.xlu0 %2644 }
 0x593   :  { %v9155_v1 = vpop.eup %9154  ;;  %9164 = vrsqrt.f32 %v2675_v11  ;;  %v2661_v41 = vmul.f32 0.0078125, %v2643_v3  ;;  %v2662_v46 = vmul.f32 0.0078125, %v2645_v28 }
 0x594   :  { %v9157_v9 = vpop.eup %9156  ;;  %2898 = vmatmul.mubr.bf16.gmra.mxu0 %v2757_v31  ;;  %v2701_v14 = vmul.f32 %v9155_v1, %v11243_v27  ;;  %9166 = vrsqrt.f32 %v2674_v50  ;;  %v11362_v0 = vadd.f32 %v11332_v16, %v2722_v51 }
 0x595   :  { %2907 = vmatprep.mubr.bf16.mxu0 %v13119_v59  ;;  %v2702_v22 = vmul.f32 %v9157_v9, %v11246_v61  ;;  %v2677_v2 = vadd.f32 1e-05, %v2661_v41  ;;  %v2678_v23 = vadd.f32 1e-05, %v2662_v46 }
 0x596   :  { %v2723_v6 = vmul.f32 %v11325_v52, %v2701_v14  ;;  %v2647_v24 = vpop.xlane.xlu1 %2646 }
 0x597   :  { %v9159_v4 = vpop.eup %9158  ;;  %v2724_v26 = vmul.f32 %v11325_v52, %v2702_v22  ;;  %9168 = vrsqrt.f32 %v2677_v2  ;;  %v2663_v61 = vmul.f32 0.0078125, %v2647_v24  ;;  %v9108_v22 = vld [vmem:[#allocation5 + $0x48] sm:$0xff]   ;;  %v9111_v2 = vld [vmem:[#allocation5] sm:$0xff]  }
 0x598   :  { %v11365_v10 = vadd.f32 %v11332_v16, %v2723_v6  ;;  %v2703_v27 = vmul.f32 %v9159_v4, %v11257_v17  ;;  %9170 = vrsqrt.f32 %v2676_v63 }
 0x599   :  { %v11379_v47 = vadd.f32 %v11332_v16, %v2724_v26  ;;  %v2679_v7 = vadd.f32 1e-05, %v2663_v61 }
 0x59a   :  { %v2758_v15 = vpack.c.bf16 %v11365_v10, %v11362_v0  ;;  %v2725_v38 = vmul.f32 %v11325_v52, %v2703_v27  ;;  %v9109_v27 = vld [vmem:[#allocation5 + $0x8] sm:$0xff]  }
 0x59b   :  { %9172 = vrsqrt.f32 %v2679_v7 }
 0x59c   :  { %v9161_v25 = vpop.eup %9160  ;;  %2908 = vmatmul.mubr.bf16.gmra.mxu0 %v2758_v15  ;;  %v11375_v17 = vadd.f32 %v11332_v16, %v2725_v38  ;;  %9174 = vrsqrt.f32 %v2678_v23  ;;  %v13154_v38 = vld [vmem:[#allocation118_spill] sm:$0xff] }
 0x59d   :  { %v9163_v21 = vpop.eup %9162  ;;  %2917 = vmatprep.mubr.bf16.mxu0 %v13119_v59  ;;  %v2705_v37 = vmul.f32 %v9161_v25, %v11273_v39  ;;  %v13155_v25 = vld [vmem:[#allocation119_spill] sm:$0xff] }
 0x59e   :  { %v2704_v48 = vmul.f32 %v9163_v21, %v11262_v45  ;;  %v2759_v57 = vpack.c.bf16 %v11375_v17, %v11379_v47 }
 0x59f   :  { %v2727_v12 = vmul.f32 %v11325_v52, %v2705_v37 }
 0x5a0   :  { %v9165_v43 = vpop.eup %9164  ;;  %v2726_v34 = vmul.f32 %v11325_v52, %v2704_v48 }
 0x5a1   :  { %v9167_v20 = vpop.eup %9166  ;;  %v11388_v39 = vadd.f32 %v11332_v16, %v2727_v12  ;;  %v2707_v45 = vmul.f32 %v9165_v43, %v11287_v36 }
 0x5a2   :  { %v11392_v30 = vadd.f32 %v11332_v16, %v2726_v34  ;;  %v2706_v32 = vmul.f32 %v9167_v20, %v11276_v33 }
 0x5a3   :  { %v2729_v18 = vmul.f32 %v11325_v52, %v2707_v45 }
 0x5a4   :  { %2918 = vmatmul.mubr.bf16.gmra.mxu0 %v2759_v57  ;;  %v2760_v40 = vpack.c.bf16 %v11388_v39, %v11392_v30  ;;  %v9169_v29 = vpop.eup %9168  ;;  %v2728_v49 = vmul.f32 %v11325_v52, %v2706_v32 }
 0x5a5   :  { %2927 = vmatprep.mubr.bf16.mxu0 %v13119_v59  ;;  %v9171_v8 = vpop.eup %9170  ;;  %v11401_v36 = vadd.f32 %v11332_v16, %v2729_v18  ;;  %v2709_v54 = vmul.f32 %v9169_v29, %v11303_v19 }
 0x5a6   :  { %v11405_v58 = vadd.f32 %v11332_v16, %v2728_v49  ;;  %v2708_v33 = vmul.f32 %v9171_v8, %v11292_v42 }
 0x5a7   :  { %v2731_v31 = vmul.f32 %v11325_v52, %v2709_v54 }
 0x5a8   :  { %v2761_v11 = vpack.c.bf16 %v11401_v36, %v11405_v58  ;;  %v9173_v1 = vpop.eup %9172  ;;  %v2730_v50 = vmul.f32 %v11325_v52, %v2708_v33 }
 0x5a9   :  { %v9175_v3 = vpop.eup %9174  ;;  %v11414_v9 = vadd.f32 %v11332_v16, %v2731_v31  ;;  %v2711_v19 = vmul.f32 %v9173_v1, %v11317_v62 }
 0x5aa   :  { %v11418_v60 = vadd.f32 %v11332_v16, %v2730_v50  ;;  %v2710_v42 = vmul.f32 %v9175_v3, %v11306_v56  ;;  %v9106_v56 = vld [vmem:[#allocation5 + $0x50] sm:$0xff]  }
 0x5ab   :  { %v2733_v51 = vmul.f32 %v11325_v52, %v2711_v19  ;;  %8428 = vmatprep.subr.bf16.mxu1 %v9106_v56 }
 0x5ac   :  { %2928 = vmatmul.mubr.bf16.gmra.mxu0 %v2760_v40  ;;  %v2762_v14 = vpack.c.bf16 %v11414_v9, %v11418_v60  ;;  %v2732_v41 = vmul.f32 %v11325_v52, %v2710_v42  ;;  %8429 = vmatpush3.bf16.msra.mxu1 %v9107_v44  ;;  %v9110_v52 = vld [vmem:[#allocation5 + $0x40] sm:$0xff]  }
 0x5ad   :  { %2937 = vmatprep.mubr.bf16.mxu0 %v13119_v59  ;;  %v11427_v6 = vadd.f32 %v11332_v16, %v2733_v51  ;;  %8430 = vmatprep.subr.bf16.mxu1 %v9108_v22 }
 0x5ae   :  { %v11430_v62 = vadd.f32 %v11332_v16, %v2732_v41  ;;  %v1661_v16 = vld [vmem:[%s12909_s15] sm:$0x3] }
 0x5af   :  { %v11438_v24 = vrot.slane %v1661_v16, %v13154_v38  ;;  %v11441_v63 = vrot.slane %v1661_v16, %v13155_v25 }
 0x5b0   :  { %v2763_v4 = vpack.c.bf16 %v11427_v6, %v11430_v62  ;;  %8431 = vmatpush3.bf16.msra.mxu1 %v9109_v27 }
 0x5b1   :  { %8432 = vmatprep.subr.bf16.mxu1 %v9110_v52 }
 0x5b4   :  { %2938 = vmatmul.mubr.bf16.gmra.mxu0 %v2761_v11  ;;  %8433 = vmatpush3.bf16.msra.mxu1 %v9111_v2 }
 0x5b5   :  { %2947 = vmatprep.mubr.bf16.mxu0 %v13119_v59 }
 0x5bc   :  { %2948 = vmatmul.mubr.bf16.gmra.mxu0 %v2762_v14 }
 0x5bd   :  { %2957 = vmatprep.mubr.bf16.mxu0 %v13119_v59 }
 0x5c4   :  { %2958 = vmatmul.mubr.bf16.gmra.mxu0 %v2763_v4 }
 0x64c   :  { %v2889_v15 = vpop.f32.mrf.mxu0 }
 0x64d   :  { %v2890_v37 = vadd.f32 %v2889_v15, %v11441_v63 }
 0x64e   :  { %v2891_v26 = vpop.f32.mrf.mxu0 }
 0x64f   :  { %v2892_v28 = vadd.f32 %v2891_v26, %v11438_v24  ;;  %v2968_v20 = vmax.f32 %v2890_v37, 0.0 }
 0x650   :  { %v2893_v21 = vpop.f32.mrf.mxu0 }
 0x651   :  { %v2894_v61 = vadd.f32 %v2893_v21, %v11441_v63  ;;  %v2969_v12 = vmax.f32 %v2892_v28, 0.0 }
 0x652   :  { %v2895_v46 = vpop.f32.mrf.mxu0 }
 0x653   :  { %v2896_v48 = vadd.f32 %v2895_v46, %v11438_v24  ;;  %v2970_v7 = vmax.f32 %v2894_v61, 0.0 }
 0x654   :  { %v2899_v57 = vpop.f32.mrf.mxu0 }
 0x655   :  { %v2971_v43 = vmax.f32 %v2896_v48, 0.0  ;;  %v3000_v45 = vpack.c.bf16 %v2970_v7, %v2968_v20  ;;  %v2900_v29 = vadd.f32 %v2899_v57, %v11441_v63 }
 0x656   :  { %v2901_v23 = vpop.f32.mrf.mxu0 }
 0x657   :  { %v3001_v34 = vpack.c.bf16 %v2971_v43, %v2969_v12  ;;  %v2902_v40 = vadd.f32 %v2901_v23, %v11438_v24  ;;  %v2972_v1 = vmax.f32 %v2900_v29, 0.0 }
 0x658   :  { %v2903_v32 = vpop.f32.mrf.mxu0 }
 0x659   :  { %v2904_v18 = vadd.f32 %v2903_v32, %v11441_v63  ;;  %3150 = vmatprep.mubr.bf16.mxu1 %v3001_v34  ;;  %v2973_v11 = vmax.f32 %v2902_v40, 0.0 }
 0x65a   :  { %v2905_v49 = vpop.f32.mrf.mxu0  ;;  %3151 = vmatmul.mubr.bf16.vlgmr.msra.gmra.mxu1 %v3000_v45 }
 0x65b   :  { %v2906_v8 = vadd.f32 %v2905_v49, %v11438_v24  ;;  %v2974_v54 = vmax.f32 %v2904_v18, 0.0 }
 0x65c   :  { %v2909_v33 = vpop.f32.mrf.mxu0 }
 0x65d   :  { %v2975_v31 = vmax.f32 %v2906_v8, 0.0  ;;  %v3002_v19 = vpack.c.bf16 %v2974_v54, %v2972_v1  ;;  %v2910_v41 = vadd.f32 %v2909_v33, %v11441_v63 }
 0x65e   :  { %v2911_v50 = vpop.f32.mrf.mxu0 }
 0x65f   :  { %v3003_v3 = vpack.c.bf16 %v2975_v31, %v2973_v11  ;;  %v2912_v14 = vadd.f32 %v2911_v50, %v11438_v24  ;;  %v2976_v2 = vmax.f32 %v2910_v41, 0.0 }
 0x660   :  { %v2913_v42 = vpop.f32.mrf.mxu0 }
 0x661   :  { %v2914_v51 = vadd.f32 %v2913_v42, %v11441_v63  ;;  %3158 = vmatprep.mubr.bf16.mxu1 %v3003_v3  ;;  %v2977_v27 = vmax.f32 %v2912_v14, 0.0 }
 0x662   :  { %v2915_v4 = vpop.f32.mrf.mxu0  ;;  %3159 = vmatmul.mubr.bf16.gmra.mxu1 %v3002_v19 }
 0x663   :  { %v2916_v56 = vadd.f32 %v2915_v4, %v11438_v24  ;;  %v2978_v44 = vmax.f32 %v2914_v51, 0.0 }
 0x664   :  { %v2919_v22 = vpop.f32.mrf.mxu0 }
 0x665   :  { %v2979_v52 = vmax.f32 %v2916_v56, 0.0  ;;  %v3004_v26 = vpack.c.bf16 %v2978_v44, %v2976_v2  ;;  %v2920_v37 = vadd.f32 %v2919_v22, %v11441_v63 }
 0x666   :  { %v2921_v16 = vpop.f32.mrf.mxu0 }
 0x667   :  { %v3005_v15 = vpack.c.bf16 %v2979_v52, %v2977_v27  ;;  %v2922_v28 = vadd.f32 %v2921_v16, %v11438_v24  ;;  %v2980_v20 = vmax.f32 %v2920_v37, 0.0 }
 0x668   :  { %v2923_v21 = vpop.f32.mrf.mxu0 }
 0x669   :  { %v2924_v61 = vadd.f32 %v2923_v21, %v11441_v63  ;;  %3166 = vmatprep.mubr.bf16.mxu1 %v3005_v15  ;;  %v2981_v12 = vmax.f32 %v2922_v28, 0.0 }
 0x66a   :  { %v2925_v46 = vpop.f32.mrf.mxu0  ;;  %3167 = vmatmul.mubr.bf16.gmra.mxu1 %v3004_v26 }
 0x66b   :  { %v2926_v48 = vadd.f32 %v2925_v46, %v11438_v24  ;;  %v2982_v7 = vmax.f32 %v2924_v61, 0.0 }
 0x66c   :  { %v2929_v57 = vpop.f32.mrf.mxu0 }
 0x66d   :  { %v2983_v43 = vmax.f32 %v2926_v48, 0.0  ;;  %v3006_v45 = vpack.c.bf16 %v2982_v7, %v2980_v20  ;;  %v2930_v29 = vadd.f32 %v2929_v57, %v11441_v63 }
 0x66e   :  { %v2931_v23 = vpop.f32.mrf.mxu0 }
 0x66f   :  { %v3007_v34 = vpack.c.bf16 %v2983_v43, %v2981_v12  ;;  %v2932_v40 = vadd.f32 %v2931_v23, %v11438_v24  ;;  %v2984_v1 = vmax.f32 %v2930_v29, 0.0 }
 0x670   :  { %v2933_v32 = vpop.f32.mrf.mxu0 }
 0x671   :  { %v2934_v18 = vadd.f32 %v2933_v32, %v11441_v63  ;;  %3174 = vmatprep.mubr.bf16.mxu1 %v3007_v34  ;;  %v2985_v11 = vmax.f32 %v2932_v40, 0.0 }
 0x672   :  { %v2935_v49 = vpop.f32.mrf.mxu0  ;;  %3175 = vmatmul.mubr.bf16.gmra.mxu1 %v3006_v45 }
 0x673   :  { %v2936_v8 = vadd.f32 %v2935_v49, %v11438_v24  ;;  %v2986_v54 = vmax.f32 %v2934_v18, 0.0 }
 0x674   :  { %v2939_v33 = vpop.f32.mrf.mxu0 }
 0x675   :  { %v2987_v31 = vmax.f32 %v2936_v8, 0.0  ;;  %v3008_v19 = vpack.c.bf16 %v2986_v54, %v2984_v1  ;;  %v2940_v41 = vadd.f32 %v2939_v33, %v11441_v63 }
 0x676   :  { %v2941_v50 = vpop.f32.mrf.mxu0 }
 0x677   :  { %v3009_v3 = vpack.c.bf16 %v2987_v31, %v2985_v11  ;;  %v2942_v14 = vadd.f32 %v2941_v50, %v11438_v24  ;;  %v2988_v2 = vmax.f32 %v2940_v41, 0.0 }
 0x678   :  { %v2943_v42 = vpop.f32.mrf.mxu0 }
 0x679   :  { %v2944_v51 = vadd.f32 %v2943_v42, %v11441_v63  ;;  %3182 = vmatprep.mubr.bf16.mxu1 %v3009_v3  ;;  %v2989_v27 = vmax.f32 %v2942_v14, 0.0 }
 0x67a   :  { %v2945_v4 = vpop.f32.mrf.mxu0  ;;  %3183 = vmatmul.mubr.bf16.gmra.mxu1 %v3008_v19  ;;  %v11478_v19 = vld [vmem:[%s12910_s16] ss:$0 sm:$0xff] }
 0x67b   :  { %v2946_v56 = vadd.f32 %v2945_v4, %v11438_v24  ;;  %v2990_v44 = vmax.f32 %v2944_v51, 0.0 }
 0x67c   :  { %v2949_v22 = vpop.f32.mrf.mxu0 }
 0x67d   :  { %v2991_v52 = vmax.f32 %v2946_v56, 0.0  ;;  %v3010_v26 = vpack.c.bf16 %v2990_v44, %v2988_v2  ;;  %v2950_v37 = vadd.f32 %v2949_v22, %v11441_v63 }
 0x67e   :  { %v2951_v16 = vpop.f32.mrf.mxu0 }
 0x67f   :  { %v3011_v15 = vpack.c.bf16 %v2991_v52, %v2989_v27  ;;  %v2952_v28 = vadd.f32 %v2951_v16, %v11438_v24  ;;  %v2992_v20 = vmax.f32 %v2950_v37, 0.0 }
 0x680   :  { %v2953_v21 = vpop.f32.mrf.mxu0 }
 0x681   :  { %v2954_v61 = vadd.f32 %v2953_v21, %v11441_v63  ;;  %3190 = vmatprep.mubr.bf16.mxu1 %v3011_v15  ;;  %v2993_v12 = vmax.f32 %v2952_v28, 0.0 }
 0x682   :  { %v2955_v46 = vpop.f32.mrf.mxu0  ;;  %3191 = vmatmul.mubr.bf16.gmra.mxu1 %v3010_v26 }
 0x683   :  { %v2956_v48 = vadd.f32 %v2955_v46, %v11438_v24  ;;  %v2994_v7 = vmax.f32 %v2954_v61, 0.0 }
 0x684   :  { %v2959_v57 = vpop.f32.mrf.mxu0 }
 0x685   :  { %v2995_v43 = vmax.f32 %v2956_v48, 0.0  ;;  %v3012_v45 = vpack.c.bf16 %v2994_v7, %v2992_v20  ;;  %v2960_v29 = vadd.f32 %v2959_v57, %v11441_v63 }
 0x686   :  { %v2961_v23 = vpop.f32.mrf.mxu0 }
 0x687   :  { %v3013_v34 = vpack.c.bf16 %v2995_v43, %v2993_v12  ;;  %v2962_v40 = vadd.f32 %v2961_v23, %v11438_v24  ;;  %v2996_v31 = vmax.f32 %v2960_v29, 0.0 }
 0x688   :  { %v2963_v32 = vpop.f32.mrf.mxu0 }
 0x689   :  { %v2964_v18 = vadd.f32 %v2963_v32, %v11441_v63  ;;  %3198 = vmatprep.mubr.bf16.mxu1 %v3013_v34  ;;  %v2997_v33 = vmax.f32 %v2962_v40, 0.0 }
 0x68a   :  { %v2965_v49 = vpop.f32.mrf.mxu0  ;;  %3199 = vmatmul.mubr.bf16.gmra.mxu1 %v3012_v45 }
 0x68b   :  { %v2966_v8 = vadd.f32 %v2965_v49, %v11438_v24  ;;  %v2998_v54 = vmax.f32 %v2964_v18, 0.0 }
 0x68d   :  { %v2999_v11 = vmax.f32 %v2966_v8, 0.0  ;;  %v3014_v50 = vpack.c.bf16 %v2998_v54, %v2996_v31 }
 0x68f   :  { %v3015_v1 = vpack.c.bf16 %v2999_v11, %v2997_v33 }
 0x691   :  { %3206 = vmatprep.mubr.bf16.mxu1 %v3015_v1 }
 0x692   :  { %3207 = vmatmul.mubr.bf16.gmra.mxu1 %v3014_v50 }
 0x71a   :  { %v8434_v3 = vpop.f32.mrf.mxu1 }
 0x71c   :  { %v8435_v42 = vpop.f32.mrf.mxu1 }
 0x71d   :  { %v8436_v63 = vadd.f32 %v8435_v42, %v8434_v3 }
 0x71e   :  { %v8437_v14 = vpop.f32.mrf.mxu1 }
 0x71f   :  { %v3153_v51 = vadd.f32 %v8436_v63, %v11478_v19 }
 0x720   :  { %v8438_v24 = vpop.f32.mrf.mxu1 }
 0x721   :  { %v8439_v41 = vadd.f32 %v8438_v24, %v8437_v14  ;;  %v11482_v4 = vadd.f32 %v3153_v51, %v11336_v55 }
 0x722   :  { %v8440_v56 = vpop.f32.mrf.mxu1 }
 0x723   :  { %v3156_v44 = vadd.f32 %v8439_v41, %v11478_v19  ;;  %3231 = vadd.xlane.f32.xlu0 %v11482_v4 }
 0x724   :  { %v8441_v22 = vpop.f32.mrf.mxu1 }
 0x725   :  { %v8442_v27 = vadd.f32 %v8441_v22, %v8440_v56  ;;  %v11487_v52 = vadd.f32 %v3156_v44, %v11340_v35 }
 0x726   :  { %v8443_v2 = vpop.f32.mrf.mxu1 }
 0x727   :  { %v3161_v16 = vadd.f32 %v8442_v27, %v11478_v19  ;;  %3233 = vadd.xlane.f32.xlu1 %v11487_v52 }
 0x728   :  { %v8444_v15 = vpop.f32.mrf.mxu1 }
 0x729   :  { %v8445_v26 = vadd.f32 %v8444_v15, %v8443_v2  ;;  %v11492_v55 = vadd.f32 %v3161_v16, %v11352_v53 }
 0x72a   :  { %v8446_v21 = vpop.f32.mrf.mxu1 }
 0x72b   :  { %v3164_v28 = vadd.f32 %v8445_v26, %v11478_v19  ;;  %3235 = vadd.xlane.f32.xlu0 %v11492_v55 }
 0x72c   :  { %v8447_v61 = vpop.f32.mrf.mxu1 }
 0x72d   :  { %v8448_v37 = vadd.f32 %v8447_v61, %v8446_v21  ;;  %v11497_v35 = vadd.f32 %v3164_v28, %v11349_v5 }
 0x72e   :  { %v8449_v46 = vpop.f32.mrf.mxu1 }
 0x72f   :  { %v3169_v48 = vadd.f32 %v8448_v37, %v11478_v19  ;;  %3237 = vadd.xlane.f32.xlu1 %v11497_v35 }
 0x730   :  { %v8450_v7 = vpop.f32.mrf.mxu1 }
 0x731   :  { %v8451_v57 = vadd.f32 %v8450_v7, %v8449_v46  ;;  %v11502_v53 = vadd.f32 %v3169_v48, %v11362_v0 }
 0x732   :  { %v8452_v12 = vpop.f32.mrf.mxu1 }
 0x733   :  { %v3172_v43 = vadd.f32 %v8451_v57, %v11478_v19  ;;  %3239 = vadd.xlane.f32.xlu0 %v11502_v53 }
 0x734   :  { %v8453_v20 = vpop.f32.mrf.mxu1 }
 0x735   :  { %v8454_v23 = vadd.f32 %v8453_v20, %v8452_v12  ;;  %v11507_v5 = vadd.f32 %v3172_v43, %v11365_v10 }
 0x736   :  { %v8455_v34 = vpop.f32.mrf.mxu1 }
 0x737   :  { %v3177_v45 = vadd.f32 %v8454_v23, %v11478_v19  ;;  %3241 = vadd.xlane.f32.xlu1 %v11507_v5 }
 0x738   :  { %v8456_v32 = vpop.f32.mrf.mxu1 }
 0x739   :  { %v8457_v40 = vadd.f32 %v8456_v32, %v8455_v34  ;;  %v11512_v0 = vadd.f32 %v3177_v45, %v11379_v47 }
 0x73a   :  { %v8458_v18 = vpop.f32.mrf.mxu1 }
 0x73b   :  { %v3180_v29 = vadd.f32 %v8457_v40, %v11478_v19  ;;  %3243 = vadd.xlane.f32.xlu0 %v11512_v0 }
 0x73c   :  { %v8459_v49 = vpop.f32.mrf.mxu1 }
 0x73d   :  { %v8460_v8 = vadd.f32 %v8459_v49, %v8458_v18  ;;  %v11517_v10 = vadd.f32 %v3180_v29, %v11375_v17 }
 0x73e   :  { %v8461_v54 = vpop.f32.mrf.mxu1 }
 0x73f   :  { %v3185_v33 = vadd.f32 %v8460_v8, %v11478_v19  ;;  %3245 = vadd.xlane.f32.xlu1 %v11517_v10 }
 0x740   :  { %v8462_v11 = vpop.f32.mrf.mxu1 }
 0x741   :  { %v8463_v31 = vadd.f32 %v8462_v11, %v8461_v54  ;;  %v11522_v47 = vadd.f32 %v3185_v33, %v11392_v30 }
 0x742   :  { %v8464_v1 = vpop.f32.mrf.mxu1 }
 0x743   :  { %v3188_v50 = vadd.f32 %v8463_v31, %v11478_v19  ;;  %3247 = vadd.xlane.f32.xlu0 %v11522_v47 }
 0x744   :  { %v8465_v3 = vpop.f32.mrf.mxu1 }
 0x745   :  { %v8466_v42 = vadd.f32 %v8465_v3, %v8464_v1  ;;  %v11527_v17 = vadd.f32 %v3188_v50, %v11388_v39 }
 0x746   :  { %v8467_v63 = vpop.f32.mrf.mxu1 }
 0x747   :  { %v3193_v14 = vadd.f32 %v8466_v42, %v11478_v19  ;;  %3249 = vadd.xlane.f32.xlu1 %v11527_v17 }
 0x748   :  { %v8468_v51 = vpop.f32.mrf.mxu1 }
 0x749   :  { %v8469_v24 = vadd.f32 %v8468_v51, %v8467_v63  ;;  %v11532_v30 = vadd.f32 %v3193_v14, %v11405_v58 }
 0x74a   :  { %v8470_v41 = vpop.f32.mrf.mxu1 }
 0x74b   :  { %v3196_v56 = vadd.f32 %v8469_v24, %v11478_v19  ;;  %3251 = vadd.xlane.f32.xlu0 %v11532_v30 }
 0x74c   :  { %v8471_v44 = vpop.f32.mrf.mxu1 }
 0x74d   :  { %v8472_v22 = vadd.f32 %v8471_v44, %v8470_v41  ;;  %v11537_v39 = vadd.f32 %v3196_v56, %v11401_v36 }
 0x74e   :  { %v8473_v27 = vpop.f32.mrf.mxu1 }
 0x74f   :  { %v3201_v2 = vadd.f32 %v8472_v22, %v11478_v19  ;;  %3253 = vadd.xlane.f32.xlu1 %v11537_v39 }
 0x750   :  { %v8474_v16 = vpop.f32.mrf.mxu1 }
 0x751   :  { %v8475_v15 = vadd.f32 %v8474_v16, %v8473_v27  ;;  %v11542_v58 = vadd.f32 %v3201_v2, %v11418_v60 }
 0x752   :  { %v8476_v26 = vpop.f32.mrf.mxu1 }
 0x753   :  { %v3204_v21 = vadd.f32 %v8475_v15, %v11478_v19  ;;  %3255 = vadd.xlane.f32.xlu0 %v11542_v58 }
 0x754   :  { %v8477_v28 = vpop.f32.mrf.mxu1 }
 0x755   :  { %v8478_v61 = vadd.f32 %v8477_v28, %v8476_v26  ;;  %v11547_v36 = vadd.f32 %v3204_v21, %v11414_v9 }
 0x756   :  { %v8479_v37 = vpop.f32.mrf.mxu1 }
 0x757   :  { %v3209_v46 = vadd.f32 %v8478_v61, %v11478_v19  ;;  %3257 = vadd.xlane.f32.xlu1 %v11547_v36 }
 0x758   :  { %v8480_v48 = vpop.f32.mrf.mxu1 }
 0x759   :  { %v8481_v7 = vadd.f32 %v8480_v48, %v8479_v37  ;;  %v11552_v60 = vadd.f32 %v3209_v46, %v11430_v62 }
 0x75b   :  { %v3212_v57 = vadd.f32 %v8481_v7, %v11478_v19  ;;  %3259 = vadd.xlane.f32.xlu0 %v11552_v60 }
 0x75d   :  { %v11557_v12 = vadd.f32 %v3212_v57, %v11427_v6 }
 0x75f   :  { %3261 = vadd.xlane.f32.xlu1 %v11557_v12 }
 0x7ac   :  { %v3232_v9 = vpop.xlane.xlu0 %3231 }
 0x7ad   :  { %v3263_v43 = vmul.f32 0.0078125, %v3232_v9 }
 0x7af   :  { %v11561_v20 = vsub.f32 %v11482_v4, %v3263_v43 }
 0x7b0   :  { %v3234_v23 = vpop.xlane.xlu1 %3233 }
 0x7b1   :  { %v3264_v34 = vmul.f32 0.0078125, %v3234_v23  ;;  %v3295_v62 = vmul.f32 %v11561_v20, %v11561_v20 }
 0x7b3   :  { %v11566_v45 = vsub.f32 %v11487_v52, %v3264_v34  ;;  %3311 = vadd.xlane.f32.xlu0 %v3295_v62 }
 0x7b4   :  { %v3236_v19 = vpop.xlane.xlu0 %3235 }
 0x7b5   :  { %v3265_v32 = vmul.f32 0.0078125, %v3236_v19  ;;  %v3296_v6 = vmul.f32 %v11566_v45, %v11566_v45 }
 0x7b7   :  { %v11571_v40 = vsub.f32 %v11492_v55, %v3265_v32  ;;  %3313 = vadd.xlane.f32.xlu1 %v3296_v6 }
 0x7b8   :  { %v3238_v4 = vpop.xlane.xlu1 %3237 }
 0x7b9   :  { %v3266_v18 = vmul.f32 0.0078125, %v3238_v4  ;;  %v3297_v29 = vmul.f32 %v11571_v40, %v11571_v40 }
 0x7bb   :  { %v11576_v49 = vsub.f32 %v11497_v35, %v3266_v18  ;;  %3315 = vadd.xlane.f32.xlu0 %v3297_v29 }
 0x7bc   :  { %v3240_v52 = vpop.xlane.xlu0 %3239 }
 0x7bd   :  { %v3267_v8 = vmul.f32 0.0078125, %v3240_v52  ;;  %v3298_v54 = vmul.f32 %v11576_v49, %v11576_v49 }
 0x7bf   :  { %v11581_v33 = vsub.f32 %v11502_v53, %v3267_v8  ;;  %3317 = vadd.xlane.f32.xlu1 %v3298_v54 }
 0x7c0   :  { %v3242_v55 = vpop.xlane.xlu1 %3241 }
 0x7c1   :  { %v3268_v11 = vmul.f32 0.0078125, %v3242_v55  ;;  %v3299_v31 = vmul.f32 %v11581_v33, %v11581_v33 }
 0x7c3   :  { %v11586_v1 = vsub.f32 %v11507_v5, %v3268_v11  ;;  %3319 = vadd.xlane.f32.xlu0 %v3299_v31 }
 0x7c4   :  { %v3244_v35 = vpop.xlane.xlu0 %3243 }
 0x7c5   :  { %v3269_v50 = vmul.f32 0.0078125, %v3244_v35  ;;  %v3300_v3 = vmul.f32 %v11586_v1, %v11586_v1 }
 0x7c7   :  { %v11591_v42 = vsub.f32 %v11512_v0, %v3269_v50  ;;  %3321 = vadd.xlane.f32.xlu1 %v3300_v3  ;;  %v11643_v3 = vld [vmem:[%s12911_s17] ss:$0 sm:$0xff] }
 0x7c8   :  { %v3246_v53 = vpop.xlane.xlu1 %3245 }
 0x7c9   :  { %v3270_v63 = vmul.f32 0.0078125, %v3246_v53  ;;  %v3301_v14 = vmul.f32 %v11591_v42, %v11591_v42 }
 0x7cb   :  { %v11596_v51 = vsub.f32 %v11517_v10, %v3270_v63  ;;  %3323 = vadd.xlane.f32.xlu0 %v3301_v14  ;;  %v11649_v14 = vld [vmem:[%s12912_s18] ss:$0 sm:$0xff] }
 0x7cc   :  { %v3248_v5 = vpop.xlane.xlu0 %3247 }
 0x7cd   :  { %v3271_v24 = vmul.f32 0.0078125, %v3248_v5  ;;  %v3302_v41 = vmul.f32 %v11596_v51, %v11596_v51 }
 0x7cf   :  { %v11601_v56 = vsub.f32 %v11522_v47, %v3271_v24  ;;  %3325 = vadd.xlane.f32.xlu1 %v3302_v41 }
 0x7d0   :  { %v3250_v0 = vpop.xlane.xlu1 %3249 }
 0x7d1   :  { %v3272_v44 = vmul.f32 0.0078125, %v3250_v0  ;;  %v3303_v22 = vmul.f32 %v11601_v56, %v11601_v56 }
 0x7d3   :  { %v11606_v27 = vsub.f32 %v11527_v17, %v3272_v44  ;;  %3327 = vadd.xlane.f32.xlu0 %v3303_v22 }
 0x7d4   :  { %v3252_v10 = vpop.xlane.xlu0 %3251 }
 0x7d5   :  { %v3273_v2 = vmul.f32 0.0078125, %v3252_v10  ;;  %v3304_v16 = vmul.f32 %v11606_v27, %v11606_v27 }
 0x7d7   :  { %v11611_v15 = vsub.f32 %v11532_v30, %v3273_v2  ;;  %3329 = vadd.xlane.f32.xlu1 %v3304_v16 }
 0x7d8   :  { %v3254_v47 = vpop.xlane.xlu1 %3253 }
 0x7d9   :  { %v3274_v26 = vmul.f32 0.0078125, %v3254_v47  ;;  %v3305_v21 = vmul.f32 %v11611_v15, %v11611_v15 }
 0x7db   :  { %v11616_v28 = vsub.f32 %v11537_v39, %v3274_v26  ;;  %3331 = vadd.xlane.f32.xlu0 %v3305_v21 }
 0x7dc   :  { %v3256_v17 = vpop.xlane.xlu0 %3255 }
 0x7dd   :  { %v3275_v61 = vmul.f32 0.0078125, %v3256_v17  ;;  %v3306_v37 = vmul.f32 %v11616_v28, %v11616_v28 }
 0x7df   :  { %v11621_v46 = vsub.f32 %v11542_v58, %v3275_v61  ;;  %3333 = vadd.xlane.f32.xlu1 %v3306_v37 }
 0x7e0   :  { %v3258_v30 = vpop.xlane.xlu1 %3257 }
 0x7e1   :  { %v3276_v48 = vmul.f32 0.0078125, %v3258_v30  ;;  %v3307_v7 = vmul.f32 %v11621_v46, %v11621_v46 }
 0x7e3   :  { %v11626_v57 = vsub.f32 %v11547_v36, %v3276_v48  ;;  %3335 = vadd.xlane.f32.xlu0 %v3307_v7 }
 0x7e4   :  { %v3260_v39 = vpop.xlane.xlu0 %3259 }
 0x7e5   :  { %v3277_v9 = vmul.f32 0.0078125, %v3260_v39  ;;  %v3308_v43 = vmul.f32 %v11626_v57, %v11626_v57 }
 0x7e7   :  { %v11631_v23 = vsub.f32 %v11552_v60, %v3277_v9  ;;  %3337 = vadd.xlane.f32.xlu1 %v3308_v43 }
 0x7e8   :  { %v3262_v58 = vpop.xlane.xlu1 %3261 }
 0x7e9   :  { %v3278_v34 = vmul.f32 0.0078125, %v3262_v58  ;;  %v3309_v62 = vmul.f32 %v11631_v23, %v11631_v23 }
 0x7eb   :  { %v11636_v19 = vsub.f32 %v11557_v12, %v3278_v34  ;;  %3339 = vadd.xlane.f32.xlu0 %v3309_v62 }
 0x7ed   :  { %v3310_v36 = vmul.f32 %v11636_v19, %v11636_v19 }
 0x7ef   :  { %3341 = vadd.xlane.f32.xlu1 %v3310_v36 }
 0x83c   :  { %v3312_v32 = vpop.xlane.xlu0 %3311 }
 0x83d   :  { %v3343_v6 = vmul.f32 0.0078125, %v3312_v32 }
 0x83f   :  { %v3359_v4 = vadd.f32 1e-05, %v3343_v6 }
 0x840   :  { %v3314_v18 = vpop.xlane.xlu1 %3313 }
 0x841   :  { %9176 = vrsqrt.f32 %v3359_v4  ;;  %v3344_v60 = vmul.f32 0.0078125, %v3314_v18 }
 0x843   :  { %v3360_v29 = vadd.f32 1e-05, %v3344_v60 }
 0x844   :  { %v3316_v52 = vpop.xlane.xlu0 %3315 }
 0x845   :  { %9178 = vrsqrt.f32 %v3360_v29  ;;  %v3345_v8 = vmul.f32 0.0078125, %v3316_v52 }
 0x847   :  { %v3361_v54 = vadd.f32 1e-05, %v3345_v8 }
 0x848   :  { %v3318_v55 = vpop.xlane.xlu1 %3317 }
 0x849   :  { %9180 = vrsqrt.f32 %v3361_v54  ;;  %v3346_v12 = vmul.f32 0.0078125, %v3318_v55 }
 0x84b   :  { %v3362_v11 = vadd.f32 1e-05, %v3346_v12 }
 0x84c   :  { %v3320_v31 = vpop.xlane.xlu0 %3319 }
 0x84d   :  { %9182 = vrsqrt.f32 %v3362_v11  ;;  %v3347_v35 = vmul.f32 0.0078125, %v3320_v31 }
 0x84e   :  { %v9177_v50 = vpop.eup %9176 }
 0x84f   :  { %v3391_v53 = vmul.f32 %v9177_v50, %v11561_v20  ;;  %v3363_v63 = vadd.f32 1e-05, %v3347_v35 }
 0x850   :  { %v3322_v5 = vpop.xlane.xlu1 %3321 }
 0x851   :  { %v3413_v24 = vmul.f32 %v11643_v3, %v3391_v53  ;;  %9184 = vrsqrt.f32 %v3363_v63  ;;  %v3348_v41 = vmul.f32 0.0078125, %v3322_v5 }
 0x852   :  { %v9179_v0 = vpop.eup %9178 }
 0x853   :  { %v11653_v44 = vadd.f32 %v11649_v14, %v3413_v24  ;;  %v3392_v22 = vmul.f32 %v9179_v0, %v11566_v45  ;;  %v3364_v10 = vadd.f32 1e-05, %v3348_v41 }
 0x854   :  { %v3324_v2 = vpop.xlane.xlu0 %3323 }
 0x855   :  { %v3414_v20 = vmul.f32 %v11643_v3, %v3392_v22  ;;  %9186 = vrsqrt.f32 %v3364_v10  ;;  %v3349_v16 = vmul.f32 0.0078125, %v3324_v2 }
 0x856   :  { %v9181_v47 = vpop.eup %9180 }
 0x857   :  { %v11658_v26 = vadd.f32 %v11649_v14, %v3414_v20  ;;  %v3393_v21 = vmul.f32 %v9181_v47, %v11571_v40  ;;  %v3365_v17 = vadd.f32 1e-05, %v3349_v16 }
 0x858   :  { %v3326_v61 = vpop.xlane.xlu1 %3325 }
 0x859   :  { %v3415_v37 = vmul.f32 %v11643_v3, %v3393_v21  ;;  %9188 = vrsqrt.f32 %v3365_v17  ;;  %v3350_v30 = vmul.f32 0.0078125, %v3326_v61 }
 0x85a   :  { %v9183_v48 = vpop.eup %9182 }
 0x85b   :  { %v11663_v45 = vadd.f32 %v11649_v14, %v3415_v37  ;;  %v3394_v7 = vmul.f32 %v9183_v48, %v11576_v49  ;;  %v3366_v39 = vadd.f32 1e-05, %v3350_v30 }
 0x85c   :  { %v3328_v9 = vpop.xlane.xlu0 %3327 }
 0x85d   :  { %v3416_v43 = vmul.f32 %v11643_v3, %v3394_v7  ;;  %9190 = vrsqrt.f32 %v3366_v39  ;;  %v3351_v58 = vmul.f32 0.0078125, %v3328_v9 }
 0x85e   :  { %v9185_v34 = vpop.eup %9184 }
 0x85f   :  { %v11668_v40 = vadd.f32 %v11649_v14, %v3416_v43  ;;  %v3395_v62 = vmul.f32 %v9185_v34, %v11581_v33  ;;  %v3367_v36 = vadd.f32 1e-05, %v3351_v58 }
 0x860   :  { %v3330_v32 = vpop.xlane.xlu1 %3329 }
 0x861   :  { %v3417_v6 = vmul.f32 %v11643_v3, %v3395_v62  ;;  %9192 = vrsqrt.f32 %v3367_v36  ;;  %v3352_v4 = vmul.f32 0.0078125, %v3330_v32 }
 0x862   :  { %v9187_v18 = vpop.eup %9186 }
 0x863   :  { %v11673_v49 = vadd.f32 %v11649_v14, %v3417_v6  ;;  %v3396_v60 = vmul.f32 %v9187_v18, %v11586_v1  ;;  %v3368_v29 = vadd.f32 1e-05, %v3352_v4 }
 0x864   :  { %v3332_v52 = vpop.xlane.xlu0 %3331 }
 0x865   :  { %v3418_v8 = vmul.f32 %v11643_v3, %v3396_v60  ;;  %9194 = vrsqrt.f32 %v3368_v29  ;;  %v3353_v54 = vmul.f32 0.0078125, %v3332_v52 }
 0x866   :  { %v9189_v55 = vpop.eup %9188 }
 0x867   :  { %v11678_v33 = vadd.f32 %v11649_v14, %v3418_v8  ;;  %v3397_v12 = vmul.f32 %v9189_v55, %v11591_v42  ;;  %v3369_v11 = vadd.f32 1e-05, %v3353_v54 }
 0x868   :  { %v3334_v31 = vpop.xlane.xlu1 %3333 }
 0x869   :  { %v3419_v35 = vmul.f32 %v11643_v3, %v3397_v12  ;;  %9196 = vrsqrt.f32 %v3369_v11  ;;  %v3354_v50 = vmul.f32 0.0078125, %v3334_v31 }
 0x86a   :  { %v9191_v53 = vpop.eup %9190 }
 0x86b   :  { %v11683_v1 = vadd.f32 %v11649_v14, %v3419_v35  ;;  %v3398_v63 = vmul.f32 %v9191_v53, %v11596_v51  ;;  %v3370_v5 = vadd.f32 1e-05, %v3354_v50 }
 0x86c   :  { %v3336_v24 = vpop.xlane.xlu0 %3335 }
 0x86d   :  { %v3420_v41 = vmul.f32 %v11643_v3, %v3398_v63  ;;  %9198 = vrsqrt.f32 %v3370_v5  ;;  %v3355_v0 = vmul.f32 0.0078125, %v3336_v24 }
 0x86e   :  { %v9193_v22 = vpop.eup %9192 }
 0x86f   :  { %v11688_v42 = vadd.f32 %v11649_v14, %v3420_v41  ;;  %v3399_v10 = vmul.f32 %v9193_v22, %v11601_v56  ;;  %v3371_v2 = vadd.f32 1e-05, %v3355_v0 }
 0x870   :  { %v3338_v20 = vpop.xlane.xlu1 %3337 }
 0x871   :  { %v3421_v16 = vmul.f32 %v11643_v3, %v3399_v10  ;;  %9200 = vrsqrt.f32 %v3371_v2  ;;  %v3356_v47 = vmul.f32 0.0078125, %v3338_v20 }
 0x872   :  { %v9195_v21 = vpop.eup %9194 }
 0x873   :  { %v11693_v51 = vadd.f32 %v11649_v14, %v3421_v16  ;;  %v3400_v17 = vmul.f32 %v9195_v21, %v11606_v27  ;;  %v3372_v61 = vadd.f32 1e-05, %v3356_v47 }
 0x874   :  { %v3340_v37 = vpop.xlane.xlu0 %3339 }
 0x875   :  { %v3422_v30 = vmul.f32 %v11643_v3, %v3400_v17  ;;  %9202 = vrsqrt.f32 %v3372_v61  ;;  %v3357_v48 = vmul.f32 0.0078125, %v3340_v37 }
 0x876   :  { %v9197_v7 = vpop.eup %9196 }
 0x877   :  { %v11698_v56 = vadd.f32 %v11649_v14, %v3422_v30  ;;  %v3401_v39 = vmul.f32 %v9197_v7, %v11611_v15  ;;  %v3373_v9 = vadd.f32 1e-05, %v3357_v48 }
 0x878   :  { %v3342_v43 = vpop.xlane.xlu1 %3341 }
 0x879   :  { %v3423_v58 = vmul.f32 %v11643_v3, %v3401_v39  ;;  %9204 = vrsqrt.f32 %v3373_v9  ;;  %v3358_v34 = vmul.f32 0.0078125, %v3342_v43 }
 0x87a   :  { %v9199_v62 = vpop.eup %9198 }
 0x87b   :  { %v11703_v27 = vadd.f32 %v11649_v14, %v3423_v58  ;;  %v3402_v36 = vmul.f32 %v9199_v62, %v11616_v28  ;;  %v3374_v32 = vadd.f32 1e-05, %v3358_v34 }
 0x87d   :  { %v3424_v6 = vmul.f32 %v11643_v3, %v3402_v36  ;;  %9206 = vrsqrt.f32 %v3374_v32 }
 0x87e   :  { %v9201_v4 = vpop.eup %9200 }
 0x87f   :  { %v11708_v18 = vadd.f32 %v11649_v14, %v3424_v6  ;;  %v3403_v15 = vmul.f32 %v9201_v4, %v11621_v46 }
 0x881   :  { %v3425_v60 = vmul.f32 %v11643_v3, %v3403_v15 }
 0x882   :  { %v9203_v29 = vpop.eup %9202 }
 0x883   :  { %v11713_v52 = vadd.f32 %v11649_v14, %v3425_v60  ;;  %v3404_v8 = vmul.f32 %v9203_v29, %v11626_v57 }
 0x885   :  { %v3426_v28 = vmul.f32 %v11643_v3, %v3404_v8 }
 0x886   :  { %v9205_v54 = vpop.eup %9204 }
 0x887   :  { %v11718_v55 = vadd.f32 %v11649_v14, %v3426_v28  ;;  %v3405_v12 = vmul.f32 %v9205_v54, %v11631_v23 }
 0x889   :  { %v3427_v11 = vmul.f32 %v11643_v3, %v3405_v12 }
 0x88a   :  { %v9207_v31 = vpop.eup %9206 }
 0x88b   :  { %v11723_v46 = vadd.f32 %v11649_v14, %v3427_v11  ;;  %v3406_v35 = vmul.f32 %v9207_v31, %v11636_v19 }
 0x88d   :  { %v3428_v50 = vmul.f32 %v11643_v3, %v3406_v35 }
 0x88f   :  { %v11728_v57 = vadd.f32 %v11649_v14, %v3428_v50 }
 0x890   :  { %9572 = dma.done.wait [#allocation6 + $0x1], 3072 }
 0x891   :  { %9573 = vsyncadd [#allocation6 + $0x1], 4294964224 }
 0x892   :  { %9574 = dma.done.wait [#allocation6 + $0x5], 1024 }
 0x893   :  { %9575 = vsyncadd [#allocation6 + $0x5], 4294966272 }
 0x894   :  { %9576 = dma.done.wait [#allocation6 + $0x9], 2048 }
 0x895   :  { %9577 = vsyncadd [#allocation6 + $0x9], 4294965248 }
 0x896   :  { %9578 = dma.done.wait [#allocation6 + $0xd], 2048 }
 0x897   :  { %9579 = vsyncadd [#allocation6 + $0xd], 4294965248  ;;  %3755 = vmatprep.mubr.bf16.mxu0 %v13119_v59  ;;  %v3571_v23 = vpack.c.bf16 %v11658_v26, %v11653_v44  ;;  %9209 = vset.pattern.permute.xlu1 %v13119_v59  ;;  %v9210_v19 = vld [vmem:[#allocation2 + $0x16c] ss:$12 sps:$4 sm:$0xff]   ;;  %v9212_v3 = vld [vmem:[#allocation2 + $0x168] ss:$12 sps:$4 sm:$0xff]   ;;  %v3572_v48 = vpack.c.bf16 %v11668_v40, %v11663_v45  ;;  %v3573_v7 = vpack.c.bf16 %v11678_v33, %v11673_v49 }
 0x898   :  { %9208 = vset.pattern.permute.xlu0 %v13119_v59  ;;  %3723 = vmatprep.subr.bf16.mxu0 %v9210_v19  ;;  %v9213_v14 = vld [vmem:[#allocation2 + $0x154] ss:$12 sps:$4 sm:$0xff]   ;;  %v9215_v53 = vld [vmem:[#allocation2 + $0x150] ss:$12 sps:$4 sm:$0xff]   ;;  %v9218_v5 = vld [vmem:[#allocation2 + $0x138] ss:$12 sps:$4 sm:$0xff]   ;;  %v3574_v39 = vpack.c.bf16 %v11688_v42, %v11683_v1  ;;  %v3575_v9 = vpack.c.bf16 %v11698_v56, %v11693_v51  ;;  %v3576_v43 = vpack.c.bf16 %v11708_v18, %v11703_v27 }
 0x899   :  { %8848 = vmatprep.mubr.bf16.mxu1 %v3571_v23  ;;  %3724 = vmatpush1.bf16.msra.mxu0 %v9212_v3  ;;  %v9216_v63 = vld [vmem:[#allocation2 + $0x13c] ss:$12 sps:$4 sm:$0xff]   ;;  %v9219_v24 = vld [vmem:[#allocation2 + $0x124] ss:$12 sps:$4 sm:$0xff]   ;;  %v9221_v41 = vld [vmem:[#allocation2 + $0x120] ss:$12 sps:$4 sm:$0xff]   ;;  %v3577_v58 = vpack.c.bf16 %v11718_v55, %v11713_v52  ;;  %v3578_v34 = vpack.c.bf16 %v11728_v57, %v11723_v46 }
 0x89a   :  { %3725 = vmatprep.subr.bf16.mxu0 %v9213_v14  ;;  %v9222_v0 = vld [vmem:[#allocation2 + $0x10c] ss:$12 sps:$4 sm:$0xff]   ;;  %v9234_v22 = vld [vmem:[#allocation2 + $0x170] ss:$12 sps:$4 sm:$0xff]   ;;  %v9224_v2 = vld [vmem:[#allocation2 + $0x108] ss:$12 sps:$4 sm:$0xff]  }
 0x89b   :  { %v9235_v10 = vld [vmem:[#allocation2 + $0x158] ss:$12 sps:$4 sm:$0xff]   ;;  %8832 = vmatprep.subr.bf16.mxu1 %v9234_v22  ;;  %v9225_v20 = vld [vmem:[#allocation2 + $0xf4] ss:$12 sps:$4 sm:$0xff]   ;;  %v9227_v47 = vld [vmem:[#allocation2 + $0xf0] ss:$12 sps:$4 sm:$0xff]  }
 0x89c   :  { %8833 = vmatpush3.bf16.msra.mxu1 %v9234_v22  ;;  %v9236_v16 = vld [vmem:[#allocation2 + $0x140] ss:$12 sps:$4 sm:$0xff]   ;;  %v9237_v21 = vld [vmem:[#allocation2 + $0x128] ss:$12 sps:$4 sm:$0xff]   ;;  %v9230_v61 = vld [vmem:[#allocation2 + $0xd8] ss:$12 sps:$4 sm:$0xff]  }
 0x89d   :  { %3726 = vmatpush1.bf16.msra.mxu0 %v9215_v53  ;;  %8834 = vmatprep.subr.bf16.mxu1 %v9235_v10  ;;  %v9228_v17 = vld [vmem:[#allocation2 + $0xdc] ss:$12 sps:$4 sm:$0xff]   ;;  %v9231_v37 = vld [vmem:[#allocation2 + $0xc4] ss:$12 sps:$4 sm:$0xff]   ;;  %v9233_v30 = vld [vmem:[#allocation2 + $0xc0] ss:$12 sps:$4 sm:$0xff]  }
 0x89e   :  { %3727 = vmatprep.subr.bf16.mxu0 %v9216_v63  ;;  %v9238_v62 = vld [vmem:[#allocation2 + $0x110] ss:$12 sps:$4 sm:$0xff]   ;;  %v9239_v36 = vld [vmem:[#allocation2 + $0xf8] ss:$12 sps:$4 sm:$0xff]   ;;  %v9240_v32 = vld [vmem:[#allocation2 + $0xe0] ss:$12 sps:$4 sm:$0xff]  }
 0x89f   :  { %v9241_v6 = vld [vmem:[#allocation2 + $0xc8] ss:$12 sps:$4 sm:$0xff]   ;;  %v13156_v4 = vld [vmem:[#allocation110_spill] sm:$0xff]  ;;  %v13158_v60 = vld [vmem:[#allocation112_spill] sm:$0xff]  ;;  %s13193_s7 = sld [smem:[#allocation127_spill]] }
 0x8a0   :  { %8835 = vmatpush3.bf16.msra.mxu1 %v9235_v10  ;;  %v13157_v15 = vld [vmem:[#allocation111_spill] sm:$0xff]  ;;  %v13159_v29 = vld [vmem:[#allocation113_spill] sm:$0xff]  ;;  %v13160_v8 = vld [vmem:[#allocation114_spill] sm:$0xff] }
 0x8a1   :  { %3728 = vmatpush1.bf16.msra.mxu0 %v9218_v5  ;;  %8836 = vmatprep.subr.bf16.mxu1 %v9236_v16  ;;  %v13161_v28 = vld [vmem:[#allocation115_spill] sm:$0xff]  ;;  %v13162_v54 = vld [vmem:[#allocation116_spill] sm:$0xff]  ;;  %v13163_v12 = vld [vmem:[#allocation117_spill] sm:$0xff] }
 0x8a2   :  { %3729 = vmatprep.subr.bf16.mxu0 %v9219_v24  ;;  %v9242_v11 = vld [vmem:[#allocation3 + $0x78] sm:$0xff]   ;;  %v9243_v31 = vld [vmem:[#allocation3 + $0x70] sm:$0xff]   ;;  %v9244_v35 = vld [vmem:[#allocation3 + $0x68] sm:$0xff]  }
 0x8a3   :  { %v9245_v50 = vld [vmem:[#allocation3 + $0x60] sm:$0xff]  }
 0x8a4   :  { %8837 = vmatpush3.bf16.msra.mxu1 %v9236_v16 }
 0x8a5   :  { %3730 = vmatpush1.bf16.msra.mxu0 %v9221_v41  ;;  %8838 = vmatprep.subr.bf16.mxu1 %v9237_v21 }
 0x8a6   :  { %3731 = vmatprep.subr.bf16.mxu0 %v9222_v0 }
 0x8a8   :  { %8839 = vmatpush3.bf16.msra.mxu1 %v9237_v21 }
 0x8a9   :  { %3732 = vmatpush1.bf16.msra.mxu0 %v9224_v2  ;;  %8840 = vmatprep.subr.bf16.mxu1 %v9238_v62 }
 0x8aa   :  { %3733 = vmatprep.subr.bf16.mxu0 %v9225_v20 }
 0x8ac   :  { %8841 = vmatpush3.bf16.msra.mxu1 %v9238_v62 }
 0x8ad   :  { %3734 = vmatpush1.bf16.msra.mxu0 %v9227_v47  ;;  %8842 = vmatprep.subr.bf16.mxu1 %v9239_v36 }
 0x8ae   :  { %3735 = vmatprep.subr.bf16.mxu0 %v9228_v17  ;;  %v11779_v17 = vld [vmem:[%s12905_s11 + $0x3] sm:$0x7] }
 0x8b0   :  { %8843 = vmatpush3.bf16.msra.mxu1 %v9239_v36 }
 0x8b1   :  { %3736 = vmatpush1.bf16.msra.mxu0 %v9230_v61  ;;  %8844 = vmatprep.subr.bf16.mxu1 %v9240_v32 }
 0x8b2   :  { %3737 = vmatprep.subr.bf16.mxu0 %v9231_v37  ;;  %v3587_v37 = vrot.slane %v11779_v17, %v13154_v38 }
 0x8b4   :  { %8845 = vmatpush3.bf16.msra.mxu1 %v9240_v32 }
 0x8b5   :  { %3738 = vmatpush1.bf16.msra.mxu0 %v9233_v30  ;;  %8846 = vmatprep.subr.bf16.mxu1 %v9241_v6 }
 0x8b6   :  { %8896 = vmatprep.subr.bf16.mxu0 %v9242_v11 }
 0x8b8   :  { %3756 = vmatmul.mubr.bf16.vlgmr.msra.gmra.mxu0 %v3571_v23  ;;  %8847 = vmatpush3.bf16.msra.mxu1 %v9241_v6 }
 0x8b9   :  { %3765 = vmatprep.mubr.bf16.mxu0 %v13119_v59  ;;  %8864 = vmatprep.subr.bf16.mxu1 %v13156_v4 }
 0x8ba   :  { %8897 = vmatpush3.bf16.msra.mxu0 %v9242_v11 }
 0x8bb   :  { %8849 = vmatmul.mubr.bf16.vlgmr.msra.gmra.mxu1 %v3572_v48  ;;  %8898 = vmatprep.subr.bf16.mxu0 %v9243_v31 }
 0x8bc   :  { %8865 = vmatpush3.bf16.msra.mxu1 %v13156_v4  ;;  %8852 = vmatprep.mubr.bf16.mxu1 %v3573_v7 }
 0x8bd   :  { %8866 = vmatprep.subr.bf16.mxu1 %v13157_v15 }
 0x8be   :  { %8899 = vmatpush3.bf16.msra.mxu0 %v9243_v31 }
 0x8bf   :  { %8900 = vmatprep.subr.bf16.mxu0 %v9244_v35 }
 0x8c0   :  { %3766 = vmatmul.mubr.bf16.gmra.mxu0 %v3572_v48  ;;  %8867 = vmatpush3.bf16.msra.mxu1 %v13157_v15  ;;  %v11785_v48 = vrot.slane %v11779_v17, %v13155_v25 }
 0x8c1   :  { %3775 = vmatprep.mubr.bf16.mxu0 %v13119_v59  ;;  %8868 = vmatprep.subr.bf16.mxu1 %v13158_v60 }
 0x8c2   :  { %8901 = vmatpush3.bf16.msra.mxu0 %v9244_v35 }
 0x8c3   :  { %8853 = vmatmul.mubr.bf16.gmra.mxu1 %v3574_v39  ;;  %8902 = vmatprep.subr.bf16.mxu0 %v9245_v50 }
 0x8c4   :  { %8869 = vmatpush3.bf16.msra.mxu1 %v13158_v60  ;;  %8856 = vmatprep.mubr.bf16.mxu1 %v3575_v9 }
 0x8c5   :  { %8870 = vmatprep.subr.bf16.mxu1 %v13159_v29 }
 0x8c6   :  { %8903 = vmatpush3.bf16.msra.mxu0 %v9245_v50 }
 0x8c8   :  { %3776 = vmatmul.mubr.bf16.gmra.mxu0 %v3573_v7  ;;  %8871 = vmatpush3.bf16.msra.mxu1 %v13159_v29 }
 0x8c9   :  { %3785 = vmatprep.mubr.bf16.mxu0 %v13119_v59  ;;  %8872 = vmatprep.subr.bf16.mxu1 %v13160_v8 }
 0x8cb   :  { %8857 = vmatmul.mubr.bf16.gmra.mxu1 %v3576_v43 }
 0x8cc   :  { %8873 = vmatpush3.bf16.msra.mxu1 %v13160_v8  ;;  %8860 = vmatprep.mubr.bf16.mxu1 %v3577_v58 }
 0x8cd   :  { %8874 = vmatprep.subr.bf16.mxu1 %v13161_v28 }
 0x8d0   :  { %3786 = vmatmul.mubr.bf16.gmra.mxu0 %v3574_v39  ;;  %8875 = vmatpush3.bf16.msra.mxu1 %v13161_v28 }
 0x8d1   :  { %3795 = vmatprep.mubr.bf16.mxu0 %v13119_v59  ;;  %8876 = vmatprep.subr.bf16.mxu1 %v13162_v54 }
 0x8d3   :  { %8861 = vmatmul.mubr.bf16.gmra.mxu1 %v3578_v34 }
 0x8d4   :  { %8877 = vmatpush3.bf16.msra.mxu1 %v13162_v54 }
 0x8d5   :  { %8878 = vmatprep.subr.bf16.mxu1 %v13163_v12 }
 0x8d8   :  { %3796 = vmatmul.mubr.bf16.gmra.mxu0 %v3575_v9  ;;  %8879 = vmatpush3.bf16.msra.mxu1 %v13163_v12 }
 0x8d9   :  { %3805 = vmatprep.mubr.bf16.mxu0 %v13119_v59 }
 0x8e0   :  { %3806 = vmatmul.mubr.bf16.gmra.mxu0 %v3576_v43 }
 0x8e1   :  { %3815 = vmatprep.mubr.bf16.mxu0 %v13119_v59 }
 0x8e8   :  { %3816 = vmatmul.mubr.bf16.gmra.mxu0 %v3577_v58 }
 0x8e9   :  { %3825 = vmatprep.mubr.bf16.mxu0 %v13119_v59 }
 0x8f0   :  { %3826 = vmatmul.mubr.bf16.gmra.mxu0 %v3578_v34 }
 0x978   :  { %v3757_v23 = vpop.f32.mrf.mxu0 }
 0x979   :  { %v3758_v36 = vadd.f32 %v3757_v23, %v11785_v48 }
 0x97a   :  { %v3759_v19 = vpop.f32.mrf.mxu0 }
 0x97b   :  { %v3760_v9 = vadd.f32 %v3759_v19, %v3587_v37 }
 0x97c   :  { %v3761_v3 = vpop.f32.mrf.mxu0 }
 0x97d   :  { %v3762_v43 = vadd.f32 %v3761_v3, %v11785_v48 }
 0x97e   :  { %v3763_v14 = vpop.f32.mrf.mxu0 }
 0x97f   :  { %v3764_v7 = vadd.f32 %v3763_v14, %v3587_v37  ;;  %v3933_v31 = vpack.c.bf16 %v3762_v43, %v3758_v36 }
 0x980   :  { %v3767_v53 = vpop.f32.mrf.mxu0 }
 0x981   :  { %v3934_v32 = vpack.c.bf16 %v3764_v7, %v3760_v9 }
 0x982   :  { %v3769_v63 = vpop.f32.mrf.mxu0 }
 0x983   :  { %v3770_v8 = vadd.f32 %v3769_v63, %v3587_v37 }
 0x984   :  { %v3771_v5 = vpop.f32.mrf.mxu0 }
 0x985   :  { %v3772_v14 = vadd.f32 %v3771_v5, %v11785_v48 }
 0x986   :  { %v3773_v24 = vpop.f32.mrf.mxu0 }
 0x987   :  { %v3774_v12 = vadd.f32 %v3773_v24, %v3587_v37 }
 0x988   :  { %v3777_v41 = vpop.f32.mrf.mxu0 }
 0x98a   :  { %v3779_v0 = vpop.f32.mrf.mxu0 }
 0x98c   :  { %v3781_v22 = vpop.f32.mrf.mxu0 }
 0x98d   :  { %v3782_v63 = vadd.f32 %v3781_v22, %v11785_v48 }
 0x98e   :  { %v3783_v10 = vpop.f32.mrf.mxu0 }
 0x990   :  { %v11772_v2 = vpop.f32.mrf.mxu0 }
 0x992   :  { %v3789_v20 = vpop.f32.mrf.mxu0 }
 0x994   :  { %v3791_v16 = vpop.f32.mrf.mxu0 }
 0x996   :  { %v3793_v47 = vpop.f32.mrf.mxu0 }
 0x998   :  { %v11774_v21 = vpop.f32.mrf.mxu0 }
 0x99a   :  { %v3799_v61 = vpop.f32.mrf.mxu0 }
 0x99b   :  { %v3800_v58 = vadd.f32 %v3799_v61, %v3587_v37  ;;  %v3768_v61 = vadd.f32 %v3767_v53, %v11785_v48 }
 0x99c   :  { %v3801_v30 = vpop.f32.mrf.mxu0 }
 0x99d   :  { %v3936_v9 = vpack.c.bf16 %v3772_v14, %v3768_v61  ;;  %v3794_v14 = vadd.f32 %v3793_v47, %v3587_v37  ;;  %v3790_v61 = vadd.f32 %v3789_v20, %v3587_v37 }
 0x99e   :  { %v3803_v39 = vpop.f32.mrf.mxu0 }
 0x99f   :  { %v3804_v34 = vadd.f32 %v3803_v39, %v3587_v37  ;;  %v3937_v39 = vpack.c.bf16 %v3774_v12, %v3770_v8 }
 0x9a0   :  { %v3807_v62 = vpop.f32.mrf.mxu0 }
 0x9a1   :  { %v3946_v6 = vpack.c.bf16 %v3804_v34, %v3800_v58  ;;  %v3784_v34 = vadd.f32 %v3783_v10, %v3587_v37 }
 0x9a2   :  { %v3809_v11 = vpop.f32.mrf.mxu0 }
 0x9a3   :  { %v3957_v35 = vsub.bf16 %v3934_v32, %v3946_v6  ;;  %v3810_v19 = vadd.f32 %v3809_v11, %v3587_v37  ;;  %v3780_v32 = vadd.f32 %v3779_v0, %v3587_v37  ;;  %v3792_v0 = vadd.f32 %v3791_v16, %v11785_v48 }
 0x9a4   :  { %v3811_v50 = vpop.f32.mrf.mxu0 }
 0x9a5   :  { %v3961_v54 = vmul.bf16 %v3957_v35, %v3933_v31  ;;  %v3940_v11 = vpack.c.bf16 %v3784_v34, %v3780_v32  ;;  %v3798_v34 = vadd.f32 %v11774_v21, %v11785_v48  ;;  %v3812_v16 = vadd.f32 %v3811_v50, %v11785_v48 }
 0x9a6   :  { %v3813_v28 = vpop.f32.mrf.mxu0 }
 0x9a7   :  { %v3814_v29 = vadd.f32 %v3813_v28, %v3587_v37  ;;  %8880 = vmatprep.mubr.bf16.mxu1 %v3961_v54  ;;  %v3778_v54 = vadd.f32 %v3777_v41, %v11785_v48  ;;  %v3788_v41 = vadd.f32 %v11772_v2, %v11785_v48 }
 0x9a8   :  { %v3817_v3 = vpop.f32.mrf.mxu0 }
 0x9a9   :  { %v3949_v23 = vpack.c.bf16 %v3814_v29, %v3810_v19  ;;  %v3939_v29 = vpack.c.bf16 %v3782_v63, %v3778_v54  ;;  %v3818_v2 = vadd.f32 %v3817_v3, %v11785_v48  ;;  %v9248_v3 = vld [vmem:[#allocation3 + $0x48] sm:$0xff]  }
 0x9aa   :  { %v3819_v7 = vpop.f32.mrf.mxu0 }
 0x9ab   :  { %v3958_v58 = vsub.bf16 %v3937_v39, %v3949_v23  ;;  %v3820_v6 = vadd.f32 %v3819_v7, %v3587_v37  ;;  %v3802_v23 = vadd.f32 %v3801_v30, %v11785_v48  ;;  %v3943_v7 = vpack.c.bf16 %v3794_v14, %v3790_v61 }
 0x9ac   :  { %v3821_v43 = vpop.f32.mrf.mxu0  ;;  %v3808_v30 = vadd.f32 %v3807_v62, %v11785_v48  ;;  %v9247_v62 = vld [vmem:[#allocation3 + $0x50] sm:$0xff]  }
 0x9ad   :  { %v3962_v36 = vmul.bf16 %v3958_v58, %v3936_v9 }
 0x9ae   :  { %v3823_v24 = vpop.f32.mrf.mxu0  ;;  %v3948_v63 = vpack.c.bf16 %v3812_v16, %v3808_v30  ;;  %v11818_v16 = vrot.slane %v11779_v17, %v11016_v13 }
 0x9af   :  { %v3824_v5 = vadd.f32 %v3823_v24, %v3587_v37  ;;  %8881 = vmatmul.mubr.bf16.vlgmr.msra.gmra.mxu1 %v3962_v36  ;;  %v3942_v36 = vpack.c.bf16 %v3792_v0, %v3788_v41  ;;  %v3945_v24 = vpack.c.bf16 %v3802_v23, %v3798_v34 }
 0x9b0   :  { %v3827_v28 = vpop.f32.mrf.mxu0 }
 0x9b1   :  { %v3952_v53 = vpack.c.bf16 %v3824_v5, %v3820_v6  ;;  %v3965_v20 = vmul.bf16 %v3957_v35, %v3945_v24  ;;  %v3966_v5 = vmul.bf16 %v3958_v58, %v3948_v63  ;;  %v3828_v35 = vadd.f32 %v3827_v28, %v11785_v48  ;;  %v9249_v58 = vld [vmem:[#allocation3 + $0x40] sm:$0xff]  }
 0x9b2   :  { %v3829_v8 = vpop.f32.mrf.mxu0 }
 0x9b3   :  { %v3959_v12 = vsub.bf16 %v3940_v11, %v3952_v53  ;;  %v3830_v39 = vadd.f32 %v3829_v8, %v3587_v37  ;;  %v8850_v53 = vpop.f32.mrf.mxu1 }
 0x9b4   :  { %v3831_v31 = vpop.f32.mrf.mxu0 }
 0x9b5   :  { %v3963_v19 = vmul.bf16 %v3959_v12, %v3939_v29  ;;  %v3832_v21 = vadd.f32 %v3831_v31, %v11785_v48  ;;  %v3870_v8 = vpop.f32.mrf.mxu1 }
 0x9b6   :  { %v3833_v10 = vpop.f32.mrf.mxu0 }
 0x9b7   :  { %v3834_v22 = vadd.f32 %v3833_v10, %v3587_v37  ;;  %8884 = vmatprep.mubr.bf16.mxu1 %v3963_v19  ;;  %v3822_v37 = vadd.f32 %v3821_v43, %v11785_v48  ;;  %v3954_v11 = vpack.c.bf16 %v3832_v21, %v3828_v35  ;;  %v9246_v43 = vld [vmem:[#allocation3 + $0x58] sm:$0xff]   ;;  %v8851_v48 = vpop.f32.mrf.mxu1 }
 0x9b8   :  { %8904 = vmatprep.subr.bf16.mxu0 %v9246_v43  ;;  %v3882_v30 = vadd.f32 %v8851_v48, %v11818_v16 }
 0x9b9   :  { %v3955_v9 = vpack.c.bf16 %v3834_v22, %v3830_v39  ;;  %v3951_v6 = vpack.c.bf16 %v3822_v37, %v3818_v2  ;;  %8905 = vmatpush3.bf16.msra.mxu0 %v9246_v43  ;;  %v3873_v28 = vpop.f32.mrf.mxu1  ;;  %v3879_v37 = vadd.f32 %v8850_v53, %v11818_v16  ;;  %v3871_v2 = vadd.f32 %v3870_v8, %v11818_v16 }
 0x9ba   :  { %8906 = vmatprep.subr.bf16.mxu0 %v9247_v62  ;;  %v3874_v63 = vadd.f32 %v3873_v28, %v11818_v16 }
 0x9bb   :  { %v3960_v47 = vsub.bf16 %v3943_v7, %v3955_v9  ;;  %v3967_v54 = vmul.bf16 %v3959_v12, %v3951_v6  ;;  %v8854_v29 = vpop.f32.mrf.mxu1 }
 0x9bc   :  { %v11828_v43 = vpack.c.bf16 %v3874_v63, %v3871_v2 }
 0x9bd   :  { %v3964_v32 = vmul.bf16 %v3960_v47, %v3942_v36  ;;  %v3968_v50 = vmul.bf16 %v3960_v47, %v3954_v11  ;;  %8907 = vmatpush3.bf16.msra.mxu0 %v9247_v62  ;;  %v3886_v12 = vpop.f32.mrf.mxu1 }
 0x9be   :  { %8908 = vmatprep.subr.bf16.mxu0 %v9248_v3  ;;  %v11843_v2 = vadd.f32 %v3886_v12, %v11818_v16 }
 0x9bf   :  { %8885 = vmatmul.mubr.bf16.gmra.mxu1 %v3964_v32  ;;  %v8855_v31 = vpop.f32.mrf.mxu1 }
 0x9c0   :  { %8888 = vmatprep.mubr.bf16.mxu1 %v3965_v20 }
 0x9c1   :  { %8909 = vmatpush3.bf16.msra.mxu0 %v9248_v3  ;;  %v11806_v14 = vpop.f32.mrf.mxu1 }
 0x9c2   :  { %8910 = vmatprep.subr.bf16.mxu0 %v9249_v58 }
 0x9c3   :  { %v8858_v19 = vpop.f32.mrf.mxu1 }
 0x9c4   :  { %v3911_v21 = vadd.f32 %v8858_v19, %v11818_v16 }
 0x9c5   :  { %8911 = vmatpush3.bf16.msra.mxu0 %v9249_v58  ;;  %v3902_v10 = vpop.f32.mrf.mxu1 }
 0x9c6   :  { %v3903_v62 = vadd.f32 %v3902_v10, %v11818_v16 }
 0x9c7   :  { %8889 = vmatmul.mubr.bf16.gmra.mxu1 %v3966_v5  ;;  %v8859_v61 = vpop.f32.mrf.mxu1  ;;  %v11824_v5 = vpack.c.bf16 %v3882_v30, %v3879_v37  ;;  %v13029_v30 = vunpack.c.h.bf16 %v11828_v43 }
 0x9c8   :  { %8892 = vmatprep.mubr.bf16.mxu1 %v3967_v54  ;;  %v3914_v35 = vadd.f32 %v8859_v61, %v11818_v16  ;;  %v3895_v61 = vadd.f32 %v8854_v29, %v11818_v16 }
 0x9c9   :  { %v3905_v0 = vpop.f32.mrf.mxu1  ;;  %v13027_v19 = vunpack.c.h.bf16 %v11824_v5 }
 0x9ca   :  { %v3906_v3 = vadd.f32 %v3905_v0, %v11818_v16 }
 0x9cb   :  { %v11808_v39 = vpop.f32.mrf.mxu1 }
 0x9cd   :  { %v11810_v22 = vpop.f32.mrf.mxu1 }
 0x9cf   :  { %8893 = vmatmul.mubr.bf16.gmra.mxu1 %v3968_v50  ;;  %v11812_v23 = vpop.f32.mrf.mxu1 }
 0x9d0   :  { %4744 = vmatprep.mubr.bf16.mxu1 %v13119_v59 }
 0x9d1   :  { %v11814_v41 = vpop.f32.mrf.mxu1 }
 0xa6f   :  { %v8882_v7 = vpop.f32.mrf.mxu1 }
 0xa70   :  { %v4068_v9 = vmul.f32 0.5, %v8882_v7  ;;  %v13028_v7 = vunpack.c.l.bf16 %v11824_v5 }
 0xa71   :  { %v4003_v34 = vpop.f32.mrf.mxu1 }
 0xa72   :  { %9266 = vtanh.f32 %v4068_v9  ;;  %v4066_v36 = vmul.f32 0.5, %v4003_v34  ;;  %v3898_v34 = vadd.f32 %v8855_v31, %v11818_v16 }
 0xa73   :  { %v8883_v47 = vpop.f32.mrf.mxu1 }
 0xa74   :  { %9268 = vtanh.f32 %v4066_v36  ;;  %v4069_v24 = vmul.f32 0.5, %v8883_v47  ;;  %v11836_v36 = vpack.c.bf16 %v3914_v35, %v3911_v21  ;;  %v11845_v35 = vpack.c.bf16 %v3898_v34, %v3895_v61 }
 0xa75   :  { %v4006_v32 = vpop.f32.mrf.mxu1 }
 0xa76   :  { %9270 = vtanh.f32 %v4069_v24  ;;  %v4067_v20 = vmul.f32 0.5, %v4006_v32  ;;  %v4138_v24 = vunpack.c.l.bf16 %v11828_v43  ;;  %v11839_v32 = vpack.c.bf16 %v3906_v3, %v3903_v62 }
 0xa77   :  { %v13026_v62 = vunpack.c.l.bf16 %v11836_v36 }
 0xa78   :  { %9272 = vtanh.f32 %v4067_v20  ;;  %v4162_v3 = vunpack.c.l.bf16 %v11839_v32 }
 0xa7f   :  { %v9267_v6 = vpop.eup %9266  ;;  %v8886_v54 = vpop.f32.mrf.mxu1 }
 0xa80   :  { %v4084_v11 = vadd.f32 1.0, %v9267_v6  ;;  %v4072_v17 = vmul.f32 0.5, %v8886_v54 }
 0xa81   :  { %v9269_v50 = vpop.eup %9268  ;;  %v4019_v58 = vpop.f32.mrf.mxu1 }
 0xa82   :  { %v4092_v53 = vmul.f32 0.5, %v4084_v11  ;;  %v4082_v8 = vadd.f32 1.0, %v9269_v50  ;;  %9274 = vtanh.f32 %v4072_v17  ;;  %v4070_v48 = vmul.f32 0.5, %v4019_v58 }
 0xa83   :  { %v9271_v28 = vpop.eup %9270  ;;  %v8887_v9 = vpop.f32.mrf.mxu1  ;;  %v13037_v11 = vunpack.c.h.bf16 %v11836_v36 }
 0xa84   :  { %v4090_v10 = vmul.f32 0.5, %v4082_v8  ;;  %v4085_v47 = vadd.f32 1.0, %v9271_v28  ;;  %9276 = vtanh.f32 %v4070_v48  ;;  %v4073_v20 = vmul.f32 0.5, %v8887_v9 }
 0xa85   :  { %v9273_v0 = vpop.eup %9272  ;;  %v4022_v37 = vpop.f32.mrf.mxu1  ;;  %v4156_v29 = vsub.f32 1.0, %v4092_v53  ;;  %v3890_v8 = vadd.f32 %v11806_v14, %v11818_v16  ;;  %v13035_v9 = vunpack.c.h.bf16 %v11839_v32 }
 0xa86   :  { %v4093_v63 = vmul.f32 0.5, %v4085_v47  ;;  %v4154_v31 = vsub.f32 1.0, %v4090_v10  ;;  %v4083_v6 = vadd.f32 1.0, %v9273_v0  ;;  %9278 = vtanh.f32 %v4073_v20 }
 0xa87   :  { %v4071_v54 = vmul.f32 0.5, %v4022_v37  ;;  %v8890_v21 = vpop.f32.mrf.mxu1  ;;  %v4172_v34 = vmul.f32 %v13026_v62, %v4156_v29 }
 0xa88   :  { %v4157_v17 = vsub.f32 1.0, %v4093_v63  ;;  %v4100_v50 = vsub.f32 0.0, %v8890_v21  ;;  %v4091_v58 = vmul.f32 0.5, %v4083_v6  ;;  %v4170_v20 = vmul.f32 %v4162_v3, %v4154_v31 }
 0xa89   :  { %9280 = vtanh.f32 %v4071_v54  ;;  %v4035_v12 = vpop.f32.mrf.mxu1  ;;  %v4149_v37 = vmul.f32 %v13027_v19, %v4093_v63  ;;  %v4148_v54 = vmul.f32 %v13028_v7, %v4092_v53  ;;  %v4146_v21 = vmul.f32 %v4138_v24, %v4090_v10 }
 0xa8a   :  { %v4173_v48 = vmul.f32 %v13037_v11, %v4157_v17  ;;  %v4108_v28 = vmul.f32 0.5, %v4100_v50  ;;  %v4098_v61 = vsub.f32 0.0, %v4035_v12  ;;  %v4155_v47 = vsub.f32 1.0, %v4091_v58 }
 0xa8b   :  { %v8891_v0 = vpop.f32.mrf.mxu1  ;;  %v4147_v29 = vmul.f32 %v13029_v30, %v4091_v58  ;;  %v4178_v62 = vadd.f32 %v4170_v20, %v4146_v21  ;;  %v3919_v30 = vadd.f32 %v11810_v22, %v11818_v16 }
 0xa8c   :  { %9282 = vtanh.f32 %v4108_v28  ;;  %v4106_v14 = vmul.f32 0.5, %v4098_v61  ;;  %v4101_v6 = vsub.f32 0.0, %v8891_v0  ;;  %v4171_v50 = vmul.f32 %v13035_v9, %v4155_v47 }
 0xa8d   :  { %v4038_v17 = vpop.f32.mrf.mxu1  ;;  %v4181_v31 = vadd.f32 %v4173_v48, %v4149_v37  ;;  %v3927_v61 = vadd.f32 %v11808_v39, %v11818_v16  ;;  %v4180_v0 = vadd.f32 %v4172_v34, %v4148_v54  ;;  %v3930_v48 = vadd.f32 %v11812_v23, %v11818_v16 }
 0xa8e   :  { %9284 = vtanh.f32 %v4106_v14  ;;  %v4109_v12 = vmul.f32 0.5, %v4101_v6  ;;  %v4099_v63 = vsub.f32 0.0, %v4038_v17  ;;  %v4179_v19 = vadd.f32 %v4171_v50, %v4147_v29 }
 0xa8f   :  { %v9275_v28 = vpop.eup %9274  ;;  %v8894_v53 = vpop.f32.mrf.mxu1  ;;  %v3922_v47 = vadd.f32 %v11814_v41, %v11818_v16  ;;  %v4219_v34 = vpack.c.bf16 %v4181_v31, %v4180_v0  ;;  %v11878_v17 = vpack.c.bf16 %v3890_v8, %v11843_v2  ;;  %v4144_v31 = vunpack.c.l.bf16 %v11845_v35 }
 0xa90   :  { %v4088_v10 = vadd.f32 1.0, %v9275_v28  ;;  %9286 = vtanh.f32 %v4109_v12  ;;  %v4107_v7 = vmul.f32 0.5, %v4099_v63  ;;  %v4104_v58 = vsub.f32 0.0, %v8894_v53 }
 0xa91   :  { %v4051_v37 = vpop.f32.mrf.mxu1  ;;  %v4218_v14 = vpack.c.bf16 %v4179_v19, %v4178_v62  ;;  %v9277_v39 = vpop.eup %9276  ;;  %v11880_v50 = vpack.c.bf16 %v3922_v47, %v3919_v30  ;;  %v11883_v12 = vpack.c.bf16 %v3930_v48, %v3927_v61  ;;  %v13034_v2 = vunpack.c.h.bf16 %v11845_v35 }
 0xa92   :  { %9288 = vtanh.f32 %v4107_v7  ;;  %v4112_v20 = vmul.f32 0.5, %v4104_v58  ;;  %v4102_v6 = vsub.f32 0.0, %v4051_v37  ;;  %v4086_v54 = vadd.f32 1.0, %v9277_v39 }
 0xa93   :  { %8912 = vmatprep.mubr.bf16.mxu0 %v4218_v14  ;;  %v8895_v21 = vpop.f32.mrf.mxu1  ;;  %v9279_v29 = vpop.eup %9278  ;;  %v4096_v22 = vmul.f32 0.5, %v4088_v10  ;;  %v13033_v53 = vunpack.c.l.bf16 %v11878_v17  ;;  %v13036_v37 = vunpack.c.h.bf16 %v11878_v17  ;;  %v13031_v14 = vunpack.c.l.bf16 %v11880_v50 }
 0xa94   :  { %9290 = vtanh.f32 %v4112_v20  ;;  %v4110_v23 = vmul.f32 0.5, %v4102_v6  ;;  %8913 = vmatmul.mubr.bf16.vlgmr.msra.gmra.mxu0 %v4219_v34  ;;  %v4094_v41 = vmul.f32 0.5, %v4086_v54  ;;  %v4089_v16 = vadd.f32 1.0, %v9279_v29 }
 0xa95   :  { %v4105_v19 = vsub.f32 0.0, %v8895_v21  ;;  %v4054_v62 = vpop.f32.mrf.mxu1  ;;  %v4160_v30 = vsub.f32 1.0, %v4096_v22  ;;  %v13030_v48 = vunpack.c.l.bf16 %v11883_v12  ;;  %v13032_v34 = vunpack.c.h.bf16 %v11883_v12 }
 0xa96   :  { %v9281_v7 = vpop.eup %9280  ;;  %9292 = vtanh.f32 %v4110_v23  ;;  %v4103_v63 = vsub.f32 0.0, %v4054_v62  ;;  %v4158_v8 = vsub.f32 1.0, %v4094_v41  ;;  %v4097_v28 = vmul.f32 0.5, %v4089_v16 }
 0xa97   :  { %v4087_v0 = vadd.f32 1.0, %v9281_v7  ;;  %v4113_v10 = vmul.f32 0.5, %v4105_v19  ;;  %v13038_v54 = vunpack.c.h.bf16 %v11880_v50  ;;  %v4150_v23 = vmul.f32 %v13033_v53, %v4094_v41 }
 0xa98   :  { %v4111_v58 = vmul.f32 0.5, %v4103_v63  ;;  %v4161_v39 = vsub.f32 1.0, %v4097_v28  ;;  %v4174_v29 = vmul.f32 %v13031_v14, %v4158_v8  ;;  %v4176_v19 = vmul.f32 %v13030_v48, %v4160_v30 }
 0xa99   :  { %v9283_v47 = vpop.eup %9282  ;;  %v4095_v61 = vmul.f32 0.5, %v4087_v0  ;;  %9294 = vtanh.f32 %v4113_v10  ;;  %v4153_v63 = vmul.f32 %v13034_v2, %v4097_v28  ;;  %v4152_v41 = vmul.f32 %v4144_v31, %v4096_v22 }
 0xa9a   :  { %v4124_v20 = vadd.f32 1.0, %v9283_v47  ;;  %9296 = vtanh.f32 %v4111_v58  ;;  %v4177_v62 = vmul.f32 %v13032_v34, %v4161_v39 }
 0xa9b   :  { %v9285_v6 = vpop.eup %9284  ;;  %v4159_v21 = vsub.f32 1.0, %v4095_v61  ;;  %v4151_v0 = vmul.f32 %v13036_v37, %v4095_v61  ;;  %v4184_v28 = vadd.f32 %v4176_v19, %v4152_v41  ;;  %v13164_v19 = vunpack.c.h.bf16 %v11836_v36 }
 0xa9c   :  { %v4122_v16 = vadd.f32 1.0, %v9285_v6  ;;  %v4132_v10 = vmul.f32 0.5, %v4124_v20  ;;  %v4182_v6 = vadd.f32 %v4174_v29, %v4150_v23  ;;  %v4185_v39 = vadd.f32 %v4177_v62, %v4153_v63 }
 0xa9d   :  { %v9287_v7 = vpop.eup %9286  ;;  %v4175_v8 = vmul.f32 %v13038_v54, %v4159_v21  ;;  %v13167_v63 = vunpack.c.h.bf16 %v11839_v32  ;;  %v13168_v41 = vunpack.c.h.bf16 %v11828_v43 }
 0xa9e   :  { %v4130_v58 = vmul.f32 0.5, %v4122_v16  ;;  %v4125_v47 = vadd.f32 1.0, %v9287_v7  ;;  %v4188_v9 = vsub.f32 1.0, %v4132_v10  ;;  %v4221_v21 = vpack.c.bf16 %v4185_v39, %v4184_v28 }
 0xa9f   :  { %v9289_v30 = vpop.eup %9288  ;;  %v4183_v48 = vadd.f32 %v4175_v8, %v4151_v0 }
 0xaa0   :  { %v4186_v14 = vsub.f32 1.0, %v4130_v58  ;;  %v4133_v34 = vmul.f32 0.5, %v4125_v47  ;;  %v4123_v53 = vadd.f32 1.0, %v9289_v30  ;;  %v4202_v23 = vmul.f32 %v4162_v3, %v4130_v58 }
 0xaa1   :  { %v9291_v2 = vpop.eup %9290  ;;  %v4220_v61 = vpack.c.bf16 %v4183_v48, %v4182_v6  ;;  %v13165_v48 = vunpack.c.l.bf16 %v11824_v5  ;;  %v13169_v3 = vunpack.c.l.bf16 %v11836_v36  ;;  %v13170_v36 = vunpack.c.l.bf16 %v11878_v17 }
 0xaa2   :  { %v4189_v20 = vsub.f32 1.0, %v4133_v34  ;;  %v4131_v37 = vmul.f32 0.5, %v4123_v53  ;;  %v4128_v11 = vadd.f32 1.0, %v9291_v2  ;;  %v4194_v29 = vmul.f32 %v4186_v14, %v4138_v24 }
 0xaa3   :  { %v9293_v54 = vpop.eup %9292  ;;  %8916 = vmatprep.mubr.bf16.mxu0 %v4220_v61  ;;  %v4205_v62 = vmul.f32 %v13164_v19, %v4133_v34  ;;  %v4196_v7 = vmul.f32 %v4188_v9, %v13165_v48  ;;  %v13166_v2 = vunpack.c.h.bf16 %v11824_v5  ;;  %v4204_v58 = vmul.f32 %v13169_v3, %v4132_v10 }
 0xaa4   :  { %v4187_v22 = vsub.f32 1.0, %v4131_v37  ;;  %v4126_v16 = vadd.f32 1.0, %v9293_v54  ;;  %8917 = vmatmul.mubr.bf16.gmra.mxu0 %v4221_v21  ;;  %v4203_v0 = vmul.f32 %v13167_v63, %v4131_v37  ;;  %v4136_v54 = vmul.f32 0.5, %v4128_v11 }
 0xaa5   :  { %v4197_v53 = vmul.f32 %v4189_v20, %v13166_v2  ;;  %v4210_v6 = vadd.f32 %v4202_v23, %v4194_v29  ;;  %v4212_v28 = vadd.f32 %v4204_v58, %v4196_v7  ;;  %v13172_v23 = vunpack.c.h.bf16 %v11845_v35  ;;  %v8137_v35 = vld [vmem:[%s12906_s12 + $0x1] ss:$0 sm:$0xff] }
 0xaa6   :  { %v4134_v8 = vmul.f32 0.5, %v4126_v16  ;;  %v4195_v24 = vmul.f32 %v4187_v22, %v13168_v41  ;;  %v9295_v14 = vpop.eup %9294  ;;  %v4192_v61 = vsub.f32 1.0, %v4136_v54  ;;  %v13171_v22 = vunpack.c.h.bf16 %v11883_v12 }
 0xaa7   :  { %v4213_v47 = vadd.f32 %v4205_v62, %v4197_v53  ;;  %v9297_v34 = vpop.eup %9296  ;;  %v4129_v30 = vadd.f32 1.0, %v9295_v14  ;;  %v13173_v62 = vunpack.c.l.bf16 %v11880_v50  ;;  %v13174_v7 = vunpack.c.h.bf16 %v11880_v50 }
 0xaa8   :  { %v4211_v9 = vadd.f32 %v4203_v0, %v4195_v24  ;;  %v4190_v39 = vsub.f32 1.0, %v4134_v8  ;;  %v4127_v5 = vadd.f32 1.0, %v9297_v34  ;;  %v4200_v29 = vmul.f32 %v4192_v61, %v4144_v31 }
 0xaa9   :  { %v4137_v32 = vmul.f32 0.5, %v4129_v30  ;;  %v4223_v20 = vpack.c.bf16 %v4213_v47, %v4212_v28  ;;  %v4206_v48 = vmul.f32 %v13173_v62, %v4134_v8  ;;  %v13175_v53 = vunpack.c.h.bf16 %v11878_v17 }
 0xaaa   :  { %v4222_v37 = vpack.c.bf16 %v4211_v9, %v4210_v6  ;;  %v4135_v11 = vmul.f32 0.5, %v4127_v5  ;;  %v4198_v10 = vmul.f32 %v4190_v39, %v13170_v36  ;;  %v13176_v0 = vunpack.c.l.bf16 %v11883_v12 }
 0xaab   :  { %v4193_v21 = vsub.f32 1.0, %v4137_v32  ;;  %v4209_v16 = vmul.f32 %v13171_v22, %v4137_v32 }
 0xaac   :  { %8920 = vmatprep.mubr.bf16.mxu0 %v4222_v37  ;;  %v4191_v43 = vsub.f32 1.0, %v4135_v11  ;;  %v4207_v2 = vmul.f32 %v13174_v7, %v4135_v11  ;;  %v4208_v41 = vmul.f32 %v13176_v0, %v4136_v54  ;;  %v4214_v14 = vadd.f32 %v4206_v48, %v4198_v10 }
 0xaad   :  { %8921 = vmatmul.mubr.bf16.gmra.mxu0 %v4223_v20  ;;  %v4201_v19 = vmul.f32 %v4193_v21, %v13172_v23 }
 0xaae   :  { %v4199_v63 = vmul.f32 %v4191_v43, %v13175_v53  ;;  %v4216_v58 = vadd.f32 %v4208_v41, %v4200_v29 }
 0xaaf   :  { %v4217_v24 = vadd.f32 %v4209_v16, %v4201_v19 }
 0xab0   :  { %v4215_v3 = vadd.f32 %v4207_v2, %v4199_v63 }
 0xab1   :  { %v4225_v47 = vpack.c.bf16 %v4217_v24, %v4216_v58 }
 0xab2   :  { %v4224_v31 = vpack.c.bf16 %v4215_v3, %v4214_v14  ;;  %v13178_v3 = vld [vmem:[#allocation72_spill] sm:$0xff] }
 0xab4   :  { %8924 = vmatprep.mubr.bf16.mxu0 %v4224_v31 }
 0xab5   :  { %8925 = vmatmul.mubr.bf16.gmra.mxu0 %v4225_v47 }
 0xb54   :  { %v8914_v50 = vpop.f32.mrf.mxu0 }
 0xb55   :  { %v4323_v8 = vadd.f32 %v8914_v50, %v8137_v35 }
 0xb56   :  { %v4314_v34 = vpop.f32.mrf.mxu0 }
 0xb57   :  { %v11944_v17 = vadd.f32 %v4323_v8, %v11663_v45  ;;  %v4315_v12 = vadd.f32 %v8137_v35, %v4314_v34 }
 0xb58   :  { %v8915_v54 = vpop.f32.mrf.mxu0 }
 0xb59   :  { %v11947_v30 = vadd.f32 %v4315_v12, %v11653_v44  ;;  %v4326_v6 = vadd.f32 %v8915_v54, %v8137_v35  ;;  %4397 = vadd.xlane.f32.xlu1 %v11944_v17 }
 0xb5a   :  { %v4317_v9 = vpop.f32.mrf.mxu0 }
 0xb5b   :  { %v11951_v39 = vadd.f32 %v4326_v6, %v11668_v40  ;;  %v4318_v5 = vadd.f32 %v8137_v35, %v4317_v9  ;;  %4393 = vadd.xlane.f32.xlu0 %v11947_v30 }
 0xb5d   :  { %v11955_v28 = vadd.f32 %v4318_v5, %v11658_v26  ;;  %4399 = vadd.xlane.f32.xlu1 %v11951_v39 }
 0xb5f   :  { %4395 = vadd.xlane.f32.xlu0 %v11955_v28 }
 0xb64   :  { %v8918_v45 = vpop.f32.mrf.mxu0 }
 0xb65   :  { %v4339_v37 = vadd.f32 %v8918_v45, %v8137_v35 }
 0xb66   :  { %v4330_v44 = vpop.f32.mrf.mxu0 }
 0xb67   :  { %v4331_v61 = vadd.f32 %v8137_v35, %v4330_v44  ;;  %v11964_v21 = vadd.f32 %v4339_v37, %v11683_v1 }
 0xb68   :  { %v8919_v32 = vpop.f32.mrf.mxu0 }
 0xb69   :  { %v11960_v11 = vadd.f32 %v4331_v61, %v11673_v49  ;;  %v4342_v26 = vadd.f32 %v8919_v32, %v8137_v35  ;;  %v13179_v32 = vld [vmem:[#allocation71_spill] sm:$0xff] }
 0xb6a   :  { %v4333_v40 = vpop.f32.mrf.mxu0 }
 0xb6b   :  { %v4334_v20 = vadd.f32 %v8137_v35, %v4333_v40  ;;  %4401 = vadd.xlane.f32.xlu0 %v11960_v11  ;;  %v11972_v49 = vadd.f32 %v4342_v26, %v11688_v42 }
 0xb6d   :  { %v11967_v43 = vadd.f32 %v4334_v20, %v11678_v33  ;;  %v8922_v36 = vpop.f32.mrf.mxu0 }
 0xb6e   :  { %v4355_v29 = vadd.f32 %v8922_v36, %v8137_v35 }
 0xb6f   :  { %4403 = vadd.xlane.f32.xlu1 %v11967_v43  ;;  %4405 = vadd.xlane.f32.xlu0 %v11964_v21  ;;  %v4346_v10 = vpop.f32.mrf.mxu0 }
 0xb70   :  { %v4347_v22 = vadd.f32 %v8137_v35, %v4346_v10  ;;  %v11980_v19 = vadd.f32 %v4355_v29, %v11703_v27  ;;  %v13181_v29 = vld [vmem:[#allocation69_spill] sm:$0xff] }
 0xb71   :  { %v8923_v16 = vpop.f32.mrf.mxu0 }
 0xb72   :  { %v11975_v23 = vadd.f32 %v4347_v22, %v11693_v51  ;;  %v4358_v62 = vadd.f32 %v8923_v16, %v8137_v35 }
 0xb73   :  { %4407 = vadd.xlane.f32.xlu1 %v11972_v49  ;;  %v4349_v1 = vpop.f32.mrf.mxu0 }
 0xb74   :  { %v4350_v33 = vadd.f32 %v8137_v35, %v4349_v1  ;;  %4409 = vadd.xlane.f32.xlu0 %v11975_v23  ;;  %v11988_v2 = vadd.f32 %v4358_v62, %v11708_v18  ;;  %v13182_v1 = vld [vmem:[#allocation68_spill] sm:$0xff] }
 0xb75   :  { %v8926_v42 = vpop.f32.mrf.mxu0 }
 0xb76   :  { %v11983_v48 = vadd.f32 %v4350_v33, %v11698_v56  ;;  %v4371_v63 = vadd.f32 %v8926_v42, %v8137_v35  ;;  %v8159_v33 = vcombine.high %v13182_v1, %v13181_v29  ;;  %v8158_v42 = vcombine.low %v13182_v1, %v13181_v29  ;;  %v13189_v29 = vld [vmem:[#allocation61_spill] sm:$0xff]  ;;  %v13190_v1 = vld [vmem:[#allocation60_spill] sm:$0xff] }
 0xb77   :  { %v4362_v7 = vpop.f32.mrf.mxu0 }
 0xb78   :  { %4411 = vadd.xlane.f32.xlu1 %v11983_v48  ;;  %4413 = vadd.xlane.f32.xlu0 %v11980_v19  ;;  %v4363_v51 = vadd.f32 %v8137_v35, %v4362_v7  ;;  %v11996_v41 = vadd.f32 %v4371_v63, %v11723_v46 }
 0xb79   :  { %v8927_v53 = vpop.f32.mrf.mxu0 }
 0xb7a   :  { %v11991_v0 = vadd.f32 %v4363_v51, %v11713_v52  ;;  %v4374_v24 = vadd.f32 %v8927_v53, %v8137_v35  ;;  %v13177_v52 = vld [vmem:[#allocation73_spill] sm:$0xff] }
 0xb7b   :  { %v4365_v27 = vpop.f32.mrf.mxu0  ;;  %v8163_v58 = vcombine.high %v13178_v3, %v13177_v52  ;;  %v8162_v46 = vcombine.low %v13178_v3, %v13177_v52 }
 0xb7c   :  { %4415 = vadd.xlane.f32.xlu1 %v11988_v2  ;;  %v4366_v56 = vadd.f32 %v8137_v35, %v4365_v27  ;;  %4417 = vadd.xlane.f32.xlu0 %v11991_v0  ;;  %v12004_v18 = vadd.f32 %v4374_v24, %v11728_v57  ;;  %v13183_v27 = vld [vmem:[#allocation67_spill] sm:$0xff] }
 0xb7d   :  { %4712 = vmatprep.subr.bf16.mxu1 %v8163_v58 }
 0xb7e   :  { %v11999_v14 = vadd.f32 %v4366_v56, %v11718_v55  ;;  %4713 = vmatpush1.bf16.msra.mxu1 %v8162_v46  ;;  %v13184_v56 = vld [vmem:[#allocation66_spill] sm:$0xff] }
 0xb7f   :  { %v8157_v24 = vcombine.high %v13184_v56, %v13183_v27  ;;  %v8156_v3 = vcombine.low %v13184_v56, %v13183_v27  ;;  %v13192_v27 = vld [vmem:[#allocation58_spill] sm:$0xff] }
 0xb80   :  { %4419 = vadd.xlane.f32.xlu1 %v11999_v14  ;;  %4421 = vadd.xlane.f32.xlu0 %v11996_v41 }
 0xb84   :  { %4423 = vadd.xlane.f32.xlu1 %v12004_v18 }
 0xbe2   :  { %v4398_v31 = vpop.xlane.xlu1 %4397 }
 0xbe3   :  { %v4427_v47 = vmul.f32 0.0078125, %v4398_v31 }
 0xbe4   :  { %v4394_v55 = vpop.xlane.xlu0 %4393 }
 0xbe5   :  { %v4425_v35 = vmul.f32 0.0078125, %v4394_v55  ;;  %v12015_v34 = vsub.f32 %v11944_v17, %v4427_v47 }
 0xbe6   :  { %v4400_v50 = vpop.xlane.xlu1 %4399 }
 0xbe7   :  { %v12012_v8 = vsub.f32 %v11947_v30, %v4425_v35  ;;  %v4428_v12 = vmul.f32 0.0078125, %v4400_v50  ;;  %v4459_v45 = vmul.f32 %v12015_v34, %v12015_v34  ;;  %v13185_v35 = vld [vmem:[#allocation65_spill] sm:$0xff]  ;;  %v13186_v50 = vld [vmem:[#allocation64_spill] sm:$0xff] }
 0xbe8   :  { %v4396_v57 = vpop.xlane.xlu0 %4395 }
 0xbe9   :  { %v4426_v54 = vmul.f32 0.0078125, %v4396_v57  ;;  %v4457_v6 = vmul.f32 %v12012_v8, %v12012_v8  ;;  %v12023_v5 = vsub.f32 %v11951_v39, %v4428_v12  ;;  %v13180_v39 = vld [vmem:[#allocation70_spill] sm:$0xff] }
 0xbea   :  { %v8161_v37 = vcombine.high %v13180_v39, %v13179_v32  ;;  %v8160_v26 = vcombine.low %v13180_v39, %v13179_v32  ;;  %v13188_v32 = vld [vmem:[#allocation62_spill] sm:$0xff] }
 0xbeb   :  { %v12020_v9 = vsub.f32 %v11955_v28, %v4426_v54  ;;  %4473 = vadd.xlane.f32.xlu0 %v4457_v6  ;;  %v4460_v17 = vmul.f32 %v12023_v5, %v12023_v5  ;;  %v8154_v54 = vcombine.low %v13186_v50, %v13185_v35 }
 0xbec   :  { %4714 = vmatprep.subr.bf16.mxu1 %v8161_v37 }
 0xbed   :  { %v4458_v30 = vmul.f32 %v12020_v9, %v12020_v9  ;;  %4715 = vmatpush1.bf16.msra.mxu1 %v8160_v26 }
 0xbee   :  { %4716 = vmatprep.subr.bf16.mxu1 %v8159_v33  ;;  %v8151_v33 = vcombine.high %v13190_v1, %v13189_v29 }
 0xbef   :  { %4475 = vadd.xlane.f32.xlu1 %v4458_v30  ;;  %4477 = vadd.xlane.f32.xlu0 %v4459_v45 }
 0xbf1   :  { %4717 = vmatpush1.bf16.msra.mxu1 %v8158_v42 }
 0xbf2   :  { %4718 = vmatprep.subr.bf16.mxu1 %v8157_v24 }
 0xbf3   :  { %4479 = vadd.xlane.f32.xlu1 %v4460_v17 }
 0xbf4   :  { %v4402_v44 = vpop.xlane.xlu0 %4401 }
 0xbf5   :  { %v4429_v61 = vmul.f32 0.0078125, %v4402_v44  ;;  %4719 = vmatpush1.bf16.msra.mxu1 %v8156_v3  ;;  %v9250_v3 = vld [vmem:[#allocation5 + $0xf8] sm:$0xff]  }
 0xbf6   :  { %8530 = vmatprep.subr.bf16.mxu0 %v9250_v3 }
 0xbf7   :  { %v12032_v28 = vsub.f32 %v11960_v11, %v4429_v61  ;;  %v13187_v61 = vld [vmem:[#allocation63_spill] sm:$0xff] }
 0xbf8   :  { %v4404_v40 = vpop.xlane.xlu1 %4403  ;;  %v4406_v20 = vpop.xlane.xlu0 %4405  ;;  %v8152_v37 = vcombine.low %v13188_v32, %v13187_v61 }
 0xbf9   :  { %v4430_v36 = vmul.f32 0.0078125, %v4404_v40  ;;  %v4431_v10 = vmul.f32 0.0078125, %v4406_v20  ;;  %v4461_v22 = vmul.f32 %v12032_v28, %v12032_v28 }
 0xbfb   :  { %v12041_v16 = vsub.f32 %v11967_v43, %v4430_v36  ;;  %v12044_v11 = vsub.f32 %v11964_v21, %v4431_v10  ;;  %4481 = vadd.xlane.f32.xlu0 %v4461_v22 }
 0xbfc   :  { %v4408_v62 = vpop.xlane.xlu1 %4407 }
 0xbfd   :  { %v4432_v7 = vmul.f32 0.0078125, %v4408_v62  ;;  %v4410_v51 = vpop.xlane.xlu0 %4409  ;;  %v4462_v53 = vmul.f32 %v12041_v16, %v12041_v16  ;;  %v4463_v43 = vmul.f32 %v12044_v11, %v12044_v11 }
 0xbfe   :  { %v4433_v63 = vmul.f32 0.0078125, %v4410_v51 }
 0xbff   :  { %v12055_v21 = vsub.f32 %v11972_v49, %v4432_v7  ;;  %4483 = vadd.xlane.f32.xlu1 %v4462_v53  ;;  %4485 = vadd.xlane.f32.xlu0 %v4463_v43 }
 0xc00   :  { %v12060_v52 = vsub.f32 %v11975_v23, %v4433_v63  ;;  %v8155_v23 = vcombine.high %v13186_v50, %v13185_v35  ;;  %v13191_v63 = vld [vmem:[#allocation59_spill] sm:$0xff]  ;;  %v9258_v35 = vld [vmem:[#allocation5 + $0xd8] sm:$0xff]  }
 0xc01   :  { %v4412_v58 = vpop.xlane.xlu1 %4411  ;;  %v4414_v46 = vpop.xlane.xlu0 %4413  ;;  %v4464_v31 = vmul.f32 %v12055_v21, %v12055_v21  ;;  %v8149_v56 = vcombine.high %v13192_v27, %v13191_v63  ;;  %v9259_v50 = vld [vmem:[#allocation5 + $0x98] sm:$0xff]  }
 0xc02   :  { %v4434_v55 = vmul.f32 0.0078125, %v4412_v58  ;;  %v4435_v49 = vmul.f32 0.0078125, %v4414_v46  ;;  %v4465_v47 = vmul.f32 %v12060_v52, %v12060_v52  ;;  %4720 = vmatprep.subr.bf16.mxu1 %v8155_v23  ;;  %v9251_v58 = vld [vmem:[#allocation5 + $0xb8] sm:$0xff]   ;;  %v9252_v46 = vld [vmem:[#allocation5 + $0xf0] sm:$0xff]  }
 0xc03   :  { %4487 = vadd.xlane.f32.xlu1 %v4464_v31  ;;  %4721 = vmatpush1.bf16.msra.mxu1 %v8154_v54  ;;  %v9253_v31 = vld [vmem:[#allocation5 + $0xb0] sm:$0xff]  }
 0xc04   :  { %v12071_v57 = vsub.f32 %v11983_v48, %v4434_v55  ;;  %v12074_v12 = vsub.f32 %v11980_v19, %v4435_v49  ;;  %4489 = vadd.xlane.f32.xlu0 %v4465_v47  ;;  %v8153_v19 = vcombine.high %v13188_v32, %v13187_v61  ;;  %8531 = vmatpush3.bf16.msra.mxu0 %v9251_v58  ;;  %v9254_v55 = vld [vmem:[#allocation5 + $0xe8] sm:$0xff]   ;;  %v9257_v47 = vld [vmem:[#allocation5 + $0xa0] sm:$0xff]  }
 0xc05   :  { %v4416_v6 = vpop.xlane.xlu1 %4415  ;;  %v4418_v45 = vpop.xlane.xlu0 %4417  ;;  %8532 = vmatprep.subr.bf16.mxu0 %v9252_v46  ;;  %v9255_v49 = vld [vmem:[#allocation5 + $0xa8] sm:$0xff]  }
 0xc06   :  { %v4436_v30 = vmul.f32 0.0078125, %v4416_v6  ;;  %v4466_v17 = vmul.f32 %v12071_v57, %v12071_v57  ;;  %v4467_v44 = vmul.f32 %v12074_v12, %v12074_v12  ;;  %v4437_v48 = vmul.f32 0.0078125, %v4418_v45  ;;  %4722 = vmatprep.subr.bf16.mxu1 %v8153_v19 }
 0xc07   :  { %4723 = vmatpush1.bf16.msra.mxu1 %v8152_v37 }
 0xc08   :  { %v12085_v39 = vsub.f32 %v11988_v2, %v4436_v30  ;;  %4491 = vadd.xlane.f32.xlu1 %v4466_v17  ;;  %4493 = vadd.xlane.f32.xlu0 %v4467_v44  ;;  %v12090_v40 = vsub.f32 %v11991_v0, %v4437_v48  ;;  %v8150_v0 = vcombine.low %v13190_v1, %v13189_v29 }
 0xc09   :  { %v4420_v20 = vpop.xlane.xlu1 %4419  ;;  %v4422_v26 = vpop.xlane.xlu0 %4421  ;;  %4724 = vmatprep.subr.bf16.mxu1 %v8151_v33  ;;  %8533 = vmatpush3.bf16.msra.mxu0 %v9253_v31 }
 0xc0a   :  { %v4468_v36 = vmul.f32 %v12085_v39, %v12085_v39  ;;  %v4438_v10 = vmul.f32 0.0078125, %v4420_v20  ;;  %v4439_v22 = vmul.f32 0.0078125, %v4422_v26  ;;  %v4469_v2 = vmul.f32 %v12090_v40, %v12090_v40  ;;  %8534 = vmatprep.subr.bf16.mxu0 %v9254_v55 }
 0xc0b   :  { %4725 = vmatpush1.bf16.msra.mxu1 %v8150_v0 }
 0xc0c   :  { %4495 = vadd.xlane.f32.xlu1 %v4468_v36  ;;  %v12101_v62 = vsub.f32 %v11999_v14, %v4438_v10  ;;  %v12104_v42 = vsub.f32 %v11996_v41, %v4439_v22  ;;  %4497 = vadd.xlane.f32.xlu0 %v4469_v2  ;;  %v8148_v14 = vcombine.low %v13192_v27, %v13191_v63  ;;  %v12123_v2 = vld [vmem:[%s12907_s13 + $0x1] ss:$0 sm:$0xff] }
 0xc0d   :  { %v4424_v7 = vpop.xlane.xlu1 %4423  ;;  %4726 = vmatprep.subr.bf16.mxu1 %v8149_v56  ;;  %8535 = vmatpush3.bf16.msra.mxu0 %v9255_v49 }
 0xc0e   :  { %v4440_v51 = vmul.f32 0.0078125, %v4424_v7  ;;  %v4470_v53 = vmul.f32 %v12101_v62, %v12101_v62  ;;  %v4471_v43 = vmul.f32 %v12104_v42, %v12104_v42 }
 0xc0f   :  { %4727 = vmatpush1.bf16.msra.mxu1 %v8148_v14 }
 0xc10   :  { %v12115_v41 = vsub.f32 %v12004_v18, %v4440_v51  ;;  %4499 = vadd.xlane.f32.xlu1 %v4470_v53  ;;  %4501 = vadd.xlane.f32.xlu0 %v4471_v43  ;;  %v9256_v18 = vld [vmem:[#allocation5 + $0xe0] sm:$0xff]  }
 0xc11   :  { %8536 = vmatprep.subr.bf16.mxu0 %v9256_v18 }
 0xc12   :  { %v4472_v24 = vmul.f32 %v12115_v41, %v12115_v41  ;;  %8537 = vmatpush3.bf16.msra.mxu0 %v9257_v47 }
 0xc13   :  { %8538 = vmatprep.subr.bf16.mxu0 %v9258_v35 }
 0xc14   :  { %4503 = vadd.xlane.f32.xlu1 %v4472_v24 }
 0xc16   :  { %8539 = vmatpush3.bf16.msra.mxu0 %v9259_v50 }
 0xc74   :  { %v4474_v23 = vpop.xlane.xlu0 %4473 }
 0xc75   :  { %v4505_v54 = vmul.f32 0.0078125, %v4474_v23 }
 0xc77   :  { %v4521_v6 = vadd.f32 1e-05, %v4505_v54 }
 0xc78   :  { %v4476_v30 = vpop.xlane.xlu1 %4475  ;;  %v4478_v45 = vpop.xlane.xlu0 %4477 }
 0xc79   :  { %9298 = vrsqrt.f32 %v4521_v6  ;;  %v4506_v17 = vmul.f32 0.0078125, %v4476_v30  ;;  %v4507_v44 = vmul.f32 0.0078125, %v4478_v45 }
 0xc7b   :  { %v4522_v48 = vadd.f32 1e-05, %v4506_v17  ;;  %v4523_v61 = vadd.f32 1e-05, %v4507_v44 }
 0xc7c   :  { %v4480_v32 = vpop.xlane.xlu1 %4479 }
 0xc7d   :  { %9300 = vrsqrt.f32 %v4522_v48  ;;  %v4508_v19 = vmul.f32 0.0078125, %v4480_v32 }
 0xc7e   :  { %9302 = vrsqrt.f32 %v4523_v61 }
 0xc7f   :  { %v4524_v37 = vadd.f32 1e-05, %v4508_v19 }
 0xc81   :  { %9304 = vrsqrt.f32 %v4524_v37 }
 0xc84   :  { %v4482_v20 = vpop.xlane.xlu0 %4481 }
 0xc85   :  { %v4509_v26 = vmul.f32 0.0078125, %v4482_v20 }
 0xc86   :  { %v9299_v36 = vpop.eup %9298 }
 0xc87   :  { %v4553_v10 = vmul.f32 %v9299_v36, %v12012_v8  ;;  %v4525_v22 = vadd.f32 1e-05, %v4509_v26  ;;  %v12130_v8 = vld [vmem:[%s12908_s14 + $0x1] ss:$0 sm:$0xff] }
 0xc88   :  { %v4484_v29 = vpop.xlane.xlu1 %4483  ;;  %v4486_v1 = vpop.xlane.xlu0 %4485 }
 0xc89   :  { %9306 = vrsqrt.f32 %v4525_v22  ;;  %v4510_v33 = vmul.f32 0.0078125, %v4484_v29  ;;  %v4511_v0 = vmul.f32 0.0078125, %v4486_v1  ;;  %v4575_v51 = vmul.f32 %v12123_v2, %v4553_v10 }
 0xc8a   :  { %v9301_v7 = vpop.eup %9300 }
 0xc8b   :  { %v9303_v53 = vpop.eup %9302  ;;  %v4554_v43 = vmul.f32 %v9301_v7, %v12020_v9  ;;  %v4526_v63 = vadd.f32 1e-05, %v4510_v33  ;;  %v4527_v27 = vadd.f32 1e-05, %v4511_v0  ;;  %v12134_v46 = vadd.f32 %v12130_v8, %v4575_v51 }
 0xc8c   :  { %v4488_v56 = vpop.xlane.xlu1 %4487  ;;  %v4555_v9 = vmul.f32 %v9303_v53, %v12015_v34 }
 0xc8d   :  { %9308 = vrsqrt.f32 %v4526_v63  ;;  %v4512_v14 = vmul.f32 0.0078125, %v4488_v56  ;;  %v4490_v24 = vpop.xlane.xlu0 %4489  ;;  %v4576_v3 = vmul.f32 %v12123_v2, %v4554_v43 }
 0xc8e   :  { %v9305_v58 = vpop.eup %9304  ;;  %9310 = vrsqrt.f32 %v4527_v27  ;;  %v4513_v55 = vmul.f32 0.0078125, %v4490_v24  ;;  %v4577_v34 = vmul.f32 %v12123_v2, %v4555_v9 }
 0xc8f   :  { %v4528_v31 = vadd.f32 1e-05, %v4512_v14  ;;  %v12138_v49 = vadd.f32 %v12130_v8, %v4576_v3  ;;  %v4556_v18 = vmul.f32 %v9305_v58, %v12023_v5 }
 0xc90   :  { %v4529_v54 = vadd.f32 1e-05, %v4513_v55  ;;  %v12150_v61 = vadd.f32 %v12130_v8, %v4577_v34 }
 0xc91   :  { %9312 = vrsqrt.f32 %v4528_v31  ;;  %v4492_v47 = vpop.xlane.xlu1 %4491  ;;  %v4613_v35 = vpack.c.bf16 %v12138_v49, %v12134_v46  ;;  %v4578_v50 = vmul.f32 %v12123_v2, %v4556_v18  ;;  %v4494_v6 = vpop.xlane.xlu0 %4493 }
 0xc92   :  { %v4514_v23 = vmul.f32 0.0078125, %v4492_v47  ;;  %v4515_v44 = vmul.f32 0.0078125, %v4494_v6 }
 0xc93   :  { %4745 = vmatmul.mubr.bf16.vlgmr.msra.gmra.mxu1 %v4613_v35  ;;  %v12147_v17 = vadd.f32 %v12130_v8, %v4578_v50 }
 0xc94   :  { %v4530_v30 = vadd.f32 1e-05, %v4514_v23  ;;  %4754 = vmatprep.mubr.bf16.mxu1 %v13119_v59  ;;  %v4531_v26 = vadd.f32 1e-05, %v4515_v44 }
 0xc95   :  { %v4496_v45 = vpop.xlane.xlu1 %4495  ;;  %v4614_v37 = vpack.c.bf16 %v12147_v17, %v12150_v61  ;;  %v4498_v22 = vpop.xlane.xlu0 %4497 }
 0xc96   :  { %v9307_v5 = vpop.eup %9306  ;;  %9314 = vrsqrt.f32 %v4530_v30  ;;  %v4516_v48 = vmul.f32 0.0078125, %v4496_v45  ;;  %v4517_v7 = vmul.f32 0.0078125, %v4498_v22 }
 0xc97   :  { %9316 = vrsqrt.f32 %v4529_v54  ;;  %v4557_v32 = vmul.f32 %v9307_v5, %v12032_v28 }
 0xc98   :  { %v4532_v19 = vadd.f32 1e-05, %v4516_v48  ;;  %v4533_v3 = vadd.f32 1e-05, %v4517_v7 }
 0xc99   :  { %v4500_v36 = vpop.xlane.xlu1 %4499  ;;  %v4579_v1 = vmul.f32 %v12123_v2, %v4557_v32  ;;  %v4502_v31 = vpop.xlane.xlu0 %4501 }
 0xc9a   :  { %v9309_v20 = vpop.eup %9308  ;;  %9318 = vrsqrt.f32 %v4532_v19  ;;  %v4518_v33 = vmul.f32 0.0078125, %v4500_v36  ;;  %v4519_v18 = vmul.f32 0.0078125, %v4502_v31  ;;  %v5313_v31 = vld [vmem:[%s13193_s7 + $0x28] sm:$0xff] }
 0xc9b   :  { %v9311_v10 = vpop.eup %9310  ;;  %4755 = vmatmul.mubr.bf16.gmra.mxu1 %v4614_v37  ;;  %v4558_v29 = vmul.f32 %v9309_v20, %v12041_v16  ;;  %9320 = vrsqrt.f32 %v4531_v26  ;;  %v12160_v51 = vadd.f32 %v12130_v8, %v4579_v1 }
 0xc9c   :  { %4764 = vmatprep.mubr.bf16.mxu1 %v13119_v59  ;;  %v4559_v43 = vmul.f32 %v9311_v10, %v12044_v11  ;;  %v4534_v63 = vadd.f32 1e-05, %v4518_v33  ;;  %v4535_v30 = vadd.f32 1e-05, %v4519_v18  ;;  %v5316_v18 = vld [vmem:[%s13193_s7 + $0x40] sm:$0xff] }
 0xc9d   :  { %v4580_v28 = vmul.f32 %v12123_v2, %v4558_v29  ;;  %v4504_v14 = vpop.xlane.xlu1 %4503 }
 0xc9e   :  { %v9313_v0 = vpop.eup %9312  ;;  %v4581_v58 = vmul.f32 %v12123_v2, %v4559_v43  ;;  %9322 = vrsqrt.f32 %v4534_v63  ;;  %v4520_v11 = vmul.f32 0.0078125, %v4504_v14  ;;  %v9262_v14 = vld [vmem:[#allocation5 + $0xc8] sm:$0xff]  }
 0xc9f   :  { %v12163_v53 = vadd.f32 %v12130_v8, %v4580_v28  ;;  %v4560_v16 = vmul.f32 %v9313_v0, %v12055_v21  ;;  %9324 = vrsqrt.f32 %v4533_v3  ;;  %v9265_v3 = vld [vmem:[#allocation5 + $0x80] sm:$0xff]  }
 0xca0   :  { %v12177_v47 = vadd.f32 %v12130_v8, %v4581_v58  ;;  %v4536_v50 = vadd.f32 1e-05, %v4520_v11  ;;  %v5310_v58 = vld [vmem:[%s13193_s7 + $0x10] sm:$0xff]  ;;  %v5311_v11 = vld [vmem:[%s13193_s7 + $0x18] sm:$0xff] }
 0xca1   :  { %v4615_v27 = vpack.c.bf16 %v12163_v53, %v12160_v51  ;;  %v4582_v56 = vmul.f32 %v12123_v2, %v4560_v16 }
 0xca2   :  { %9326 = vrsqrt.f32 %v4536_v50  ;;  %v5318_v50 = vld [vmem:[%s13193_s7 + $0x50] sm:$0xff] }
 0xca3   :  { %v9315_v24 = vpop.eup %9314  ;;  %4765 = vmatmul.mubr.bf16.gmra.mxu1 %v4615_v27  ;;  %v12173_v21 = vadd.f32 %v12130_v8, %v4582_v56  ;;  %9328 = vrsqrt.f32 %v4535_v30  ;;  %v9261_v56 = vld [vmem:[#allocation5 + $0x90] sm:$0xff]  }
 0xca4   :  { %v9317_v9 = vpop.eup %9316  ;;  %4774 = vmatprep.mubr.bf16.mxu1 %v13119_v59  ;;  %v4562_v55 = vmul.f32 %v9315_v24, %v12071_v57  ;;  %v9263_v24 = vld [vmem:[#allocation5 + $0x88] sm:$0xff]  }
 0xca5   :  { %v4561_v35 = vmul.f32 %v9317_v9, %v12060_v52  ;;  %v4616_v23 = vpack.c.bf16 %v12173_v21, %v12177_v47  ;;  %v5308_v9 = vld [vmem:[%s13193_s7] sm:$0xff] }
 0xca6   :  { %v4584_v54 = vmul.f32 %v12123_v2, %v4562_v55  ;;  %5326 = vperm.xlu0 %9208, %v5308_v9   ;;  %v5321_v55 = vld [vmem:[%s13193_s7 + $0x68] sm:$0xff] }
 0xca7   :  { %v9319_v6 = vpop.eup %9318  ;;  %v4583_v45 = vmul.f32 %v12123_v2, %v4561_v35  ;;  %v5317_v35 = vld [vmem:[%s13193_s7 + $0x48] sm:$0xff] }
 0xca8   :  { %v9321_v34 = vpop.eup %9320  ;;  %v12186_v57 = vadd.f32 %v12130_v8, %v4584_v54  ;;  %v4564_v52 = vmul.f32 %v9319_v6, %v12085_v39  ;;  %v5312_v54 = vld [vmem:[%s13193_s7 + $0x20] sm:$0xff] }
 0xca9   :  { %v12190_v5 = vadd.f32 %v12130_v8, %v4583_v45  ;;  %v4563_v44 = vmul.f32 %v9321_v34, %v12074_v12  ;;  %v5320_v6 = vld [vmem:[%s13193_s7 + $0x60] sm:$0xff] }
 0xcaa   :  { %v4586_v32 = vmul.f32 %v12123_v2, %v4564_v52  ;;  %5351 = vperm.xlu0 %9208, %v5313_v31   ;;  %v8109_v34 = vld [vmem:[%s12909_s15 + $0x2] sm:$0x3] }
 0xcab   :  { %4775 = vmatmul.mubr.bf16.gmra.mxu1 %v4616_v23  ;;  %v4617_v48 = vpack.c.bf16 %v12186_v57, %v12190_v5  ;;  %v9323_v19 = vpop.eup %9322  ;;  %v4585_v37 = vmul.f32 %v12123_v2, %v4563_v44  ;;  %v5319_v23 = vld [vmem:[%s13193_s7 + $0x58] sm:$0xff]  ;;  %v12272_v45 = vrot.slane %v8109_v34, %v13154_v38  ;;  %v12275_v52 = vrot.slane %v8109_v34, %v13155_v25 }
 0xcac   :  { %4784 = vmatprep.mubr.bf16.mxu1 %v13119_v59  ;;  %v9325_v20 = vpop.eup %9324  ;;  %v12199_v39 = vadd.f32 %v12130_v8, %v4586_v32  ;;  %v4566_v26 = vmul.f32 %v9323_v19, %v12101_v62 }
 0xcad   :  { %v12203_v36 = vadd.f32 %v12130_v8, %v4585_v37  ;;  %v4565_v12 = vmul.f32 %v9325_v20, %v12090_v40 }
 0xcae   :  { %v4588_v22 = vmul.f32 %v12123_v2, %v4566_v26  ;;  %5391 = vperm.xlu0 %9208, %v5321_v55  }
 0xcaf   :  { %v4618_v10 = vpack.c.bf16 %v12199_v39, %v12203_v36  ;;  %v9327_v29 = vpop.eup %9326  ;;  %v4587_v1 = vmul.f32 %v12123_v2, %v4565_v12 }
 0xcb0   :  { %v9329_v33 = vpop.eup %9328  ;;  %v12212_v28 = vadd.f32 %v12130_v8, %v4588_v22  ;;  %v4568_v62 = vmul.f32 %v9327_v29, %v12115_v41 }
 0xcb1   :  { %v12216_v0 = vadd.f32 %v12130_v8, %v4587_v1  ;;  %v4567_v40 = vmul.f32 %v9329_v33, %v12104_v42  ;;  %v9260_v42 = vld [vmem:[#allocation5 + $0xd0] sm:$0xff]  }
 0xcb2   :  { %v4590_v43 = vmul.f32 %v12123_v2, %v4568_v62  ;;  %8540 = vmatprep.subr.bf16.mxu0 %v9260_v42 }
 0xcb3   :  { %4785 = vmatmul.mubr.bf16.gmra.mxu1 %v4617_v48  ;;  %v4619_v7 = vpack.c.bf16 %v12212_v28, %v12216_v0  ;;  %v4589_v16 = vmul.f32 %v12123_v2, %v4567_v40  ;;  %8541 = vmatpush3.bf16.msra.mxu0 %v9261_v56  ;;  %v9264_v2 = vld [vmem:[#allocation5 + $0xc0] sm:$0xff]  }
 0xcb4   :  { %4794 = vmatprep.mubr.bf16.mxu1 %v13119_v59  ;;  %v12225_v63 = vadd.f32 %v12130_v8, %v4590_v43  ;;  %8542 = vmatprep.subr.bf16.mxu0 %v9262_v14 }
 0xcb5   :  { %v12228_v41 = vadd.f32 %v12130_v8, %v4589_v16  ;;  %v5309_v8 = vld [vmem:[%s13193_s7 + $0x8] sm:$0xff] }
 0xcb6   :  { %5331 = vperm.xlu1 %9209, %v5309_v8  }
 0xcb7   :  { %v4620_v27 = vpack.c.bf16 %v12225_v63, %v12228_v41  ;;  %8543 = vmatpush3.bf16.msra.mxu0 %v9263_v24 }
 0xcb8   :  { %8544 = vmatprep.subr.bf16.mxu0 %v9264_v2 }
 0xcba   :  { %5336 = vperm.xlu1 %9209, %v5310_v58  }
 0xcbb   :  { %4795 = vmatmul.mubr.bf16.gmra.mxu1 %v4618_v10  ;;  %8545 = vmatpush3.bf16.msra.mxu0 %v9265_v3 }
 0xcbc   :  { %4804 = vmatprep.mubr.bf16.mxu1 %v13119_v59 }
 0xcbe   :  { %5341 = vperm.xlu1 %9209, %v5311_v11  }
 0xcc2   :  { %5366 = vperm.xlu1 %9209, %v5316_v18  }
 0xcc3   :  { %4805 = vmatmul.mubr.bf16.gmra.mxu1 %v4619_v7 }
 0xcc4   :  { %4814 = vmatprep.mubr.bf16.mxu1 %v13119_v59 }
 0xcc6   :  { %5371 = vperm.xlu1 %9209, %v5317_v35  }
 0xcca   :  { %5376 = vperm.xlu1 %9209, %v5318_v50  }
 0xccb   :  { %4815 = vmatmul.mubr.bf16.gmra.mxu1 %v4620_v27 }
 0xcce   :  { %5381 = vperm.xlu1 %9209, %v5319_v23  }
 0xcd2   :  { %5346 = vperm.xlu1 %9209, %v5312_v54  }
 0xcd6   :  { %5386 = vperm.xlu1 %9209, %v5320_v6  }
 0xd53   :  { %v4746_v30 = vpop.f32.mrf.mxu1 }
 0xd54   :  { %v4747_v37 = vadd.f32 %v4746_v30, %v12275_v52 }
 0xd55   :  { %v4748_v44 = vpop.f32.mrf.mxu1 }
 0xd56   :  { %v4749_v32 = vadd.f32 %v4748_v44, %v12272_v45  ;;  %v4825_v1 = vmax.f32 %v4747_v37, 0.0 }
 0xd57   :  { %v4750_v48 = vpop.f32.mrf.mxu1 }
 0xd58   :  { %v4751_v19 = vadd.f32 %v4750_v48, %v12275_v52  ;;  %v4826_v22 = vmax.f32 %v4749_v32, 0.0 }
 0xd59   :  { %v4752_v20 = vpop.f32.mrf.mxu1 }
 0xd5a   :  { %v4753_v26 = vadd.f32 %v4752_v20, %v12272_v45  ;;  %v4827_v12 = vmax.f32 %v4751_v19, 0.0 }
 0xd5b   :  { %v4756_v10 = vpop.f32.mrf.mxu1 }
 0xd5c   :  { %v4828_v29 = vmax.f32 %v4753_v26, 0.0  ;;  %v4857_v40 = vpack.c.bf16 %v4827_v12, %v4825_v1  ;;  %v4757_v27 = vadd.f32 %v4756_v10, %v12275_v52 }
 0xd5d   :  { %v4758_v33 = vpop.f32.mrf.mxu1 }
 0xd5e   :  { %v4858_v62 = vpack.c.bf16 %v4828_v29, %v4826_v22  ;;  %v4759_v43 = vadd.f32 %v4758_v33, %v12272_v45  ;;  %v4829_v8 = vmax.f32 %v4757_v27, 0.0 }
 0xd5f   :  { %v4760_v7 = vpop.f32.mrf.mxu1 }
 0xd60   :  { %v4761_v16 = vadd.f32 %v4760_v7, %v12275_v52  ;;  %5007 = vmatprep.mubr.bf16.mxu0 %v4858_v62  ;;  %v4830_v2 = vmax.f32 %v4759_v43, 0.0 }
 0xd61   :  { %v4762_v42 = vpop.f32.mrf.mxu1  ;;  %5008 = vmatmul.mubr.bf16.vlgmr.msra.gmra.mxu0 %v4857_v40 }
 0xd62   :  { %v4763_v56 = vadd.f32 %v4762_v42, %v12272_v45  ;;  %v4831_v14 = vmax.f32 %v4761_v16, 0.0 }
 0xd63   :  { %v4766_v24 = vpop.f32.mrf.mxu1 }
 0xd64   :  { %v4832_v3 = vmax.f32 %v4763_v56, 0.0  ;;  %v4859_v31 = vpack.c.bf16 %v4831_v14, %v4829_v8  ;;  %v4767_v35 = vadd.f32 %v4766_v24, %v12275_v52 }
 0xd65   :  { %v4768_v58 = vpop.f32.mrf.mxu1 }
 0xd66   :  { %v4860_v9 = vpack.c.bf16 %v4832_v3, %v4830_v2  ;;  %v4769_v55 = vadd.f32 %v4768_v58, %v12272_v45  ;;  %v4833_v44 = vmax.f32 %v4767_v35, 0.0 }
 0xd67   :  { %v4770_v11 = vpop.f32.mrf.mxu1 }
 0xd68   :  { %v4771_v18 = vadd.f32 %v4770_v11, %v12275_v52  ;;  %5015 = vmatprep.mubr.bf16.mxu0 %v4860_v9  ;;  %v4834_v34 = vmax.f32 %v4769_v55, 0.0 }
 0xd69   :  { %v4772_v50 = vpop.f32.mrf.mxu1  ;;  %5016 = vmatmul.mubr.bf16.gmra.mxu0 %v4859_v31 }
 0xd6a   :  { %v4773_v23 = vadd.f32 %v4772_v50, %v12272_v45  ;;  %v4835_v54 = vmax.f32 %v4771_v18, 0.0 }
 0xd6b   :  { %v4776_v6 = vpop.f32.mrf.mxu1 }
 0xd6c   :  { %v4836_v30 = vmax.f32 %v4773_v23, 0.0  ;;  %v4861_v19 = vpack.c.bf16 %v4835_v54, %v4833_v44  ;;  %v4777_v12 = vadd.f32 %v4776_v6, %v12275_v52 }
 0xd6d   :  { %v4778_v48 = vpop.f32.mrf.mxu1 }
 0xd6e   :  { %v4862_v32 = vpack.c.bf16 %v4836_v30, %v4834_v34  ;;  %v4779_v20 = vadd.f32 %v4778_v48, %v12272_v45  ;;  %v4837_v40 = vmax.f32 %v4777_v12, 0.0 }
 0xd6f   :  { %v4780_v37 = vpop.f32.mrf.mxu1 }
 0xd70   :  { %v4781_v26 = vadd.f32 %v4780_v37, %v12275_v52  ;;  %5023 = vmatprep.mubr.bf16.mxu0 %v4862_v32  ;;  %v4838_v33 = vmax.f32 %v4779_v20, 0.0 }
 0xd71   :  { %v4782_v10 = vpop.f32.mrf.mxu1  ;;  %5024 = vmatmul.mubr.bf16.gmra.mxu0 %v4861_v19 }
 0xd72   :  { %v4783_v22 = vadd.f32 %v4782_v10, %v12272_v45  ;;  %v4839_v29 = vmax.f32 %v4781_v26, 0.0 }
 0xd73   :  { %v4786_v1 = vpop.f32.mrf.mxu1 }
 0xd74   :  { %v4840_v62 = vmax.f32 %v4783_v22, 0.0  ;;  %v4863_v16 = vpack.c.bf16 %v4839_v29, %v4837_v40  ;;  %v4787_v14 = vadd.f32 %v4786_v1, %v12275_v52 }
 0xd75   :  { %v4788_v7 = vpop.f32.mrf.mxu1 }
 0xd76   :  { %v4864_v43 = vpack.c.bf16 %v4840_v62, %v4838_v33  ;;  %v4789_v42 = vadd.f32 %v4788_v7, %v12272_v45  ;;  %v4841_v31 = vmax.f32 %v4787_v14, 0.0 }
 0xd77   :  { %v4790_v27 = vpop.f32.mrf.mxu1 }
 0xd78   :  { %v4791_v56 = vadd.f32 %v4790_v27, %v12275_v52  ;;  %5031 = vmatprep.mubr.bf16.mxu0 %v4864_v43  ;;  %v4842_v58 = vmax.f32 %v4789_v42, 0.0 }
 0xd79   :  { %v4792_v24 = vpop.f32.mrf.mxu1  ;;  %5032 = vmatmul.mubr.bf16.gmra.mxu0 %v4863_v16 }
 0xd7a   :  { %v4793_v2 = vadd.f32 %v4792_v24, %v12272_v45  ;;  %v4843_v3 = vmax.f32 %v4791_v56, 0.0 }
 0xd7b   :  { %v4796_v8 = vpop.f32.mrf.mxu1 }
 0xd7c   :  { %v4844_v9 = vmax.f32 %v4793_v2, 0.0  ;;  %v4865_v18 = vpack.c.bf16 %v4843_v3, %v4841_v31  ;;  %v4797_v54 = vadd.f32 %v4796_v8, %v12275_v52 }
 0xd7d   :  { %v4798_v11 = vpop.f32.mrf.mxu1 }
 0xd7e   :  { %v4866_v55 = vpack.c.bf16 %v4844_v9, %v4842_v58  ;;  %v4799_v50 = vadd.f32 %v4798_v11, %v12272_v45  ;;  %v4845_v19 = vmax.f32 %v4797_v54, 0.0 }
 0xd7f   :  { %v4800_v35 = vpop.f32.mrf.mxu1 }
 0xd80   :  { %v4801_v23 = vadd.f32 %v4800_v35, %v12275_v52  ;;  %5039 = vmatprep.mubr.bf16.mxu0 %v4866_v55  ;;  %v4846_v48 = vmax.f32 %v4799_v50, 0.0 }
 0xd81   :  { %v4802_v6 = vpop.f32.mrf.mxu1  ;;  %5040 = vmatmul.mubr.bf16.gmra.mxu0 %v4865_v18 }
 0xd82   :  { %v4803_v34 = vadd.f32 %v4802_v6, %v12272_v45  ;;  %v4847_v30 = vmax.f32 %v4801_v23, 0.0  ;;  %v12312_v23 = vld [vmem:[%s12910_s16 + $0x1] ss:$0 sm:$0xff] }
 0xd83   :  { %v4806_v44 = vpop.f32.mrf.mxu1 }
 0xd84   :  { %v4848_v32 = vmax.f32 %v4803_v34, 0.0  ;;  %v4867_v26 = vpack.c.bf16 %v4847_v30, %v4845_v19  ;;  %v4807_v29 = vadd.f32 %v4806_v44, %v12275_v52 }
 0xd85   :  { %v4808_v37 = vpop.f32.mrf.mxu1 }
 0xd86   :  { %v4868_v20 = vpack.c.bf16 %v4848_v32, %v4846_v48  ;;  %v4809_v10 = vadd.f32 %v4808_v37, %v12272_v45  ;;  %v4849_v16 = vmax.f32 %v4807_v29, 0.0 }
 0xd87   :  { %v4810_v12 = vpop.f32.mrf.mxu1 }
 0xd88   :  { %v4811_v22 = vadd.f32 %v4810_v12, %v12275_v52  ;;  %5047 = vmatprep.mubr.bf16.mxu0 %v4868_v20  ;;  %v4850_v7 = vmax.f32 %v4809_v10, 0.0 }
 0xd89   :  { %v4812_v1 = vpop.f32.mrf.mxu1  ;;  %5048 = vmatmul.mubr.bf16.gmra.mxu0 %v4867_v26 }
 0xd8a   :  { %v4813_v33 = vadd.f32 %v4812_v1, %v12272_v45  ;;  %v4851_v62 = vmax.f32 %v4811_v22, 0.0 }
 0xd8b   :  { %v4816_v40 = vpop.f32.mrf.mxu1 }
 0xd8c   :  { %v4852_v43 = vmax.f32 %v4813_v33, 0.0  ;;  %v4869_v56 = vpack.c.bf16 %v4851_v62, %v4849_v16  ;;  %v4817_v3 = vadd.f32 %v4816_v40, %v12275_v52 }
 0xd8d   :  { %v4818_v27 = vpop.f32.mrf.mxu1 }
 0xd8e   :  { %v4870_v42 = vpack.c.bf16 %v4852_v43, %v4850_v7  ;;  %v4819_v24 = vadd.f32 %v4818_v27, %v12272_v45  ;;  %v4853_v55 = vmax.f32 %v4817_v3, 0.0 }
 0xd8f   :  { %v4820_v14 = vpop.f32.mrf.mxu1 }
 0xd90   :  { %v4821_v2 = vadd.f32 %v4820_v14, %v12275_v52  ;;  %5055 = vmatprep.mubr.bf16.mxu0 %v4870_v42  ;;  %v4854_v31 = vmax.f32 %v4819_v24, 0.0 }
 0xd91   :  { %v4822_v8 = vpop.f32.mrf.mxu1  ;;  %5056 = vmatmul.mubr.bf16.gmra.mxu0 %v4869_v56 }
 0xd92   :  { %v4823_v58 = vadd.f32 %v4822_v8, %v12272_v45  ;;  %v4855_v9 = vmax.f32 %v4821_v2, 0.0 }
 0xd94   :  { %v4856_v11 = vmax.f32 %v4823_v58, 0.0  ;;  %v4871_v35 = vpack.c.bf16 %v4855_v9, %v4853_v55 }
 0xd96   :  { %v4872_v18 = vpack.c.bf16 %v4856_v11, %v4854_v31 }
 0xd98   :  { %5063 = vmatprep.mubr.bf16.mxu0 %v4872_v18 }
 0xd99   :  { %5064 = vmatmul.mubr.bf16.gmra.mxu0 %v4871_v35 }
 0xe21   :  { %v8546_v50 = vpop.f32.mrf.mxu0 }
 0xe23   :  { %v8547_v54 = vpop.f32.mrf.mxu0 }
 0xe24   :  { %v8548_v52 = vadd.f32 %v8547_v54, %v8546_v50 }
 0xe25   :  { %v8549_v6 = vpop.f32.mrf.mxu0 }
 0xe26   :  { %v5010_v34 = vadd.f32 %v8548_v52, %v12312_v23 }
 0xe27   :  { %v8550_v45 = vpop.f32.mrf.mxu0 }
 0xe28   :  { %v8551_v30 = vadd.f32 %v8550_v45, %v8549_v6  ;;  %v12316_v44 = vadd.f32 %v5010_v34, %v12134_v46 }
 0xe29   :  { %v8552_v48 = vpop.f32.mrf.mxu0 }
 0xe2a   :  { %v5013_v32 = vadd.f32 %v8551_v30, %v12312_v23  ;;  %5088 = vadd.xlane.f32.xlu0 %v12316_v44 }
 0xe2b   :  { %v8553_v19 = vpop.f32.mrf.mxu0 }
 0xe2c   :  { %v8554_v37 = vadd.f32 %v8553_v19, %v8552_v48  ;;  %v12321_v20 = vadd.f32 %v5013_v32, %v12138_v49 }
 0xe2d   :  { %v8555_v26 = vpop.f32.mrf.mxu0 }
 0xe2e   :  { %v5018_v12 = vadd.f32 %v8554_v37, %v12312_v23  ;;  %5090 = vadd.xlane.f32.xlu1 %v12321_v20 }
 0xe2f   :  { %v8556_v10 = vpop.f32.mrf.mxu0 }
 0xe30   :  { %v8557_v22 = vadd.f32 %v8556_v10, %v8555_v26  ;;  %v12326_v46 = vadd.f32 %v5018_v12, %v12150_v61 }
 0xe31   :  { %v8558_v29 = vpop.f32.mrf.mxu0 }
 0xe32   :  { %v5021_v1 = vadd.f32 %v8557_v22, %v12312_v23  ;;  %5092 = vadd.xlane.f32.xlu0 %v12326_v46 }
 0xe33   :  { %v8559_v33 = vpop.f32.mrf.mxu0 }
 0xe34   :  { %v8560_v62 = vadd.f32 %v8559_v33, %v8558_v29  ;;  %v12331_v49 = vadd.f32 %v5021_v1, %v12147_v17 }
 0xe35   :  { %v8561_v40 = vpop.f32.mrf.mxu0 }
 0xe36   :  { %v5026_v7 = vadd.f32 %v8560_v62, %v12312_v23  ;;  %5094 = vadd.xlane.f32.xlu1 %v12331_v49 }
 0xe37   :  { %v8562_v43 = vpop.f32.mrf.mxu0 }
 0xe38   :  { %v8563_v16 = vadd.f32 %v8562_v43, %v8561_v40  ;;  %v12336_v61 = vadd.f32 %v5026_v7, %v12160_v51 }
 0xe39   :  { %v8564_v27 = vpop.f32.mrf.mxu0 }
 0xe3a   :  { %v5029_v42 = vadd.f32 %v8563_v16, %v12312_v23  ;;  %5096 = vadd.xlane.f32.xlu0 %v12336_v61 }
 0xe3b   :  { %v8565_v56 = vpop.f32.mrf.mxu0 }
 0xe3c   :  { %v8566_v14 = vadd.f32 %v8565_v56, %v8564_v27  ;;  %v12341_v17 = vadd.f32 %v5029_v42, %v12163_v53 }
 0xe3d   :  { %v8567_v24 = vpop.f32.mrf.mxu0 }
 0xe3e   :  { %v5034_v2 = vadd.f32 %v8566_v14, %v12312_v23  ;;  %5098 = vadd.xlane.f32.xlu1 %v12341_v17 }
 0xe3f   :  { %v8568_v3 = vpop.f32.mrf.mxu0 }
 0xe40   :  { %v8569_v8 = vadd.f32 %v8568_v3, %v8567_v24  ;;  %v12346_v51 = vadd.f32 %v5034_v2, %v12177_v47  ;;  %v5315_v24 = vld [vmem:[%s13193_s7 + $0x38] sm:$0xff] }
 0xe41   :  { %v8570_v58 = vpop.f32.mrf.mxu0 }
 0xe42   :  { %v5037_v9 = vadd.f32 %v8569_v8, %v12312_v23  ;;  %5100 = vadd.xlane.f32.xlu0 %v12346_v51 }
 0xe43   :  { %v8571_v31 = vpop.f32.mrf.mxu0 }
 0xe44   :  { %v8572_v11 = vadd.f32 %v8571_v31, %v8570_v58  ;;  %v12351_v53 = vadd.f32 %v5037_v9, %v12173_v21  ;;  %v12412_v58 = vpop.permute.xlu0 %5326 }
 0xe45   :  { %v8573_v55 = vpop.f32.mrf.mxu0 }
 0xe46   :  { %v5042_v18 = vadd.f32 %v8572_v11, %v12312_v23  ;;  %5102 = vadd.xlane.f32.xlu1 %v12351_v53 }
 0xe47   :  { %v8574_v35 = vpop.f32.mrf.mxu0 }
 0xe48   :  { %v8575_v50 = vadd.f32 %v8574_v35, %v8573_v55  ;;  %v12356_v47 = vadd.f32 %v5042_v18, %v12190_v5  ;;  %v12416_v31 = vpop.permute.xlu0 %5351 }
 0xe49   :  { %v8576_v54 = vpop.f32.mrf.mxu0 }
 0xe4a   :  { %v5045_v52 = vadd.f32 %v8575_v50, %v12312_v23  ;;  %5104 = vadd.xlane.f32.xlu0 %v12356_v47 }
 0xe4b   :  { %v8577_v6 = vpop.f32.mrf.mxu0 }
 0xe4c   :  { %v8578_v34 = vadd.f32 %v8577_v6, %v8576_v54  ;;  %v12361_v21 = vadd.f32 %v5045_v52, %v12186_v57  ;;  %v12420_v55 = vpop.permute.xlu0 %5391 }
 0xe4d   :  { %v8579_v45 = vpop.f32.mrf.mxu0 }
 0xe4e   :  { %v5050_v30 = vadd.f32 %v8578_v34, %v12312_v23  ;;  %5106 = vadd.xlane.f32.xlu1 %v12361_v21 }
 0xe4f   :  { %v8580_v48 = vpop.f32.mrf.mxu0 }
 0xe50   :  { %v8581_v32 = vadd.f32 %v8580_v48, %v8579_v45  ;;  %v12366_v5 = vadd.f32 %v5050_v30, %v12203_v36 }
 0xe51   :  { %v8582_v19 = vpop.f32.mrf.mxu0 }
 0xe52   :  { %v5053_v37 = vadd.f32 %v8581_v32, %v12312_v23  ;;  %5108 = vadd.xlane.f32.xlu0 %v12366_v5 }
 0xe53   :  { %v8583_v26 = vpop.f32.mrf.mxu0 }
 0xe54   :  { %v8584_v12 = vadd.f32 %v8583_v26, %v8582_v19  ;;  %v12371_v57 = vadd.f32 %v5053_v37, %v12199_v39 }
 0xe55   :  { %v8585_v10 = vpop.f32.mrf.mxu0 }
 0xe56   :  { %v5058_v22 = vadd.f32 %v8584_v12, %v12312_v23  ;;  %5110 = vadd.xlane.f32.xlu1 %v12371_v57 }
 0xe57   :  { %v8586_v29 = vpop.f32.mrf.mxu0 }
 0xe58   :  { %v8587_v1 = vadd.f32 %v8586_v29, %v8585_v10  ;;  %v12376_v36 = vadd.f32 %v5058_v22, %v12216_v0 }
 0xe59   :  { %v8588_v33 = vpop.f32.mrf.mxu0 }
 0xe5a   :  { %v5061_v62 = vadd.f32 %v8587_v1, %v12312_v23  ;;  %5112 = vadd.xlane.f32.xlu0 %v12376_v36 }
 0xe5b   :  { %v8589_v40 = vpop.f32.mrf.mxu0 }
 0xe5c   :  { %v8590_v7 = vadd.f32 %v8589_v40, %v8588_v33  ;;  %v12381_v39 = vadd.f32 %v5061_v62, %v12212_v28  ;;  %v5314_v28 = vld [vmem:[%s13193_s7 + $0x30] sm:$0xff] }
 0xe5d   :  { %v8591_v43 = vpop.f32.mrf.mxu0 }
 0xe5e   :  { %v5066_v16 = vadd.f32 %v8590_v7, %v12312_v23  ;;  %5114 = vadd.xlane.f32.xlu1 %v12381_v39 }
 0xe5f   :  { %v8592_v27 = vpop.f32.mrf.mxu0 }
 0xe60   :  { %v8593_v42 = vadd.f32 %v8592_v27, %v8591_v43  ;;  %v12386_v0 = vadd.f32 %v5066_v16, %v12228_v41  ;;  %v12400_v41 = vpop.permute.xlu1 %5331 }
 0xe62   :  { %v5069_v56 = vadd.f32 %v8593_v42, %v12312_v23  ;;  %5116 = vadd.xlane.f32.xlu0 %v12386_v0 }
 0xe64   :  { %v12391_v14 = vadd.f32 %v5069_v56, %v12225_v63  ;;  %v12402_v23 = vpop.permute.xlu1 %5336 }
 0xe66   :  { %5118 = vadd.xlane.f32.xlu1 %v12391_v14 }
 0xe68   :  { %v12404_v2 = vpop.permute.xlu1 %5341 }
 0xe6c   :  { %v12406_v63 = vpop.permute.xlu1 %5366 }
 0xe70   :  { %v12408_v3 = vpop.permute.xlu1 %5371 }
 0xe74   :  { %v12410_v8 = vpop.permute.xlu1 %5376 }
 0xe77   :  { %5356 = vperm.xlu1 %9209, %v5314_v28  }
 0xe78   :  { %5361 = vperm.xlu0 %9208, %v5315_v24   ;;  %v12414_v9 = vpop.permute.xlu1 %5381 }
 0xe7c   :  { %v12418_v11 = vpop.permute.xlu1 %5346 }
 0xe80   :  { %v12422_v18 = vpop.permute.xlu1 %5386 }
 0xeb3   :  { %v5089_v35 = vpop.xlane.xlu0 %5088 }
 0xeb4   :  { %v5120_v50 = vmul.f32 0.0078125, %v5089_v35 }
 0xeb6   :  { %v12425_v54 = vsub.f32 %v12316_v44, %v5120_v50 }
 0xeb7   :  { %v5091_v52 = vpop.xlane.xlu1 %5090 }
 0xeb8   :  { %v5121_v6 = vmul.f32 0.0078125, %v5091_v52  ;;  %v5152_v34 = vmul.f32 %v12425_v54, %v12425_v54 }
 0xeba   :  { %v12430_v45 = vsub.f32 %v12321_v20, %v5121_v6  ;;  %5168 = vadd.xlane.f32.xlu0 %v5152_v34 }
 0xebb   :  { %v5093_v30 = vpop.xlane.xlu0 %5092 }
 0xebc   :  { %v5122_v48 = vmul.f32 0.0078125, %v5093_v30  ;;  %v5153_v32 = vmul.f32 %v12430_v45, %v12430_v45 }
 0xebe   :  { %v12435_v19 = vsub.f32 %v12326_v46, %v5122_v48  ;;  %5170 = vadd.xlane.f32.xlu1 %v5153_v32 }
 0xebf   :  { %v5095_v44 = vpop.xlane.xlu1 %5094 }
 0xec0   :  { %v5123_v37 = vmul.f32 0.0078125, %v5095_v44  ;;  %v5154_v26 = vmul.f32 %v12435_v19, %v12435_v19 }
 0xec2   :  { %v12440_v12 = vsub.f32 %v12331_v49, %v5123_v37  ;;  %5172 = vadd.xlane.f32.xlu0 %v5154_v26 }
 0xec3   :  { %v5097_v20 = vpop.xlane.xlu0 %5096 }
 0xec4   :  { %v5124_v10 = vmul.f32 0.0078125, %v5097_v20  ;;  %v5155_v22 = vmul.f32 %v12440_v12, %v12440_v12 }
 0xec6   :  { %v12445_v29 = vsub.f32 %v12336_v61, %v5124_v10  ;;  %5174 = vadd.xlane.f32.xlu1 %v5155_v22 }
 0xec7   :  { %v5099_v46 = vpop.xlane.xlu1 %5098 }
 0xec8   :  { %v5125_v1 = vmul.f32 0.0078125, %v5099_v46  ;;  %v5156_v33 = vmul.f32 %v12445_v29, %v12445_v29 }
 0xeca   :  { %v12450_v62 = vsub.f32 %v12341_v17, %v5125_v1  ;;  %5176 = vadd.xlane.f32.xlu0 %v5156_v33 }
 0xecb   :  { %v5101_v49 = vpop.xlane.xlu0 %5100 }
 0xecc   :  { %v5126_v40 = vmul.f32 0.0078125, %v5101_v49  ;;  %v5157_v7 = vmul.f32 %v12450_v62, %v12450_v62 }
 0xece   :  { %v12455_v43 = vsub.f32 %v12346_v51, %v5126_v40  ;;  %5178 = vadd.xlane.f32.xlu1 %v5157_v7 }
 0xecf   :  { %v5103_v61 = vpop.xlane.xlu1 %5102 }
 0xed0   :  { %v5127_v16 = vmul.f32 0.0078125, %v5103_v61  ;;  %v5158_v27 = vmul.f32 %v12455_v43, %v12455_v43 }
 0xed2   :  { %v12460_v42 = vsub.f32 %v12351_v53, %v5127_v16  ;;  %5180 = vadd.xlane.f32.xlu0 %v5158_v27  ;;  %v5322_v16 = vld [vmem:[%s13193_s7 + $0x70] sm:$0xff]  ;;  %v8183_v27 = vld [vmem:[#allocation7] ss:$0 sm:$0xff] }
 0xed3   :  { %v5105_v17 = vpop.xlane.xlu0 %5104 }
 0xed4   :  { %v5128_v56 = vmul.f32 0.0078125, %v5105_v17  ;;  %v5159_v28 = vmul.f32 %v12460_v42, %v12460_v42 }
 0xed6   :  { %v12465_v24 = vsub.f32 %v12356_v47, %v5128_v56  ;;  %5182 = vadd.xlane.f32.xlu1 %v5159_v28 }
 0xed7   :  { %v5107_v51 = vpop.xlane.xlu1 %5106 }
 0xed8   :  { %v5129_v35 = vmul.f32 0.0078125, %v5107_v51  ;;  %v5160_v50 = vmul.f32 %v12465_v24, %v12465_v24 }
 0xeda   :  { %v12470_v52 = vsub.f32 %v12361_v21, %v5129_v35  ;;  %5184 = vadd.xlane.f32.xlu0 %v5160_v50 }
 0xedb   :  { %v5109_v53 = vpop.xlane.xlu0 %5108 }
 0xedc   :  { %v5130_v6 = vmul.f32 0.0078125, %v5109_v53  ;;  %v5161_v34 = vmul.f32 %v12470_v52, %v12470_v52 }
 0xede   :  { %v12475_v30 = vsub.f32 %v12366_v5, %v5130_v6  ;;  %5186 = vadd.xlane.f32.xlu1 %v5161_v34 }
 0xedf   :  { %v5111_v47 = vpop.xlane.xlu1 %5110 }
 0xee0   :  { %v5131_v48 = vmul.f32 0.0078125, %v5111_v47  ;;  %v5162_v32 = vmul.f32 %v12475_v30, %v12475_v30 }
 0xee2   :  { %v12480_v44 = vsub.f32 %v12371_v57, %v5131_v48  ;;  %5188 = vadd.xlane.f32.xlu0 %v5162_v32 }
 0xee3   :  { %v5113_v21 = vpop.xlane.xlu0 %5112 }
 0xee4   :  { %v5132_v37 = vmul.f32 0.0078125, %v5113_v21  ;;  %v5163_v26 = vmul.f32 %v12480_v44, %v12480_v44 }
 0xee6   :  { %v12485_v20 = vsub.f32 %v12376_v36, %v5132_v37  ;;  %5190 = vadd.xlane.f32.xlu1 %v5163_v26 }
 0xee7   :  { %v5115_v5 = vpop.xlane.xlu1 %5114 }
 0xee8   :  { %v5133_v10 = vmul.f32 0.0078125, %v5115_v5  ;;  %v5164_v22 = vmul.f32 %v12485_v20, %v12485_v20 }
 0xeea   :  { %v12490_v46 = vsub.f32 %v12381_v39, %v5133_v10  ;;  %5192 = vadd.xlane.f32.xlu0 %v5164_v22 }
 0xeeb   :  { %v5117_v57 = vpop.xlane.xlu0 %5116 }
 0xeec   :  { %v5134_v1 = vmul.f32 0.0078125, %v5117_v57  ;;  %v5165_v33 = vmul.f32 %v12490_v46, %v12490_v46 }
 0xeee   :  { %v12495_v49 = vsub.f32 %v12386_v0, %v5134_v1  ;;  %5194 = vadd.xlane.f32.xlu1 %v5165_v33  ;;  %v5323_v0 = vld [vmem:[%s13193_s7 + $0x78] sm:$0xff] }
 0xeef   :  { %v5119_v36 = vpop.xlane.xlu1 %5118 }
 0xef0   :  { %v5135_v40 = vmul.f32 0.0078125, %v5119_v36  ;;  %v5166_v7 = vmul.f32 %v12495_v49, %v12495_v49 }
 0xef2   :  { %v12500_v61 = vsub.f32 %v12391_v14, %v5135_v40  ;;  %5196 = vadd.xlane.f32.xlu0 %v5166_v7 }
 0xef3   :  { %v12510_v17 = vpop.permute.xlu0 %5361  ;;  %v12512_v14 = vpop.permute.xlu1 %5356 }
 0xef4   :  { %v5167_v39 = vmul.f32 %v12500_v61, %v12500_v61 }
 0xef6   :  { %5198 = vadd.xlane.f32.xlu1 %v5167_v39 }
 0xf07   :  { %5396 = vperm.xlu1 %9209, %v5322_v16  }
 0xf08   :  { %5401 = vperm.xlu0 %9208, %v5323_v0  }
 0xf0b   :  { %5443 = vperm.xlu1 %9209, %v8183_v27  }
 0xf43   :  { %v5169_v56 = vpop.xlane.xlu0 %5168 }
 0xf44   :  { %v5200_v35 = vmul.f32 0.0078125, %v5169_v56 }
 0xf46   :  { %v5216_v48 = vadd.f32 1e-05, %v5200_v35 }
 0xf47   :  { %v5171_v28 = vpop.xlane.xlu1 %5170 }
 0xf48   :  { %v5201_v53 = vmul.f32 0.0078125, %v5171_v28  ;;  %9330 = vrsqrt.f32 %v5216_v48 }
 0xf4a   :  { %v5217_v37 = vadd.f32 1e-05, %v5201_v53 }
 0xf4b   :  { %v5173_v51 = vpop.xlane.xlu0 %5172 }
 0xf4c   :  { %v5202_v34 = vmul.f32 0.0078125, %v5173_v51  ;;  %9332 = vrsqrt.f32 %v5217_v37 }
 0xf4e   :  { %v5218_v5 = vadd.f32 1e-05, %v5202_v34 }
 0xf4f   :  { %v5175_v50 = vpop.xlane.xlu1 %5174 }
 0xf50   :  { %v5203_v47 = vmul.f32 0.0078125, %v5175_v50  ;;  %9334 = vrsqrt.f32 %v5218_v5 }
 0xf52   :  { %v5219_v10 = vadd.f32 1e-05, %v5203_v47 }
 0xf53   :  { %v5177_v6 = vpop.xlane.xlu0 %5176 }
 0xf54   :  { %v5204_v32 = vmul.f32 0.0078125, %v5177_v6  ;;  %9336 = vrsqrt.f32 %v5219_v10 }
 0xf55   :  { %v9331_v0 = vpop.eup %9330 }
 0xf56   :  { %v5220_v22 = vadd.f32 1e-05, %v5204_v32  ;;  %v5248_v37 = vmul.f32 %v9331_v0, %v12425_v54 }
 0xf57   :  { %v5179_v21 = vpop.xlane.xlu1 %5178 }
 0xf58   :  { %v5205_v26 = vmul.f32 0.0078125, %v5179_v21  ;;  %9338 = vrsqrt.f32 %v5220_v22 }
 0xf59   :  { %v9333_v27 = vpop.eup %9332 }
 0xf5a   :  { %v5221_v1 = vadd.f32 1e-05, %v5205_v26  ;;  %v5249_v22 = vmul.f32 %v9333_v27, %v12430_v45 }
 0xf5b   :  { %v5181_v57 = vpop.xlane.xlu0 %5180 }
 0xf5c   :  { %v5206_v33 = vmul.f32 0.0078125, %v5181_v57  ;;  %9340 = vrsqrt.f32 %v5221_v1 }
 0xf5d   :  { %v9335_v56 = vpop.eup %9334 }
 0xf5e   :  { %v5222_v36 = vadd.f32 1e-05, %v5206_v33  ;;  %v5250_v47 = vmul.f32 %v9335_v56, %v12435_v19  ;;  %v12523_v19 = vld [vmem:[%s12911_s17 + $0x1] ss:$0 sm:$0xff] }
 0xf5f   :  { %v5183_v40 = vpop.xlane.xlu1 %5182  ;;  %v5271_v27 = vmul.f32 %v12523_v19, %v5249_v22 }
 0xf60   :  { %v5207_v7 = vmul.f32 0.0078125, %v5183_v40  ;;  %9342 = vrsqrt.f32 %v5222_v36  ;;  %v5272_v54 = vmul.f32 %v12523_v19, %v5250_v47 }
 0xf61   :  { %v9337_v28 = vpop.eup %9336 }
 0xf62   :  { %v5223_v39 = vadd.f32 1e-05, %v5207_v7  ;;  %v5251_v32 = vmul.f32 %v9337_v28, %v12440_v12 }
 0xf63   :  { %v5185_v16 = vpop.xlane.xlu0 %5184 }
 0xf64   :  { %9344 = vrsqrt.f32 %v5223_v39  ;;  %v5208_v53 = vmul.f32 0.0078125, %v5185_v16  ;;  %v5273_v45 = vmul.f32 %v12523_v19, %v5251_v32  ;;  %v5270_v39 = vmul.f32 %v12523_v19, %v5248_v37 }
 0xf65   :  { %v9339_v50 = vpop.eup %9338 }
 0xf66   :  { %v5252_v26 = vmul.f32 %v9339_v50, %v12445_v29  ;;  %v5224_v1 = vadd.f32 1e-05, %v5208_v53 }
 0xf67   :  { %v5187_v51 = vpop.xlane.xlu1 %5186 }
 0xf68   :  { %v5209_v5 = vmul.f32 0.0078125, %v5187_v51  ;;  %v5274_v16 = vmul.f32 %v12523_v19, %v5252_v26 }
 0xf69   :  { %v9341_v34 = vpop.eup %9340 }
 0xf6a   :  { %v5253_v57 = vmul.f32 %v9341_v34, %v12450_v62  ;;  %v5225_v7 = vadd.f32 1e-05, %v5209_v5 }
 0xf6b   :  { %v5189_v35 = vpop.xlane.xlu0 %5188 }
 0xf6c   :  { %v5210_v6 = vmul.f32 0.0078125, %v5189_v35  ;;  %v5275_v56 = vmul.f32 %v12523_v19, %v5253_v57 }
 0xf6d   :  { %v9343_v48 = vpop.eup %9342 }
 0xf6e   :  { %v5226_v21 = vadd.f32 1e-05, %v5210_v6  ;;  %v5254_v12 = vmul.f32 %v9343_v48, %v12455_v43  ;;  %v12534_v43 = vld [vmem:[%s12912_s18 + $0x1] ss:$0 sm:$0xff] }
 0xf6f   :  { %v5191_v10 = vpop.xlane.xlu1 %5190  ;;  %v5294_v28 = vadd.f32 %v12534_v43, %v5272_v54  ;;  %v5295_v50 = vadd.f32 %v12534_v43, %v5273_v45  ;;  %v5292_v6 = vadd.f32 %v12534_v43, %v5270_v39  ;;  %v5296_v34 = vadd.f32 %v12534_v43, %v5274_v16 }
 0xf70   :  { %v5211_v33 = vmul.f32 0.0078125, %v5191_v10  ;;  %9346 = vrsqrt.f32 %v5226_v21  ;;  %v5293_v48 = vadd.f32 %v12534_v43, %v5271_v27  ;;  %v5297_v32 = vadd.f32 %v12534_v43, %v5275_v56 }
 0xf71   :  { %v9345_v36 = vpop.eup %9344  ;;  %9348 = vrsqrt.f32 %v5224_v1  ;;  %v5406_v37 = vmul.f32 %v12402_v23, %v5294_v28  ;;  %v5407_v10 = vmul.f32 %v12404_v2, %v5295_v50  ;;  %v5404_v57 = vmul.f32 %v12412_v58, %v5292_v6  ;;  %v13195_v6 = vld [vmem:[#allocation109_spill] sm:$0xff] }
 0xf72   :  { %v5227_v29 = vadd.f32 1e-05, %v5211_v33  ;;  %v5255_v40 = vmul.f32 %v9345_v36, %v12460_v42  ;;  %v5276_v42 = vmul.f32 %v12523_v19, %v5254_v12  ;;  %v5408_v1 = vmul.f32 %v12418_v11, %v5296_v34 }
 0xf73   :  { %v5193_v62 = vpop.xlane.xlu0 %5192  ;;  %v5405_v36 = vmul.f32 %v12400_v41, %v5293_v48  ;;  %v5409_v12 = vmul.f32 %v12416_v31, %v5297_v32 }
 0xf74   :  { %v5212_v0 = vmul.f32 0.0078125, %v5193_v62  ;;  %9350 = vrsqrt.f32 %v5227_v29  ;;  %v5277_v35 = vmul.f32 %v12523_v19, %v5255_v40  ;;  %v5298_v21 = vadd.f32 %v12534_v43, %v5276_v42 }
 0xf75   :  { %9352 = vrsqrt.f32 %v5225_v7  ;;  %v5420_v29 = vadd.f32 %v5406_v37, %v5404_v57  ;;  %v5421_v40 = vadd.f32 %v5407_v10, %v5405_v36 }
 0xf76   :  { %v5228_v51 = vadd.f32 1e-05, %v5212_v0  ;;  %v5299_v5 = vadd.f32 %v12534_v43, %v5277_v35  ;;  %v5410_v54 = vmul.f32 %v12512_v14, %v5298_v21 }
 0xf77   :  { %v5195_v53 = vpop.xlane.xlu1 %5194  ;;  %v5424_v62 = vadd.f32 %v5420_v29, %v5408_v1  ;;  %v5425_v39 = vadd.f32 %v5421_v40, %v5409_v12 }
 0xf78   :  { %9354 = vrsqrt.f32 %v5228_v51  ;;  %v5213_v47 = vmul.f32 0.0078125, %v5195_v53  ;;  %v5411_v45 = vmul.f32 %v12510_v17, %v5299_v5  ;;  %v13194_v17 = vld [vmem:[#allocation107_spill] sm:$0xff] }
 0xf79   :  { %v5428_v16 = vadd.f32 %v5424_v62, %v5410_v54 }
 0xf7a   :  { %v5229_v26 = vadd.f32 1e-05, %v5213_v47  ;;  %v5429_v27 = vadd.f32 %v5425_v39, %v5411_v45 }
 0xf7b   :  { %v5197_v22 = vpop.xlane.xlu0 %5196  ;;  %v5432_v51 = vadd.f32 %v5428_v16, %v13194_v17 }
 0xf7c   :  { %9356 = vrsqrt.f32 %v5229_v26  ;;  %v5214_v33 = vmul.f32 0.0078125, %v5197_v22  ;;  %v5433_v34 = vadd.f32 %v5429_v27, %v13195_v6 }
 0xf7d   :  { %v9347_v7 = vpop.eup %9346 }
 0xf7e   :  { %v5230_v23 = vadd.f32 1e-05, %v5214_v33  ;;  %v9349_v11 = vpop.eup %9348  ;;  %v5258_v41 = vmul.f32 %v9347_v7, %v12475_v30 }
 0xf7f   :  { %v5199_v2 = vpop.xlane.xlu1 %5198  ;;  %v5256_v42 = vmul.f32 %v9349_v11, %v12465_v24 }
 0xf80   :  { %9358 = vrsqrt.f32 %v5230_v23  ;;  %v5215_v58 = vmul.f32 0.0078125, %v5199_v2  ;;  %v5280_v50 = vmul.f32 %v12523_v19, %v5258_v41  ;;  %v13196_v41 = vld [vmem:[#allocation106_spill] sm:$0xff] }
 0xf81   :  { %v9351_v31 = vpop.eup %9350  ;;  %v5278_v48 = vmul.f32 %v12523_v19, %v5256_v42 }
 0xf82   :  { %v5231_v0 = vadd.f32 1e-05, %v5215_v58  ;;  %v9353_v14 = vpop.eup %9352  ;;  %v5259_v53 = vmul.f32 %v9351_v31, %v12480_v44 }
 0xf83   :  { %v5397_v56 = vpop.permute.xlu1 %5396  ;;  %v5257_v30 = vmul.f32 %v9353_v14, %v12470_v52  ;;  %v5300_v5 = vadd.f32 %v12534_v43, %v5278_v48 }
 0xf84   :  { %9360 = vrsqrt.f32 %v5231_v0  ;;  %v5281_v44 = vmul.f32 %v12523_v19, %v5259_v53  ;;  %v5402_v0 = vpop.permute.xlu0 %5401 }
 0xf85   :  { %v9355_v28 = vpop.eup %9354  ;;  %v5279_v52 = vmul.f32 %v12523_v19, %v5257_v30  ;;  %v5412_v54 = vmul.f32 %v12406_v63, %v5300_v5 }
 0xf86   :  { %v5260_v35 = vmul.f32 %v9355_v28, %v12485_v20  ;;  %v5302_v20 = vadd.f32 %v12534_v43, %v5280_v50 }
 0xf87   :  { %v5444_v47 = vpop.permute.xlu1 %5443  ;;  %v5301_v36 = vadd.f32 %v12534_v43, %v5279_v52 }
 0xf88   :  { %v5282_v32 = vmul.f32 %v12523_v19, %v5260_v35  ;;  %v12566_v21 = vadd.f32 %v5444_v47, %v5432_v51  ;;  %v12568_v24 = vadd.f32 %v5444_v47, %v5433_v34  ;;  %v5414_v33 = vmul.f32 %v12410_v8, %v5302_v20 }
 0xf89   :  { %v9357_v37 = vpop.eup %9356  ;;  %v5413_v2 = vmul.f32 %v12408_v3, %v5301_v36 }
 0xf8a   :  { %v5261_v26 = vmul.f32 %v9357_v37, %v12490_v46  ;;  %5450 = vst [vmem:[#allocation11] sm:$0xff] %v12566_v21  ;;  %5451 = vst [vmem:[#allocation11 + $0x8] sm:$0xff] %v12568_v24  ;;  %v5304_v10 = vadd.f32 %v12534_v43, %v5282_v32  ;;  %v5303_v46 = vadd.f32 %v12534_v43, %v5281_v44 }
 0xf8b   :  { %v5422_v7 = vadd.f32 %v5414_v33, %v5412_v54 }
 0xf8c   :  { %v5283_v22 = vmul.f32 %v12523_v19, %v5261_v26  ;;  %v5416_v29 = vmul.f32 %v12422_v18, %v5304_v10  ;;  %v5415_v8 = vmul.f32 %v12414_v9, %v5303_v46  ;;  %v13197_v9 = vld [vmem:[#allocation108_spill] sm:$0xff] }
 0xf8d   :  { %v9359_v57 = vpop.eup %9358 }
 0xf8e   :  { %v5262_v1 = vmul.f32 %v9359_v57, %v12495_v49  ;;  %v5305_v23 = vadd.f32 %v12534_v43, %v5283_v22  ;;  %v5426_v58 = vadd.f32 %v5422_v7, %v5416_v29  ;;  %v5423_v16 = vadd.f32 %v5415_v8, %v5413_v2 }
 0xf90   :  { %v5284_v12 = vmul.f32 %v12523_v19, %v5262_v1  ;;  %v5417_v63 = vmul.f32 %v12420_v55, %v5305_v23 }
 0xf91   :  { %v9361_v40 = vpop.eup %9360 }
 0xf92   :  { %v5306_v45 = vadd.f32 %v12534_v43, %v5284_v12  ;;  %v5263_v49 = vmul.f32 %v9361_v40, %v12500_v61  ;;  %v5427_v31 = vadd.f32 %v5423_v16, %v5417_v63 }
 0xf94   :  { %v5418_v62 = vmul.f32 %v5397_v56, %v5306_v45  ;;  %v5285_v39 = vmul.f32 %v12523_v19, %v5263_v49 }
 0xf96   :  { %v5430_v11 = vadd.f32 %v5426_v58, %v5418_v62  ;;  %v5307_v18 = vadd.f32 %v12534_v43, %v5285_v39 }
 0xf98   :  { %v5434_v27 = vadd.f32 %v5430_v11, %v13196_v41  ;;  %v5419_v14 = vmul.f32 %v5402_v0, %v5307_v18 }
 0xf9a   :  { %v5431_v61 = vadd.f32 %v5427_v31, %v5419_v14  ;;  %v12595_v42 = vadd.f32 %v5444_v47, %v5434_v27 }
 0xf9c   :  { %v5435_v3 = vadd.f32 %v5431_v61, %v13197_v9  ;;  %5452 = vst [vmem:[#allocation11 + $0x10] sm:$0xff] %v12595_v42 }
 0xf9e   :  { %v12599_v56 = vadd.f32 %v5444_v47, %v5435_v3 }
 0xfa0   :  { %5453 = vst [vmem:[#allocation11 + $0x18] sm:$0xff] %v12599_v56 }
 0xfa1   :  { %9580 = dma.done.wait [#allocation6 + $0x2], 3072 }
 0xfa2   :  { %9581 = vsyncadd [#allocation6 + $0x2], 4294964224 }
 0xfa3   :  { %9582 = dma.done.wait [#allocation6 + $0x6], 1024 }
 0xfa4   :  { %9583 = vsyncadd [#allocation6 + $0x6], 4294966272 }
 0xfa5   :  { %9584 = dma.done.wait [#allocation6 + $0xa], 2048 }
 0xfa6   :  { %9585 = vsyncadd [#allocation6 + $0xa], 4294965248 }
 0xfa7   :  { %9586 = dma.done.wait [#allocation6 + $0xe], 2048 }
 0xfa8   :  { %9587 = vsyncadd [#allocation6 + $0xe], 4294965248  ;;  %5752 = vmatprep.mubr.bf16.mxu1 %v13119_v59  ;;  %v5574_v55 = vpack.c.bf16 %v12568_v24, %v12566_v21  ;;  %v9362_v19 = vld [vmem:[#allocation2 + $0x22c] ss:$12 sps:$4 sm:$0xff]   ;;  %v9364_v43 = vld [vmem:[#allocation2 + $0x228] ss:$12 sps:$4 sm:$0xff]   ;;  %v5575_v26 = vpack.c.bf16 %v12599_v56, %v12595_v42 }
 0xfa9   :  { %5720 = vmatprep.subr.bf16.mxu1 %v9362_v19  ;;  %v9365_v28 = vld [vmem:[#allocation2 + $0x214] ss:$12 sps:$4 sm:$0xff]   ;;  %v9367_v17 = vld [vmem:[#allocation2 + $0x210] ss:$12 sps:$4 sm:$0xff]   ;;  %v9370_v35 = vld [vmem:[#allocation2 + $0x1f8] ss:$12 sps:$4 sm:$0xff]  }
 0xfaa   :  { %8944 = vmatprep.mubr.bf16.mxu0 %v5574_v55  ;;  %5721 = vmatpush1.bf16.msra.mxu1 %v9364_v43  ;;  %v9368_v51 = vld [vmem:[#allocation2 + $0x1fc] ss:$12 sps:$4 sm:$0xff]   ;;  %v9371_v50 = vld [vmem:[#allocation2 + $0x1e4] ss:$12 sps:$4 sm:$0xff]   ;;  %v9373_v53 = vld [vmem:[#allocation2 + $0x1e0] ss:$12 sps:$4 sm:$0xff]  }
 0xfab   :  { %5722 = vmatprep.subr.bf16.mxu1 %v9365_v28  ;;  %v9374_v6 = vld [vmem:[#allocation2 + $0x1cc] ss:$12 sps:$4 sm:$0xff]   ;;  %v9376_v34 = vld [vmem:[#allocation2 + $0x1c8] ss:$12 sps:$4 sm:$0xff]   ;;  %v9379_v47 = vld [vmem:[#allocation2 + $0x1b0] ss:$12 sps:$4 sm:$0xff]  }
 0xfac   :  { %v9377_v30 = vld [vmem:[#allocation2 + $0x1b4] ss:$12 sps:$4 sm:$0xff]   ;;  %v9380_v48 = vld [vmem:[#allocation2 + $0x19c] ss:$12 sps:$4 sm:$0xff]   ;;  %v9382_v32 = vld [vmem:[#allocation2 + $0x198] ss:$12 sps:$4 sm:$0xff]  }
 0xfad   :  { %v9383_v37 = vld [vmem:[#allocation2 + $0x184] ss:$12 sps:$4 sm:$0xff]   ;;  %v9385_v20 = vld [vmem:[#allocation2 + $0x180] ss:$12 sps:$4 sm:$0xff]   ;;  %v13198_v44 = vld [vmem:[#allocation113_spill] sm:$0xff] }
 0xfae   :  { %5723 = vmatpush1.bf16.msra.mxu1 %v9367_v17  ;;  %v13199_v52 = vld [vmem:[#allocation114_spill] sm:$0xff]  ;;  %v13200_v5 = vld [vmem:[#allocation115_spill] sm:$0xff]  ;;  %v13201_v10 = vld [vmem:[#allocation116_spill] sm:$0xff] }
 0xfaf   :  { %5724 = vmatprep.subr.bf16.mxu1 %v9368_v51  ;;  %v13202_v22 = vld [vmem:[#allocation117_spill] sm:$0xff]  ;;  %v9386_v57 = vld [vmem:[#allocation2 + $0x230] ss:$12 sps:$4 sm:$0xff]   ;;  %v9388_v33 = vld [vmem:[#allocation2 + $0x200] ss:$12 sps:$4 sm:$0xff]  }
 0xfb0   :  { %8928 = vmatprep.subr.bf16.mxu0 %v9386_v57  ;;  %v9387_v1 = vld [vmem:[#allocation2 + $0x218] ss:$12 sps:$4 sm:$0xff]   ;;  %v9389_v46 = vld [vmem:[#allocation2 + $0x1e8] ss:$12 sps:$4 sm:$0xff]   ;;  %v9390_v36 = vld [vmem:[#allocation2 + $0x1d0] ss:$12 sps:$4 sm:$0xff]  }
 0xfb1   :  { %8929 = vmatpush3.bf16.msra.mxu0 %v9386_v57  ;;  %v9391_v12 = vld [vmem:[#allocation2 + $0x1b8] ss:$12 sps:$4 sm:$0xff]   ;;  %v9392_v54 = vld [vmem:[#allocation2 + $0x1a0] ss:$12 sps:$4 sm:$0xff]   ;;  %v9393_v29 = vld [vmem:[#allocation2 + $0x188] ss:$12 sps:$4 sm:$0xff]  }
 0xfb2   :  { %5725 = vmatpush1.bf16.msra.mxu1 %v9370_v35  ;;  %8930 = vmatprep.subr.bf16.mxu0 %v9387_v1  ;;  %v12627_v8 = vld [vmem:[%s12905_s11 + $0x6] sm:$0x7]  ;;  %v9394_v17 = vld [vmem:[#allocation3 + $0xb8] sm:$0xff]   ;;  %v9395_v51 = vld [vmem:[#allocation3 + $0xb0] sm:$0xff]  }
 0xfb3   :  { %5726 = vmatprep.subr.bf16.mxu1 %v9371_v50  ;;  %v5584_v2 = vrot.slane %v12627_v8, %v13154_v38  ;;  %v5580_v39 = vrot.slane %v12627_v8, %v13155_v25  ;;  %v9396_v35 = vld [vmem:[#allocation3 + $0xa8] sm:$0xff]   ;;  %v9397_v50 = vld [vmem:[#allocation3 + $0xa0] sm:$0xff]  }
 0xfb5   :  { %8931 = vmatpush3.bf16.msra.mxu0 %v9387_v1 }
 0xfb6   :  { %5727 = vmatpush1.bf16.msra.mxu1 %v9373_v53  ;;  %8932 = vmatprep.subr.bf16.mxu0 %v9388_v33  ;;  %v9398_v53 = vld [vmem:[#allocation3 + $0x98] sm:$0xff]  }
 0xfb7   :  { %5728 = vmatprep.subr.bf16.mxu1 %v9374_v6  ;;  %v9399_v6 = vld [vmem:[#allocation3 + $0x90] sm:$0xff]  }
 0xfb9   :  { %8933 = vmatpush3.bf16.msra.mxu0 %v9388_v33 }
 0xfba   :  { %5729 = vmatpush1.bf16.msra.mxu1 %v9376_v34  ;;  %8934 = vmatprep.subr.bf16.mxu0 %v9389_v46  ;;  %v9400_v34 = vld [vmem:[#allocation3 + $0x88] sm:$0xff]  }
 0xfbb   :  { %5730 = vmatprep.subr.bf16.mxu1 %v9377_v30  ;;  %v9401_v30 = vld [vmem:[#allocation3 + $0x80] sm:$0xff]  }
 0xfbd   :  { %8935 = vmatpush3.bf16.msra.mxu0 %v9389_v46 }
 0xfbe   :  { %5731 = vmatpush1.bf16.msra.mxu1 %v9379_v47  ;;  %8936 = vmatprep.subr.bf16.mxu0 %v9390_v36 }
 0xfbf   :  { %5732 = vmatprep.subr.bf16.mxu1 %v9380_v48 }
 0xfc1   :  { %8937 = vmatpush3.bf16.msra.mxu0 %v9390_v36 }
 0xfc2   :  { %5733 = vmatpush1.bf16.msra.mxu1 %v9382_v32  ;;  %8938 = vmatprep.subr.bf16.mxu0 %v9391_v12 }
 0xfc3   :  { %5734 = vmatprep.subr.bf16.mxu1 %v9383_v37 }
 0xfc5   :  { %8939 = vmatpush3.bf16.msra.mxu0 %v9391_v12 }
 0xfc6   :  { %5735 = vmatpush1.bf16.msra.mxu1 %v9385_v20  ;;  %8940 = vmatprep.subr.bf16.mxu0 %v9392_v54 }
 0xfc7   :  { %8948 = vmatprep.subr.bf16.mxu1 %v13156_v4 }
 0xfc9   :  { %5753 = vmatmul.mubr.bf16.vlgmr.msra.gmra.mxu1 %v5574_v55  ;;  %8941 = vmatpush3.bf16.msra.mxu0 %v9392_v54 }
 0xfca   :  { %5762 = vmatprep.mubr.bf16.mxu1 %v13119_v59  ;;  %8949 = vmatpush3.bf16.msra.mxu1 %v13156_v4 }
 0xfcb   :  { %8950 = vmatprep.subr.bf16.mxu1 %v13157_v15  ;;  %8942 = vmatprep.subr.bf16.mxu0 %v9393_v29 }
 0xfcd   :  { %8943 = vmatpush3.bf16.msra.mxu0 %v9393_v29  ;;  %v5588_v29 = vrot.slane %v12627_v8, %v11016_v13 }
 0xfce   :  { %8951 = vmatpush3.bf16.msra.mxu1 %v13157_v15  ;;  %8968 = vmatprep.subr.bf16.mxu0 %v9394_v17 }
 0xfcf   :  { %8952 = vmatprep.subr.bf16.mxu1 %v13158_v60 }
 0xfd0   :  { %8945 = vmatmul.mubr.bf16.vlgmr.msra.gmra.mxu0 %v5575_v26 }
 0xfd1   :  { %5763 = vmatmul.mubr.bf16.gmra.mxu1 %v5575_v26  ;;  %8969 = vmatpush3.bf16.msra.mxu0 %v9394_v17 }
 0xfd2   :  { %8953 = vmatpush3.bf16.msra.mxu1 %v13158_v60  ;;  %8970 = vmatprep.subr.bf16.mxu0 %v9395_v51 }
 0xfd3   :  { %8954 = vmatprep.subr.bf16.mxu1 %v13198_v44 }
 0xfd5   :  { %8971 = vmatpush3.bf16.msra.mxu0 %v9395_v51 }
 0xfd6   :  { %8955 = vmatpush3.bf16.msra.mxu1 %v13198_v44  ;;  %8972 = vmatprep.subr.bf16.mxu0 %v9396_v35 }
 0xfd7   :  { %8956 = vmatprep.subr.bf16.mxu1 %v13199_v52 }
 0xfd9   :  { %8973 = vmatpush3.bf16.msra.mxu0 %v9396_v35 }
 0xfda   :  { %8957 = vmatpush3.bf16.msra.mxu1 %v13199_v52  ;;  %8974 = vmatprep.subr.bf16.mxu0 %v9397_v50 }
 0xfdb   :  { %8958 = vmatprep.subr.bf16.mxu1 %v13200_v5 }
 0xfdd   :  { %8975 = vmatpush3.bf16.msra.mxu0 %v9397_v50 }
 0xfde   :  { %8959 = vmatpush3.bf16.msra.mxu1 %v13200_v5  ;;  %8976 = vmatprep.subr.bf16.mxu0 %v9398_v53 }
 0xfdf   :  { %8960 = vmatprep.subr.bf16.mxu1 %v13201_v10 }
 0xfe1   :  { %8977 = vmatpush3.bf16.msra.mxu0 %v9398_v53 }
 0xfe2   :  { %8961 = vmatpush3.bf16.msra.mxu1 %v13201_v10  ;;  %8978 = vmatprep.subr.bf16.mxu0 %v9399_v6 }
 0xfe3   :  { %8962 = vmatprep.subr.bf16.mxu1 %v13202_v22 }
 0xfe5   :  { %8979 = vmatpush3.bf16.msra.mxu0 %v9399_v6 }
 0xfe6   :  { %8963 = vmatpush3.bf16.msra.mxu1 %v13202_v22  ;;  %8980 = vmatprep.subr.bf16.mxu0 %v9400_v34 }
 0xfe9   :  { %8981 = vmatpush3.bf16.msra.mxu0 %v9400_v34 }
 0xfea   :  { %8982 = vmatprep.subr.bf16.mxu0 %v9401_v30 }
 0xfed   :  { %8983 = vmatpush3.bf16.msra.mxu0 %v9401_v30 }
0x1089   :  { %v5754_v23 = vpop.f32.mrf.mxu1 }
0x108a   :  { %v5755_v31 = vadd.f32 %v5754_v23, %v5580_v39 }
0x108b   :  { %v5756_v40 = vpop.f32.mrf.mxu1 }
0x108c   :  { %v5757_v11 = vadd.f32 %v5756_v40, %v5584_v2 }
0x108d   :  { %v5758_v45 = vpop.f32.mrf.mxu1 }
0x108e   :  { %v5759_v16 = vadd.f32 %v5758_v45, %v5580_v39 }
0x108f   :  { %v5760_v7 = vpop.f32.mrf.mxu1 }
0x1090   :  { %v5761_v63 = vadd.f32 %v5760_v7, %v5584_v2  ;;  %v5822_v3 = vpack.c.bf16 %v5759_v16, %v5755_v31  ;;  %v8946_v37 = vpop.f32.mrf.mxu0 }
0x1091   :  { %v5764_v49 = vpop.f32.mrf.mxu1  ;;  %v5816_v40 = vadd.f32 %v8946_v37, %v5588_v29 }
0x1092   :  { %v5823_v14 = vpack.c.bf16 %v5761_v63, %v5757_v11  ;;  %v5765_v61 = vadd.f32 %v5764_v49, %v5580_v39  ;;  %v5807_v46 = vpop.f32.mrf.mxu0 }
0x1093   :  { %v5766_v62 = vpop.f32.mrf.mxu1  ;;  %v5808_v45 = vadd.f32 %v5807_v46, %v5588_v29 }
0x1094   :  { %v5767_v0 = vadd.f32 %v5766_v62, %v5584_v2  ;;  %v8947_v54 = vpop.f32.mrf.mxu0 }
0x1095   :  { %v5768_v58 = vpop.f32.mrf.mxu1  ;;  %v5819_v7 = vadd.f32 %v8947_v54, %v5588_v29 }
0x1096   :  { %v5769_v41 = vadd.f32 %v5768_v58, %v5580_v39  ;;  %v5810_v23 = vpop.f32.mrf.mxu0 }
0x1097   :  { %v5770_v18 = vpop.f32.mrf.mxu1  ;;  %v5811_v49 = vadd.f32 %v5810_v23, %v5588_v29  ;;  %v5827_v11 = vpack.c.bf16 %v5819_v7, %v5816_v40 }
0x1098   :  { %v5771_v27 = vadd.f32 %v5770_v18, %v5584_v2  ;;  %v5825_v55 = vpack.c.bf16 %v5769_v41, %v5765_v61 }
0x1099   :  { %v5824_v18 = vpack.c.bf16 %v5811_v49, %v5808_v45 }
0x109a   :  { %v5826_v9 = vpack.c.bf16 %v5771_v27, %v5767_v0 }
0x109c   :  { %v5828_v19 = vsub.bf16 %v5823_v14, %v5826_v9  ;;  %v5904_v9 = vunpack.c.l.bf16 %v5827_v11 }
0x109e   :  { %v5830_v43 = vmul.bf16 %v5828_v19, %v5825_v55  ;;  %v5829_v28 = vmul.bf16 %v5828_v19, %v5822_v3  ;;  %v5898_v3 = vunpack.c.l.bf16 %v5824_v18 }
0x10a0   :  { %8964 = vmatprep.mubr.bf16.mxu1 %v5829_v28  ;;  %v5899_v28 = vunpack.c.h.bf16 %v5824_v18 }
0x10a1   :  { %8965 = vmatmul.mubr.bf16.vlgmr.msra.gmra.mxu1 %v5830_v43  ;;  %v5905_v43 = vunpack.c.h.bf16 %v5827_v11 }
0x10a2   :  { %6216 = vmatprep.mubr.bf16.mxu1 %v13119_v59 }
0x1161   :  { %v8966_v47 = vpop.f32.mrf.mxu1 }
0x1162   :  { %v5888_v48 = vsub.f32 0.0, %v8966_v47 }
0x1163   :  { %v5865_v32 = vpop.f32.mrf.mxu1 }
0x1164   :  { %v5890_v20 = vmul.f32 0.5, %v5888_v48  ;;  %v5880_v26 = vmul.f32 0.5, %v5865_v32 }
0x1165   :  { %v8967_v57 = vpop.f32.mrf.mxu1 }
0x1166   :  { %9418 = vtanh.f32 %v5890_v20  ;;  %v5889_v1 = vsub.f32 0.0, %v8967_v57 }
0x1167   :  { %9420 = vtanh.f32 %v5880_v26  ;;  %v5868_v33 = vpop.f32.mrf.mxu1 }
0x1168   :  { %v5891_v36 = vmul.f32 0.5, %v5889_v1  ;;  %v5881_v12 = vmul.f32 0.5, %v5868_v33  ;;  %v8216_v1 = vld [vmem:[%s12906_s12 + $0x2] ss:$0 sm:$0xff] }
0x116a   :  { %9422 = vtanh.f32 %v5891_v36 }
0x116b   :  { %9424 = vtanh.f32 %v5881_v12 }
0x1173   :  { %v9419_v2 = vpop.eup %9418 }
0x1174   :  { %v9421_v62 = vpop.eup %9420  ;;  %v5894_v58 = vadd.f32 1.0, %v9419_v2 }
0x1175   :  { %v5884_v39 = vadd.f32 1.0, %v9421_v62  ;;  %v13203_v62 = vld [vmem:[#allocation89_spill] sm:$0xff] }
0x1176   :  { %v5896_v63 = vmul.f32 0.5, %v5894_v58  ;;  %v13204_v58 = vld [vmem:[#allocation88_spill] sm:$0xff] }
0x1177   :  { %v9423_v16 = vpop.eup %9422  ;;  %v5886_v0 = vmul.f32 0.5, %v5884_v39  ;;  %v8242_v39 = vcombine.high %v13204_v58, %v13203_v62 }
0x1178   :  { %v9425_v41 = vpop.eup %9424  ;;  %v5910_v27 = vsub.f32 1.0, %v5896_v63  ;;  %v5895_v31 = vadd.f32 1.0, %v9423_v16  ;;  %v5914_v50 = vmul.f32 %v5904_v9, %v5896_v63 }
0x1179   :  { %v5902_v14 = vsub.f32 1.0, %v5886_v0  ;;  %v5885_v61 = vadd.f32 1.0, %v9425_v41  ;;  %v5900_v30 = vmul.f32 %v5898_v3, %v5886_v0  ;;  %6184 = vmatprep.subr.bf16.mxu1 %v8242_v39  ;;  %v9408_v39 = vld [vmem:[#allocation5 + $0x160] sm:$0xff]  }
0x117a   :  { %v5897_v8 = vmul.f32 0.5, %v5895_v31  ;;  %v5912_v17 = vmul.f32 %v5910_v27, %v5898_v3 }
0x117b   :  { %v5887_v55 = vmul.f32 0.5, %v5885_v61  ;;  %v5906_v35 = vmul.f32 %v5904_v9, %v5902_v14 }
0x117c   :  { %v5911_v19 = vsub.f32 1.0, %v5897_v8  ;;  %v5915_v53 = vmul.f32 %v5905_v43, %v5897_v8  ;;  %v5916_v48 = vadd.f32 %v5914_v50, %v5912_v17  ;;  %v13207_v17 = vld [vmem:[#allocation85_spill] sm:$0xff] }
0x117d   :  { %v5903_v51 = vsub.f32 1.0, %v5887_v55  ;;  %v5901_v47 = vmul.f32 %v5899_v28, %v5887_v55  ;;  %v5908_v37 = vadd.f32 %v5906_v35, %v5900_v30  ;;  %v13205_v55 = vld [vmem:[#allocation87_spill] sm:$0xff] }
0x117e   :  { %v5913_v6 = vmul.f32 %v5911_v19, %v5899_v28  ;;  %v13206_v19 = vld [vmem:[#allocation86_spill] sm:$0xff] }
0x117f   :  { %v5907_v34 = vmul.f32 %v5905_v43, %v5903_v51  ;;  %v8240_v43 = vcombine.high %v13206_v19, %v13205_v55  ;;  %v8239_v28 = vcombine.low %v13206_v19, %v13205_v55  ;;  %v13208_v51 = vld [vmem:[#allocation84_spill] sm:$0xff] }
0x1180   :  { %v5917_v32 = vadd.f32 %v5915_v53, %v5913_v6  ;;  %v8238_v35 = vcombine.high %v13208_v51, %v13207_v17  ;;  %v8237_v50 = vcombine.low %v13208_v51, %v13207_v17  ;;  %v13209_v53 = vld [vmem:[#allocation83_spill] sm:$0xff]  ;;  %v13210_v6 = vld [vmem:[#allocation82_spill] sm:$0xff] }
0x1181   :  { %v5909_v20 = vadd.f32 %v5907_v34, %v5901_v47  ;;  %v8236_v34 = vcombine.high %v13210_v6, %v13209_v53  ;;  %v8235_v30 = vcombine.low %v13210_v6, %v13209_v53  ;;  %v13211_v47 = vld [vmem:[#allocation81_spill] sm:$0xff]  ;;  %v8225_v17 = vld [vmem:[%s12907_s13 + $0x2] ss:$0 sm:$0xff] }
0x1182   :  { %v5919_v26 = vpack.c.bf16 %v5917_v32, %v5916_v48  ;;  %v13212_v48 = vld [vmem:[#allocation80_spill] sm:$0xff]  ;;  %v8226_v6 = vld [vmem:[%s12908_s14 + $0x2] ss:$0 sm:$0xff] }
0x1183   :  { %v5918_v57 = vpack.c.bf16 %v5909_v20, %v5908_v37  ;;  %v8234_v32 = vcombine.high %v13212_v48, %v13211_v47  ;;  %v8233_v37 = vcombine.low %v13212_v48, %v13211_v47  ;;  %v13213_v20 = vld [vmem:[#allocation79_spill] sm:$0xff] }
0x1185   :  { %8984 = vmatprep.mubr.bf16.mxu0 %v5918_v57 }
0x1186   :  { %8985 = vmatmul.mubr.bf16.vlgmr.msra.gmra.mxu0 %v5919_v26  ;;  %v13214_v26 = vld [vmem:[#allocation78_spill] sm:$0xff] }
0x1187   :  { %v8232_v57 = vcombine.high %v13214_v26, %v13213_v20 }
0x1246   :  { %v8986_v33 = vpop.f32.mrf.mxu0 }
0x1247   :  { %v6017_v46 = vadd.f32 %v8986_v33, %v8216_v1  ;;  %v13215_v33 = vld [vmem:[#allocation77_spill] sm:$0xff] }
0x1248   :  { %v6008_v36 = vpop.f32.mrf.mxu0 }
0x1249   :  { %v6025_v12 = vadd.f32 %v6017_v46, %v12595_v42  ;;  %v6009_v54 = vadd.f32 %v8216_v1, %v6008_v36  ;;  %v8241_v42 = vcombine.low %v13204_v58, %v13203_v62  ;;  %v13216_v46 = vld [vmem:[#allocation76_spill] sm:$0xff] }
0x124a   :  { %v8987_v29 = vpop.f32.mrf.mxu0  ;;  %v8230_v36 = vcombine.high %v13216_v46, %v13215_v33  ;;  %v9406_v62 = vld [vmem:[#allocation5 + $0x168] sm:$0xff]  }
0x124b   :  { %v6023_v23 = vadd.f32 %v6009_v54, %v12566_v21  ;;  %v6020_v40 = vadd.f32 %v8987_v29, %v8216_v1  ;;  %6031 = vadd.xlane.f32.xlu1 %v6025_v12  ;;  %6185 = vmatpush1.bf16.msra.mxu1 %v8241_v42  ;;  %v13217_v54 = vld [vmem:[#allocation75_spill] sm:$0xff]  ;;  %v13218_v29 = vld [vmem:[#allocation74_spill] sm:$0xff] }
0x124c   :  { %v6011_v45 = vpop.f32.mrf.mxu0  ;;  %6186 = vmatprep.subr.bf16.mxu1 %v8240_v43  ;;  %v9407_v58 = vld [vmem:[#allocation5 + $0x128] sm:$0xff]   ;;  %v9409_v42 = vld [vmem:[#allocation5 + $0x120] sm:$0xff]  }
0x124d   :  { %v6026_v7 = vadd.f32 %v6020_v40, %v12599_v56  ;;  %v6012_v49 = vadd.f32 %v8216_v1, %v6011_v45  ;;  %6027 = vadd.xlane.f32.xlu0 %v6023_v23  ;;  %v8231_v1 = vcombine.low %v13214_v26, %v13213_v20  ;;  %v8227_v40 = vcombine.low %v13218_v29, %v13217_v54  ;;  %v9402_v45 = vld [vmem:[#allocation5 + $0x178] sm:$0xff]  }
0x124e   :  { %8624 = vmatprep.subr.bf16.mxu0 %v9402_v45 }
0x124f   :  { %v6024_v2 = vadd.f32 %v6012_v49, %v12568_v24  ;;  %6033 = vadd.xlane.f32.xlu1 %v6026_v7  ;;  %6187 = vmatpush1.bf16.msra.mxu1 %v8239_v28  ;;  %v9404_v49 = vld [vmem:[#allocation5 + $0x170] sm:$0xff]  }
0x1250   :  { %6188 = vmatprep.subr.bf16.mxu1 %v8238_v35 }
0x1251   :  { %6029 = vadd.xlane.f32.xlu0 %v6024_v2 }
0x1253   :  { %6189 = vmatpush1.bf16.msra.mxu1 %v8237_v50 }
0x1254   :  { %6190 = vmatprep.subr.bf16.mxu1 %v8236_v34 }
0x1257   :  { %6191 = vmatpush1.bf16.msra.mxu1 %v8235_v30 }
0x1258   :  { %6192 = vmatprep.subr.bf16.mxu1 %v8234_v32 }
0x125b   :  { %6193 = vmatpush1.bf16.msra.mxu1 %v8233_v37 }
0x125c   :  { %6194 = vmatprep.subr.bf16.mxu1 %v8232_v57 }
0x125f   :  { %6195 = vmatpush1.bf16.msra.mxu1 %v8231_v1 }
0x1260   :  { %6196 = vmatprep.subr.bf16.mxu1 %v8230_v36  ;;  %v9416_v36 = vld [vmem:[#allocation5 + $0x140] sm:$0xff]  }
0x12d4   :  { %v6032_v21 = vpop.xlane.xlu1 %6031 }
0x12d5   :  { %v6037_v11 = vmul.f32 0.0078125, %v6032_v21  ;;  %v9410_v21 = vld [vmem:[#allocation5 + $0x158] sm:$0xff]  }
0x12d6   :  { %v6028_v63 = vpop.xlane.xlu0 %6027 }
0x12d7   :  { %v6035_v18 = vmul.f32 0.0078125, %v6028_v63  ;;  %v12649_v41 = vsub.f32 %v6025_v12, %v6037_v11  ;;  %v8229_v12 = vcombine.low %v13216_v46, %v13215_v33  ;;  %v9411_v63 = vld [vmem:[#allocation5 + $0x118] sm:$0xff]   ;;  %v9412_v33 = vld [vmem:[#allocation5 + $0x150] sm:$0xff]   ;;  %v9415_v46 = vld [vmem:[#allocation5 + $0x108] sm:$0xff]  }
0x12d8   :  { %v6034_v16 = vpop.xlane.xlu1 %6033 }
0x12d9   :  { %v12647_v56 = vsub.f32 %v6023_v23, %v6035_v18  ;;  %v6038_v24 = vmul.f32 0.0078125, %v6034_v16  ;;  %v6045_v8 = vmul.f32 %v12649_v41, %v12649_v41  ;;  %v8228_v23 = vcombine.high %v13218_v29, %v13217_v54  ;;  %6197 = vmatpush1.bf16.msra.mxu1 %v8229_v12  ;;  %v9417_v12 = vld [vmem:[#allocation5 + $0x100] sm:$0xff]  }
0x12da   :  { %v6030_v0 = vpop.xlane.xlu0 %6029  ;;  %v8188_v54 = vld [vmem:[%s12909_s15 + $0x4] sm:$0x3] }
0x12db   :  { %v6036_v27 = vmul.f32 0.0078125, %v6030_v0  ;;  %v6043_v31 = vmul.f32 %v12647_v56, %v12647_v56  ;;  %v12655_v61 = vsub.f32 %v6026_v7, %v6038_v24  ;;  %6198 = vmatprep.subr.bf16.mxu1 %v8228_v23  ;;  %v9403_v7 = vld [vmem:[#allocation5 + $0x138] sm:$0xff]   ;;  %v6101_v23 = vrot.slane %v8188_v54, %v13154_v38 }
0x12dc   :  { %8625 = vmatpush3.bf16.msra.mxu0 %v9403_v7 }
0x12dd   :  { %v12653_v14 = vsub.f32 %v6024_v2, %v6036_v27  ;;  %6047 = vadd.xlane.f32.xlu0 %v6043_v31  ;;  %v6046_v3 = vmul.f32 %v12655_v61, %v12655_v61  ;;  %6199 = vmatpush1.bf16.msra.mxu1 %v8227_v40  ;;  %v9405_v2 = vld [vmem:[#allocation5 + $0x130] sm:$0xff]   ;;  %v6097_v40 = vrot.slane %v8188_v54, %v13155_v25 }
0x12de   :  { %8626 = vmatprep.subr.bf16.mxu0 %v9404_v49 }
0x12df   :  { %v6044_v9 = vmul.f32 %v12653_v14, %v12653_v14 }
0x12e0   :  { %8627 = vmatpush3.bf16.msra.mxu0 %v9405_v2 }
0x12e1   :  { %6051 = vadd.xlane.f32.xlu0 %v6045_v8  ;;  %6049 = vadd.xlane.f32.xlu1 %v6044_v9 }
0x12e2   :  { %8628 = vmatprep.subr.bf16.mxu0 %v9406_v62 }
0x12e4   :  { %8629 = vmatpush3.bf16.msra.mxu0 %v9407_v58 }
0x12e5   :  { %6053 = vadd.xlane.f32.xlu1 %v6046_v3  ;;  %8630 = vmatprep.subr.bf16.mxu0 %v9408_v39 }
0x12e8   :  { %8631 = vmatpush3.bf16.msra.mxu0 %v9409_v42 }
0x12e9   :  { %8632 = vmatprep.subr.bf16.mxu0 %v9410_v21 }
0x12ec   :  { %8633 = vmatpush3.bf16.msra.mxu0 %v9411_v63 }
0x12ed   :  { %8634 = vmatprep.subr.bf16.mxu0 %v9412_v33 }
0x1366   :  { %v6048_v11 = vpop.xlane.xlu0 %6047 }
0x1367   :  { %v6055_v18 = vmul.f32 0.0078125, %v6048_v11 }
0x1369   :  { %v6059_v16 = vadd.f32 1e-05, %v6055_v18 }
0x136a   :  { %v6050_v0 = vpop.xlane.xlu1 %6049  ;;  %v6052_v24 = vpop.xlane.xlu0 %6051 }
0x136b   :  { %9426 = vrsqrt.f32 %v6059_v16  ;;  %v6056_v27 = vmul.f32 0.0078125, %v6050_v0  ;;  %v6057_v31 = vmul.f32 0.0078125, %v6052_v24 }
0x136d   :  { %v6060_v8 = vadd.f32 1e-05, %v6056_v27  ;;  %v6061_v9 = vadd.f32 1e-05, %v6057_v31 }
0x136e   :  { %v6054_v3 = vpop.xlane.xlu1 %6053 }
0x136f   :  { %9428 = vrsqrt.f32 %v6060_v8  ;;  %v6058_v55 = vmul.f32 0.0078125, %v6054_v3 }
0x1370   :  { %9430 = vrsqrt.f32 %v6061_v9 }
0x1371   :  { %v6062_v19 = vadd.f32 1e-05, %v6058_v55 }
0x1373   :  { %9432 = vrsqrt.f32 %v6062_v19 }
0x1378   :  { %v9427_v43 = vpop.eup %9426 }
0x1379   :  { %v6067_v28 = vmul.f32 %v9427_v43, %v12647_v56 }
0x137b   :  { %v6077_v50 = vmul.f32 %v8225_v17, %v6067_v28 }
0x137c   :  { %v9429_v51 = vpop.eup %9428 }
0x137d   :  { %v6068_v35 = vmul.f32 %v9429_v51, %v12653_v14  ;;  %v9431_v53 = vpop.eup %9430  ;;  %v12699_v47 = vadd.f32 %v8226_v6, %v6077_v50 }
0x137e   :  { %v6069_v56 = vmul.f32 %v9431_v53, %v12649_v41  ;;  %v9413_v41 = vld [vmem:[#allocation5 + $0x110] sm:$0xff]   ;;  %v8243_v53 = vld [vmem:[%s12910_s16 + $0x2] ss:$0 sm:$0xff] }
0x137f   :  { %v6078_v34 = vmul.f32 %v8225_v17, %v6068_v35  ;;  %8635 = vmatpush3.bf16.msra.mxu0 %v9413_v41 }
0x1380   :  { %v9433_v30 = vpop.eup %9432  ;;  %v6079_v20 = vmul.f32 %v8225_v17, %v6069_v56 }
0x1381   :  { %v12701_v48 = vadd.f32 %v8226_v6, %v6078_v34  ;;  %v6070_v32 = vmul.f32 %v9433_v30, %v12655_v61  ;;  %v9414_v61 = vld [vmem:[#allocation5 + $0x148] sm:$0xff]  }
0x1382   :  { %v12710_v57 = vadd.f32 %v8226_v6, %v6079_v20  ;;  %8636 = vmatprep.subr.bf16.mxu0 %v9414_v61 }
0x1383   :  { %v6091_v37 = vpack.c.bf16 %v12701_v48, %v12699_v47  ;;  %v6080_v14 = vmul.f32 %v8225_v17, %v6070_v32  ;;  %8637 = vmatpush3.bf16.msra.mxu0 %v9415_v46 }
0x1384   :  { %8638 = vmatprep.subr.bf16.mxu0 %v9416_v36 }
0x1385   :  { %6217 = vmatmul.mubr.bf16.vlgmr.msra.gmra.mxu1 %v6091_v37  ;;  %v12708_v26 = vadd.f32 %v8226_v6, %v6080_v14 }
0x1386   :  { %6226 = vmatprep.mubr.bf16.mxu1 %v13119_v59 }
0x1387   :  { %v6092_v1 = vpack.c.bf16 %v12708_v26, %v12710_v57  ;;  %8639 = vmatpush3.bf16.msra.mxu0 %v9417_v12 }
0x138d   :  { %6227 = vmatmul.mubr.bf16.gmra.mxu1 %v6092_v1 }
0x1445   :  { %v6218_v29 = vpop.f32.mrf.mxu1 }
0x1446   :  { %v6219_v62 = vadd.f32 %v6218_v29, %v6097_v40 }
0x1447   :  { %v6220_v45 = vpop.f32.mrf.mxu1 }
0x1448   :  { %v6221_v49 = vadd.f32 %v6220_v45, %v6101_v23  ;;  %v6237_v18 = vmax.f32 %v6219_v62, 0.0 }
0x1449   :  { %v6222_v7 = vpop.f32.mrf.mxu1 }
0x144a   :  { %v6223_v2 = vadd.f32 %v6222_v7, %v6097_v40  ;;  %v6238_v63 = vmax.f32 %v6221_v49, 0.0 }
0x144b   :  { %v6224_v58 = vpop.f32.mrf.mxu1 }
0x144c   :  { %v6225_v39 = vadd.f32 %v6224_v58, %v6101_v23  ;;  %v6239_v42 = vmax.f32 %v6223_v2, 0.0 }
0x144d   :  { %v6228_v21 = vpop.f32.mrf.mxu1 }
0x144e   :  { %v6240_v11 = vmax.f32 %v6225_v39, 0.0  ;;  %v6245_v24 = vpack.c.bf16 %v6239_v42, %v6237_v18  ;;  %v6229_v9 = vadd.f32 %v6228_v21, %v6097_v40 }
0x144f   :  { %v6230_v16 = vpop.f32.mrf.mxu1 }
0x1450   :  { %v6246_v0 = vpack.c.bf16 %v6240_v11, %v6238_v63  ;;  %v6231_v31 = vadd.f32 %v6230_v16, %v6101_v23  ;;  %v6241_v17 = vmax.f32 %v6229_v9, 0.0 }
0x1451   :  { %v6232_v27 = vpop.f32.mrf.mxu1 }
0x1452   :  { %v6233_v8 = vadd.f32 %v6232_v27, %v6097_v40  ;;  %6383 = vmatprep.mubr.bf16.mxu0 %v6246_v0  ;;  %v6242_v43 = vmax.f32 %v6231_v31, 0.0 }
0x1453   :  { %v6234_v3 = vpop.f32.mrf.mxu1  ;;  %6384 = vmatmul.mubr.bf16.vlgmr.msra.gmra.mxu0 %v6245_v24 }
0x1454   :  { %v6235_v55 = vadd.f32 %v6234_v3, %v6101_v23  ;;  %v6243_v19 = vmax.f32 %v6233_v8, 0.0 }
0x1456   :  { %v6244_v28 = vmax.f32 %v6235_v55, 0.0  ;;  %v6247_v35 = vpack.c.bf16 %v6243_v19, %v6241_v17 }
0x1458   :  { %v6248_v51 = vpack.c.bf16 %v6244_v28, %v6242_v43 }
0x145a   :  { %6391 = vmatprep.mubr.bf16.mxu0 %v6248_v51  ;;  %v8260_v51 = vld [vmem:[%s12911_s17 + $0x2] ss:$0 sm:$0xff] }
0x145b   :  { %6392 = vmatmul.mubr.bf16.gmra.mxu0 %v6247_v35 }
0x1513   :  { %v8640_v50 = vpop.f32.mrf.mxu0 }
0x1515   :  { %v8641_v6 = vpop.f32.mrf.mxu0 }
0x1516   :  { %v8642_v34 = vadd.f32 %v8641_v6, %v8640_v50  ;;  %v8261_v50 = vld [vmem:[%s12912_s18 + $0x2] ss:$0 sm:$0xff] }
0x1517   :  { %v8643_v30 = vpop.f32.mrf.mxu0 }
0x1518   :  { %v6386_v56 = vadd.f32 %v8642_v34, %v8243_v53 }
0x1519   :  { %v8644_v32 = vpop.f32.mrf.mxu0 }
0x151a   :  { %v8645_v37 = vadd.f32 %v8644_v32, %v8643_v30  ;;  %v6400_v14 = vadd.f32 %v6386_v56, %v12699_v47 }
0x151b   :  { %v8646_v20 = vpop.f32.mrf.mxu0 }
0x151c   :  { %v6389_v1 = vadd.f32 %v8645_v37, %v8243_v53  ;;  %6404 = vadd.xlane.f32.xlu0 %v6400_v14 }
0x151d   :  { %v8647_v33 = vpop.f32.mrf.mxu0 }
0x151e   :  { %v8648_v41 = vadd.f32 %v8647_v33, %v8646_v20  ;;  %v6401_v61 = vadd.f32 %v6389_v1, %v12701_v48 }
0x151f   :  { %v8649_v46 = vpop.f32.mrf.mxu0 }
0x1520   :  { %v6394_v36 = vadd.f32 %v8648_v41, %v8243_v53  ;;  %6406 = vadd.xlane.f32.xlu1 %v6401_v61 }
0x1521   :  { %v8650_v12 = vpop.f32.mrf.mxu0 }
0x1522   :  { %v8651_v54 = vadd.f32 %v8650_v12, %v8649_v46  ;;  %v6402_v29 = vadd.f32 %v6394_v36, %v12710_v57 }
0x1524   :  { %v6397_v23 = vadd.f32 %v8651_v54, %v8243_v53  ;;  %6408 = vadd.xlane.f32.xlu0 %v6402_v29 }
0x1526   :  { %v6403_v40 = vadd.f32 %v6397_v23, %v12708_v26 }
0x1528   :  { %6410 = vadd.xlane.f32.xlu1 %v6403_v40 }
0x15a5   :  { %v6405_v47 = vpop.xlane.xlu0 %6404 }
0x15a6   :  { %v6412_v45 = vmul.f32 0.0078125, %v6405_v47 }
0x15a8   :  { %v6416_v7 = vsub.f32 %v6400_v14, %v6412_v45 }
0x15a9   :  { %v6407_v49 = vpop.xlane.xlu1 %6406 }
0x15aa   :  { %v6413_v2 = vmul.f32 0.0078125, %v6407_v49  ;;  %v6420_v62 = vmul.f32 %v6416_v7, %v6416_v7 }
0x15ac   :  { %v6417_v58 = vsub.f32 %v6401_v61, %v6413_v2  ;;  %6424 = vadd.xlane.f32.xlu0 %v6420_v62 }
0x15ad   :  { %v6409_v48 = vpop.xlane.xlu0 %6408 }
0x15ae   :  { %v6414_v39 = vmul.f32 0.0078125, %v6409_v48  ;;  %v6421_v42 = vmul.f32 %v6417_v58, %v6417_v58 }
0x15b0   :  { %v6418_v21 = vsub.f32 %v6402_v29, %v6414_v39  ;;  %6426 = vadd.xlane.f32.xlu1 %v6421_v42 }
0x15b1   :  { %v6411_v63 = vpop.xlane.xlu1 %6410 }
0x15b2   :  { %v6415_v57 = vmul.f32 0.0078125, %v6411_v63  ;;  %v6422_v11 = vmul.f32 %v6418_v21, %v6418_v21 }
0x15b4   :  { %v6419_v18 = vsub.f32 %v6403_v40, %v6415_v57  ;;  %6428 = vadd.xlane.f32.xlu0 %v6422_v11 }
0x15b6   :  { %v6423_v26 = vmul.f32 %v6419_v18, %v6419_v18 }
0x15b8   :  { %6430 = vadd.xlane.f32.xlu1 %v6423_v26 }
0x1635   :  { %v6425_v16 = vpop.xlane.xlu0 %6424 }
0x1636   :  { %v6432_v0 = vmul.f32 0.0078125, %v6425_v16 }
0x1638   :  { %v6436_v24 = vadd.f32 1e-05, %v6432_v0 }
0x1639   :  { %v6427_v27 = vpop.xlane.xlu1 %6426 }
0x163a   :  { %9434 = vrsqrt.f32 %v6436_v24  ;;  %v6433_v31 = vmul.f32 0.0078125, %v6427_v27 }
0x163c   :  { %v6437_v8 = vadd.f32 1e-05, %v6433_v31 }
0x163d   :  { %v6429_v9 = vpop.xlane.xlu0 %6428 }
0x163e   :  { %9436 = vrsqrt.f32 %v6437_v8  ;;  %v6434_v3 = vmul.f32 0.0078125, %v6429_v9 }
0x1640   :  { %v6438_v55 = vadd.f32 1e-05, %v6434_v3 }
0x1641   :  { %v6431_v19 = vpop.xlane.xlu1 %6430 }
0x1642   :  { %9438 = vrsqrt.f32 %v6438_v55  ;;  %v6435_v43 = vmul.f32 0.0078125, %v6431_v19 }
0x1644   :  { %v6439_v28 = vadd.f32 1e-05, %v6435_v43 }
0x1646   :  { %9440 = vrsqrt.f32 %v6439_v28 }
0x1647   :  { %v9435_v17 = vpop.eup %9434 }
0x1648   :  { %v6444_v35 = vmul.f32 %v9435_v17, %v6416_v7 }
0x164a   :  { %v6454_v53 = vmul.f32 %v8260_v51, %v6444_v35 }
0x164b   :  { %v9437_v6 = vpop.eup %9436 }
0x164c   :  { %v12732_v34 = vadd.f32 %v8261_v50, %v6454_v53  ;;  %v6445_v30 = vmul.f32 %v9437_v6, %v6417_v58 }
0x164e   :  { %v6455_v56 = vmul.f32 %v8260_v51, %v6445_v30 }
0x164f   :  { %v9439_v32 = vpop.eup %9438 }
0x1650   :  { %v12734_v37 = vadd.f32 %v8261_v50, %v6455_v56  ;;  %v6446_v14 = vmul.f32 %v9439_v32, %v6418_v21 }
0x1652   :  { %v6456_v20 = vmul.f32 %v8260_v51, %v6446_v14 }
0x1653   :  { %v9441_v1 = vpop.eup %9440 }
0x1654   :  { %v12736_v33 = vadd.f32 %v8261_v50, %v6456_v20  ;;  %v6447_v41 = vmul.f32 %v9441_v1, %v6419_v18 }
0x1656   :  { %v6457_v61 = vmul.f32 %v8260_v51, %v6447_v41 }
0x1658   :  { %v12738_v46 = vadd.f32 %v8261_v50, %v6457_v61 }
0x1659   :  { %9588 = dma.done.wait [#allocation6 + $0x3], 3072 }
0x165a   :  { %9589 = vsyncadd [#allocation6 + $0x3], 4294964224 }
0x165b   :  { %9590 = dma.done.wait [#allocation6 + $0x7], 1024 }
0x165c   :  { %9591 = vsyncadd [#allocation6 + $0x7], 4294966272 }
0x165d   :  { %9592 = dma.done.wait [#allocation6 + $0xb], 2048 }
0x165e   :  { %9593 = vsyncadd [#allocation6 + $0xb], 4294965248 }
0x165f   :  { %9594 = dma.done.wait [#allocation6 + $0xf], 2048 }
0x1660   :  { %9595 = vsyncadd [#allocation6 + $0xf], 4294965248  ;;  %6766 = vmatprep.mubr.bf16.mxu1 %v13119_v59  ;;  %v6588_v36 = vpack.c.bf16 %v12734_v37, %v12732_v34  ;;  %9443 = vset.pattern.permute.xlu1 %v13119_v59  ;;  %v9444_v12 = vld [vmem:[#allocation2 + $0x2ec] ss:$12 sps:$4 sm:$0xff]   ;;  %v9446_v54 = vld [vmem:[#allocation2 + $0x2e8] ss:$12 sps:$4 sm:$0xff]   ;;  %v6589_v63 = vpack.c.bf16 %v12738_v46, %v12736_v33 }
0x1661   :  { %9442 = vset.pattern.permute.xlu0 %v13119_v59  ;;  %6734 = vmatprep.subr.bf16.mxu1 %v9444_v12  ;;  %v9447_v29 = vld [vmem:[#allocation2 + $0x2d4] ss:$12 sps:$4 sm:$0xff]   ;;  %v9449_v23 = vld [vmem:[#allocation2 + $0x2d0] ss:$12 sps:$4 sm:$0xff]   ;;  %v9452_v47 = vld [vmem:[#allocation2 + $0x2b8] ss:$12 sps:$4 sm:$0xff]  }
0x1662   :  { %9004 = vmatprep.mubr.bf16.mxu0 %v6588_v36  ;;  %6735 = vmatpush1.bf16.msra.mxu1 %v9446_v54  ;;  %v9450_v40 = vld [vmem:[#allocation2 + $0x2bc] ss:$12 sps:$4 sm:$0xff]   ;;  %v9453_v45 = vld [vmem:[#allocation2 + $0x2a4] ss:$12 sps:$4 sm:$0xff]   ;;  %v9455_v7 = vld [vmem:[#allocation2 + $0x2a0] ss:$12 sps:$4 sm:$0xff]  }
0x1663   :  { %6736 = vmatprep.subr.bf16.mxu1 %v9447_v29  ;;  %v9456_v49 = vld [vmem:[#allocation2 + $0x28c] ss:$12 sps:$4 sm:$0xff]   ;;  %v9458_v2 = vld [vmem:[#allocation2 + $0x288] ss:$12 sps:$4 sm:$0xff]   ;;  %v9461_v58 = vld [vmem:[#allocation2 + $0x270] ss:$12 sps:$4 sm:$0xff]  }
0x1664   :  { %v9459_v62 = vld [vmem:[#allocation2 + $0x274] ss:$12 sps:$4 sm:$0xff]   ;;  %v9462_v48 = vld [vmem:[#allocation2 + $0x25c] ss:$12 sps:$4 sm:$0xff]   ;;  %v9464_v39 = vld [vmem:[#allocation2 + $0x258] ss:$12 sps:$4 sm:$0xff]  }
0x1665   :  { %v9465_v42 = vld [vmem:[#allocation2 + $0x244] ss:$12 sps:$4 sm:$0xff]   ;;  %v9467_v21 = vld [vmem:[#allocation2 + $0x240] ss:$12 sps:$4 sm:$0xff]   ;;  %v12767_v0 = vld [vmem:[%s12905_s11 + $0x9] sm:$0x7] }
0x1666   :  { %6737 = vmatpush1.bf16.msra.mxu1 %v9449_v23  ;;  %v6598_v24 = vrot.slane %v12767_v0, %v13154_v38  ;;  %v6594_v8 = vrot.slane %v12767_v0, %v13155_v25  ;;  %v9476_v20 = vld [vmem:[#allocation3 + $0xf8] sm:$0xff]   ;;  %v9477_v1 = vld [vmem:[#allocation3 + $0xf0] sm:$0xff]   ;;  %v9478_v41 = vld [vmem:[#allocation3 + $0xe8] sm:$0xff]   ;;  %s9601_s26 = smov [#allocation11]  }
0x1667   :  { %6738 = vmatprep.subr.bf16.mxu1 %v9450_v40  ;;  %v9479_v61 = vld [vmem:[#allocation3 + $0xe0] sm:$0xff]   ;;  %v9481_v12 = vld [vmem:[#allocation3 + $0xd0] sm:$0xff]   ;;  %v9482_v54 = vld [vmem:[#allocation3 + $0xc8] sm:$0xff]   ;;  %s7557_s22 = sshll.u32 %s9601_s26, 4  ;;  %s7558_s22 = int_to_ptr.vmem [resolvable:$true] %s7557_s22 }
0x1668   :  { %v9483_v29 = vld [vmem:[#allocation3 + $0xc0] sm:$0xff]   ;;  %s9524_s27 = scalar_lea.vmem %s7558_s22, 512  ;;  %p9529_p1 = scmp.lt.s32.totalorder %s7558_s22, %s7558_s22 }
0x1669   :  { %p9525_p0 = scmp.ne.s32.totalorder %s7558_s22, %s9524_s27  ;;  %p9530_p2 = scmp.lt.s32.totalorder %s9524_s27, %s9524_s27 }
0x166a   :  { %6739 = vmatpush1.bf16.msra.mxu1 %v9452_v47 }
0x166b   :  { %6740 = vmatprep.subr.bf16.mxu1 %v9453_v45  ;;  %p9531_p3 = por %p9530_p2, %p9529_p1 }
0x166d   :  { %p9532_p4 = pnand %p9531_p3, %p9525_p0 }
0x166e   :  { %6741 = vmatpush1.bf16.msra.mxu1 %v9455_v7 }
0x166f   :  { %6742 = vmatprep.subr.bf16.mxu1 %v9456_v49 }
0x1672   :  { %6743 = vmatpush1.bf16.msra.mxu1 %v9458_v2 }
0x1673   :  { %6744 = vmatprep.subr.bf16.mxu1 %v9459_v62 }
0x1676   :  { %6745 = vmatpush1.bf16.msra.mxu1 %v9461_v58 }
0x1677   :  { %6746 = vmatprep.subr.bf16.mxu1 %v9462_v48 }
0x167a   :  { %6747 = vmatpush1.bf16.msra.mxu1 %v9464_v39 }
0x167b   :  { %6748 = vmatprep.subr.bf16.mxu1 %v9465_v42 }
0x167e   :  { %6749 = vmatpush1.bf16.msra.mxu1 %v9467_v21 }
0x167f   :  { %9008 = vmatprep.subr.bf16.mxu1 %v13156_v4 }
0x1681   :  { %6767 = vmatmul.mubr.bf16.vlgmr.msra.gmra.mxu1 %v6588_v36  ;;  %v9480_v36 = vld [vmem:[#allocation3 + $0xd8] sm:$0xff]  }
0x1682   :  { %6776 = vmatprep.mubr.bf16.mxu1 %v13119_v59  ;;  %9009 = vmatpush3.bf16.msra.mxu1 %v13156_v4  ;;  %v9468_v4 = vld [vmem:[#allocation2 + $0x2f0] ss:$12 sps:$4 sm:$0xff]  }
0x1683   :  { %9010 = vmatprep.subr.bf16.mxu1 %v13157_v15  ;;  %8988 = vmatprep.subr.bf16.mxu0 %v9468_v4 }
0x1684   :  { %8989 = vmatpush3.bf16.msra.mxu0 %v9468_v4 }
0x1686   :  { %9011 = vmatpush3.bf16.msra.mxu1 %v13157_v15  ;;  %v9469_v15 = vld [vmem:[#allocation2 + $0x2d8] ss:$12 sps:$4 sm:$0xff]  }
0x1687   :  { %9012 = vmatprep.subr.bf16.mxu1 %v13158_v60  ;;  %8990 = vmatprep.subr.bf16.mxu0 %v9469_v15 }
0x1688   :  { %8991 = vmatpush3.bf16.msra.mxu0 %v9469_v15 }
0x1689   :  { %6777 = vmatmul.mubr.bf16.gmra.mxu1 %v6589_v63 }
0x168a   :  { %9013 = vmatpush3.bf16.msra.mxu1 %v13158_v60  ;;  %v9470_v60 = vld [vmem:[#allocation2 + $0x2c0] ss:$12 sps:$4 sm:$0xff]  }
0x168b   :  { %9014 = vmatprep.subr.bf16.mxu1 %v13198_v44  ;;  %8992 = vmatprep.subr.bf16.mxu0 %v9470_v60 }
0x168c   :  { %8993 = vmatpush3.bf16.msra.mxu0 %v9470_v60 }
0x168e   :  { %9015 = vmatpush3.bf16.msra.mxu1 %v13198_v44  ;;  %v9471_v44 = vld [vmem:[#allocation2 + $0x2a8] ss:$12 sps:$4 sm:$0xff]  }
0x168f   :  { %9016 = vmatprep.subr.bf16.mxu1 %v13199_v52  ;;  %8994 = vmatprep.subr.bf16.mxu0 %v9471_v44 }
0x1690   :  { %8995 = vmatpush3.bf16.msra.mxu0 %v9471_v44 }
0x1692   :  { %9017 = vmatpush3.bf16.msra.mxu1 %v13199_v52  ;;  %v9472_v52 = vld [vmem:[#allocation2 + $0x290] ss:$12 sps:$4 sm:$0xff]  }
0x1693   :  { %9018 = vmatprep.subr.bf16.mxu1 %v13200_v5  ;;  %8996 = vmatprep.subr.bf16.mxu0 %v9472_v52 }
0x1694   :  { %8997 = vmatpush3.bf16.msra.mxu0 %v9472_v52 }
0x1696   :  { %9019 = vmatpush3.bf16.msra.mxu1 %v13200_v5  ;;  %v9473_v5 = vld [vmem:[#allocation2 + $0x278] ss:$12 sps:$4 sm:$0xff]  }
0x1697   :  { %9020 = vmatprep.subr.bf16.mxu1 %v13201_v10  ;;  %8998 = vmatprep.subr.bf16.mxu0 %v9473_v5 }
0x1698   :  { %8999 = vmatpush3.bf16.msra.mxu0 %v9473_v5 }
0x169a   :  { %9021 = vmatpush3.bf16.msra.mxu1 %v13201_v10  ;;  %v9474_v10 = vld [vmem:[#allocation2 + $0x260] ss:$12 sps:$4 sm:$0xff]  }
0x169b   :  { %9022 = vmatprep.subr.bf16.mxu1 %v13202_v22  ;;  %9000 = vmatprep.subr.bf16.mxu0 %v9474_v10 }
0x169c   :  { %9001 = vmatpush3.bf16.msra.mxu0 %v9474_v10 }
0x169e   :  { %9023 = vmatpush3.bf16.msra.mxu1 %v13202_v22  ;;  %v9475_v22 = vld [vmem:[#allocation2 + $0x248] ss:$12 sps:$4 sm:$0xff]  }
0x169f   :  { %9002 = vmatprep.subr.bf16.mxu0 %v9475_v22 }
0x16a0   :  { %9003 = vmatpush3.bf16.msra.mxu0 %v9475_v22 }
0x16a1   :  { %9028 = vmatprep.subr.bf16.mxu0 %v9476_v20 }
0x16a3   :  { %9005 = vmatmul.mubr.bf16.vlgmr.msra.gmra.mxu0 %v6589_v63  ;;  %v6602_v63 = vrot.slane %v12767_v0, %v11016_v13 }
0x16a4   :  { %9029 = vmatpush3.bf16.msra.mxu0 %v9476_v20 }
0x16a5   :  { %9030 = vmatprep.subr.bf16.mxu0 %v9477_v1 }
0x16a8   :  { %9031 = vmatpush3.bf16.msra.mxu0 %v9477_v1 }
0x16a9   :  { %9032 = vmatprep.subr.bf16.mxu0 %v9478_v41 }
0x16ac   :  { %9033 = vmatpush3.bf16.msra.mxu0 %v9478_v41 }
0x16ad   :  { %9034 = vmatprep.subr.bf16.mxu0 %v9479_v61 }
0x16b0   :  { %9035 = vmatpush3.bf16.msra.mxu0 %v9479_v61 }
0x16b1   :  { %9036 = vmatprep.subr.bf16.mxu0 %v9480_v36 }
0x16b4   :  { %9037 = vmatpush3.bf16.msra.mxu0 %v9480_v36 }
0x16b5   :  { %9038 = vmatprep.subr.bf16.mxu0 %v9481_v12 }
0x16b8   :  { %9039 = vmatpush3.bf16.msra.mxu0 %v9481_v12 }
0x16b9   :  { %9040 = vmatprep.subr.bf16.mxu0 %v9482_v54 }
0x16bc   :  { %9041 = vmatpush3.bf16.msra.mxu0 %v9482_v54  ;;  %v8294_v54 = vld [vmem:[%s12906_s12 + $0x3] ss:$0 sm:$0xff] }
0x16bd   :  { %9042 = vmatprep.subr.bf16.mxu0 %v9483_v29 }
0x16c0   :  { %9043 = vmatpush3.bf16.msra.mxu0 %v9483_v29 }
0x1741   :  { %v6768_v57 = vpop.f32.mrf.mxu1 }
0x1742   :  { %v6769_v51 = vadd.f32 %v6768_v57, %v6594_v8 }
0x1743   :  { %v6770_v11 = vpop.f32.mrf.mxu1 }
0x1744   :  { %v6771_v3 = vadd.f32 %v6770_v11, %v6598_v24 }
0x1745   :  { %v6772_v18 = vpop.f32.mrf.mxu1 }
0x1746   :  { %v6773_v19 = vadd.f32 %v6772_v18, %v6594_v8 }
0x1747   :  { %v6774_v26 = vpop.f32.mrf.mxu1 }
0x1748   :  { %v6775_v9 = vadd.f32 %v6774_v26, %v6598_v24  ;;  %v6836_v6 = vpack.c.bf16 %v6773_v19, %v6769_v51 }
0x1749   :  { %v6778_v16 = vpop.f32.mrf.mxu1 }
0x174a   :  { %v6837_v35 = vpack.c.bf16 %v6775_v9, %v6771_v3  ;;  %v6779_v50 = vadd.f32 %v6778_v16, %v6594_v8 }
0x174b   :  { %v6780_v27 = vpop.f32.mrf.mxu1 }
0x174c   :  { %v6781_v43 = vadd.f32 %v6780_v27, %v6598_v24 }
0x174d   :  { %v6782_v31 = vpop.f32.mrf.mxu1 }
0x174e   :  { %v6783_v28 = vadd.f32 %v6782_v31, %v6594_v8 }
0x174f   :  { %v6784_v55 = vpop.f32.mrf.mxu1 }
0x1750   :  { %v6785_v17 = vadd.f32 %v6784_v55, %v6598_v24  ;;  %v6839_v30 = vpack.c.bf16 %v6783_v28, %v6779_v50 }
0x1752   :  { %v6840_v53 = vpack.c.bf16 %v6785_v17, %v6781_v43 }
0x1754   :  { %v6842_v56 = vsub.bf16 %v6837_v35, %v6840_v53 }
0x1756   :  { %v6844_v32 = vmul.bf16 %v6842_v56, %v6839_v30  ;;  %v6843_v14 = vmul.bf16 %v6842_v56, %v6836_v6 }
0x1758   :  { %9024 = vmatprep.mubr.bf16.mxu1 %v6843_v14 }
0x1759   :  { %9025 = vmatmul.mubr.bf16.vlgmr.msra.gmra.mxu1 %v6844_v32 }
0x175a   :  { %7230 = vmatprep.mubr.bf16.mxu1 %v13119_v59 }
0x1763   :  { %v9006_v45 = vpop.f32.mrf.mxu0 }
0x1764   :  { %v6830_v15 = vadd.f32 %v9006_v45, %v6602_v63 }
0x1765   :  { %v6821_v48 = vpop.f32.mrf.mxu0 }
0x1766   :  { %v6822_v60 = vadd.f32 %v6821_v48, %v6602_v63 }
0x1767   :  { %v9007_v21 = vpop.f32.mrf.mxu0 }
0x1768   :  { %v6833_v44 = vadd.f32 %v9007_v21, %v6602_v63  ;;  %v13220_v21 = vld [vmem:[#allocation104_spill] sm:$0xff] }
0x1769   :  { %v6824_v4 = vpop.f32.mrf.mxu0 }
0x176a   :  { %v6825_v52 = vadd.f32 %v6824_v4, %v6602_v63  ;;  %v6841_v18 = vpack.c.bf16 %v6833_v44, %v6830_v15 }
0x176c   :  { %v6838_v26 = vpack.c.bf16 %v6825_v52, %v6822_v60  ;;  %v6918_v0 = vunpack.c.l.bf16 %v6841_v18  ;;  %v6919_v28 = vunpack.c.h.bf16 %v6841_v18 }
0x176e   :  { %v6912_v55 = vunpack.c.l.bf16 %v6838_v26  ;;  %v6913_v17 = vunpack.c.h.bf16 %v6838_v26 }
0x1819   :  { %v9026_v23 = vpop.f32.mrf.mxu1 }
0x181a   :  { %v6902_v40 = vsub.f32 0.0, %v9026_v23 }
0x181b   :  { %v6879_v47 = vpop.f32.mrf.mxu1 }
0x181c   :  { %v6904_v7 = vmul.f32 0.5, %v6902_v40  ;;  %v6894_v49 = vmul.f32 0.5, %v6879_v47 }
0x181d   :  { %v9027_v2 = vpop.f32.mrf.mxu1 }
0x181e   :  { %9500 = vtanh.f32 %v6904_v7  ;;  %v6903_v62 = vsub.f32 0.0, %v9027_v2 }
0x181f   :  { %9502 = vtanh.f32 %v6894_v49  ;;  %v6882_v58 = vpop.f32.mrf.mxu1 }
0x1820   :  { %v6905_v39 = vmul.f32 0.5, %v6903_v62  ;;  %v6895_v42 = vmul.f32 0.5, %v6882_v58 }
0x1822   :  { %9504 = vtanh.f32 %v6905_v39 }
0x1823   :  { %9506 = vtanh.f32 %v6895_v42  ;;  %v13219_v42 = vld [vmem:[#allocation105_spill] sm:$0xff] }
0x1824   :  { %v8320_v63 = vcombine.high %v13220_v21, %v13219_v42 }
0x1826   :  { %7198 = vmatprep.subr.bf16.mxu1 %v8320_v63 }
0x182b   :  { %v9501_v5 = vpop.eup %9500 }
0x182c   :  { %v9503_v10 = vpop.eup %9502  ;;  %v6908_v22 = vadd.f32 1.0, %v9501_v5 }
0x182d   :  { %v6898_v57 = vadd.f32 1.0, %v9503_v10 }
0x182e   :  { %v6910_v11 = vmul.f32 0.5, %v6908_v22 }
0x182f   :  { %v9505_v16 = vpop.eup %9504  ;;  %v6900_v24 = vmul.f32 0.5, %v6898_v57 }
0x1830   :  { %v9507_v27 = vpop.eup %9506  ;;  %v6924_v31 = vsub.f32 1.0, %v6910_v11  ;;  %v6909_v8 = vadd.f32 1.0, %v9505_v16  ;;  %v6928_v53 = vmul.f32 %v6918_v0, %v6910_v11 }
0x1831   :  { %v6916_v9 = vsub.f32 1.0, %v6900_v24  ;;  %v6899_v3 = vadd.f32 1.0, %v9507_v27  ;;  %v6914_v32 = vmul.f32 %v6912_v55, %v6900_v24  ;;  %v13221_v24 = vld [vmem:[#allocation103_spill] sm:$0xff]  ;;  %v13222_v27 = vld [vmem:[#allocation102_spill] sm:$0xff] }
0x1832   :  { %v6911_v13 = vmul.f32 0.5, %v6909_v8  ;;  %v6926_v51 = vmul.f32 %v6924_v31, %v6912_v55  ;;  %v8318_v31 = vcombine.high %v13222_v27, %v13221_v24  ;;  %v8317_v8 = vcombine.low %v13222_v27, %v13221_v24  ;;  %v13225_v55 = vld [vmem:[#allocation99_spill] sm:$0xff]  ;;  %v8304_v24 = vld [vmem:[%s12908_s14 + $0x3] ss:$0 sm:$0xff] }
0x1833   :  { %v6901_v19 = vmul.f32 0.5, %v6899_v3  ;;  %v6920_v50 = vmul.f32 %v6918_v0, %v6916_v9  ;;  %v13223_v9 = vld [vmem:[#allocation101_spill] sm:$0xff]  ;;  %v13224_v3 = vld [vmem:[#allocation100_spill] sm:$0xff] }
0x1834   :  { %v6925_v43 = vsub.f32 1.0, %v6911_v13  ;;  %v6929_v6 = vmul.f32 %v6919_v28, %v6911_v13  ;;  %v6930_v20 = vadd.f32 %v6928_v53, %v6926_v51  ;;  %v8316_v13 = vcombine.high %v13224_v3, %v13223_v9  ;;  %v13228_v51 = vld [vmem:[#allocation96_spill] sm:$0xff]  ;;  %v13229_v53 = vld [vmem:[#allocation95_spill] sm:$0xff] }
0x1835   :  { %v6917_v35 = vsub.f32 1.0, %v6901_v19  ;;  %v6915_v14 = vmul.f32 %v6913_v17, %v6901_v19  ;;  %v6922_v41 = vadd.f32 %v6920_v50, %v6914_v32  ;;  %v8315_v0 = vcombine.low %v13224_v3, %v13223_v9  ;;  %v13226_v19 = vld [vmem:[#allocation98_spill] sm:$0xff]  ;;  %v13231_v32 = vld [vmem:[#allocation93_spill] sm:$0xff] }
0x1836   :  { %v6927_v30 = vmul.f32 %v6925_v43, %v6913_v17  ;;  %v8314_v43 = vcombine.high %v13226_v19, %v13225_v55  ;;  %v13227_v17 = vld [vmem:[#allocation97_spill] sm:$0xff] }
0x1837   :  { %v6921_v56 = vmul.f32 %v6919_v28, %v6917_v35  ;;  %v8313_v28 = vcombine.low %v13226_v19, %v13225_v55  ;;  %v8312_v35 = vcombine.high %v13228_v51, %v13227_v17  ;;  %v8311_v50 = vcombine.low %v13228_v51, %v13227_v17  ;;  %v9497_v17 = vld [vmem:[#allocation5 + $0x188] sm:$0xff]   ;;  %v9498_v51 = vld [vmem:[#allocation5 + $0x1c0] sm:$0xff]  }
0x1838   :  { %v6931_v1 = vadd.f32 %v6929_v6, %v6927_v30  ;;  %v13230_v6 = vld [vmem:[#allocation94_spill] sm:$0xff] }
0x1839   :  { %v6923_v61 = vadd.f32 %v6921_v56, %v6915_v14  ;;  %v8310_v30 = vcombine.high %v13230_v6, %v13229_v53  ;;  %v8309_v56 = vcombine.low %v13230_v6, %v13229_v53  ;;  %v13232_v14 = vld [vmem:[#allocation92_spill] sm:$0xff] }
0x183a   :  { %v6933_v36 = vpack.c.bf16 %v6931_v1, %v6930_v20  ;;  %v8308_v20 = vcombine.high %v13232_v14, %v13231_v32  ;;  %v8307_v1 = vcombine.low %v13232_v14, %v13231_v32 }
0x183b   :  { %v6932_v12 = vpack.c.bf16 %v6923_v61, %v6922_v41  ;;  %v13233_v41 = vld [vmem:[#allocation91_spill] sm:$0xff]  ;;  %v13234_v61 = vld [vmem:[#allocation90_spill] sm:$0xff] }
0x183d   :  { %9044 = vmatprep.mubr.bf16.mxu0 %v6932_v12  ;;  %v8305_v12 = vcombine.low %v13234_v61, %v13233_v41 }
0x183e   :  { %9045 = vmatmul.mubr.bf16.vlgmr.msra.gmra.mxu0 %v6933_v36  ;;  %v8306_v36 = vcombine.high %v13234_v61, %v13233_v41 }
0x18fe   :  { %v9046_v29 = vpop.f32.mrf.mxu0 }
0x18ff   :  { %v7031_v23 = vadd.f32 %v9046_v29, %v8294_v54  ;;  %v9485_v29 = vld [vmem:[#allocation5 + $0x1b8] sm:$0xff]  }
0x1900   :  { %v7022_v40 = vpop.f32.mrf.mxu0 }
0x1901   :  { %v7039_v47 = vadd.f32 %v7031_v23, %v12736_v33  ;;  %v7023_v45 = vadd.f32 %v8294_v54, %v7022_v40  ;;  %v8319_v33 = vcombine.low %v13220_v21, %v13219_v42  ;;  %v9486_v23 = vld [vmem:[#allocation5 + $0x1f0] sm:$0xff]  }
0x1902   :  { %v9047_v7 = vpop.f32.mrf.mxu0  ;;  %v9487_v40 = vld [vmem:[#allocation5 + $0x1b0] sm:$0xff]  }
0x1903   :  { %v7037_v49 = vadd.f32 %v7023_v45, %v12732_v34  ;;  %v7034_v2 = vadd.f32 %v9047_v7, %v8294_v54  ;;  %7045 = vadd.xlane.f32.xlu1 %v7039_v47  ;;  %7199 = vmatpush1.bf16.msra.mxu1 %v8319_v33  ;;  %v9489_v45 = vld [vmem:[#allocation5 + $0x1a8] sm:$0xff]   ;;  %v9490_v7 = vld [vmem:[#allocation5 + $0x1e0] sm:$0xff]  }
0x1904   :  { %v7025_v62 = vpop.f32.mrf.mxu0  ;;  %7200 = vmatprep.subr.bf16.mxu1 %v8318_v31 }
0x1905   :  { %v7040_v58 = vadd.f32 %v7034_v2, %v12738_v46  ;;  %v7026_v48 = vadd.f32 %v8294_v54, %v7025_v62  ;;  %7041 = vadd.xlane.f32.xlu0 %v7037_v49  ;;  %v9484_v54 = vld [vmem:[#allocation5 + $0x1f8] sm:$0xff]  }
0x1906   :  { %8682 = vmatprep.subr.bf16.mxu0 %v9484_v54  ;;  %v9492_v2 = vld [vmem:[#allocation5 + $0x1d8] sm:$0xff]  }
0x1907   :  { %v7038_v39 = vadd.f32 %v7026_v48, %v12734_v37  ;;  %7047 = vadd.xlane.f32.xlu1 %v7040_v58  ;;  %7201 = vmatpush1.bf16.msra.mxu1 %v8317_v8  ;;  %v9493_v62 = vld [vmem:[#allocation5 + $0x198] sm:$0xff]  }
0x1908   :  { %7202 = vmatprep.subr.bf16.mxu1 %v8316_v13  ;;  %8683 = vmatpush3.bf16.msra.mxu0 %v9485_v29 }
0x1909   :  { %7043 = vadd.xlane.f32.xlu0 %v7038_v39  ;;  %8684 = vmatprep.subr.bf16.mxu0 %v9486_v23 }
0x190b   :  { %7203 = vmatpush1.bf16.msra.mxu1 %v8315_v0 }
0x190c   :  { %7204 = vmatprep.subr.bf16.mxu1 %v8314_v43  ;;  %8685 = vmatpush3.bf16.msra.mxu0 %v9487_v40 }
0x190f   :  { %7205 = vmatpush1.bf16.msra.mxu1 %v8313_v28  ;;  %v9494_v28 = vld [vmem:[#allocation5 + $0x1d0] sm:$0xff]  }
0x1910   :  { %7206 = vmatprep.subr.bf16.mxu1 %v8312_v35  ;;  %v9499_v35 = vld [vmem:[#allocation5 + $0x180] sm:$0xff]  }
0x1913   :  { %7207 = vmatpush1.bf16.msra.mxu1 %v8311_v50 }
0x1914   :  { %7208 = vmatprep.subr.bf16.mxu1 %v8310_v30 }
0x1917   :  { %7209 = vmatpush1.bf16.msra.mxu1 %v8309_v56 }
0x1918   :  { %7210 = vmatprep.subr.bf16.mxu1 %v8308_v20 }
0x191b   :  { %7211 = vmatpush1.bf16.msra.mxu1 %v8307_v1 }
0x191c   :  { %7212 = vmatprep.subr.bf16.mxu1 %v8306_v36 }
0x191f   :  { %7213 = vmatpush1.bf16.msra.mxu1 %v8305_v12 }
0x198c   :  { %v7046_v34 = vpop.xlane.xlu1 %7045 }
0x198d   :  { %v7051_v15 = vmul.f32 0.0078125, %v7046_v34 }
0x198e   :  { %v7042_v4 = vpop.xlane.xlu0 %7041 }
0x198f   :  { %v7049_v60 = vmul.f32 0.0078125, %v7042_v4  ;;  %v12789_v5 = vsub.f32 %v7039_v47, %v7051_v15  ;;  %v9488_v47 = vld [vmem:[#allocation5 + $0x1e8] sm:$0xff]  }
0x1990   :  { %v7048_v44 = vpop.xlane.xlu1 %7047  ;;  %8686 = vmatprep.subr.bf16.mxu0 %v9488_v47 }
0x1991   :  { %v12787_v46 = vsub.f32 %v7037_v49, %v7049_v60  ;;  %v7052_v37 = vmul.f32 0.0078125, %v7048_v44  ;;  %v7059_v18 = vmul.f32 %v12789_v5, %v12789_v5  ;;  %8687 = vmatpush3.bf16.msra.mxu0 %v9489_v45  ;;  %v9491_v49 = vld [vmem:[#allocation5 + $0x1a0] sm:$0xff]  }
0x1992   :  { %v7044_v52 = vpop.xlane.xlu0 %7043  ;;  %8688 = vmatprep.subr.bf16.mxu0 %v9490_v7 }
0x1993   :  { %v7050_v10 = vmul.f32 0.0078125, %v7044_v52  ;;  %v7057_v22 = vmul.f32 %v12787_v46, %v12787_v46  ;;  %v12795_v11 = vsub.f32 %v7040_v58, %v7052_v37 }
0x1995   :  { %v12793_v57 = vsub.f32 %v7038_v39, %v7050_v10  ;;  %7061 = vadd.xlane.f32.xlu0 %v7057_v22  ;;  %v7060_v16 = vmul.f32 %v12795_v11, %v12795_v11  ;;  %8689 = vmatpush3.bf16.msra.mxu0 %v9491_v49  ;;  %v8303_v10 = vld [vmem:[%s12907_s13 + $0x3] ss:$0 sm:$0xff] }
0x1996   :  { %8690 = vmatprep.subr.bf16.mxu0 %v9492_v2 }
0x1997   :  { %v7058_v26 = vmul.f32 %v12793_v57, %v12793_v57 }
0x1999   :  { %7065 = vadd.xlane.f32.xlu0 %v7059_v18  ;;  %7063 = vadd.xlane.f32.xlu1 %v7058_v26 }
0x199a   :  { %8691 = vmatpush3.bf16.msra.mxu0 %v9493_v62 }
0x199b   :  { %8692 = vmatprep.subr.bf16.mxu0 %v9494_v28 }
0x199d   :  { %7067 = vadd.xlane.f32.xlu1 %v7060_v16 }
0x1a1e   :  { %v7062_v58 = vpop.xlane.xlu0 %7061 }
0x1a1f   :  { %v7069_v48 = vmul.f32 0.0078125, %v7062_v58 }
0x1a21   :  { %v7073_v39 = vadd.f32 1e-05, %v7069_v48 }
0x1a22   :  { %v7064_v42 = vpop.xlane.xlu1 %7063  ;;  %v7066_v21 = vpop.xlane.xlu0 %7065 }
0x1a23   :  { %9508 = vrsqrt.f32 %v7073_v39  ;;  %v7070_v63 = vmul.f32 0.0078125, %v7064_v42  ;;  %v7071_v33 = vmul.f32 0.0078125, %v7066_v21 }
0x1a25   :  { %v7074_v34 = vadd.f32 1e-05, %v7070_v63  ;;  %v7075_v4 = vadd.f32 1e-05, %v7071_v33  ;;  %v8321_v33 = vld [vmem:[%s12910_s16 + $0x3] ss:$0 sm:$0xff] }
0x1a26   :  { %v7068_v15 = vpop.xlane.xlu1 %7067 }
0x1a27   :  { %9510 = vrsqrt.f32 %v7074_v34  ;;  %v7072_v60 = vmul.f32 0.0078125, %v7068_v15 }
0x1a28   :  { %9512 = vrsqrt.f32 %v7075_v4 }
0x1a29   :  { %v7076_v44 = vadd.f32 1e-05, %v7072_v60 }
0x1a2b   :  { %9514 = vrsqrt.f32 %v7076_v44 }
0x1a30   :  { %v9509_v52 = vpop.eup %9508 }
0x1a31   :  { %v7081_v37 = vmul.f32 %v9509_v52, %v12787_v46 }
0x1a33   :  { %v7091_v26 = vmul.f32 %v8303_v10, %v7081_v37 }
0x1a34   :  { %v9511_v22 = vpop.eup %9510 }
0x1a35   :  { %v7082_v18 = vmul.f32 %v9511_v22, %v12793_v57  ;;  %v9513_v16 = vpop.eup %9512  ;;  %v12839_v8 = vadd.f32 %v8304_v24, %v7091_v26 }
0x1a36   :  { %v7083_v46 = vmul.f32 %v9513_v16, %v12789_v5  ;;  %v9495_v5 = vld [vmem:[#allocation5 + $0x190] sm:$0xff]  }
0x1a37   :  { %v7092_v27 = vmul.f32 %v8303_v10, %v7082_v18  ;;  %8693 = vmatpush3.bf16.msra.mxu0 %v9495_v5 }
0x1a38   :  { %v9515_v31 = vpop.eup %9514  ;;  %v7093_v0 = vmul.f32 %v8303_v10, %v7083_v46 }
0x1a39   :  { %v12841_v9 = vadd.f32 %v8304_v24, %v7092_v27  ;;  %v7084_v3 = vmul.f32 %v9515_v31, %v12795_v11  ;;  %v9496_v11 = vld [vmem:[#allocation5 + $0x1c8] sm:$0xff]  }
0x1a3a   :  { %v12850_v19 = vadd.f32 %v8304_v24, %v7093_v0  ;;  %8694 = vmatprep.subr.bf16.mxu0 %v9496_v11 }
0x1a3b   :  { %v7105_v13 = vpack.c.bf16 %v12841_v9, %v12839_v8  ;;  %v7094_v57 = vmul.f32 %v8303_v10, %v7084_v3  ;;  %8695 = vmatpush3.bf16.msra.mxu0 %v9497_v17 }
0x1a3c   :  { %8696 = vmatprep.subr.bf16.mxu0 %v9498_v51 }
0x1a3d   :  { %7231 = vmatmul.mubr.bf16.vlgmr.msra.gmra.mxu1 %v7105_v13  ;;  %v12848_v55 = vadd.f32 %v8304_v24, %v7094_v57 }
0x1a3e   :  { %7240 = vmatprep.mubr.bf16.mxu1 %v13119_v59  ;;  %v8266_v59 = vld [vmem:[%s12909_s15 + $0x6] sm:$0x3] }
0x1a3f   :  { %v7106_v43 = vpack.c.bf16 %v12848_v55, %v12850_v19  ;;  %8697 = vmatpush3.bf16.msra.mxu0 %v9499_v35  ;;  %v7115_v53 = vrot.slane %v8266_v59, %v13154_v38  ;;  %v7111_v6 = vrot.slane %v8266_v59, %v13155_v25 }
0x1a45   :  { %7241 = vmatmul.mubr.bf16.gmra.mxu1 %v7106_v43 }
0x1afd   :  { %v7232_v50 = vpop.f32.mrf.mxu1 }
0x1afe   :  { %v7233_v20 = vadd.f32 %v7232_v50, %v7111_v6  ;;  %v7484_v50 = vld [vmem:[%s12904_s9 + $0x10] sm:$0xff] }
0x1aff   :  { %v7234_v30 = vpop.f32.mrf.mxu1 }
0x1b00   :  { %v7235_v32 = vadd.f32 %v7234_v30, %v7115_v53  ;;  %v7251_v29 = vmax.f32 %v7233_v20, 0.0  ;;  %v8340_v20 = vld [vmem:[#allocation8] ss:$0 sm:$0xff] }
0x1b01   :  { %v7236_v56 = vpop.f32.mrf.mxu1 }
0x1b02   :  { %v7237_v14 = vadd.f32 %v7236_v56, %v7111_v6  ;;  %v7252_v12 = vmax.f32 %v7235_v32, 0.0 }
0x1b03   :  { %v7238_v1 = vpop.f32.mrf.mxu1 }
0x1b04   :  { %v7239_v41 = vadd.f32 %v7238_v1, %v7115_v53  ;;  %v7253_v61 = vmax.f32 %v7237_v14, 0.0  ;;  %v7485_v14 = vld [vmem:[%s12904_s9 + $0x18] sm:$0xff] }
0x1b05   :  { %v7242_v36 = vpop.f32.mrf.mxu1 }
0x1b06   :  { %v7254_v54 = vmax.f32 %v7239_v41, 0.0  ;;  %v7259_v47 = vpack.c.bf16 %v7253_v61, %v7251_v29  ;;  %v7243_v25 = vadd.f32 %v7242_v36, %v7111_v6 }
0x1b07   :  { %v7244_v23 = vpop.f32.mrf.mxu1 }
0x1b08   :  { %v7260_v40 = vpack.c.bf16 %v7254_v54, %v7252_v12  ;;  %v7245_v7 = vadd.f32 %v7244_v23, %v7115_v53  ;;  %v7255_v39 = vmax.f32 %v7243_v25, 0.0 }
0x1b09   :  { %v7246_v45 = vpop.f32.mrf.mxu1 }
0x1b0a   :  { %v7247_v38 = vadd.f32 %v7246_v45, %v7111_v6  ;;  %7397 = vmatprep.mubr.bf16.mxu0 %v7260_v40  ;;  %v7256_v58 = vmax.f32 %v7245_v7, 0.0 }
0x1b0b   :  { %v7248_v49 = vpop.f32.mrf.mxu1  ;;  %7398 = vmatmul.mubr.bf16.vlgmr.msra.gmra.mxu0 %v7259_v47 }
0x1b0c   :  { %v7249_v2 = vadd.f32 %v7248_v49, %v7115_v53  ;;  %v7257_v62 = vmax.f32 %v7247_v38, 0.0  ;;  %v7482_v53 = vld [vmem:[%s12904_s9] sm:$0xff] }
0x1b0e   :  { %v7258_v48 = vmax.f32 %v7249_v2, 0.0  ;;  %v7261_v21 = vpack.c.bf16 %v7257_v62, %v7255_v39 }
0x1b10   :  { %v7262_v42 = vpack.c.bf16 %v7258_v48, %v7256_v58 }
0x1b12   :  { %7405 = vmatprep.mubr.bf16.mxu0 %v7262_v42 }
0x1b13   :  { %7406 = vmatmul.mubr.bf16.gmra.mxu0 %v7261_v21 }
0x1bcb   :  { %v8698_v63 = vpop.f32.mrf.mxu0 }
0x1bcd   :  { %v8699_v34 = vpop.f32.mrf.mxu0 }
0x1bce   :  { %v8700_v4 = vadd.f32 %v8699_v34, %v8698_v63 }
0x1bcf   :  { %v8701_v15 = vpop.f32.mrf.mxu0 }
0x1bd0   :  { %v7400_v60 = vadd.f32 %v8700_v4, %v8321_v33 }
0x1bd1   :  { %v8702_v44 = vpop.f32.mrf.mxu0 }
0x1bd2   :  { %v8703_v52 = vadd.f32 %v8702_v44, %v8701_v15  ;;  %v7414_v37 = vadd.f32 %v7400_v60, %v12839_v8 }
0x1bd3   :  { %v8704_v10 = vpop.f32.mrf.mxu0 }
0x1bd4   :  { %v7403_v22 = vadd.f32 %v8703_v52, %v8321_v33  ;;  %7418 = vadd.xlane.f32.xlu0 %v7414_v37 }
0x1bd5   :  { %v8705_v18 = vpop.f32.mrf.mxu0 }
0x1bd6   :  { %v8706_v26 = vadd.f32 %v8705_v18, %v8704_v10  ;;  %v7415_v16 = vadd.f32 %v7403_v22, %v12841_v9 }
0x1bd7   :  { %v8707_v24 = vpop.f32.mrf.mxu0 }
0x1bd8   :  { %v7408_v27 = vadd.f32 %v8706_v26, %v8321_v33  ;;  %7420 = vadd.xlane.f32.xlu1 %v7415_v16 }
0x1bd9   :  { %v8708_v31 = vpop.f32.mrf.mxu0 }
0x1bda   :  { %v8709_v46 = vadd.f32 %v8708_v31, %v8707_v24  ;;  %v7416_v3 = vadd.f32 %v7408_v27, %v12850_v19 }
0x1bdc   :  { %v7411_v13 = vadd.f32 %v8709_v46, %v8321_v33  ;;  %7422 = vadd.xlane.f32.xlu0 %v7416_v3 }
0x1bde   :  { %v7417_v57 = vadd.f32 %v7411_v13, %v12848_v55  ;;  %v7483_v55 = vld [vmem:[%s12904_s9 + $0x8] sm:$0xff] }
0x1be0   :  { %7424 = vadd.xlane.f32.xlu1 %v7417_v57 }
0x1c5d   :  { %v7419_v8 = vpop.xlane.xlu0 %7418 }
0x1c5e   :  { %v7426_v0 = vmul.f32 0.0078125, %v7419_v8 }
0x1c60   :  { %v7430_v43 = vsub.f32 %v7414_v37, %v7426_v0 }
0x1c61   :  { %v7421_v28 = vpop.xlane.xlu1 %7420 }
0x1c62   :  { %v7427_v5 = vmul.f32 0.0078125, %v7421_v28  ;;  %v7434_v11 = vmul.f32 %v7430_v43, %v7430_v43 }
0x1c64   :  { %v7431_v17 = vsub.f32 %v7415_v16, %v7427_v5  ;;  %7438 = vadd.xlane.f32.xlu0 %v7434_v11 }
0x1c65   :  { %v7423_v9 = vpop.xlane.xlu0 %7422 }
0x1c66   :  { %v7428_v51 = vmul.f32 0.0078125, %v7423_v9  ;;  %v7435_v35 = vmul.f32 %v7431_v17, %v7431_v17 }
0x1c68   :  { %v12866_v59 = vsub.f32 %v7416_v3, %v7428_v51  ;;  %7440 = vadd.xlane.f32.xlu1 %v7435_v35 }
0x1c69   :  { %v7425_v6 = vpop.xlane.xlu1 %7424 }
0x1c6a   :  { %v7436_v19 = vmul.f32 %v12866_v59, %v12866_v59  ;;  %v7429_v30 = vmul.f32 0.0078125, %v7425_v6 }
0x1c6c   :  { %7442 = vadd.xlane.f32.xlu0 %v7436_v19  ;;  %v7433_v56 = vsub.f32 %v7417_v57, %v7429_v30 }
0x1c6e   :  { %v7437_v32 = vmul.f32 %v7433_v56, %v7433_v56 }
0x1c79   :  { %7493 = vperm.xlu1 %9443, %v7483_v55  }
0x1c7d   :  { %7498 = vperm.xlu1 %9443, %v7484_v50  }
0x1c82   :  { %7488 = vperm.xlu0 %9442, %v7482_v53  }
0x1ca1   :  { %7444 = vadd.xlane.f32.xlu1 %v7437_v32 }
0x1cb2   :  { %7503 = vperm.xlu1 %9443, %v7485_v14  }
0x1cb6   :  { %7531 = vperm.xlu1 %9443, %v8340_v20  }
0x1cb7   :  { %9535 = shalt.err (!%p9532_p4)
}
0x1cb8   :  { %s9602_s6 = smov 128   ;;  %s9603_s28 = smov 8   ;;  %v8338_v58 = vld [vmem:[%s12911_s17 + $0x3] ss:$0 sm:$0xff]  ;;  %vm7538_vm3 = vcmask 1041409  }
0x1cb9   :  { %7563 = dma.vmem_to_hbm [thread:$0]  %s7558_s22, 512, %s12918_s24, [#allocation12], %s9602_s6, %s9602_s6, %s9603_s28  }
0x1cba   :  { %v8339_v21 = vld [vmem:[%s12912_s18 + $0x3] ss:$0 sm:$0xff]  ;;  %s9604_s17 = smov [#allocation9]  }
0x1cbb   :  { %s7548_s18 = sshll.u32 %s9604_s17, 4  ;;  %s7549_s18 = int_to_ptr.vmem [resolvable:$true] %s7548_s18 }
0x1cbc   :  { %s9544_s0 = scalar_lea.vmem %s7549_s18, 32  ;;  %p9549_p6 = scmp.lt.s32.totalorder %s7549_s18, %s7549_s18 }
0x1cbd   :  { %p9545_p5 = scmp.ne.s32.totalorder %s7549_s18, %s9544_s0  ;;  %p9550_p7 = scmp.lt.s32.totalorder %s9544_s0, %s9544_s0 }
0x1cbf   :  { %p9551_p8 = por %p9550_p7, %p9549_p6 }
0x1cc1   :  { %p9552_p9 = pnand %p9551_p8, %p9545_p5 }
0x1ced   :  { %v7439_v41 = vpop.xlane.xlu0 %7438 }
0x1cee   :  { %v7446_v36 = vmul.f32 0.0078125, %v7439_v41 }
0x1cf0   :  { %v7450_v54 = vadd.f32 1e-05, %v7446_v36 }
0x1cf1   :  { %v7441_v1 = vpop.xlane.xlu1 %7440 }
0x1cf2   :  { %v7447_v61 = vmul.f32 0.0078125, %v7441_v1 }
0x1cf4   :  { %v7451_v12 = vadd.f32 1e-05, %v7447_v61 }
0x1cf5   :  { %v7443_v29 = vpop.xlane.xlu0 %7442  ;;  %v7494_v40 = vpop.permute.xlu1 %7493 }
0x1cf6   :  { %9516 = vrsqrt.f32 %v7451_v12  ;;  %v7448_v23 = vmul.f32 0.0078125, %v7443_v29 }
0x1cf7   :  { %9518 = vrsqrt.f32 %v7450_v54 }
0x1cf8   :  { %v7452_v47 = vadd.f32 1e-05, %v7448_v23 }
0x1cf9   :  { %v7499_v7 = vpop.permute.xlu1 %7498 }
0x1cfa   :  { %9520 = vrsqrt.f32 %v7452_v47 }
0x1cfd   :  { %v7489_v4 = vpop.permute.xlu0 %7488 }
0x1d03   :  { %v9517_v45 = vpop.eup %9516 }
0x1d04   :  { %v9519_v38 = vpop.eup %9518  ;;  %v7459_v25 = vmul.f32 %v9517_v45, %v7431_v17 }
0x1d05   :  { %v7458_v2 = vmul.f32 %v9519_v38, %v7430_v43 }
0x1d06   :  { %v7469_v48 = vmul.f32 %v8338_v58, %v7459_v25 }
0x1d07   :  { %v7468_v42 = vmul.f32 %v8338_v58, %v7458_v2  ;;  %v9521_v34 = vpop.eup %9520 }
0x1d08   :  { %v7479_v63 = vadd.f32 %v8339_v21, %v7469_v48  ;;  %v7460_v60 = vmul.f32 %v9521_v34, %v12866_v59 }
0x1d09   :  { %v7478_v33 = vadd.f32 %v8339_v21, %v7468_v42 }
0x1d0a   :  { %v7507_v15 = vmul.f32 %v7494_v40, %v7479_v63  ;;  %v7470_v37 = vmul.f32 %v8338_v58, %v7460_v60 }
0x1d0b   :  { %v7506_v44 = vmul.f32 %v7489_v4, %v7478_v33 }
0x1d0c   :  { %v7480_v26 = vadd.f32 %v8339_v21, %v7470_v37 }
0x1d0d   :  { %v7510_v52 = vadd.f32 %v7507_v15, %v7506_v44 }
0x1d0e   :  { %v7508_v46 = vmul.f32 %v7499_v7, %v7480_v26 }
0x1d0f   :  { %v7511_v22 = vrot.slane %v7510_v52, 4 }
0x1d11   :  { %v7512_v24 = vadd.f32 %v7511_v22, %v7510_v52 }
0x1d13   :  { %v7513_v57 = vrot.slane %v7512_v24, 2 }
0x1d15   :  { %v7514_v43 = vadd.f32 %v7513_v57, %v7512_v24 }
0x1d17   :  { %v7515_v5 = vrot.slane %v7514_v43, 1 }
0x1d19   :  { %v7516_v51 = vadd.f32 %v7515_v5, %v7514_v43 }
0x1d2a   :  { %v7445_v49 = vpop.xlane.xlu1 %7444 }
0x1d2b   :  { %v7449_v62 = vmul.f32 0.0078125, %v7445_v49 }
0x1d2d   :  { %v7453_v39 = vadd.f32 1e-05, %v7449_v62 }
0x1d2e   :  { %v7504_v31 = vpop.permute.xlu1 %7503 }
0x1d2f   :  { %9522 = vrsqrt.f32 %v7453_v39 }
0x1d32   :  { %v7532_v9 = vpop.permute.xlu1 %7531 }
0x1d33   :  { %v7534_v59 = vadd.f32 %v7532_v9, %v7516_v51 }
0x1d3c   :  { %v9523_v10 = vpop.eup %9522 }
0x1d3d   :  { %v7461_v18 = vmul.f32 %v9523_v10, %v7433_v56 }
0x1d3f   :  { %v7471_v16 = vmul.f32 %v8338_v58, %v7461_v18 }
0x1d41   :  { %v7481_v27 = vadd.f32 %v8339_v21, %v7471_v16 }
0x1d43   :  { %v7509_v3 = vmul.f32 %v7504_v31, %v7481_v27 }
0x1d45   :  { %v7517_v13 = vadd.f32 %v7509_v3, %v7508_v46 }
0x1d47   :  { %v7518_v8 = vrot.slane %v7517_v13, 4 }
0x1d49   :  { %v7519_v0 = vadd.f32 %v7518_v8, %v7517_v13 }
0x1d4b   :  { %v7520_v28 = vrot.slane %v7519_v0, 2 }
0x1d4d   :  { %v7521_v11 = vadd.f32 %v7520_v28, %v7519_v0 }
0x1d4f   :  { %v7522_v17 = vrot.slane %v7521_v11, 1 }
0x1d51   :  { %v7523_v35 = vadd.f32 %v7522_v17, %v7521_v11 }
0x1d53   :  { %v7535_v19 = vadd.f32 %v7532_v9, %v7523_v35 }
0x1d55   :  { %v7539_v55 = vsel %vm7538_vm3, %v7535_v19, %v7534_v59 }
0x1d56   :  { %7541 = vst [vmem:[#allocation9] sm:$0x3] %v7539_v55 }
0x1d57   :  { %9555 = shalt.err (!%p9552_p9)
}
0x1d58   :  { %7551 = dma.vmem_to_hbm [thread:$0]  %s7549_s18, 32, %s12917_s23, [#allocation10]  }
0x1d59   :  { %9596 = dma.done.wait [#allocation10], 32  }
0x1d5a   :  { %9597 = vsyncadd [#allocation10], 4294967264 }
0x1d5b   :  { %9598 = dma.done.wait [#allocation12], 512  }
0x1d5c   :  { %9599 = vsyncadd [#allocation12], 4294966784 }
0x1d5d   :  { %7570 = vsyncpa [#allocation10], 1 }
0x1d5e   :  { %7571 = vsyncpa [#allocation12], 1 }
0x1d5f   :  { %7572 = vsyncmov [#allocation6] }
0x1d62   :  { %s7573_s21 = vpop.sfrf %7572 }
0x1d63   :  { %p8341_p10 = scmp.ne.s32.totalorder %s7573_s21, 0 }
0x1d65   :  { %7577 = shalt.err (%p8341_p10)  }
0x1d66   :  { %7579 = vsyncmov [#allocation6 + $0x1] }
0x1d69   :  { %s7580_s30 = vpop.sfrf %7579 }
0x1d6a   :  { %p8342_p11 = scmp.ne.s32.totalorder %s7580_s30, 0 }
0x1d6c   :  { %7584 = shalt.err (%p8342_p11)  }
0x1d6d   :  { %7586 = vsyncmov [#allocation6 + $0x2] }
0x1d70   :  { %s7587_s13 = vpop.sfrf %7586 }
0x1d71   :  { %p8343_p12 = scmp.ne.s32.totalorder %s7587_s13, 0 }
0x1d73   :  { %7591 = shalt.err (%p8343_p12)  }
0x1d74   :  { %7593 = vsyncmov [#allocation6 + $0x3] }
0x1d77   :  { %s7594_s23 = vpop.sfrf %7593 }
0x1d78   :  { %p8344_p13 = scmp.ne.s32.totalorder %s7594_s23, 0 }
0x1d7a   :  { %7598 = shalt.err (%p8344_p13)  }
0x1d7b   :  { %7600 = vsyncmov [#allocation6 + $0x4] }
0x1d7e   :  { %s7601_s14 = vpop.sfrf %7600 }
0x1d7f   :  { %p8345_p0 = scmp.ne.s32.totalorder %s7601_s14, 0 }
0x1d81   :  { %7605 = shalt.err (%p8345_p0)  }
0x1d82   :  { %7607 = vsyncmov [#allocation6 + $0x5] }
0x1d85   :  { %s7608_s15 = vpop.sfrf %7607 }
0x1d86   :  { %p8346_p1 = scmp.ne.s32.totalorder %s7608_s15, 0 }
0x1d88   :  { %7612 = shalt.err (%p8346_p1)  }
0x1d89   :  { %7614 = vsyncmov [#allocation6 + $0x6] }
0x1d8c   :  { %s7615_s3 = vpop.sfrf %7614 }
0x1d8d   :  { %p8347_p2 = scmp.ne.s32.totalorder %s7615_s3, 0 }
0x1d8f   :  { %7619 = shalt.err (%p8347_p2)  }
0x1d90   :  { %7621 = vsyncmov [#allocation6 + $0x7] }
0x1d93   :  { %s7622_s16 = vpop.sfrf %7621 }
0x1d94   :  { %p8348_p3 = scmp.ne.s32.totalorder %s7622_s16, 0 }
0x1d96   :  { %7626 = shalt.err (%p8348_p3)  }
0x1d97   :  { %7628 = vsyncmov [#allocation6 + $0x8] }
0x1d9a   :  { %s7629_s25 = vpop.sfrf %7628 }
0x1d9b   :  { %p8349_p4 = scmp.ne.s32.totalorder %s7629_s25, 0 }
0x1d9d   :  { %7633 = shalt.err (%p8349_p4)  }
0x1d9e   :  { %7635 = vsyncmov [#allocation6 + $0x9] }
0x1da1   :  { %s7636_s10 = vpop.sfrf %7635 }
0x1da2   :  { %p8350_p5 = scmp.ne.s32.totalorder %s7636_s10, 0 }
0x1da4   :  { %7640 = shalt.err (%p8350_p5)  }
0x1da5   :  { %7642 = vsyncmov [#allocation6 + $0xa] }
0x1da8   :  { %s7643_s19 = vpop.sfrf %7642 }
0x1da9   :  { %p8351_p6 = scmp.ne.s32.totalorder %s7643_s19, 0 }
0x1dab   :  { %7647 = shalt.err (%p8351_p6)  }
0x1dac   :  { %7649 = vsyncmov [#allocation6 + $0xb] }
0x1daf   :  { %s7650_s8 = vpop.sfrf %7649 }
0x1db0   :  { %p8352_p7 = scmp.ne.s32.totalorder %s7650_s8, 0 }
0x1db2   :  { %7654 = shalt.err (%p8352_p7)  }
0x1db3   :  { %7656 = vsyncmov [#allocation6 + $0xc] }
0x1db6   :  { %s7657_s4 = vpop.sfrf %7656 }
0x1db7   :  { %p8353_p8 = scmp.ne.s32.totalorder %s7657_s4, 0 }
0x1db9   :  { %7661 = shalt.err (%p8353_p8)  }
0x1dba   :  { %7663 = vsyncmov [#allocation6 + $0xd] }
0x1dbd   :  { %s7664_s5 = vpop.sfrf %7663 }
0x1dbe   :  { %p8354_p9 = scmp.ne.s32.totalorder %s7664_s5, 0 }
0x1dc0   :  { %7668 = shalt.err (%p8354_p9)  }
0x1dc1   :  { %7670 = vsyncmov [#allocation6 + $0xe] }
0x1dc4   :  { %s7671_s20 = vpop.sfrf %7670 }
0x1dc5   :  { %p8355_p10 = scmp.ne.s32.totalorder %s7671_s20, 0 }
0x1dc7   :  { %7675 = shalt.err (%p8355_p10)  }
0x1dc8   :  { %7677 = vsyncmov [#allocation6 + $0xf] }
0x1dcb   :  { %s7678_s26 = vpop.sfrf %7677 }
0x1dcc   :  { %p8356_p11 = scmp.ne.s32.totalorder %s7678_s26, 0 }
0x1dce   :  { %7682 = shalt.err (%p8356_p11)  }

</bundles_post_ra>
